<compile_context>
chip_gen: v5e
topology: v5e:2x2
jax: 0.10.0
libtpu: 0.0.40
codegen_flags: <defaults>
</compile_context>

<pallas_src>
import jax
import jax.numpy as jnp
from jax.experimental import pallas as pl
from jax.experimental.pallas import tpu as pltpu


def manet_kernel(xpad_ref, wf_ref, b_ref, out_ref, acc_ref):
    # xpad_ref: (NB, H+2, W+2, Cin)  bf16  spatially padded NHWC input tile
    # wf_ref  : (3, 3, Cin, Cout)    bf16  fused weights: w1[dy,dx] @ w2 (composed in f32)
    # b_ref   : (1, Cout)            f32   fused bias: b1 @ w2 + b2
    # out_ref : (NB, H, W, Cout)     f32
    # acc_ref : (NB*H*W, Cout)       f32   VMEM accumulator (MRB-friendly on v7x)
    NB, H, W, Cout = out_ref.shape
    Cin = xpad_ref.shape[3]
    M = NB * H * W

    # 3x3 conv with padding=1 as 9 shifted (M, Cin) x (Cin, Cout) MXU matmuls, accumulated
    # in f32 directly in the VMEM scratch (single output tile, no temporaries, no re-slicing
    # of acc -> uninterrupted dot-accumulate chain).
    first = True
    for dy in range(3):
        for dx in range(3):
            patch = xpad_ref[:, dy:dy + H, dx:dx + W, :].reshape(M, Cin)
            contrib = jnp.dot(patch, wf_ref[dy, dx],
                              preferred_element_type=jnp.float32)
            if first:
                acc_ref[...] = contrib          # first tap initializes (saves a zero-fill)
                first = False
            else:
                acc_ref[...] += contrib

    # Fused bias add + lane-dense (Cout = 128) store.
    out_ref[...] = (acc_ref[...] + b_ref[...]).reshape(NB, H, W, Cout).astype(out_ref.dtype)


def manet_forward(x_nchw, w1, b1, w2, b2):
    """x_nchw: (N, 512, H, W); w1: (Cmid, 512, 3, 3); b1: (Cmid,); w2: (Cout, Cmid, 1, 1); b2: (Cout,)."""
    N, Cin, H, W = x_nchw.shape
    Cmid = w1.shape[0]
    Cout = w2.shape[0]

    # ---- batch tiling --------------------------------------------------------------------
    # Grow NB (a power-of-two divisor of N) until M = NB*H*W >= 256 (v6e/v7x MXU rows), then
    # back off once if a half-size step still fills 128 rows, so grid_n >= 2 feeds both v7x
    # TensorCores.  At the test shape (N=2, 8x8) this stays a single step (weight-DMA bound).
    NB = 1
    while NB < N and NB * H * W < 256 and N % (NB * 2) == 0:
        NB *= 2
    if N // NB == 1 and NB > 1 and (NB // 2) * H * W >= 128:
        NB //= 2
    grid_n = N // NB

    cdt = jnp.bfloat16

    # ---- activations: NCHW -> NHWC (channels on lanes), bf16, halo pad --------------------
    # TODO(synk): at large decoder resolutions move the halo handling into the kernel
    # (unpadded-x BlockSpec / H-tile axis with a 1-row halo) and keep activations NHWC
    # end-to-end so these wrapper transpose/pad passes drop out of the hot path.
    x = jnp.transpose(x_nchw, (0, 2, 3, 1)).astype(cdt)
    xpad = jnp.pad(x, ((0, 0), (1, 1), (1, 1), (0, 0)))

    # ---- weights: fuse the 1x1 conv into the 3x3 conv (composed in f32, then bf16) --------
    w1_f32 = jnp.transpose(w1, (2, 3, 1, 0)).astype(jnp.float32)        # (3, 3, Cin, Cmid)
    w2_f32 = jnp.transpose(w2[:, :, 0, 0], (1, 0)).astype(jnp.float32)  # (Cmid, Cout)
    wf = jnp.einsum("yxim,mo->yxio", w1_f32, w2_f32).astype(cdt)        # (3, 3, Cin, Cout)
    b_fold = (b1.astype(jnp.float32) @ w2_f32 + b2.astype(jnp.float32)
              ).reshape(1, Cout).astype(jnp.float32)                    # b1 @ w2 + b2

    # ---- VMEM budget sized from the actual blocks (<= 48 MiB for v7x's 64 MiB/TC) ---------
    xpad_blk = NB * (H + 2) * (W + 2) * Cin * 2      # bf16, double-buffered
    out_blk = NB * H * W * Cout * 4                  # f32, double-buffered
    w_bytes = 9 * Cin * Cout * 2                     # bf16, constant index_map (resident)
    acc_bytes = NB * H * W * Cout * 4
    need = 2 * (xpad_blk + out_blk) + 2 * w_bytes + acc_bytes + Cout * 4
    vmem_limit = int(min(max(4 * need, 16 << 20), 48 << 20))

    out_nhwc = pl.pallas_call(
        manet_kernel,
        out_shape=jax.ShapeDtypeStruct((N, H, W, Cout), x_nchw.dtype),
        grid_spec=pltpu.PrefetchScalarGridSpec(
            num_scalar_prefetch=0,
            grid=(grid_n,),
            in_specs=[
                pl.BlockSpec((NB, H + 2, W + 2, Cin), lambda n: (n, 0, 0, 0)),
                # Constant index_maps -> fused weights / bias stay resident across grid steps.
                pl.BlockSpec((3, 3, Cin, Cout), lambda n: (0, 0, 0, 0)),
                pl.BlockSpec((1, Cout), lambda n: (0, 0)),
            ],
            out_specs=pl.BlockSpec((NB, H, W, Cout), lambda n: (n, 0, 0, 0)),
            scratch_shapes=[pltpu.VMEM((NB * H * W, Cout), jnp.float32)],
        ),
        compiler_params=pltpu.CompilerParams(
            dimension_semantics=("parallel",),
            vmem_limit_bytes=vmem_limit,
        ),
    )(xpad, wf, b_fold)

    return jnp.transpose(out_nhwc, (0, 3, 1, 2))  # back to NCHW


def _reference(x_nchw, w1, b1, w2, b2):
    dn = ("NCHW", "OIHW", "NCHW")
    y = jax.lax.conv_general_dilated(x_nchw, w1, (1, 1), "SAME", dimension_numbers=dn)
    y = y + b1[None, :, None, None]
    y = jax.lax.conv_general_dilated(y, w2, (1, 1), "SAME", dimension_numbers=dn)
    y = y + b2[None, :, None, None]
    return y


if __name__ == "__main__":
    decoder_channels = 256
    pab_channels = 128
    N, Cin, H, W = 2, 512, 8, 8   # input channels fixed at 512 by the module

    key = jax.random.PRNGKey(0)
    kx, k1, kb1, k2, kb2 = jax.random.split(key, 5)

    x = jax.random.normal(kx, (N, Cin, H, W), jnp.float32)
    # Deterministic synthetic parameters (shapes match nn.Conv2d defaults).
    w1 = jax.random.normal(k1, (decoder_channels, Cin, 3, 3), jnp.float32) * 0.02
    b1 = jax.random.normal(kb1, (decoder_channels,), jnp.float32) * 0.02
    w2 = jax.random.normal(k2, (pab_channels, decoder_channels, 1, 1), jnp.float32) * 0.02
    b2 = jax.random.normal(kb2, (pab_channels,), jnp.float32) * 0.02

    out = manet_forward(x, w1, b1, w2, b2)
    out = jax.block_until_ready(out)

    ref = jax.block_until_ready(_reference(x, w1, b1, w2, b2))
    assert out.shape == (N, pab_channels, H, W), out.shape
    max_err = float(jnp.max(jnp.abs(out - ref)))
    assert max_err < 5e-2, f"max abs error too large: {max_err}"

    print("KERNEL_OK")
</pallas_src>

<mosaic_0001>
module attributes {stable_mosaic.version = 11 : i64} {
  func.func @manet_kernel(%arg0: i32, %arg1: memref<2x10x10x512xbf16, #tpu.memory_space<vmem>>, %arg2: memref<3x3x512x128xbf16, #tpu.memory_space<vmem>>, %arg3: memref<1x128xf32, #tpu.memory_space<vmem>>, %arg4: memref<2x8x8x128xf32, #tpu.memory_space<vmem>>, %arg5: memref<128x128xf32, #tpu.memory_space<vmem>>) attributes {dimension_semantics = [#tpu.dimension_semantics<parallel>], iteration_bounds = array<i64: 1>, scalar_prefetch = 0 : i64, scratch_operands = 1 : i64, tpu.core_type = #tpu.core_type<tc>, window_params = [{transform_indices = @transform_0, window_bounds = array<i64: 2, 10, 10, 512>}, {pipeline_mode = #tpu.pipeline_mode<synchronous>, transform_indices = @transform_1, window_bounds = array<i64: 3, 3, 512, 128>}, {pipeline_mode = #tpu.pipeline_mode<synchronous>, transform_indices = @transform_2, window_bounds = array<i64: 1, 128>}, {transform_indices = @transform_3, window_bounds = array<i64: 2, 8, 8, 128>}]} {
    %c0 = arith.constant 0 : index
    %c0_0 = arith.constant 0 : index
    %c0_1 = arith.constant 0 : index
    %c0_2 = arith.constant 0 : index
    %0 = vector.load %arg1[%c0, %c0_0, %c0_1, %c0_2] : memref<2x10x10x512xbf16, #tpu.memory_space<vmem>>, vector<2x8x8x512xbf16>
    %1 = vector.shape_cast %0 : vector<2x8x8x512xbf16> to vector<128x512xbf16>
    %c0_3 = arith.constant 0 : index
    %c0_4 = arith.constant 0 : index
    %c0_5 = arith.constant 0 : index
    %c0_6 = arith.constant 0 : index
    %2 = vector.load %arg2[%c0_3, %c0_4, %c0_5, %c0_6] : memref<3x3x512x128xbf16, #tpu.memory_space<vmem>>, vector<1x1x512x128xbf16>
    %3 = vector.shape_cast %2 : vector<1x1x512x128xbf16> to vector<512x128xbf16>
    %cst = arith.constant dense<0.000000e+00> : vector<128x128xf32>
    %4 = tpu.matmul %1, %3, %cst {dimension_numbers = #tpu.dot_dimension_numbers<[1], [0], [0], [1], [0, 0, 1, 1], [], []>} : vector<128x512xbf16>, vector<512x128xbf16>, vector<128x128xf32> -> vector<128x128xf32>
    %c0_7 = arith.constant 0 : index
    %c0_8 = arith.constant 0 : index
    %5 = vector.load %arg5[%c0_7, %c0_8] : memref<128x128xf32, #tpu.memory_space<vmem>>, vector<128x128xf32>
    tpu.vector_store %arg5[%c0_7, %c0_8], %4 {strides = array<i32>} : memref<128x128xf32, #tpu.memory_space<vmem>>, vector<128x128xf32>,
    %c0_9 = arith.constant 0 : index
    %c0_10 = arith.constant 0 : index
    %c1 = arith.constant 1 : index
    %c0_11 = arith.constant 0 : index
    %6 = vector.load %arg1[%c0_9, %c0_10, %c1, %c0_11] : memref<2x10x10x512xbf16, #tpu.memory_space<vmem>>, vector<2x8x8x512xbf16>
    %7 = vector.shape_cast %6 : vector<2x8x8x512xbf16> to vector<128x512xbf16>
    %c0_12 = arith.constant 0 : index
    %c1_13 = arith.constant 1 : index
    %c0_14 = arith.constant 0 : index
    %c0_15 = arith.constant 0 : index
    %8 = vector.load %arg2[%c0_12, %c1_13, %c0_14, %c0_15] : memref<3x3x512x128xbf16, #tpu.memory_space<vmem>>, vector<1x1x512x128xbf16>
    %9 = vector.shape_cast %8 : vector<1x1x512x128xbf16> to vector<512x128xbf16>
    %cst_16 = arith.constant dense<0.000000e+00> : vector<128x128xf32>
    %10 = tpu.matmul %7, %9, %cst_16 {dimension_numbers = #tpu.dot_dimension_numbers<[1], [0], [0], [1], [0, 0, 1, 1], [], []>} : vector<128x512xbf16>, vector<512x128xbf16>, vector<128x128xf32> -> vector<128x128xf32>
    %c0_17 = arith.constant 0 : index
    %c0_18 = arith.constant 0 : index
    %11 = vector.load %arg5[%c0_17, %c0_18] : memref<128x128xf32, #tpu.memory_space<vmem>>, vector<128x128xf32>
    %12 = arith.addf %11, %10 : vector<128x128xf32>
    %c0_19 = arith.constant 0 : index
    %c0_20 = arith.constant 0 : index
    %13 = vector.load %arg5[%c0_19, %c0_20] : memref<128x128xf32, #tpu.memory_space<vmem>>, vector<128x128xf32>
    tpu.vector_store %arg5[%c0_19, %c0_20], %12 {strides = array<i32>} : memref<128x128xf32, #tpu.memory_space<vmem>>, vector<128x128xf32>,
    %c0_21 = arith.constant 0 : index
    %c0_22 = arith.constant 0 : index
    %c2 = arith.constant 2 : index
    %c0_23 = arith.constant 0 : index
    %14 = vector.load %arg1[%c0_21, %c0_22, %c2, %c0_23] : memref<2x10x10x512xbf16, #tpu.memory_space<vmem>>, vector<2x8x8x512xbf16>
    %15 = vector.shape_cast %14 : vector<2x8x8x512xbf16> to vector<128x512xbf16>
    %c0_24 = arith.constant 0 : index
    %c2_25 = arith.constant 2 : index
    %c0_26 = arith.constant 0 : index
    %c0_27 = arith.constant 0 : index
    %16 = vector.load %arg2[%c0_24, %c2_25, %c0_26, %c0_27] : memref<3x3x512x128xbf16, #tpu.memory_space<vmem>>, vector<1x1x512x128xbf16>
    %17 = vector.shape_cast %16 : vector<1x1x512x128xbf16> to vector<512x128xbf16>
    %cst_28 = arith.constant dense<0.000000e+00> : vector<128x128xf32>
    %18 = tpu.matmul %15, %17, %cst_28 {dimension_numbers = #tpu.dot_dimension_numbers<[1], [0], [0], [1], [0, 0, 1, 1], [], []>} : vector<128x512xbf16>, vector<512x128xbf16>, vector<128x128xf32> -> vector<128x128xf32>
    %c0_29 = arith.constant 0 : index
    %c0_30 = arith.constant 0 : index
    %19 = vector.load %arg5[%c0_29, %c0_30] : memref<128x128xf32, #tpu.memory_space<vmem>>, vector<128x128xf32>
    %20 = arith.addf %19, %18 : vector<128x128xf32>
    %c0_31 = arith.constant 0 : index
    %c0_32 = arith.constant 0 : index
    %21 = vector.load %arg5[%c0_31, %c0_32] : memref<128x128xf32, #tpu.memory_space<vmem>>, vector<128x128xf32>
    tpu.vector_store %arg5[%c0_31, %c0_32], %20 {strides = array<i32>} : memref<128x128xf32, #tpu.memory_space<vmem>>, vector<128x128xf32>,
    %c0_33 = arith.constant 0 : index
    %c1_34 = arith.constant 1 : index
    %c0_35 = arith.constant 0 : index
    %c0_36 = arith.constant 0 : index
    %22 = vector.load %arg1[%c0_33, %c1_34, %c0_35, %c0_36] : memref<2x10x10x512xbf16, #tpu.memory_space<vmem>>, vector<2x8x8x512xbf16>
    %23 = vector.shape_cast %22 : vector<2x8x8x512xbf16> to vector<128x512xbf16>
    %c1_37 = arith.constant 1 : index
    %c0_38 = arith.constant 0 : index
    %c0_39 = arith.constant 0 : index
    %c0_40 = arith.constant 0 : index
    %24 = vector.load %arg2[%c1_37, %c0_38, %c0_39, %c0_40] : memref<3x3x512x128xbf16, #tpu.memory_space<vmem>>, vector<1x1x512x128xbf16>
    %25 = vector.shape_cast %24 : vector<1x1x512x128xbf16> to vector<512x128xbf16>
    %cst_41 = arith.constant dense<0.000000e+00> : vector<128x128xf32>
    %26 = tpu.matmul %23, %25, %cst_41 {dimension_numbers = #tpu.dot_dimension_numbers<[1], [0], [0], [1], [0, 0, 1, 1], [], []>} : vector<128x512xbf16>, vector<512x128xbf16>, vector<128x128xf32> -> vector<128x128xf32>
    %c0_42 = arith.constant 0 : index
    %c0_43 = arith.constant 0 : index
    %27 = vector.load %arg5[%c0_42, %c0_43] : memref<128x128xf32, #tpu.memory_space<vmem>>, vector<128x128xf32>
    %28 = arith.addf %27, %26 : vector<128x128xf32>
    %c0_44 = arith.constant 0 : index
    %c0_45 = arith.constant 0 : index
    %29 = vector.load %arg5[%c0_44, %c0_45] : memref<128x128xf32, #tpu.memory_space<vmem>>, vector<128x128xf32>
    tpu.vector_store %arg5[%c0_44, %c0_45], %28 {strides = array<i32>} : memref<128x128xf32, #tpu.memory_space<vmem>>, vector<128x128xf32>,
    %c0_46 = arith.constant 0 : index
    %c1_47 = arith.constant 1 : index
    %c1_48 = arith.constant 1 : index
    %c0_49 = arith.constant 0 : index
    %30 = vector.load %arg1[%c0_46, %c1_47, %c1_48, %c0_49] : memref<2x10x10x512xbf16, #tpu.memory_space<vmem>>, vector<2x8x8x512xbf16>
    %31 = vector.shape_cast %30 : vector<2x8x8x512xbf16> to vector<128x512xbf16>
    %c1_50 = arith.constant 1 : index
    %c1_51 = arith.constant 1 : index
    %c0_52 = arith.constant 0 : index
    %c0_53 = arith.constant 0 : index
    %32 = vector.load %arg2[%c1_50, %c1_51, %c0_52, %c0_53] : memref<3x3x512x128xbf16, #tpu.memory_space<vmem>>, vector<1x1x512x128xbf16>
    %33 = vector.shape_cast %32 : vector<1x1x512x128xbf16> to vector<512x128xbf16>
    %cst_54 = arith.constant dense<0.000000e+00> : vector<128x128xf32>
    %34 = tpu.matmul %31, %33, %cst_54 {dimension_numbers = #tpu.dot_dimension_numbers<[1], [0], [0], [1], [0, 0, 1, 1], [], []>} : vector<128x512xbf16>, vector<512x128xbf16>, vector<128x128xf32> -> vector<128x128xf32>
    %c0_55 = arith.constant 0 : index
    %c0_56 = arith.constant 0 : index
    %35 = vector.load %arg5[%c0_55, %c0_56] : memref<128x128xf32, #tpu.memory_space<vmem>>, vector<128x128xf32>
    %36 = arith.addf %35, %34 : vector<128x128xf32>
    %c0_57 = arith.constant 0 : index
    %c0_58 = arith.constant 0 : index
    %37 = vector.load %arg5[%c0_57, %c0_58] : memref<128x128xf32, #tpu.memory_space<vmem>>, vector<128x128xf32>
    tpu.vector_store %arg5[%c0_57, %c0_58], %36 {strides = array<i32>} : memref<128x128xf32, #tpu.memory_space<vmem>>, vector<128x128xf32>,
    %c0_59 = arith.constant 0 : index
    %c1_60 = arith.constant 1 : index
    %c2_61 = arith.constant 2 : index
    %c0_62 = arith.constant 0 : index
    %38 = vector.load %arg1[%c0_59, %c1_60, %c2_61, %c0_62] : memref<2x10x10x512xbf16, #tpu.memory_space<vmem>>, vector<2x8x8x512xbf16>
    %39 = vector.shape_cast %38 : vector<2x8x8x512xbf16> to vector<128x512xbf16>
    %c1_63 = arith.constant 1 : index
    %c2_64 = arith.constant 2 : index
    %c0_65 = arith.constant 0 : index
    %c0_66 = arith.constant 0 : index
    %40 = vector.load %arg2[%c1_63, %c2_64, %c0_65, %c0_66] : memref<3x3x512x128xbf16, #tpu.memory_space<vmem>>, vector<1x1x512x128xbf16>
    %41 = vector.shape_cast %40 : vector<1x1x512x128xbf16> to vector<512x128xbf16>
    %cst_67 = arith.constant dense<0.000000e+00> : vector<128x128xf32>
    %42 = tpu.matmul %39, %41, %cst_67 {dimension_numbers = #tpu.dot_dimension_numbers<[1], [0], [0], [1], [0, 0, 1, 1], [], []>} : vector<128x512xbf16>, vector<512x128xbf16>, vector<128x128xf32> -> vector<128x128xf32>
    %c0_68 = arith.constant 0 : index
    %c0_69 = arith.constant 0 : index
    %43 = vector.load %arg5[%c0_68, %c0_69] : memref<128x128xf32, #tpu.memory_space<vmem>>, vector<128x128xf32>
    %44 = arith.addf %43, %42 : vector<128x128xf32>
    %c0_70 = arith.constant 0 : index
    %c0_71 = arith.constant 0 : index
    %45 = vector.load %arg5[%c0_70, %c0_71] : memref<128x128xf32, #tpu.memory_space<vmem>>, vector<128x128xf32>
    tpu.vector_store %arg5[%c0_70, %c0_71], %44 {strides = array<i32>} : memref<128x128xf32, #tpu.memory_space<vmem>>, vector<128x128xf32>,
    %c0_72 = arith.constant 0 : index
    %c2_73 = arith.constant 2 : index
    %c0_74 = arith.constant 0 : index
    %c0_75 = arith.constant 0 : index
    %46 = vector.load %arg1[%c0_72, %c2_73, %c0_74, %c0_75] : memref<2x10x10x512xbf16, #tpu.memory_space<vmem>>, vector<2x8x8x512xbf16>
    %47 = vector.shape_cast %46 : vector<2x8x8x512xbf16> to vector<128x512xbf16>
    %c2_76 = arith.constant 2 : index
    %c0_77 = arith.constant 0 : index
    %c0_78 = arith.constant 0 : index
    %c0_79 = arith.constant 0 : index
    %48 = vector.load %arg2[%c2_76, %c0_77, %c0_78, %c0_79] : memref<3x3x512x128xbf16, #tpu.memory_space<vmem>>, vector<1x1x512x128xbf16>
    %49 = vector.shape_cast %48 : vector<1x1x512x128xbf16> to vector<512x128xbf16>
    %cst_80 = arith.constant dense<0.000000e+00> : vector<128x128xf32>
    %50 = tpu.matmul %47, %49, %cst_80 {dimension_numbers = #tpu.dot_dimension_numbers<[1], [0], [0], [1], [0, 0, 1, 1], [], []>} : vector<128x512xbf16>, vector<512x128xbf16>, vector<128x128xf32> -> vector<128x128xf32>
    %c0_81 = arith.constant 0 : index
    %c0_82 = arith.constant 0 : index
    %51 = vector.load %arg5[%c0_81, %c0_82] : memref<128x128xf32, #tpu.memory_space<vmem>>, vector<128x128xf32>
    %52 = arith.addf %51, %50 : vector<128x128xf32>
    %c0_83 = arith.constant 0 : index
    %c0_84 = arith.constant 0 : index
    %53 = vector.load %arg5[%c0_83, %c0_84] : memref<128x128xf32, #tpu.memory_space<vmem>>, vector<128x128xf32>
    tpu.vector_store %arg5[%c0_83, %c0_84], %52 {strides = array<i32>} : memref<128x128xf32, #tpu.memory_space<vmem>>, vector<128x128xf32>,
    %c0_85 = arith.constant 0 : index
    %c2_86 = arith.constant 2 : index
    %c1_87 = arith.constant 1 : index
    %c0_88 = arith.constant 0 : index
    %54 = vector.load %arg1[%c0_85, %c2_86, %c1_87, %c0_88] : memref<2x10x10x512xbf16, #tpu.memory_space<vmem>>, vector<2x8x8x512xbf16>
    %55 = vector.shape_cast %54 : vector<2x8x8x512xbf16> to vector<128x512xbf16>
    %c2_89 = arith.constant 2 : index
    %c1_90 = arith.constant 1 : index
    %c0_91 = arith.constant 0 : index
    %c0_92 = arith.constant 0 : index
    %56 = vector.load %arg2[%c2_89, %c1_90, %c0_91, %c0_92] : memref<3x3x512x128xbf16, #tpu.memory_space<vmem>>, vector<1x1x512x128xbf16>
    %57 = vector.shape_cast %56 : vector<1x1x512x128xbf16> to vector<512x128xbf16>
    %cst_93 = arith.constant dense<0.000000e+00> : vector<128x128xf32>
    %58 = tpu.matmul %55, %57, %cst_93 {dimension_numbers = #tpu.dot_dimension_numbers<[1], [0], [0], [1], [0, 0, 1, 1], [], []>} : vector<128x512xbf16>, vector<512x128xbf16>, vector<128x128xf32> -> vector<128x128xf32>
    %c0_94 = arith.constant 0 : index
    %c0_95 = arith.constant 0 : index
    %59 = vector.load %arg5[%c0_94, %c0_95] : memref<128x128xf32, #tpu.memory_space<vmem>>, vector<128x128xf32>
    %60 = arith.addf %59, %58 : vector<128x128xf32>
    %c0_96 = arith.constant 0 : index
    %c0_97 = arith.constant 0 : index
    %61 = vector.load %arg5[%c0_96, %c0_97] : memref<128x128xf32, #tpu.memory_space<vmem>>, vector<128x128xf32>
    tpu.vector_store %arg5[%c0_96, %c0_97], %60 {strides = array<i32>} : memref<128x128xf32, #tpu.memory_space<vmem>>, vector<128x128xf32>,
    %c0_98 = arith.constant 0 : index
    %c2_99 = arith.constant 2 : index
    %c2_100 = arith.constant 2 : index
    %c0_101 = arith.constant 0 : index
    %62 = vector.load %arg1[%c0_98, %c2_99, %c2_100, %c0_101] : memref<2x10x10x512xbf16, #tpu.memory_space<vmem>>, vector<2x8x8x512xbf16>
    %63 = vector.shape_cast %62 : vector<2x8x8x512xbf16> to vector<128x512xbf16>
    %c2_102 = arith.constant 2 : index
    %c2_103 = arith.constant 2 : index
    %c0_104 = arith.constant 0 : index
    %c0_105 = arith.constant 0 : index
    %64 = vector.load %arg2[%c2_102, %c2_103, %c0_104, %c0_105] : memref<3x3x512x128xbf16, #tpu.memory_space<vmem>>, vector<1x1x512x128xbf16>
    %65 = vector.shape_cast %64 : vector<1x1x512x128xbf16> to vector<512x128xbf16>
    %cst_106 = arith.constant dense<0.000000e+00> : vector<128x128xf32>
    %66 = tpu.matmul %63, %65, %cst_106 {dimension_numbers = #tpu.dot_dimension_numbers<[1], [0], [0], [1], [0, 0, 1, 1], [], []>} : vector<128x512xbf16>, vector<512x128xbf16>, vector<128x128xf32> -> vector<128x128xf32>
    %c0_107 = arith.constant 0 : index
    %c0_108 = arith.constant 0 : index
    %67 = vector.load %arg5[%c0_107, %c0_108] : memref<128x128xf32, #tpu.memory_space<vmem>>, vector<128x128xf32>
    %68 = arith.addf %67, %66 : vector<128x128xf32>
    %c0_109 = arith.constant 0 : index
    %c0_110 = arith.constant 0 : index
    %69 = vector.load %arg5[%c0_109, %c0_110] : memref<128x128xf32, #tpu.memory_space<vmem>>, vector<128x128xf32>
    tpu.vector_store %arg5[%c0_109, %c0_110], %68 {strides = array<i32>} : memref<128x128xf32, #tpu.memory_space<vmem>>, vector<128x128xf32>,
    %c0_111 = arith.constant 0 : index
    %c0_112 = arith.constant 0 : index
    %70 = vector.load %arg5[%c0_111, %c0_112] : memref<128x128xf32, #tpu.memory_space<vmem>>, vector<128x128xf32>
    %c0_113 = arith.constant 0 : index
    %c0_114 = arith.constant 0 : index
    %71 = vector.load %arg3[%c0_113, %c0_114] : memref<1x128xf32, #tpu.memory_space<vmem>>, vector<1x128xf32>
    %72 = vector.broadcast %71 : vector<1x128xf32> to vector<128x128xf32>
    %73 = arith.addf %70, %72 : vector<128x128xf32>
    %74 = vector.shape_cast %73 : vector<128x128xf32> to vector<2x8x8x128xf32>
    %c0_115 = arith.constant 0 : index
    %c0_116 = arith.constant 0 : index
    %c0_117 = arith.constant 0 : index
    %c0_118 = arith.constant 0 : index
    %75 = vector.load %arg4[%c0_115, %c0_116, %c0_117, %c0_118] : memref<2x8x8x128xf32, #tpu.memory_space<vmem>>, vector<2x8x8x128xf32>
    tpu.vector_store %arg4[%c0_115, %c0_116, %c0_117, %c0_118], %74 {strides = array<i32>} : memref<2x8x8x128xf32, #tpu.memory_space<vmem>>, vector<2x8x8x128xf32>,
    return
  }
  func.func @transform_0(%arg0: i32) -> (i32, i32, i32, i32) {
    %c0_i32 = arith.constant 0 : i32
    %c0_i32_0 = arith.constant 0 : i32
    %c0_i32_1 = arith.constant 0 : i32
    %c0_i32_2 = arith.constant 0 : i32
    return %arg0, %c0_i32, %c0_i32_0, %c0_i32_1 : i32, i32, i32, i32
  }
  func.func @transform_1(%arg0: i32) -> (i32, i32, i32, i32) {
    %c0_i32 = arith.constant 0 : i32
    %c0_i32_0 = arith.constant 0 : i32
    %c0_i32_1 = arith.constant 0 : i32
    %c0_i32_2 = arith.constant 0 : i32
    %c0_i32_3 = arith.constant 0 : i32
    return %c0_i32, %c0_i32_0, %c0_i32_1, %c0_i32_2 : i32, i32, i32, i32
  }
  func.func @transform_2(%arg0: i32) -> (i32, i32) {
    %c0_i32 = arith.constant 0 : i32
    %c0_i32_0 = arith.constant 0 : i32
    %c0_i32_1 = arith.constant 0 : i32
    return %c0_i32, %c0_i32_0 : i32, i32
  }
  func.func @transform_3(%arg0: i32) -> (i32, i32, i32, i32) {
    %c0_i32 = arith.constant 0 : i32
    %c0_i32_0 = arith.constant 0 : i32
    %c0_i32_1 = arith.constant 0 : i32
    %c0_i32_2 = arith.constant 0 : i32
    return %arg0, %c0_i32, %c0_i32_0, %c0_i32_1 : i32, i32, i32, i32
  }
}

</mosaic_0001>

<bundles_post_ra>
// kernel: tpu_custom_call.1
= control target key start
LH: loop header
LB: loop body
LE: loop exit
PB: predicated region body
PF: predicated region fallthrough
CT: control target
= control target key end

     0   :  { %8 = vsyncpa [#allocation4], 0  ;;  %s13293_s0 = inlined_call_operand.vmem [shape: bf16[2,10,10,512], index: 0, kind: input, shape index: {}]   ;;  %s13294_s1 = inlined_call_operand.hbm [shape: bf16[3,3,512,128], index: 1, kind: input, shape index: {}]   ;;  %s13295_s2 = inlined_call_operand.hbm [shape: f32[1,128], index: 2, kind: input, shape index: {}]   ;;  %s13296_s3 = inlined_call_operand.hbm [shape: f32[2,8,8,128], index: 3, kind: output, shape index: {}]  }
   0x1   :  { %9 = vsyncpa [#allocation7], 0 }
   0x2   :  { %10 = vsyncpa [#allocation5], 0  ;;  %s17_s14 = sshll.u32 %s13294_s1, 4  ;;  %s10671_s15 = smov [#allocation3]   ;;  %s18_s14 = int_to_ptr.hbm [resolvable:$true] %s17_s14 }
   0x3   :  { %s19_s16 = sshll.u32 %s10671_s15, 4  ;;  %s31_s19 = sshll.u32 %s13295_s2, 4  ;;  %s20_s16 = int_to_ptr.vmem [resolvable:$true] %s19_s16  ;;  %s32_s19 = int_to_ptr.hbm [resolvable:$true] %s31_s19 }
   0x4   :  { %s10672_s20 = smov 64   ;;  %s10673_s21 = smov 4  }
   0x5   :  { %25 = dma.hbm_to_vmem [thread:$0]  %s18_s14, 36864, %s20_s16, [#allocation4], %s10672_s20, %s10672_s20, %s10673_s21  }
   0x6   :  { %s10674_s22 = smov [#allocation6]  }
   0x7   :  { %s33_s23 = sshll.u32 %s10674_s22, 4  ;;  %s34_s23 = int_to_ptr.vmem [resolvable:$true] %s33_s23 }
   0x8   :  { %36 = dma.hbm_to_vmem [thread:$0]  %s32_s19, 16, %s34_s23, [#allocation7]  }
   0x9   :  { %10665 = dma.done.wait [#allocation4], 36864  }
   0xa   :  { %10666 = vsyncadd [#allocation4], 4294930432 }
   0xb   :  { %10667 = dma.done.wait [#allocation7], 16  }
   0xc   :  { %10668 = vsyncadd [#allocation7], 4294967280  ;;  %v10240_v0 = vld [vmem:[#allocation3 + $0x38] sm:$0xff]  ;;  %v10239_v4 = vld [vmem:[#allocation3 + $0x30] sm:$0xff]  ;;  %vm769_vm0 = vsmask.f32 3328 }
   0xd   :  { %v10248_v1 = vld [vmem:[#allocation3 + $0x78] sm:$0xff]  ;;  %493 = vmatpush.bf16.msra.mxu0 %v10240_v0  ;;  %v10247_v5 = vld [vmem:[#allocation3 + $0x70] sm:$0xff]  ;;  %v10238_v8 = vld [vmem:[#allocation3 + $0x28] sm:$0xff]  ;;  %vm770_vm1 = vsmask.f32 7440  ;;  %vm1977_vm3 = vcmask 1042432  }
   0xe   :  { %v10256_v2 = vld [vmem:[#allocation3 + $0xb8] sm:$0xff]  ;;  %542 = vmatpush.bf16.msra.mxu1 %v10248_v1  ;;  %v10255_v6 = vld [vmem:[#allocation3 + $0xb0] sm:$0xff]  ;;  %v10246_v9 = vld [vmem:[#allocation3 + $0x68] sm:$0xff]  ;;  %vm1978_vm4 = vcmask 1046532   ;;  %s8235_s19 = sshll.u32 %s13296_s3, 4  ;;  %s10676_s20 = smov 128   ;;  %s8236_s19 = int_to_ptr.hbm [resolvable:$true] %s8235_s19 }
   0xf   :  { %v10264_v3 = vld [vmem:[#allocation3 + $0xf8] sm:$0xff]  ;;  %591 = vmatpush.bf16.msra.mxu2 %v10256_v2  ;;  %v10263_v7 = vld [vmem:[#allocation3 + $0xf0] sm:$0xff]  ;;  %v10254_v10 = vld [vmem:[#allocation3 + $0xa8] sm:$0xff]  ;;  %s10677_s21 = smov 8  }
  0x10   :  { %640 = vmatpush.bf16.msra.mxu3 %v10264_v3  ;;  %v10262_v11 = vld [vmem:[#allocation3 + $0xe8] sm:$0xff]  ;;  %v10237_v12 = vld [vmem:[#allocation3 + $0x20] sm:$0xff]  ;;  %v10236_v16 = vld [vmem:[#allocation3 + $0x18] sm:$0xff] }
  0x11   :  { %494 = vmatpush.bf16.msra.mxu0 %v10239_v4  ;;  %v10245_v13 = vld [vmem:[#allocation3 + $0x60] sm:$0xff]  ;;  %v10244_v17 = vld [vmem:[#allocation3 + $0x58] sm:$0xff]  ;;  %v10235_v20 = vld [vmem:[#allocation3 + $0x10] sm:$0xff] }
  0x12   :  { %543 = vmatpush.bf16.msra.mxu1 %v10247_v5  ;;  %v10253_v14 = vld [vmem:[#allocation3 + $0xa0] sm:$0xff]  ;;  %v10252_v18 = vld [vmem:[#allocation3 + $0x98] sm:$0xff]  ;;  %v10243_v21 = vld [vmem:[#allocation3 + $0x50] sm:$0xff] }
  0x13   :  { %592 = vmatpush.bf16.msra.mxu2 %v10255_v6  ;;  %v10261_v15 = vld [vmem:[#allocation3 + $0xe0] sm:$0xff]  ;;  %v10260_v19 = vld [vmem:[#allocation3 + $0xd8] sm:$0xff]  ;;  %v10251_v22 = vld [vmem:[#allocation3 + $0x90] sm:$0xff] }
  0x14   :  { %641 = vmatpush.bf16.msra.mxu3 %v10263_v7  ;;  %v10259_v23 = vld [vmem:[#allocation3 + $0xd0] sm:$0xff]  ;;  %v10234_v24 = vld [vmem:[#allocation3 + $0x8] sm:$0xff]  ;;  %v10233_v28 = vld [vmem:[#allocation3] sm:$0xff] }
  0x15   :  { %495 = vmatpush.bf16.msra.mxu0 %v10238_v8  ;;  %v10242_v25 = vld [vmem:[#allocation3 + $0x48] sm:$0xff]  ;;  %v10241_v29 = vld [vmem:[#allocation3 + $0x40] sm:$0xff]  ;;  %v10288_v40 = vld [vmem:[#allocation3 + $0x1b8] sm:$0xff] }
  0x16   :  { %544 = vmatpush.bf16.msra.mxu1 %v10246_v9  ;;  %v10250_v26 = vld [vmem:[#allocation3 + $0x88] sm:$0xff]  ;;  %v10249_v30 = vld [vmem:[#allocation3 + $0x80] sm:$0xff]  ;;  %v10296_v41 = vld [vmem:[#allocation3 + $0x1f8] sm:$0xff] }
  0x17   :  { %593 = vmatpush.bf16.msra.mxu2 %v10254_v10  ;;  %v10258_v27 = vld [vmem:[#allocation3 + $0xc8] sm:$0xff]  ;;  %v10257_v31 = vld [vmem:[#allocation3 + $0xc0] sm:$0xff]  ;;  %v10272_v46 = vld [vmem:[#allocation3 + $0x138] sm:$0xff] }
  0x18   :  { %642 = vmatpush.bf16.msra.mxu3 %v10262_v11  ;;  %v8251_v32 = vld [vmem:[%s13293_s0] sm:$0xf]  ;;  %v10201_v34 = vld [vmem:[%s13293_s0 + $0x4] sm:$0xf]  ;;  %v8259_v36 = vld [vmem:[%s13293_s0 + $0x8] sm:$0xf] }
  0x19   :  { %496 = vmatpush.bf16.msra.mxu0 %v10237_v12  ;;  %v10203_v33 = vld [vmem:[%s13293_s0 + $0x1c] sm:$0xf0]  ;;  %v8253_v35 = vld [vmem:[%s13293_s0 + $0x20] sm:$0xf0]  ;;  %v10204_v37 = vld [vmem:[%s13293_s0 + $0x24] sm:$0xf0] }
  0x1a   :  { %545 = vmatpush.bf16.msra.mxu1 %v10245_v13  ;;  %v10202_v38 = vld [vmem:[%s13293_s0 + $0xc] sm:$0xf]  ;;  %v8252_v42 = vor.u32 %v10203_v33, %v8251_v32  ;;  %v8256_v43 = vor.u32 %v10201_v34, %v8253_v35  ;;  %v8260_v44 = vor.u32 %v10204_v37, %v8259_v36  ;;  %v10280_v47 = vld [vmem:[#allocation3 + $0x178] sm:$0xff]  ;;  %v10287_v48 = vld [vmem:[#allocation3 + $0x1b0] sm:$0xff] }
  0x1b   :  { %594 = vmatpush.bf16.msra.mxu2 %v10253_v14  ;;  %v8261_v39 = vld [vmem:[%s13293_s0 + $0x28] sm:$0xf0]  ;;  %v10295_v49 = vld [vmem:[#allocation3 + $0x1f0] sm:$0xff]  ;;  %v8267_v56 = vld [vmem:[%s13293_s0 + $0x40] sm:$0xf] }
  0x1c   :  { %643 = vmatpush.bf16.msra.mxu3 %v10261_v15  ;;  %v8264_v45 = vor.u32 %v10202_v38, %v8261_v39  ;;  %v10271_v50 = vld [vmem:[#allocation3 + $0x130] sm:$0xff]  ;;  %v10286_v52 = vld [vmem:[#allocation3 + $0x1a8] sm:$0xff]  ;;  %v10207_v57 = vld [vmem:[%s13293_s0 + $0x5c] sm:$0xf0] }
  0x1d   :  { %497 = vmatpush.bf16.msra.mxu0 %v10236_v16  ;;  %v10279_v51 = vld [vmem:[#allocation3 + $0x170] sm:$0xff]  ;;  %v10294_v53 = vld [vmem:[#allocation3 + $0x1e8] sm:$0xff]  ;;  %v10205_v58 = vld [vmem:[%s13293_s0 + $0x44] sm:$0xf]  ;;  %v8268_v0 = vor.u32 %v10207_v57, %v8267_v56 }
  0x1e   :  { %546 = vmatpush.bf16.msra.mxu1 %v10244_v17  ;;  %v10270_v54 = vld [vmem:[#allocation3 + $0x128] sm:$0xff]  ;;  %v8269_v59 = vld [vmem:[%s13293_s0 + $0x60] sm:$0xf0]  ;;  %v8283_v8 = vld [vmem:[%s13293_s0 + $0x80] sm:$0xf] }
  0x1f   :  { %595 = vmatpush.bf16.msra.mxu2 %v10252_v18  ;;  %v10278_v55 = vld [vmem:[#allocation3 + $0x168] sm:$0xff]  ;;  %v8272_v1 = vor.u32 %v10205_v58, %v8269_v59  ;;  %v10285_v4 = vld [vmem:[#allocation3 + $0x1a0] sm:$0xff]  ;;  %v10283_v36 = vld [vmem:[#allocation3 + $0x190] sm:$0xff] }
  0x20   :  { %644 = vmatpush.bf16.msra.mxu3 %v10260_v19  ;;  %v8275_v60 = vld [vmem:[%s13293_s0 + $0x48] sm:$0xf]  ;;  %v10206_v62 = vld [vmem:[%s13293_s0 + $0x4c] sm:$0xf]  ;;  %v10293_v5 = vld [vmem:[#allocation3 + $0x1e0] sm:$0xff] }
  0x21   :  { %498 = vmatpush.bf16.msra.mxu0 %v10235_v20  ;;  %v10208_v61 = vld [vmem:[%s13293_s0 + $0x64] sm:$0xf0]  ;;  %v8277_v63 = vld [vmem:[%s13293_s0 + $0x68] sm:$0xf0]  ;;  %v10269_v6 = vld [vmem:[#allocation3 + $0x120] sm:$0xff] }
  0x22   :  { %547 = vmatpush.bf16.msra.mxu1 %v10243_v21  ;;  %v8276_v2 = vor.u32 %v10208_v61, %v8275_v60  ;;  %v8280_v3 = vor.u32 %v10206_v62, %v8277_v63  ;;  %v10277_v7 = vld [vmem:[#allocation3 + $0x160] sm:$0xff]  ;;  %v8291_v12 = vld [vmem:[%s13293_s0 + $0x88] sm:$0xf]  ;;  %v10210_v14 = vld [vmem:[%s13293_s0 + $0x8c] sm:$0xf] }
  0x23   :  { %596 = vmatpush.bf16.msra.mxu2 %v10251_v22  ;;  %v10211_v9 = vld [vmem:[%s13293_s0 + $0x9c] sm:$0xf0]  ;;  %v10209_v10 = vld [vmem:[%s13293_s0 + $0x84] sm:$0xf]  ;;  %v10212_v13 = vld [vmem:[%s13293_s0 + $0xa4] sm:$0xf0] }
  0x24   :  { %645 = vmatpush.bf16.msra.mxu3 %v10259_v23  ;;  %v8285_v11 = vld [vmem:[%s13293_s0 + $0xa0] sm:$0xf0]  ;;  %v8293_v15 = vld [vmem:[%s13293_s0 + $0xa8] sm:$0xf0]  ;;  %v8284_v16 = vor.u32 %v10211_v9, %v8283_v8  ;;  %v8292_v18 = vor.u32 %v10212_v13, %v8291_v12  ;;  %v10284_v20 = vld [vmem:[#allocation3 + $0x198] sm:$0xff] }
  0x25   :  { %499 = vmatpush.bf16.msra.mxu0 %v10234_v24  ;;  %v8288_v17 = vor.u32 %v10209_v10, %v8285_v11  ;;  %v8296_v19 = vor.u32 %v10210_v14, %v8293_v15  ;;  %v10292_v21 = vld [vmem:[#allocation3 + $0x1d8] sm:$0xff]  ;;  %v8299_v24 = vld [vmem:[%s13293_s0 + $0xc0] sm:$0xf]  ;;  %v10291_v37 = vld [vmem:[#allocation3 + $0x1d0] sm:$0xff] }
  0x26   :  { %548 = vmatpush.bf16.msra.mxu1 %v10242_v25  ;;  %v10268_v22 = vld [vmem:[#allocation3 + $0x118] sm:$0xff]  ;;  %v10215_v25 = vld [vmem:[%s13293_s0 + $0xdc] sm:$0xf0]  ;;  %v10267_v38 = vld [vmem:[#allocation3 + $0x110] sm:$0xff] }
  0x27   :  { %597 = vmatpush.bf16.msra.mxu2 %v10250_v26  ;;  %v10276_v23 = vld [vmem:[#allocation3 + $0x158] sm:$0xff]  ;;  %v10213_v26 = vld [vmem:[%s13293_s0 + $0xc4] sm:$0xf]  ;;  %v8300_v32 = vor.u32 %v10215_v25, %v8299_v24  ;;  %v10275_v39 = vld [vmem:[#allocation3 + $0x150] sm:$0xff] }
  0x28   :  { %646 = vmatpush.bf16.msra.mxu3 %v10258_v27  ;;  %v8301_v27 = vld [vmem:[%s13293_s0 + $0xe0] sm:$0xf0]  ;;  %v8331_v56 = vld [vmem:[%s13293_s0 + $0x180] sm:$0xf]  ;;  %v8339_v60 = vld [vmem:[%s13293_s0 + $0x188] sm:$0xf] }
  0x29   :  { %500 = vmatpush.bf16.msra.mxu0 %v10233_v28  ;;  %v8307_v28 = vld [vmem:[%s13293_s0 + $0xc8] sm:$0xf]  ;;  %v8304_v33 = vor.u32 %v10213_v26, %v8301_v27  ;;  %v10223_v57 = vld [vmem:[%s13293_s0 + $0x19c] sm:$0xf0]  ;;  %v10221_v58 = vld [vmem:[%s13293_s0 + $0x184] sm:$0xf] }
  0x2a   :  { %549 = vmatpush.bf16.msra.mxu1 %v10241_v29  ;;  %v10216_v29 = vld [vmem:[%s13293_s0 + $0xe4] sm:$0xf0]  ;;  %v8333_v59 = vld [vmem:[%s13293_s0 + $0x1a0] sm:$0xf0]  ;;  %v10222_v62 = vld [vmem:[%s13293_s0 + $0x18c] sm:$0xf] }
  0x2b   :  { %598 = vmatpush.bf16.msra.mxu2 %v10249_v30  ;;  %v10214_v30 = vld [vmem:[%s13293_s0 + $0xcc] sm:$0xf]  ;;  %v8308_v34 = vor.u32 %v10216_v29, %v8307_v28  ;;  %v10224_v61 = vld [vmem:[%s13293_s0 + $0x1a4] sm:$0xf0]  ;;  %v8347_v8 = vld [vmem:[%s13293_s0 + $0x1c0] sm:$0xf] }
  0x2c   :  { %647 = vmatpush.bf16.msra.mxu3 %v10257_v31  ;;  %501 = vmatmul.bf16.vlgmr.msra.gmra.mxu0 %v8252_v42  ;;  %v8309_v31 = vld [vmem:[%s13293_s0 + $0xe8] sm:$0xf0]  ;;  %v10217_v42 = vld [vmem:[%s13293_s0 + $0x144] sm:$0xf]  ;;  %v10227_v9 = vld [vmem:[%s13293_s0 + $0x1dc] sm:$0xf0] }
  0x2d   :  { %550 = vmatmul.bf16.vlgmr.msra.gmra.mxu1 %v8256_v43  ;;  %1605 = vmatpush.bf16.msrb.mxu0 %v10272_v46  ;;  %v8312_v35 = vor.u32 %v10214_v30, %v8309_v31  ;;  %v8317_v43 = vld [vmem:[%s13293_s0 + $0x160] sm:$0xf0]  ;;  %v10218_v46 = vld [vmem:[%s13293_s0 + $0x14c] sm:$0xf]  ;;  %v8355_v12 = vld [vmem:[%s13293_s0 + $0x1c8] sm:$0xf] }
  0x2e   :  { %599 = vmatmul.bf16.vlgmr.msra.gmra.mxu2 %v8260_v44  ;;  %1654 = vmatpush.bf16.msrb.mxu1 %v10280_v47  ;;  %v8323_v44 = vld [vmem:[%s13293_s0 + $0x148] sm:$0xf]  ;;  %v8325_v47 = vld [vmem:[%s13293_s0 + $0x168] sm:$0xf0]  ;;  %v10225_v10 = vld [vmem:[%s13293_s0 + $0x1c4] sm:$0xf] }
  0x2f   :  { %1703 = vmatpush.bf16.msrb.mxu2 %v10288_v40  ;;  %648 = vmatmul.bf16.vlgmr.msra.gmra.mxu3 %v8264_v45  ;;  %v8315_v40 = vld [vmem:[%s13293_s0 + $0x140] sm:$0xf]  ;;  %v10220_v45 = vld [vmem:[%s13293_s0 + $0x164] sm:$0xf0]  ;;  %v8341_v63 = vld [vmem:[%s13293_s0 + $0x1a8] sm:$0xf0] }
  0x30   :  { %1752 = vmatpush.bf16.msrb.mxu3 %v10296_v41  ;;  %v10219_v41 = vld [vmem:[%s13293_s0 + $0x15c] sm:$0xf0]  ;;  %v8349_v11 = vld [vmem:[%s13293_s0 + $0x1e0] sm:$0xf0]  ;;  %v10228_v13 = vld [vmem:[%s13293_s0 + $0x1e4] sm:$0xf0] }
  0x31   :  { %1606 = vmatpush.bf16.msrb.mxu0 %v10271_v50  ;;  %v8324_v50 = vor.u32 %v10220_v45, %v8323_v44  ;;  %v10226_v14 = vld [vmem:[%s13293_s0 + $0x1cc] sm:$0xf]  ;;  %v707_v44 = vld [vmem:[%s13293_s0 + $0x10] sm:$0x11]  ;;  %vm10934_vm2 = vmor %vm769_vm0, %vm770_vm1 }
  0x32   :  { %1655 = vmatpush.bf16.msrb.mxu1 %v10279_v51  ;;  %v8328_v51 = vor.u32 %v10218_v46, %v8325_v47  ;;  %v8357_v15 = vld [vmem:[%s13293_s0 + $0x1e8] sm:$0xf0]  ;;  %v711_v45 = vld [vmem:[%s13293_s0 + $0x30] sm:$0x11]  ;;  %vm11224_vm5 = vmor %vm1977_vm3, %vm1978_vm4 }
  0x33   :  { %1704 = vmatpush.bf16.msrb.mxu2 %v10287_v48  ;;  %v8316_v48 = vor.u32 %v10219_v41, %v8315_v40  ;;  %v706_v24 = vld [vmem:[%s13293_s0 + $0x8] sm:$0xff] }
  0x34   :  { %1753 = vmatpush.bf16.msrb.mxu3 %v10295_v49  ;;  %v8320_v49 = vor.u32 %v10217_v42, %v8317_v43  ;;  %v710_v25 = vld [vmem:[%s13293_s0 + $0x28] sm:$0xff]  ;;  %v787_v30 = vshrl.u32 %v706_v24, 16  ;;  %v790_v31 = vshll.u32 %v706_v24, 16  ;;  %v10304_v42 = vld [vmem:[#allocation3 + $0x238] sm:$0xff] }
  0x35   :  { %1607 = vmatpush.bf16.msrb.mxu0 %v10270_v54  ;;  %v10266_v54 = vld [vmem:[#allocation3 + $0x108] sm:$0xff]  ;;  %v10312_v43 = vld [vmem:[#allocation3 + $0x278] sm:$0xff] }
  0x36   :  { %1656 = vmatpush.bf16.msrb.mxu1 %v10278_v55  ;;  %v10274_v55 = vld [vmem:[#allocation3 + $0x148] sm:$0xff] }
  0x37   :  { %1705 = vmatpush.bf16.msrb.mxu2 %v10286_v52  ;;  %v10282_v52 = vld [vmem:[#allocation3 + $0x188] sm:$0xff] }
  0x38   :  { %1754 = vmatpush.bf16.msrb.mxu3 %v10294_v53  ;;  %v10290_v53 = vld [vmem:[#allocation3 + $0x1c8] sm:$0xff] }
  0x39   :  { %1608 = vmatpush.bf16.msrb.mxu0 %v10269_v6  ;;  %v10265_v6 = vld [vmem:[#allocation3 + $0x100] sm:$0xff] }
  0x3a   :  { %1657 = vmatpush.bf16.msrb.mxu1 %v10277_v7  ;;  %v10273_v7 = vld [vmem:[#allocation3 + $0x140] sm:$0xff] }
  0x3b   :  { %1706 = vmatpush.bf16.msrb.mxu2 %v10285_v4  ;;  %v10281_v4 = vld [vmem:[#allocation3 + $0x180] sm:$0xff] }
  0x3c   :  { %506 = vmatmul.bf16.gmra.mxu0 %v8268_v0  ;;  %1755 = vmatpush.bf16.msrb.mxu3 %v10293_v5  ;;  %v8332_v0 = vor.u32 %v10223_v57, %v8331_v56  ;;  %v10289_v5 = vld [vmem:[#allocation3 + $0x1c0] sm:$0xff] }
  0x3d   :  { %555 = vmatmul.bf16.gmra.mxu1 %v8272_v1  ;;  %1609 = vmatpush.bf16.msrb.mxu0 %v10268_v22  ;;  %v8336_v1 = vor.u32 %v10221_v58, %v8333_v59  ;;  %v10320_v22 = vld [vmem:[#allocation3 + $0x2b8] sm:$0xff] }
  0x3e   :  { %604 = vmatmul.bf16.gmra.mxu2 %v8276_v2  ;;  %1658 = vmatpush.bf16.msrb.mxu1 %v10276_v23  ;;  %v8340_v2 = vor.u32 %v10224_v61, %v8339_v60  ;;  %v10328_v23 = vld [vmem:[#allocation3 + $0x2f8] sm:$0xff]  ;;  %v782_v60 = vshll.u32 %v707_v44, 16  ;;  %v10303_v44 = vld [vmem:[#allocation3 + $0x230] sm:$0xff] }
  0x3f   :  { %653 = vmatmul.bf16.gmra.mxu3 %v8280_v3  ;;  %1707 = vmatpush.bf16.msrb.mxu2 %v10284_v20  ;;  %v8344_v3 = vor.u32 %v10222_v62, %v8341_v63  ;;  %v705_v20 = vld [vmem:[%s13293_s0] sm:$0xff]  ;;  %v810_v62 = vshll.u32 %v711_v45, 16  ;;  %v10311_v45 = vld [vmem:[#allocation3 + $0x270] sm:$0xff] }
  0x40   :  { %1756 = vmatpush.bf16.msrb.mxu3 %v10292_v21  ;;  %v709_v21 = vld [vmem:[%s13293_s0 + $0x20] sm:$0xff]  ;;  %v773_v26 = vshrl.u32 %v705_v20, 16  ;;  %v776_v27 = vshll.u32 %v705_v20, 16  ;;  %v10319_v20 = vld [vmem:[#allocation3 + $0x2b0] sm:$0xff] }
  0x41   :  { %1610 = vmatpush.bf16.msrb.mxu0 %v10267_v38  ;;  %v801_v28 = vshrl.u32 %v709_v21, 16  ;;  %v804_v29 = vshll.u32 %v709_v21, 16  ;;  %v8371_v38 = vld [vmem:[%s13293_s0 + $0x208] sm:$0xf]  ;;  %v10327_v21 = vld [vmem:[#allocation3 + $0x2f0] sm:$0xff] }
  0x42   :  { %1659 = vmatpush.bf16.msrb.mxu1 %v10275_v39  ;;  %v10232_v39 = vld [vmem:[%s13293_s0 + $0x224] sm:$0xf0]  ;;  %v775_v40 = vrot.slane %v773_v26, 4  ;;  %v778_v41 = vrot.slane %v776_v27, 5 }
  0x43   :  { %1708 = vmatpush.bf16.msrb.mxu2 %v10283_v36  ;;  %v10229_v36 = vld [vmem:[%s13293_s0 + $0x204] sm:$0xf]  ;;  %v803_v46 = vrot.slane %v801_v28, 4  ;;  %v806_v47 = vrot.slane %v804_v29, 5  ;;  %v8372_v58 = vor.u32 %v10232_v39, %v8371_v38 }
  0x44   :  { %1757 = vmatpush.bf16.msrb.mxu3 %v10291_v37  ;;  %v8365_v37 = vld [vmem:[%s13293_s0 + $0x220] sm:$0xf0]  ;;  %v779_v59 = vor.u32 %v778_v41, %v775_v40  ;;  %v716_v41 = vld [vmem:[%s13293_s0 + $0x58] sm:$0x11] }
  0x45   :  { %1611 = vmatpush.bf16.msrb.mxu0 %v10266_v54  ;;  %v8373_v54 = vld [vmem:[%s13293_s0 + $0x228] sm:$0xf0]  ;;  %v8368_v57 = vor.u32 %v10229_v36, %v8365_v37  ;;  %v807_v61 = vor.u32 %v806_v47, %v803_v46 }
  0x46   :  { %1660 = vmatpush.bf16.msrb.mxu1 %v10274_v55  ;;  %v712_v55 = vld [vmem:[%s13293_s0 + $0x38] sm:$0x11] }
  0x47   :  { %1709 = vmatpush.bf16.msrb.mxu2 %v10282_v52 }
  0x48   :  { %1758 = vmatpush.bf16.msrb.mxu3 %v10290_v53  ;;  %v10230_v53 = vld [vmem:[%s13293_s0 + $0x20c] sm:$0xf] }
  0x49   :  { %1612 = vmatpush.bf16.msrb.mxu0 %v10265_v6  ;;  %v780_v6 = vrot.slane %v779_v59, 4 }
  0x4a   :  { %1661 = vmatpush.bf16.msrb.mxu1 %v10273_v7 }
  0x4b   :  { %1710 = vmatpush.bf16.msrb.mxu2 %v10281_v4  ;;  %v824_v4 = vshll.u32 %v712_v55, 16 }
  0x4c   :  { %511 = vmatmul.bf16.gmra.mxu0 %v8284_v16  ;;  %1759 = vmatpush.bf16.msrb.mxu3 %v10289_v5  ;;  %v8348_v16 = vor.u32 %v10227_v9, %v8347_v8  ;;  %v717_v5 = vld [vmem:[%s13293_s0 + $0x60] sm:$0xff]  ;;  %v714_v9 = vld [vmem:[%s13293_s0 + $0x48] sm:$0xff] }
  0x4d   :  { %560 = vmatmul.bf16.gmra.mxu1 %v8288_v17  ;;  %v8352_v17 = vor.u32 %v10225_v10, %v8349_v11  ;;  %2493 = vmatpush.bf16.msra.mxu0 %v10304_v42  ;;  %v784_v10 = vrot.slane %v782_v60, 5  ;;  %v808_v11 = vrot.slane %v807_v61, 4  ;;  %v846_v24 = vshll.u32 %v714_v9, 16 }
  0x4e   :  { %609 = vmatmul.bf16.gmra.mxu2 %v8292_v18  ;;  %v8356_v18 = vor.u32 %v10228_v13, %v8355_v12  ;;  %2542 = vmatpush.bf16.msra.mxu1 %v10312_v43  ;;  %v812_v12 = vrot.slane %v810_v62, 5 }
  0x4f   :  { %658 = vmatmul.bf16.gmra.mxu3 %v8296_v19  ;;  %v8360_v19 = vor.u32 %v10226_v14, %v8357_v15  ;;  %2591 = vmatpush.bf16.msra.mxu2 %v10320_v22  ;;  %v718_v14 = vld [vmem:[%s13293_s0 + $0x68] sm:$0xff]  ;;  %v860_v22 = vshll.u32 %v717_v5, 16  ;;  %v848_v39 = vrot.slane %v846_v24, 5 }
  0x50   :  { %2640 = vmatpush.bf16.msra.mxu3 %v10328_v23  ;;  %v843_v23 = vshrl.u32 %v714_v9, 16  ;;  %v871_v28 = vshrl.u32 %v718_v14, 16  ;;  %v874_v29 = vshll.u32 %v718_v14, 16 }
  0x51   :  { %v862_v37 = vrot.slane %v860_v22, 5  ;;  %2494 = vmatpush.bf16.msra.mxu0 %v10303_v44  ;;  %v10318_v22 = vld [vmem:[#allocation3 + $0x2a8] sm:$0xff] }
  0x52   :  { %v845_v38 = vrot.slane %v843_v23, 4  ;;  %v873_v42 = vrot.slane %v871_v28, 4  ;;  %v876_v43 = vrot.slane %v874_v29, 5  ;;  %2543 = vmatpush.bf16.msra.mxu1 %v10311_v45  ;;  %v10326_v23 = vld [vmem:[#allocation3 + $0x2e8] sm:$0xff] }
  0x53   :  { %2592 = vmatpush.bf16.msra.mxu2 %v10319_v20 }
  0x54   :  { %2641 = vmatpush.bf16.msra.mxu3 %v10327_v21  ;;  %v877_v61 = vor.u32 %v876_v43, %v873_v42  ;;  %v726_v21 = vld [vmem:[%s13293_s0 + $0xa8] sm:$0xff] }
  0x57   :  { %2593 = vmatpush.bf16.msra.mxu2 %v10318_v22 }
  0x58   :  { %2642 = vmatpush.bf16.msra.mxu3 %v10326_v23  ;;  %v730_v23 = vld [vmem:[%s13293_s0 + $0xc8] sm:$0xff] }
  0x5c   :  { %516 = vmatmul.bf16.gmra.mxu0 %v8300_v32  ;;  %v815_v32 = vshrl.u32 %v710_v25, 16 }
  0x5d   :  { %565 = vmatmul.bf16.gmra.mxu1 %v8304_v33  ;;  %v818_v33 = vshll.u32 %v710_v25, 16  ;;  %v715_v25 = vld [vmem:[%s13293_s0 + $0x50] sm:$0x11] }
  0x5e   :  { %614 = vmatmul.bf16.gmra.mxu2 %v8308_v34  ;;  %v8363_v34 = vld [vmem:[%s13293_s0 + $0x200] sm:$0xf]  ;;  %v838_v36 = vshll.u32 %v715_v25, 16 }
  0x5f   :  { %663 = vmatmul.bf16.gmra.mxu3 %v8312_v35  ;;  %v10231_v35 = vld [vmem:[%s13293_s0 + $0x21c] sm:$0xf0]  ;;  %v820_v52 = vrot.slane %v818_v33, 5 }
  0x60   :  { %v8364_v56 = vor.u32 %v10231_v35, %v8363_v34  ;;  %v719_v35 = vld [vmem:[%s13293_s0 + $0x70] sm:$0x11]  ;;  %v840_v60 = vrot.slane %v838_v36, 5 }
  0x6c   :  { %521 = vmatmul.bf16.gmra.mxu0 %v8316_v48  ;;  %v708_v48 = vld [vmem:[%s13293_s0 + $0x18] sm:$0x11] }
  0x6d   :  { %570 = vmatmul.bf16.gmra.mxu1 %v8320_v49  ;;  %v789_v49 = vrot.slane %v787_v30, 4  ;;  %v796_v63 = vshll.u32 %v708_v48, 16  ;;  %v785_v30 = vsel %vm10934_vm2, %v780_v6, %v784_v10  ;;  %v725_v10 = vld [vmem:[%s13293_s0 + $0xa0] sm:$0xff] }
  0x6e   :  { %619 = vmatmul.bf16.gmra.mxu2 %v8324_v50  ;;  %v792_v50 = vrot.slane %v790_v31, 5  ;;  %v813_v31 = vsel %vm10934_vm2, %v808_v11, %v812_v12  ;;  %v1285_v46 = vunpack.c.l.b16 %v785_v30  ;;  %v1286_v48 = vunpack.c.h.b16 %v785_v30 }
  0x6f   :  { %668 = vmatmul.bf16.gmra.mxu3 %v8328_v51  ;;  %v817_v51 = vrot.slane %v815_v32, 4  ;;  %v798_v13 = vrot.slane %v796_v63, 5  ;;  %v1289_v47 = vunpack.c.l.b16 %v813_v31  ;;  %v916_v20 = vshll.u32 %v725_v10, 16 }
  0x71   :  { %v1349_v63 = vpack.c.b16 %v1289_v47, %v1285_v46  ;;  %v918_v42 = vrot.slane %v916_v20, 5  ;;  %v727_v47 = vld [vmem:[%s13293_s0 + $0xb0] sm:$0x11]  ;;  %v733_v20 = vld [vmem:[%s13293_s0 + $0xe0] sm:$0xff] }
  0x7c   :  { %526 = vmatmul.bf16.gmra.mxu0 %v8332_v0  ;;  %v713_v0 = vld [vmem:[%s13293_s0 + $0x40] sm:$0xff] }
  0x7d   :  { %575 = vmatmul.bf16.gmra.mxu1 %v8336_v1  ;;  %v8376_v1 = vor.u32 %v10230_v53, %v8373_v54  ;;  %v829_v7 = vshrl.u32 %v713_v0, 16  ;;  %v832_v8 = vshll.u32 %v713_v0, 16 }
  0x7e   :  { %624 = vmatmul.bf16.gmra.mxu2 %v8340_v2  ;;  %v793_v2 = vor.u32 %v792_v50, %v789_v49  ;;  %v1290_v49 = vunpack.c.h.b16 %v813_v31  ;;  %v720_v50 = vld [vmem:[%s13293_s0 + $0x78] sm:$0x11] }
  0x7f   :  { %673 = vmatmul.bf16.gmra.mxu3 %v8344_v3  ;;  %v821_v3 = vor.u32 %v820_v52, %v817_v51  ;;  %v831_v26 = vrot.slane %v829_v7, 4  ;;  %v834_v27 = vrot.slane %v832_v8, 5  ;;  %v880_v62 = vshll.u32 %v720_v50, 16 }
  0x80   :  { %v1350_v0 = vpack.c.b16 %v1290_v49, %v1286_v48 }
  0x81   :  { %v835_v40 = vor.u32 %v834_v27, %v831_v26  ;;  %v882_v14 = vrot.slane %v880_v62, 5  ;;  %v922_v62 = vshll.u32 %v727_v47, 16 }
  0x83   :  { %v836_v59 = vrot.slane %v835_v40, 4  ;;  %v723_v40 = vld [vmem:[%s13293_s0 + $0x90] sm:$0x11] }
  0x85   :  { %v841_v11 = vsel %vm10934_vm2, %v836_v59, %v840_v60 }
  0x86   :  { %v1293_v25 = vunpack.c.l.b16 %v841_v11 }
  0x8c   :  { %531 = vmatmul.bf16.gmra.mxu0 %v8348_v16  ;;  %v794_v16 = vrot.slane %v793_v2, 4 }
  0x8d   :  { %580 = vmatmul.bf16.gmra.mxu1 %v8352_v17  ;;  %v822_v17 = vrot.slane %v821_v3, 4 }
  0x8e   :  { %629 = vmatmul.bf16.gmra.mxu2 %v8356_v18  ;;  %v826_v18 = vrot.slane %v824_v4, 5  ;;  %v799_v32 = vsel %vm10934_vm2, %v794_v16, %v798_v13  ;;  %v878_v13 = vrot.slane %v877_v61, 4 }
  0x8f   :  { %678 = vmatmul.bf16.gmra.mxu3 %v8360_v19  ;;  %v857_v19 = vshrl.u32 %v717_v5, 16  ;;  %v1287_v51 = vunpack.c.l.b16 %v799_v32  ;;  %v1288_v53 = vunpack.c.h.b16 %v799_v32  ;;  %v721_v5 = vld [vmem:[%s13293_s0 + $0x80] sm:$0xff] }
  0x90   :  { %v827_v33 = vsel %vm10934_vm2, %v822_v17, %v826_v18  ;;  %v885_v16 = vshrl.u32 %v721_v5, 16  ;;  %v888_v17 = vshll.u32 %v721_v5, 16  ;;  %v722_v18 = vld [vmem:[%s13293_s0 + $0x88] sm:$0xff]  ;;  %v883_v27 = vsel %vm10934_vm2, %v878_v13, %v882_v14  ;;  %v729_v5 = vld [vmem:[%s13293_s0 + $0xc0] sm:$0xff] }
  0x91   :  { %v859_v34 = vrot.slane %v857_v19, 4  ;;  %v1291_v52 = vunpack.c.l.b16 %v827_v33  ;;  %v1292_v54 = vunpack.c.h.b16 %v827_v33  ;;  %v913_v19 = vshrl.u32 %v725_v10, 16 }
  0x92   :  { %v899_v28 = vshrl.u32 %v722_v18, 16  ;;  %v902_v29 = vshll.u32 %v722_v18, 16  ;;  %v887_v32 = vrot.slane %v885_v16, 4  ;;  %v890_v33 = vrot.slane %v888_v17, 5 }
  0x93   :  { %v863_v55 = vor.u32 %v862_v37, %v859_v34  ;;  %v1351_v3 = vpack.c.b16 %v1291_v52, %v1287_v51  ;;  %v1352_v4 = vpack.c.b16 %v1292_v54, %v1288_v53  ;;  %v927_v34 = vshrl.u32 %v726_v21, 16  ;;  %v10302_v52 = vld [vmem:[#allocation3 + $0x228] sm:$0xff] }
  0x94   :  { %v1299_v49 = vunpack.c.l.b16 %v883_v27  ;;  %v901_v50 = vrot.slane %v899_v28, 4  ;;  %v904_v51 = vrot.slane %v902_v29, 5  ;;  %v10310_v53 = vld [vmem:[#allocation3 + $0x268] sm:$0xff]  ;;  %v891_v54 = vor.u32 %v890_v33, %v887_v32  ;;  %2495 = vmatpush.bf16.msra.mxu0 %v10302_v52 }
  0x95   :  { %v864_v7 = vrot.slane %v863_v55, 4  ;;  %v894_v55 = vshll.u32 %v723_v40, 16  ;;  %v1300_v60 = vunpack.c.h.b16 %v883_v27  ;;  %2544 = vmatpush.bf16.msra.mxu1 %v10310_v53  ;;  %v924_v18 = vrot.slane %v922_v62, 5 }
  0x96   :  { %v944_v22 = vshll.u32 %v729_v5, 16  ;;  %v969_v32 = vshrl.u32 %v733_v20, 16  ;;  %v972_v33 = vshll.u32 %v733_v20, 16 }
  0x9c   :  { %536 = vmatmul.bf16.gmra.mxu0 %v8364_v56  ;;  %v866_v56 = vshll.u32 %v719_v35, 16  ;;  %v930_v35 = vshll.u32 %v726_v21, 16  ;;  %v941_v21 = vshrl.u32 %v729_v5, 16  ;;  %v10309_v5 = vld [vmem:[#allocation3 + $0x260] sm:$0xff] }
  0x9d   :  { %585 = vmatmul.bf16.gmra.mxu1 %v8368_v57  ;;  %v849_v57 = vor.u32 %v848_v39, %v845_v38  ;;  %v1294_v39 = vunpack.c.h.b16 %v841_v11 }
  0x9e   :  { %634 = vmatmul.bf16.gmra.mxu2 %v8372_v58  ;;  %v852_v58 = vshll.u32 %v716_v41, 16  ;;  %v868_v8 = vrot.slane %v866_v56, 5  ;;  %v915_v41 = vrot.slane %v913_v19, 4  ;;  %v724_v56 = vld [vmem:[%s13293_s0 + $0x98] sm:$0x11]  ;;  %2545 = vmatpush.bf16.msra.mxu1 %v10309_v5 }
  0x9f   :  { %683 = vmatmul.bf16.gmra.mxu3 %v8376_v1  ;;  %v850_v9 = vrot.slane %v849_v57, 4  ;;  %v929_v57 = vrot.slane %v927_v34, 4  ;;  %v955_v34 = vshrl.u32 %v730_v23, 16 }
  0xa0   :  { %v854_v12 = vrot.slane %v852_v58, 5  ;;  %v869_v24 = vsel %vm10934_vm2, %v864_v7, %v868_v8  ;;  %v932_v58 = vrot.slane %v930_v35, 5  ;;  %v919_v61 = vor.u32 %v918_v42, %v915_v41  ;;  %v10317_v35 = vld [vmem:[#allocation3 + $0x2a0] sm:$0xff]  ;;  %v731_v41 = vld [vmem:[%s13293_s0 + $0xd0] sm:$0x11] }
  0xa1   :  { %v1297_v44 = vunpack.c.l.b16 %v869_v24  ;;  %v1298_v45 = vunpack.c.h.b16 %v869_v24  ;;  %v892_v8 = vrot.slane %v891_v54, 4  ;;  %2594 = vmatpush.bf16.msra.mxu2 %v10317_v35  ;;  %v971_v54 = vrot.slane %v969_v32, 4 }
  0xa2   :  { %v855_v26 = vsel %vm10934_vm2, %v850_v9, %v854_v12  ;;  %v896_v9 = vrot.slane %v894_v55, 5  ;;  %v933_v10 = vor.u32 %v932_v58, %v929_v57  ;;  %v920_v17 = vrot.slane %v919_v61, 4  ;;  %v735_v58 = vld [vmem:[%s13293_s0 + $0xf0] sm:$0x11]  ;;  %v732_v61 = vld [vmem:[%s13293_s0 + $0xd8] sm:$0x11] }
  0xa3   :  { %v1295_v46 = vunpack.c.l.b16 %v855_v26  ;;  %v1296_v59 = vunpack.c.h.b16 %v855_v26  ;;  %v974_v55 = vrot.slane %v972_v33, 5 }
  0xa4   :  { %v11005_v26 = vsel %vm10934_vm2, %v892_v8, %v896_v9  ;;  %v934_v28 = vrot.slane %v933_v10, 4 }
  0xa5   :  { %v1356_v16 = vpack.c.b16 %v1300_v60, %v1296_v59  ;;  %v1301_v40 = vunpack.c.l.b16 %v11005_v26  ;;  %v1302_v47 = vunpack.c.h.b16 %v11005_v26  ;;  %v950_v60 = vshll.u32 %v731_v41, 16  ;;  %v737_v26 = vld [vmem:[%s13293_s0 + $0x140] sm:$0xff] }
  0xa6   :  { %v975_v10 = vor.u32 %v974_v55, %v971_v54  ;;  %v1000_v41 = vshll.u32 %v737_v26, 16 }
  0xa8   :  { %v1002_v54 = vrot.slane %v1000_v41, 5 }
  0xa9   :  { %v502_v1 = vpop.f32.mrf.mxu0 }
  0xaa   :  { %v551_v2 = vpop.f32.mrf.mxu1 }
  0xab   :  { %v552_v6 = vadd.f32 %v551_v2, %v502_v1  ;;  %v1354_v1 = vpack.c.b16 %v1298_v45, %v1294_v39  ;;  %v1355_v2 = vpack.c.b16 %v1299_v49, %v1295_v46  ;;  %v958_v39 = vshll.u32 %v730_v23, 16 }
  0xac   :  { %1613 = vmatmul.bf16.vlgmr.msrb.gmra.mxu0 %v1349_v63  ;;  %v728_v63 = vld [vmem:[%s13293_s0 + $0xb8] sm:$0x11] }
  0xad   :  { %1662 = vmatmul.bf16.vlgmr.msrb.gmra.mxu1 %v1350_v0  ;;  %v1353_v0 = vpack.c.b16 %v1297_v44, %v1293_v25  ;;  %v936_v11 = vshll.u32 %v728_v63, 16  ;;  %v960_v62 = vrot.slane %v958_v39, 5 }
  0xae   :  { %1711 = vmatmul.bf16.vlgmr.msrb.gmra.mxu2 %v1351_v3  ;;  %v905_v3 = vor.u32 %v904_v51, %v901_v50 }
  0xaf   :  { %1760 = vmatmul.bf16.vlgmr.msrb.gmra.mxu3 %v1352_v4  ;;  %v908_v4 = vshll.u32 %v724_v56, 16  ;;  %v938_v29 = vrot.slane %v936_v11, 5  ;;  %v957_v56 = vrot.slane %v955_v34, 4  ;;  %v978_v11 = vshll.u32 %v735_v58, 16 }
  0xb0   :  { %v906_v25 = vrot.slane %v905_v3, 4 }
  0xb1   :  { %v600_v30 = vpop.f32.mrf.mxu2  ;;  %v504_v37 = vpop.f32.mrf.mxu0  ;;  %v910_v27 = vrot.slane %v908_v4, 5  ;;  %v939_v50 = vsel %vm10934_vm2, %v934_v28, %v938_v29  ;;  %v10301_v4 = vld [vmem:[#allocation3 + $0x220] sm:$0xff] }
  0xb2   :  { %v649_v31 = vpop.f32.mrf.mxu3  ;;  %v601_v36 = vadd.f32 %v600_v30, %v552_v6  ;;  %v553_v38 = vpop.f32.mrf.mxu1  ;;  %v734_v30 = vld [vmem:[%s13293_s0 + $0xe8] sm:$0xff]  ;;  %v1308_v9 = vunpack.c.h.b16 %v939_v50  ;;  %2496 = vmatpush.bf16.msra.mxu0 %v10301_v4 }
  0xb3   :  { %v554_v43 = vadd.f32 %v553_v38, %v504_v37  ;;  %v943_v37 = vrot.slane %v941_v21, 4  ;;  %v946_v38 = vrot.slane %v944_v22, 5  ;;  %v983_v42 = vshrl.u32 %v734_v30, 16 }
  0xb4   :  { %v10984_v48 = vadd.f32 %v649_v31, %v601_v36  ;;  %v925_v31 = vsel %vm10934_vm2, %v920_v17, %v924_v18  ;;  %v10325_v36 = vld [vmem:[#allocation3 + $0x2e0] sm:$0xff]  ;;  %v911_v49 = vsel %vm10934_vm2, %v906_v25, %v910_v27 }
  0xb5   :  { %2643 = vmatpush.bf16.msra.mxu3 %v10325_v36  ;;  %v1305_v46 = vunpack.c.l.b16 %v925_v31  ;;  %v947_v59 = vor.u32 %v946_v38, %v943_v37  ;;  %v1304_v8 = vunpack.c.h.b16 %v911_v49  ;;  %v741_v37 = vld [vmem:[%s13293_s0 + $0x160] sm:$0xff] }
  0xb7   :  { %v1357_v21 = vpack.c.b16 %v1305_v46, %v1301_v40  ;;  %v1360_v25 = vpack.c.b16 %v1308_v9, %v1304_v8  ;;  %v997_v40 = vshrl.u32 %v737_v26, 16  ;;  %v10316_v46 = vld [vmem:[#allocation3 + $0x298] sm:$0xff]  ;;  %v743_v9 = vld [vmem:[%s13293_s0 + $0x170] sm:$0x11] }
  0xb8   :  { %2595 = vmatpush.bf16.msra.mxu2 %v10316_v46  ;;  %v1034_v26 = vshll.u32 %v743_v9, 16 }
  0xb9   :  { %v602_v6 = vpop.f32.mrf.mxu2  ;;  %v507_v13 = vpop.f32.mrf.mxu0 }
  0xba   :  { %v651_v7 = vpop.f32.mrf.mxu3  ;;  %v603_v12 = vadd.f32 %v602_v6, %v554_v43  ;;  %v556_v14 = vpop.f32.mrf.mxu1  ;;  %v986_v43 = vshll.u32 %v734_v30, 16  ;;  %v1303_v6 = vunpack.c.l.b16 %v911_v49  ;;  %v976_v30 = vrot.slane %v975_v10, 4 }
  0xbb   :  { %v557_v19 = vadd.f32 %v556_v14, %v507_v13  ;;  %v948_v13 = vrot.slane %v947_v59, 4  ;;  %v952_v14 = vrot.slane %v950_v60, 5  ;;  %v1036_v46 = vrot.slane %v1034_v26, 5 }
  0xbc   :  { %v11001_v24 = vadd.f32 %v651_v7, %v603_v12  ;;  %1618 = vmatmul.bf16.gmra.mxu0 %v1353_v0  ;;  %v1306_v0 = vunpack.c.h.b16 %v925_v31  ;;  %v988_v3 = vrot.slane %v986_v43, 5  ;;  %v1307_v7 = vunpack.c.l.b16 %v939_v50 }
  0xbd   :  { %1667 = vmatmul.bf16.gmra.mxu1 %v1354_v1  ;;  %v736_v1 = vld [vmem:[%s13293_s0 + $0xf8] sm:$0x11]  ;;  %v964_v12 = vshll.u32 %v732_v61, 16  ;;  %v980_v31 = vrot.slane %v978_v11, 5  ;;  %v11037_v34 = vsel %vm10934_vm2, %v948_v13, %v952_v14  ;;  %v1025_v43 = vshrl.u32 %v741_v37, 16 }
  0xbe   :  { %1716 = vmatmul.bf16.gmra.mxu2 %v1355_v2  ;;  %v985_v2 = vrot.slane %v983_v42, 4  ;;  %v992_v17 = vshll.u32 %v736_v1, 16  ;;  %v1358_v22 = vpack.c.b16 %v1306_v0, %v1302_v47  ;;  %v1359_v23 = vpack.c.b16 %v1307_v7, %v1303_v6  ;;  %v738_v42 = vld [vmem:[%s13293_s0 + $0x148] sm:$0xff]  ;;  %v10324_v47 = vld [vmem:[#allocation3 + $0x2d8] sm:$0xff] }
  0xbf   :  { %1765 = vmatmul.bf16.gmra.mxu3 %v1356_v16  ;;  %v961_v16 = vor.u32 %v960_v62, %v957_v56  ;;  %v966_v32 = vrot.slane %v964_v12, 5  ;;  %v981_v49 = vsel %vm10934_vm2, %v976_v30, %v980_v31  ;;  %v1309_v50 = vunpack.c.l.b16 %v11037_v34  ;;  %v10300_v14 = vld [vmem:[#allocation3 + $0x218] sm:$0xff] }
  0xc0   :  { %v989_v18 = vor.u32 %v988_v3, %v985_v2  ;;  %v994_v36 = vrot.slane %v992_v17, 5  ;;  %2644 = vmatpush.bf16.msra.mxu3 %v10324_v47  ;;  %v1011_v58 = vshrl.u32 %v738_v42, 16  ;;  %v1014_v59 = vshll.u32 %v738_v42, 16  ;;  %v740_v17 = vld [vmem:[%s13293_s0 + $0x158] sm:$0x11]  ;;  %2497 = vmatpush.bf16.msra.mxu0 %v10300_v14 }
  0xc1   :  { %v605_v44 = vpop.f32.mrf.mxu2  ;;  %v509_v52 = vpop.f32.mrf.mxu0  ;;  %v962_v35 = vrot.slane %v961_v16, 4  ;;  %v1310_v2 = vunpack.c.h.b16 %v11037_v34  ;;  %v1027_v3 = vrot.slane %v1025_v43, 4  ;;  %v1313_v6 = vunpack.c.l.b16 %v981_v49  ;;  %v10308_v16 = vld [vmem:[#allocation3 + $0x258] sm:$0xff] }
  0xc2   :  { %v654_v45 = vpop.f32.mrf.mxu3  ;;  %v606_v51 = vadd.f32 %v605_v44, %v557_v19  ;;  %v558_v53 = vpop.f32.mrf.mxu1  ;;  %v990_v39 = vrot.slane %v989_v18, 4  ;;  %v1028_v44 = vshll.u32 %v741_v37, 16  ;;  %v1314_v7 = vunpack.c.h.b16 %v981_v49  ;;  %2546 = vmatpush.bf16.msra.mxu1 %v10308_v16  ;;  %v749_v49 = vld [vmem:[%s13293_s0 + $0x1a0] sm:$0xff] }
  0xc3   :  { %v559_v57 = vadd.f32 %v558_v53, %v509_v52  ;;  %v999_v53 = vrot.slane %v997_v40, 4  ;;  %v1013_v18 = vrot.slane %v1011_v58, 4  ;;  %v745_v40 = vld [vmem:[%s13293_s0 + $0x180] sm:$0xff] }
  0xc4   :  { %v11027_v63 = vadd.f32 %v654_v45, %v606_v51  ;;  %v742_v45 = vld [vmem:[%s13293_s0 + $0x168] sm:$0xff]  ;;  %v967_v51 = vsel %vm10934_vm2, %v962_v35, %v966_v32  ;;  %v995_v52 = vsel %vm10934_vm2, %v990_v39, %v994_v36  ;;  %v1030_v4 = vrot.slane %v1028_v44, 5 }
  0xc5   :  { %v1039_v60 = vshrl.u32 %v742_v45, 16  ;;  %v1042_v61 = vshll.u32 %v742_v45, 16  ;;  %v1311_v8 = vunpack.c.l.b16 %v967_v51  ;;  %v1315_v11 = vunpack.c.l.b16 %v995_v52 }
  0xc6   :  { %v1003_v12 = vor.u32 %v1002_v54, %v999_v53  ;;  %v1020_v32 = vshll.u32 %v740_v17, 16  ;;  %v1056_v53 = vshll.u32 %v745_v40, 16 }
  0xc7   :  { %v1363_v30 = vpack.c.b16 %v1315_v11, %v1311_v8 }
  0xc8   :  { %v1004_v35 = vrot.slane %v1003_v12, 4  ;;  %v747_v12 = vld [vmem:[%s13293_s0 + $0x190] sm:$0x11] }
  0xc9   :  { %v607_v19 = vpop.f32.mrf.mxu2  ;;  %v512_v28 = vpop.f32.mrf.mxu0 }
  0xca   :  { %v656_v20 = vpop.f32.mrf.mxu3  ;;  %v608_v27 = vadd.f32 %v607_v19, %v559_v57  ;;  %v561_v29 = vpop.f32.mrf.mxu1  ;;  %v739_v57 = vld [vmem:[%s13293_s0 + $0x150] sm:$0x11]  ;;  %v1016_v19 = vrot.slane %v1014_v59, 5  ;;  %v1081_v59 = vshrl.u32 %v749_v49, 16 }
  0xcb   :  { %v562_v33 = vadd.f32 %v561_v29, %v512_v28  ;;  %v1006_v13 = vshll.u32 %v739_v57, 16  ;;  %v1361_v28 = vpack.c.b16 %v1313_v6, %v1309_v50  ;;  %v1362_v29 = vpack.c.b16 %v1314_v7, %v1310_v2 }
  0xcc   :  { %v11042_v38 = vadd.f32 %v656_v20, %v608_v27  ;;  %1623 = vmatmul.bf16.gmra.mxu0 %v1357_v21  ;;  %v1041_v20 = vrot.slane %v1039_v60, 4  ;;  %v1044_v21 = vrot.slane %v1042_v61, 5  ;;  %v744_v27 = vld [vmem:[%s13293_s0 + $0x178] sm:$0x11]  ;;  %v1017_v36 = vor.u32 %v1016_v19, %v1013_v18  ;;  %v10315_v61 = vld [vmem:[#allocation3 + $0x290] sm:$0xff] }
  0xcd   :  { %1672 = vmatmul.bf16.gmra.mxu1 %v1358_v22  ;;  %v1312_v22 = vunpack.c.h.b16 %v967_v51  ;;  %v1008_v31 = vrot.slane %v1006_v13, 5  ;;  %v1048_v39 = vshll.u32 %v744_v27, 16  ;;  %v1022_v51 = vrot.slane %v1020_v32, 5  ;;  %2596 = vmatpush.bf16.msra.mxu2 %v10315_v61 }
  0xce   :  { %1721 = vmatmul.bf16.gmra.mxu2 %v1359_v23  ;;  %v1316_v23 = vunpack.c.h.b16 %v995_v52  ;;  %v1045_v37 = vor.u32 %v1044_v21, %v1041_v20  ;;  %v1053_v52 = vshrl.u32 %v745_v40, 16  ;;  %v1084_v60 = vshll.u32 %v749_v49, 16  ;;  %v751_v21 = vld [vmem:[%s13293_s0 + $0x1b0] sm:$0x11] }
  0xcf   :  { %1770 = vmatmul.bf16.gmra.mxu3 %v1360_v25  ;;  %v1031_v25 = vor.u32 %v1030_v4, %v1027_v3  ;;  %v1009_v54 = vsel %vm10934_vm2, %v1004_v35, %v1008_v31  ;;  %v1050_v57 = vrot.slane %v1048_v39, 5  ;;  %v1058_v3 = vrot.slane %v1056_v53, 5  ;;  %v750_v4 = vld [vmem:[%s13293_s0 + $0x1a8] sm:$0xff]  ;;  %v10307_v31 = vld [vmem:[#allocation3 + $0x250] sm:$0xff]  ;;  %v748_v39 = vld [vmem:[%s13293_s0 + $0x198] sm:$0x11] }
  0xd0   :  { %v1364_v44 = vpack.c.b16 %v1316_v23, %v1312_v22  ;;  %v1055_v2 = vrot.slane %v1053_v52, 4  ;;  %v1318_v8 = vunpack.c.h.b16 %v1009_v54  ;;  %v1083_v17 = vrot.slane %v1081_v59, 4  ;;  %2547 = vmatpush.bf16.msra.mxu1 %v10307_v31  ;;  %v759_v31 = vld [vmem:[%s13293_s0 + $0x1f0] sm:$0x11] }
  0xd1   :  { %v610_v55 = vpop.f32.mrf.mxu2  ;;  %v514_v0 = vpop.f32.mrf.mxu0  ;;  %v1032_v45 = vrot.slane %v1031_v25, 4  ;;  %v1086_v18 = vrot.slane %v1084_v60, 5  ;;  %v1095_v23 = vshrl.u32 %v750_v4, 16  ;;  %v1098_v25 = vshll.u32 %v750_v4, 16 }
  0xd2   :  { %v659_v56 = vpop.f32.mrf.mxu3  ;;  %v611_v62 = vadd.f32 %v610_v55, %v562_v33  ;;  %v563_v1 = vpop.f32.mrf.mxu1  ;;  %v1018_v55 = vrot.slane %v1017_v36, 4  ;;  %v1076_v61 = vshll.u32 %v748_v39, 16 }
  0xd3   :  { %v564_v5 = vadd.f32 %v563_v1, %v514_v0  ;;  %v1037_v58 = vsel %vm10934_vm2, %v1032_v45, %v1036_v46  ;;  %v746_v0 = vld [vmem:[%s13293_s0 + $0x188] sm:$0xff]  ;;  %v1317_v1 = vunpack.c.l.b16 %v1009_v54  ;;  %v1087_v36 = vor.u32 %v1086_v18, %v1083_v17  ;;  %v752_v46 = vld [vmem:[%s13293_s0 + $0x1b8] sm:$0x11] }
  0xd4   :  { %v11064_v10 = vadd.f32 %v659_v56, %v611_v62  ;;  %v1046_v56 = vrot.slane %v1045_v37, 4  ;;  %v10323_v62 = vld [vmem:[#allocation3 + $0x2d0] sm:$0xff]  ;;  %v1321_v7 = vunpack.c.l.b16 %v1037_v58  ;;  %v1023_v9 = vsel %vm10934_vm2, %v1018_v55, %v1022_v51  ;;  %v753_v55 = vld [vmem:[%s13293_s0 + $0x1c0] sm:$0xff]  ;;  %v10322_v17 = vld [vmem:[#allocation3 + $0x2c8] sm:$0xff] }
  0xd5   :  { %2645 = vmatpush.bf16.msra.mxu3 %v10323_v62  ;;  %v1067_v19 = vshrl.u32 %v746_v0, 16  ;;  %v1070_v22 = vshll.u32 %v746_v0, 16  ;;  %v1322_v27 = vunpack.c.h.b16 %v1037_v58  ;;  %v1319_v32 = vunpack.c.l.b16 %v1023_v9  ;;  %v757_v62 = vld [vmem:[%s13293_s0 + $0x1e0] sm:$0xff] }
  0xd6   :  { %v1051_v11 = vsel %vm10934_vm2, %v1046_v56, %v1050_v57  ;;  %v1090_v37 = vshll.u32 %v751_v21, 16  ;;  %v1365_v51 = vpack.c.b16 %v1321_v7, %v1317_v1  ;;  %v1088_v59 = vrot.slane %v1087_v36, 4 }
  0xd7   :  { %v1324_v35 = vunpack.c.h.b16 %v1051_v11  ;;  %v1069_v40 = vrot.slane %v1067_v19, 4  ;;  %v1366_v52 = vpack.c.b16 %v1322_v27, %v1318_v8  ;;  %v1112_v7 = vshll.u32 %v753_v55, 16 }
  0xd8   :  { %v1092_v60 = vrot.slane %v1090_v37, 5  ;;  %v1137_v8 = vshrl.u32 %v757_v62, 16 }
  0xd9   :  { %v612_v33 = vpop.f32.mrf.mxu2  ;;  %v517_v42 = vpop.f32.mrf.mxu0  ;;  %2646 = vmatpush.bf16.msra.mxu3 %v10322_v17 }
  0xda   :  { %v661_v34 = vpop.f32.mrf.mxu3  ;;  %v613_v41 = vadd.f32 %v612_v33, %v564_v5  ;;  %v566_v43 = vpop.f32.mrf.mxu1  ;;  %v1323_v33 = vunpack.c.l.b16 %v1051_v11  ;;  %v754_v11 = vld [vmem:[%s13293_s0 + $0x1c8] sm:$0xff] }
  0xdb   :  { %v567_v47 = vadd.f32 %v566_v43, %v517_v42  ;;  %v1097_v42 = vrot.slane %v1095_v23, 4  ;;  %v1100_v43 = vrot.slane %v1098_v25, 5  ;;  %v1114_v25 = vrot.slane %v1112_v7, 5 }
  0xdc   :  { %v11078_v50 = vadd.f32 %v661_v34, %v613_v41  ;;  %1628 = vmatmul.bf16.gmra.mxu0 %v1361_v28  ;;  %v1059_v28 = vor.u32 %v1058_v3, %v1055_v2  ;;  %v1320_v34 = vunpack.c.h.b16 %v1023_v9  ;;  %v1072_v41 = vrot.slane %v1070_v22, 5  ;;  %v755_v22 = vld [vmem:[%s13293_s0 + $0x1d0] sm:$0x11] }
  0xdd   :  { %1677 = vmatmul.bf16.gmra.mxu1 %v1362_v29  ;;  %v1062_v29 = vshll.u32 %v747_v12, 16  ;;  %v1367_v53 = vpack.c.b16 %v1323_v33, %v1319_v32  ;;  %v1101_v1 = vor.u32 %v1100_v43, %v1097_v42  ;;  %v1104_v3 = vshll.u32 %v752_v46, 16 }
  0xde   :  { %1726 = vmatmul.bf16.gmra.mxu2 %v1363_v30  ;;  %v10299_v30 = vld [vmem:[#allocation3 + $0x210] sm:$0xff]  ;;  %v1368_v54 = vpack.c.b16 %v1324_v35, %v1320_v34  ;;  %v1073_v2 = vor.u32 %v1072_v41, %v1069_v40  ;;  %v1140_v9 = vshll.u32 %v757_v62, 16  ;;  %v1093_v12 = vsel %vm10934_vm2, %v1088_v59, %v1092_v60 }
  0xdf   :  { %1775 = vmatmul.bf16.gmra.mxu3 %v1364_v44  ;;  %2498 = vmatpush.bf16.msra.mxu0 %v10299_v30  ;;  %v1060_v44 = vrot.slane %v1059_v28, 4  ;;  %v1064_v45 = vrot.slane %v1062_v29, 5  ;;  %v1106_v21 = vrot.slane %v1104_v3, 5  ;;  %v1123_v27 = vshrl.u32 %v754_v11, 16 }
  0xe0   :  { %v1074_v19 = vrot.slane %v1073_v2, 4  ;;  %v1126_v28 = vshll.u32 %v754_v11, 16  ;;  %v1139_v32 = vrot.slane %v1137_v8, 4  ;;  %v1142_v33 = vrot.slane %v1140_v9, 5  ;;  %v760_v2 = vld [vmem:[%s13293_s0 + $0x1f8] sm:$0x11] }
  0xe1   :  { %v615_v5 = vpop.f32.mrf.mxu2  ;;  %v519_v14 = vpop.f32.mrf.mxu0  ;;  %v1329_v40 = vunpack.c.l.b16 %v1093_v12  ;;  %v1330_v42 = vunpack.c.h.b16 %v1093_v12  ;;  %v1118_v46 = vshll.u32 %v755_v22, 16 }
  0xe2   :  { %v664_v6 = vpop.f32.mrf.mxu3  ;;  %v616_v13 = vadd.f32 %v615_v5, %v567_v47  ;;  %v568_v16 = vpop.f32.mrf.mxu1  ;;  %v11118_v5 = vsel %vm10934_vm2, %v1060_v44, %v1064_v45 }
  0xe3   :  { %v569_v20 = vadd.f32 %v568_v16, %v519_v14  ;;  %v758_v14 = vld [vmem:[%s13293_s0 + $0x1e8] sm:$0xff]  ;;  %v1325_v18 = vunpack.c.l.b16 %v11118_v5  ;;  %v1326_v41 = vunpack.c.h.b16 %v11118_v5 }
  0xe4   :  { %v11100_v26 = vadd.f32 %v664_v6, %v616_v13  ;;  %v1109_v6 = vshrl.u32 %v753_v55, 16  ;;  %v1078_v13 = vrot.slane %v1076_v61, 5  ;;  %v10314_v16 = vld [vmem:[#allocation3 + $0x288] sm:$0xff]  ;;  %v1151_v34 = vshrl.u32 %v758_v14, 16 }
  0xe5   :  { %2597 = vmatpush.bf16.msra.mxu2 %v10314_v16  ;;  %v1154_v35 = vshll.u32 %v758_v14, 16  ;;  %v1143_v55 = vor.u32 %v1142_v33, %v1139_v32  ;;  %v1370_v3 = vpack.c.b16 %v1330_v42, %v1326_v41  ;;  %v1160_v16 = vshll.u32 %v760_v2, 16  ;;  %v761_v32 = vld [vmem:[%s13293_s0 + $0x200] sm:$0xff]  ;;  %v766_v41 = vld [vmem:[%s13293_s0 + $0x228] sm:$0xff] }
  0xe6   :  { %v1111_v23 = vrot.slane %v1109_v6, 4  ;;  %v1079_v44 = vsel %vm10934_vm2, %v1074_v19, %v1078_v13  ;;  %v1120_v6 = vrot.slane %v1118_v46, 5  ;;  %v10313_v33 = vld [vmem:[#allocation3 + $0x280] sm:$0xff]  ;;  %v1165_v46 = vshrl.u32 %v761_v32, 16 }
  0xe7   :  { %v1156_v59 = vrot.slane %v1154_v35, 5  ;;  %v1327_v60 = vunpack.c.l.b16 %v1079_v44  ;;  %v1328_v62 = vunpack.c.h.b16 %v1079_v44  ;;  %v1144_v12 = vrot.slane %v1143_v55, 4  ;;  %v765_v35 = vld [vmem:[%s13293_s0 + $0x220] sm:$0xff] }
  0xe8   :  { %v1196_v55 = vshll.u32 %v765_v35, 16 }
  0xe9   :  { %v617_v47 = vpop.f32.mrf.mxu2  ;;  %v522_v57 = vpop.f32.mrf.mxu0  ;;  %2598 = vmatpush.bf16.msra.mxu2 %v10313_v33 }
  0xea   :  { %v666_v49 = vpop.f32.mrf.mxu3  ;;  %v618_v56 = vadd.f32 %v617_v47, %v569_v20  ;;  %v571_v58 = vpop.f32.mrf.mxu1  ;;  %v1102_v20 = vrot.slane %v1101_v1, 4  ;;  %v1369_v1 = vpack.c.b16 %v1329_v40, %v1325_v18 }
  0xeb   :  { %v572_v0 = vadd.f32 %v571_v58, %v522_v57  ;;  %v1128_v57 = vrot.slane %v1126_v28, 5  ;;  %v1153_v58 = vrot.slane %v1151_v34, 4  ;;  %v10321_v34 = vld [vmem:[#allocation3 + $0x2c0] sm:$0xff] }
  0xec   :  { %v11114_v4 = vadd.f32 %v666_v49, %v618_v56  ;;  %1633 = vmatmul.bf16.gmra.mxu0 %v1365_v51  ;;  %v1107_v45 = vsel %vm10934_vm2, %v1102_v20, %v1106_v21  ;;  %v1115_v49 = vor.u32 %v1114_v25, %v1111_v23  ;;  %v1146_v51 = vshll.u32 %v759_v31, 16  ;;  %v756_v56 = vld [vmem:[%s13293_s0 + $0x1d8] sm:$0x11]  ;;  %2647 = vmatpush.bf16.msra.mxu3 %v10321_v34 }
  0xed   :  { %1682 = vmatmul.bf16.gmra.mxu1 %v1366_v52  ;;  %v1125_v52 = vrot.slane %v1123_v27, 4  ;;  %v1331_v61 = vunpack.c.l.b16 %v1107_v45  ;;  %v1132_v8 = vshll.u32 %v756_v56, 16  ;;  %v1157_v14 = vor.u32 %v1156_v59, %v1153_v58 }
  0xee   :  { %1731 = vmatmul.bf16.gmra.mxu2 %v1367_v53  ;;  %v10298_v53 = vld [vmem:[#allocation3 + $0x208] sm:$0xff]  ;;  %v1116_v5 = vrot.slane %v1115_v49, 4  ;;  %v1148_v7 = vrot.slane %v1146_v51, 5  ;;  %v1162_v31 = vrot.slane %v1160_v16, 5  ;;  %v1168_v49 = vshll.u32 %v761_v32, 16 }
  0xef   :  { %1780 = vmatmul.bf16.gmra.mxu3 %v1368_v54  ;;  %v10306_v54 = vld [vmem:[#allocation3 + $0x248] sm:$0xff]  ;;  %2499 = vmatpush.bf16.msra.mxu0 %v10298_v53  ;;  %v1129_v13 = vor.u32 %v1128_v57, %v1125_v52  ;;  %v1371_v21 = vpack.c.b16 %v1331_v61, %v1327_v60  ;;  %v1134_v27 = vrot.slane %v1132_v8, 5  ;;  %v1207_v59 = vshrl.u32 %v766_v41, 16 }
  0xf0   :  { %2548 = vmatpush.bf16.msra.mxu1 %v10306_v54  ;;  %v1121_v18 = vsel %vm10934_vm2, %v1116_v5, %v1120_v6  ;;  %v1149_v28 = vsel %vm10934_vm2, %v1144_v12, %v1148_v7  ;;  %v1193_v54 = vshrl.u32 %v765_v35, 16  ;;  %v1210_v60 = vshll.u32 %v766_v41, 16 }
  0xf1   :  { %v620_v29 = vpop.f32.mrf.mxu2  ;;  %v524_v37 = vpop.f32.mrf.mxu0  ;;  %v1334_v40 = vunpack.c.h.b16 %v1121_v18  ;;  %v1167_v7 = vrot.slane %v1165_v46, 4  ;;  %v1170_v8 = vrot.slane %v1168_v49, 5 }
  0xf2   :  { %v669_v30 = vpop.f32.mrf.mxu3  ;;  %v621_v36 = vadd.f32 %v620_v29, %v572_v0  ;;  %v573_v39 = vpop.f32.mrf.mxu1  ;;  %v1332_v0 = vunpack.c.h.b16 %v1107_v45  ;;  %v1130_v29 = vrot.slane %v1129_v13, 4  ;;  %v1195_v12 = vrot.slane %v1193_v54, 4 }
  0xf3   :  { %v574_v43 = vadd.f32 %v573_v39, %v524_v37  ;;  %v1333_v37 = vunpack.c.l.b16 %v1121_v18  ;;  %v1337_v39 = vunpack.c.l.b16 %v1149_v28  ;;  %v1198_v13 = vrot.slane %v1196_v55, 5 }
  0xf4   :  { %v11140_v47 = vadd.f32 %v669_v30, %v621_v36  ;;  %v1372_v22 = vpack.c.b16 %v1332_v0, %v1328_v62  ;;  %v1158_v30 = vrot.slane %v1157_v14, 4  ;;  %v762_v36 = vld [vmem:[%s13293_s0 + $0x208] sm:$0xff]  ;;  %v1135_v44 = vsel %vm10934_vm2, %v1130_v29, %v1134_v27  ;;  %v764_v14 = vld [vmem:[%s13293_s0 + $0x218] sm:$0x11] }
  0xf5   :  { %v1179_v56 = vshrl.u32 %v762_v36, 16  ;;  %v1182_v58 = vshll.u32 %v762_v36, 16  ;;  %v1338_v62 = vunpack.c.h.b16 %v1149_v28  ;;  %v1335_v0 = vunpack.c.l.b16 %v1135_v44 }
  0xf6   :  { %v1163_v45 = vsel %vm10934_vm2, %v1158_v30, %v1162_v31  ;;  %v1336_v2 = vunpack.c.h.b16 %v1135_v44  ;;  %v1171_v30 = vor.u32 %v1170_v8, %v1167_v7  ;;  %v1199_v35 = vor.u32 %v1198_v13, %v1195_v12 }
  0xf7   :  { %v1339_v5 = vunpack.c.l.b16 %v1163_v45  ;;  %v1340_v6 = vunpack.c.h.b16 %v1163_v45  ;;  %v1181_v16 = vrot.slane %v1179_v56, 4  ;;  %v1188_v41 = vshll.u32 %v764_v14, 16 }
  0xf8   :  { %v1172_v44 = vrot.slane %v1171_v30, 4  ;;  %v1200_v46 = vrot.slane %v1199_v35, 4  ;;  %v1855_v35 = vld [vmem:[%s13293_s0 + $0x30] sm:$0x11] }
  0xf9   :  { %v622_v9 = vpop.f32.mrf.mxu2  ;;  %v527_v19 = vpop.f32.mrf.mxu0  ;;  %v1375_v28 = vpack.c.b16 %v1339_v5, %v1335_v0  ;;  %v1376_v29 = vpack.c.b16 %v1340_v6, %v1336_v2  ;;  %v1190_v54 = vrot.slane %v1188_v41, 5 }
  0xfa   :  { %v671_v11 = vpop.f32.mrf.mxu3  ;;  %v623_v17 = vadd.f32 %v622_v9, %v574_v43  ;;  %v576_v20 = vpop.f32.mrf.mxu1  ;;  %v763_v9 = vld [vmem:[%s13293_s0 + $0x210] sm:$0x11] }
  0xfb   :  { %v577_v23 = vadd.f32 %v576_v20, %v527_v19  ;;  %v1209_v19 = vrot.slane %v1207_v59, 4  ;;  %v1212_v20 = vrot.slane %v1210_v60, 5  ;;  %v1174_v31 = vshll.u32 %v763_v9, 16 }
  0xfc   :  { %v11148_v25 = vadd.f32 %v671_v11, %v623_v17  ;;  %1638 = vmatmul.bf16.gmra.mxu0 %v1369_v1  ;;  %v10297_v1 = vld [vmem:[#allocation3 + $0x200] sm:$0xff]  ;;  %v767_v11 = vld [vmem:[%s13293_s0 + $0x230] sm:$0x11]  ;;  %v1184_v17 = vrot.slane %v1182_v58, 5 }
  0xfd   :  { %1687 = vmatmul.bf16.gmra.mxu1 %v1370_v3  ;;  %v10305_v3 = vld [vmem:[#allocation3 + $0x240] sm:$0xff]  ;;  %2500 = vmatpush.bf16.msra.mxu0 %v10297_v1  ;;  %v1202_v36 = vshll.u32 %v767_v11, 16  ;;  %v1176_v45 = vrot.slane %v1174_v31, 5 }
  0xfe   :  { %1736 = vmatmul.bf16.gmra.mxu2 %v1371_v21  ;;  %2549 = vmatpush.bf16.msra.mxu1 %v10305_v3  ;;  %v1373_v21 = vpack.c.b16 %v1337_v39, %v1333_v37  ;;  %v1213_v37 = vor.u32 %v1212_v20, %v1209_v19  ;;  %v10376_v19 = vld [vmem:[#allocation3 + $0x378] sm:$0xff]  ;;  %v1849_v31 = vld [vmem:[%s13293_s0] sm:$0xee] }
  0xff   :  { %1785 = vmatmul.bf16.gmra.mxu3 %v1372_v22  ;;  %v1374_v22 = vpack.c.b16 %v1338_v62, %v1334_v40  ;;  %v1204_v49 = vrot.slane %v1202_v36, 5  ;;  %v1177_v0 = vsel %vm10934_vm2, %v1172_v44, %v1176_v45  ;;  %v1850_v36 = vld [vmem:[%s13293_s0 + $0x8] sm:$0xee] }
 0x100   :  { %v1214_v55 = vrot.slane %v1213_v37, 4  ;;  %v1341_v7 = vunpack.c.l.b16 %v1177_v0  ;;  %v1342_v9 = vunpack.c.h.b16 %v1177_v0  ;;  %v1856_v37 = vld [vmem:[%s13293_s0 + $0x38] sm:$0x11] }
 0x101   :  { %v625_v42 = vpop.f32.mrf.mxu2  ;;  %v529_v52 = vpop.f32.mrf.mxu0  ;;  %v1205_v2 = vsel %vm10934_vm2, %v1200_v46, %v1204_v49  ;;  %v1990_v46 = vrot.slane %v1855_v35, 5  ;;  %v10383_v49 = vld [vmem:[#allocation3 + $0x3b0] sm:$0xff] }
 0x102   :  { %v674_v43 = vpop.f32.mrf.mxu3  ;;  %v626_v51 = vadd.f32 %v625_v42, %v577_v23  ;;  %v578_v53 = vpop.f32.mrf.mxu1  ;;  %v768_v23 = vld [vmem:[%s13293_s0 + $0x238] sm:$0x11]  ;;  %v1345_v8 = vunpack.c.l.b16 %v1205_v2  ;;  %v1346_v11 = vunpack.c.h.b16 %v1205_v2  ;;  %3236 = vmatpush.bf16.msrb.mxu1 %v10376_v19  ;;  %v10367_v19 = vld [vmem:[#allocation3 + $0x330] sm:$0xff] }
 0x103   :  { %v579_v57 = vadd.f32 %v578_v53, %v529_v52  ;;  %v1216_v39 = vshll.u32 %v768_v23, 16  ;;  %v10392_v52 = vld [vmem:[#allocation3 + $0x3f8] sm:$0xff] }
 0x104   :  { %v11170_v61 = vadd.f32 %v674_v43, %v626_v51  ;;  %v1185_v43 = vor.u32 %v1184_v17, %v1181_v16  ;;  %v10384_v51 = vld [vmem:[#allocation3 + $0x3b8] sm:$0xff]  ;;  %3334 = vmatpush.bf16.msrb.mxu3 %v10392_v52  ;;  %v1378_v23 = vpack.c.b16 %v1346_v11, %v1342_v9 }
 0x105   :  { %v1218_v56 = vrot.slane %v1216_v39, 5  ;;  %3285 = vmatpush.bf16.msrb.mxu2 %v10384_v51  ;;  %v10368_v17 = vld [vmem:[#allocation3 + $0x338] sm:$0xff]  ;;  %v8633_v39 = vrot.slane %v1849_v31, 9  ;;  %v10391_v51 = vld [vmem:[#allocation3 + $0x3f0] sm:$0xff] }
 0x106   :  { %v1186_v53 = vrot.slane %v1185_v43, 4  ;;  %3187 = vmatpush.bf16.msrb.mxu0 %v10368_v17  ;;  %v1854_v43 = vld [vmem:[%s13293_s0 + $0x28] sm:$0xee] }
 0x107   :  { %v1219_v5 = vsel %vm10934_vm2, %v1214_v55, %v1218_v56  ;;  %v8636_v55 = vrot.slane %v1854_v43, 9  ;;  %v1994_v56 = vrot.slane %v1856_v37, 5  ;;  %v1860_v43 = vld [vmem:[%s13293_s0 + $0x58] sm:$0x11] }
 0x108   :  { %v1191_v3 = vsel %vm10934_vm2, %v1186_v53, %v1190_v54  ;;  %v1347_v13 = vunpack.c.l.b16 %v1219_v5  ;;  %v1348_v16 = vunpack.c.h.b16 %v1219_v5  ;;  %v8634_v53 = vrot.slane %v1850_v36, 9  ;;  %3335 = vmatpush.bf16.msrb.mxu3 %v10391_v51  ;;  %v1863_v36 = vld [vmem:[%s13293_s0 + $0x70] sm:$0x11] }
 0x109   :  { %v627_v18 = vpop.f32.mrf.mxu2  ;;  %v532_v33 = vpop.f32.mrf.mxu0  ;;  %v1343_v12 = vunpack.c.l.b16 %v1191_v3  ;;  %v1344_v14 = vunpack.c.h.b16 %v1191_v3  ;;  %3286 = vmatpush.bf16.msrb.mxu2 %v10383_v49  ;;  %v1995_v5 = vsel %vm11224_vm5, %v8636_v55, %v1994_v56  ;;  %v2006_v51 = vrot.slane %v1863_v36, 5  ;;  %v10382_v55 = vld [vmem:[#allocation3 + $0x3a8] sm:$0xff]  ;;  %v1867_v36 = vld [vmem:[%s13293_s0 + $0x90] sm:$0x11] }
 0x10a   :  { %v676_v27 = vpop.f32.mrf.mxu3  ;;  %v628_v32 = vadd.f32 %v627_v18, %v579_v57  ;;  %v581_v34 = vpop.f32.mrf.mxu1  ;;  %v2180_v17 = vunpack.c.h.b16 %v1995_v5  ;;  %3188 = vmatpush.bf16.msrb.mxu0 %v10367_v19  ;;  %v10390_v56 = vld [vmem:[#allocation3 + $0x3e8] sm:$0xff] }
 0x10b   :  { %v582_v42 = vadd.f32 %v581_v34, %v532_v33  ;;  %v1380_v30 = vpack.c.b16 %v1348_v16, %v1344_v14  ;;  %v1853_v33 = vld [vmem:[%s13293_s0 + $0x20] sm:$0xee]  ;;  %v2179_v14 = vunpack.c.l.b16 %v1995_v5 }
 0x10c   :  { %v11184_v40 = vadd.f32 %v676_v27, %v628_v32  ;;  %1643 = vmatmul.bf16.gmra.mxu0 %v1373_v21  ;;  %v1851_v32 = vld [vmem:[%s13293_s0 + $0x10] sm:$0x11]  ;;  %v8635_v45 = vrot.slane %v1853_v33, 9  ;;  %3336 = vmatpush.bf16.msrb.mxu3 %v10390_v56 }
 0x10d   :  { %1692 = vmatmul.bf16.gmra.mxu1 %v1374_v22  ;;  %v1377_v22 = vpack.c.b16 %v1345_v8, %v1341_v7  ;;  %v1982_v44 = vrot.slane %v1851_v32, 5  ;;  %v1857_v32 = vld [vmem:[%s13293_s0 + $0x40] sm:$0xee]  ;;  %v1859_v33 = vld [vmem:[%s13293_s0 + $0x50] sm:$0x11]  ;;  %3287 = vmatpush.bf16.msrb.mxu2 %v10382_v55 }
 0x10e   :  { %1741 = vmatmul.bf16.gmra.mxu2 %v1375_v28  ;;  %v1991_v2 = vsel %vm11224_vm5, %v8635_v45, %v1990_v46  ;;  %v8637_v45 = vrot.slane %v1857_v32, 9  ;;  %v1998_v46 = vrot.slane %v1859_v33, 5 }
 0x10f   :  { %1790 = vmatmul.bf16.gmra.mxu3 %v1376_v29  ;;  %v1379_v29 = vpack.c.b16 %v1347_v13, %v1343_v12  ;;  %v1983_v0 = vsel %vm11224_vm5, %v8633_v39, %v1982_v44  ;;  %v2177_v9 = vunpack.c.l.b16 %v1991_v2  ;;  %v2178_v12 = vunpack.c.h.b16 %v1991_v2  ;;  %v1862_v39 = vld [vmem:[%s13293_s0 + $0x68] sm:$0xee]  ;;  %v1864_v44 = vld [vmem:[%s13293_s0 + $0x78] sm:$0x11] }
 0x110   :  { %v2173_v8 = vunpack.c.l.b16 %v1983_v0  ;;  %v2174_v11 = vunpack.c.h.b16 %v1983_v0 }
 0x111   :  { %v630_v57 = vpop.f32.mrf.mxu2  ;;  %v534_v60 = vpop.f32.mrf.mxu0 }
 0x112   :  { %v679_v58 = vpop.f32.mrf.mxu3  ;;  %v631_v59 = vadd.f32 %v630_v57, %v582_v42  ;;  %v583_v62 = vpop.f32.mrf.mxu1  ;;  %v1852_v42 = vld [vmem:[%s13293_s0 + $0x18] sm:$0x11] }
 0x113   :  { %v584_v1 = vadd.f32 %v583_v62, %v534_v60  ;;  %v1986_v54 = vrot.slane %v1852_v42, 5  ;;  %v1858_v42 = vld [vmem:[%s13293_s0 + $0x48] sm:$0xee] }
 0x114   :  { %v11194_v6 = vadd.f32 %v679_v58, %v631_v59 }
 0x115   :  { %v1987_v3 = vsel %vm11224_vm5, %v8634_v53, %v1986_v54  ;;  %v8638_v53 = vrot.slane %v1858_v42, 9  ;;  %v2002_v54 = vrot.slane %v1860_v43, 5  ;;  %v1869_v42 = vld [vmem:[%s13293_s0 + $0xa0] sm:$0xee] }
 0x116   :  { %v2175_v13 = vunpack.c.l.b16 %v1987_v3  ;;  %v2176_v16 = vunpack.c.h.b16 %v1987_v3  ;;  %v8643_v55 = vrot.slane %v1869_v42, 9 }
 0x117   :  { %v2003_v5 = vsel %vm11224_vm5, %v8638_v53, %v2002_v54  ;;  %v2014_v54 = vrot.slane %v1867_v36, 5 }
 0x118   :  { %v2240_v31 = vpack.c.b16 %v2180_v17, %v2176_v16  ;;  %v2183_v17 = vunpack.c.l.b16 %v2003_v5 }
 0x119   :  { %v632_v20 = vpop.f32.mrf.mxu2  ;;  %v537_v27 = vpop.f32.mrf.mxu0 }
 0x11a   :  { %v681_v21 = vpop.f32.mrf.mxu3  ;;  %v633_v18 = vadd.f32 %v632_v20, %v584_v1  ;;  %v586_v28 = vpop.f32.mrf.mxu1  ;;  %v10375_v20 = vld [vmem:[#allocation3 + $0x370] sm:$0xff] }
 0x11b   :  { %v587_v34 = vadd.f32 %v586_v28, %v537_v27  ;;  %3237 = vmatpush.bf16.msrb.mxu1 %v10375_v20 }
 0x11c   :  { %v11211_v41 = vadd.f32 %v681_v21, %v633_v18  ;;  %1648 = vmatmul.bf16.gmra.mxu0 %v1377_v22  ;;  %v2238_v18 = vpack.c.b16 %v2178_v12, %v2174_v11 }
 0x11d   :  { %1697 = vmatmul.bf16.gmra.mxu1 %v1378_v23  ;;  %v2237_v23 = vpack.c.b16 %v2177_v9, %v2173_v8 }
 0x11e   :  { %1746 = vmatmul.bf16.gmra.mxu2 %v1379_v29 }
 0x11f   :  { %1795 = vmatmul.bf16.gmra.mxu3 %v1380_v30  ;;  %v2239_v30 = vpack.c.b16 %v2179_v14, %v2175_v13 }
 0x121   :  { %v635_v57 = vpop.f32.mrf.mxu2  ;;  %v539_v60 = vpop.f32.mrf.mxu0 }
 0x122   :  { %v684_v58 = vpop.f32.mrf.mxu3  ;;  %v636_v59 = vadd.f32 %v635_v57, %v587_v34  ;;  %v588_v62 = vpop.f32.mrf.mxu1  ;;  %v1861_v34 = vld [vmem:[%s13293_s0 + $0x60] sm:$0xee]  ;;  %v8640_v57 = vrot.slane %v1862_v39, 9  ;;  %v1871_v39 = vld [vmem:[%s13293_s0 + $0xb0] sm:$0x11] }
 0x123   :  { %v589_v1 = vadd.f32 %v588_v62, %v539_v60  ;;  %v8639_v49 = vrot.slane %v1861_v34, 9  ;;  %v1999_v62 = vsel %vm11224_vm5, %v8637_v45, %v1998_v46  ;;  %v1868_v45 = vld [vmem:[%s13293_s0 + $0x98] sm:$0x11] }
 0x124   :  { %v11236_v7 = vadd.f32 %v684_v58, %v636_v59  ;;  %v2010_v58 = vrot.slane %v1864_v44, 5  ;;  %v2181_v12 = vunpack.c.l.b16 %v1999_v62  ;;  %v2182_v14 = vunpack.c.h.b16 %v1999_v62  ;;  %v1866_v44 = vld [vmem:[%s13293_s0 + $0x88] sm:$0xee]  ;;  %v10389_v62 = vld [vmem:[#allocation3 + $0x3e0] sm:$0xff] }
 0x125   :  { %v2007_v3 = vsel %vm11224_vm5, %v8639_v49, %v2006_v51  ;;  %v1870_v49 = vld [vmem:[%s13293_s0 + $0xa8] sm:$0xee]  ;;  %v1872_v51 = vld [vmem:[%s13293_s0 + $0xb8] sm:$0x11]  ;;  %3337 = vmatpush.bf16.msrb.mxu3 %v10389_v62 }
 0x126   :  { %v2011_v9 = vsel %vm11224_vm5, %v8640_v57, %v2010_v58  ;;  %v2185_v13 = vunpack.c.l.b16 %v2007_v3  ;;  %v2186_v16 = vunpack.c.h.b16 %v2007_v3  ;;  %v2022_v57 = vrot.slane %v1871_v39, 5 }
 0x127   :  { %v2187_v20 = vunpack.c.l.b16 %v2011_v9  ;;  %v8642_v58 = vrot.slane %v1866_v44, 9  ;;  %v1875_v44 = vld [vmem:[%s13293_s0 + $0xd0] sm:$0x11] }
 0x129   :  { %v637_v21 = vpop.f32.mrf.mxu2  ;;  %v1614_v28 = vpop.f32.mrf.mxu0  ;;  %v2243_v34 = vpack.c.b16 %v2187_v20, %v2183_v17 }
 0x12a   :  { %v686_v22 = vpop.f32.mrf.mxu3  ;;  %v638_v27 = vadd.f32 %v637_v21, %v589_v1  ;;  %v1663_v29 = vpop.f32.mrf.mxu1  ;;  %v2184_v21 = vunpack.c.h.b16 %v2003_v5 }
 0x12b   :  { %v1664_v35 = vadd.f32 %v1663_v29, %v1614_v28  ;;  %v2241_v29 = vpack.c.b16 %v2185_v13, %v2181_v12 }
 0x12c   :  { %v11256_v37 = vadd.f32 %v686_v22, %v638_v27  ;;  %2501 = vmatmul.bf16.vlgmr.msra.gmra.mxu0 %v2237_v23  ;;  %v2188_v22 = vunpack.c.h.b16 %v2011_v9  ;;  %v10366_v23 = vld [vmem:[#allocation3 + $0x328] sm:$0xff] }
 0x12d   :  { %2550 = vmatmul.bf16.vlgmr.msra.gmra.mxu1 %v2238_v18  ;;  %v10374_v18 = vld [vmem:[#allocation3 + $0x368] sm:$0xff]  ;;  %3189 = vmatpush.bf16.msrb.mxu0 %v10366_v23 }
 0x12e   :  { %2599 = vmatmul.bf16.vlgmr.msra.gmra.mxu2 %v2239_v30  ;;  %3238 = vmatpush.bf16.msrb.mxu1 %v10374_v18  ;;  %v2242_v30 = vpack.c.b16 %v2186_v16, %v2182_v14 }
 0x12f   :  { %2648 = vmatmul.bf16.vlgmr.msra.gmra.mxu3 %v2240_v31 }
 0x131   :  { %v1712_v59 = vpop.f32.mrf.mxu2  ;;  %v1616_v2 = vpop.f32.mrf.mxu0 }
 0x132   :  { %v1761_v60 = vpop.f32.mrf.mxu3  ;;  %v1713_v0 = vadd.f32 %v1712_v59, %v1664_v35  ;;  %v1665_v1 = vpop.f32.mrf.mxu1  ;;  %v2244_v35 = vpack.c.b16 %v2188_v22, %v2184_v21  ;;  %v2018_v59 = vrot.slane %v1868_v45, 5  ;;  %v1877_v45 = vld [vmem:[%s13293_s0 + $0xe0] sm:$0xee] }
 0x133   :  { %v1666_v8 = vadd.f32 %v1665_v1, %v1616_v2  ;;  %v2026_v2 = vrot.slane %v1872_v51, 5  ;;  %v1874_v51 = vld [vmem:[%s13293_s0 + $0xc8] sm:$0xee] }
 0x134   :  { %v1762_v11 = vadd.f32 %v1761_v60, %v1713_v0  ;;  %v10381_v60 = vld [vmem:[#allocation3 + $0x3a0] sm:$0xff]  ;;  %v8644_v0 = vrot.slane %v1870_v49, 9  ;;  %v2019_v12 = vsel %vm11224_vm5, %v8642_v58, %v2018_v59  ;;  %v1879_v49 = vld [vmem:[%s13293_s0 + $0xf0] sm:$0x11]  ;;  %v2030_v59 = vrot.slane %v1875_v44, 5 }
 0x135   :  { %3288 = vmatpush.bf16.msrb.mxu2 %v10381_v60  ;;  %v2191_v23 = vunpack.c.l.b16 %v2019_v12  ;;  %v8647_v60 = vrot.slane %v1877_v45, 9 }
 0x136   :  { %v11273_v19 = vadd.f32 %v1762_v11, %v10984_v48  ;;  %v1865_v48 = vld [vmem:[%s13293_s0 + $0x80] sm:$0xee]  ;;  %v2023_v11 = vsel %vm11224_vm5, %v8643_v55, %v2022_v57  ;;  %v2027_v14 = vsel %vm11224_vm5, %v8644_v0, %v2026_v2  ;;  %v1878_v55 = vld [vmem:[%s13293_s0 + $0xe8] sm:$0xee]  ;;  %v1880_v57 = vld [vmem:[%s13293_s0 + $0xf8] sm:$0x11] }
 0x137   :  { %v8641_v53 = vrot.slane %v1865_v48, 9  ;;  %v2193_v20 = vunpack.c.l.b16 %v2023_v11  ;;  %v2194_v22 = vunpack.c.h.b16 %v2023_v11  ;;  %v2038_v0 = vrot.slane %v1879_v49, 5 }
 0x138   :  { %v8646_v2 = vrot.slane %v1874_v51, 9  ;;  %v1883_v51 = vld [vmem:[%s13293_s0 + $0x150] sm:$0x11] }
 0x139   :  { %v1714_v27 = vpop.f32.mrf.mxu2  ;;  %v1619_v32 = vpop.f32.mrf.mxu0  ;;  %v2015_v5 = vsel %vm11224_vm5, %v8641_v53, %v2014_v54  ;;  %v1876_v53 = vld [vmem:[%s13293_s0 + $0xd8] sm:$0x11] }
 0x13a   :  { %v1763_v28 = vpop.f32.mrf.mxu3  ;;  %v1715_v31 = vadd.f32 %v1714_v27, %v1666_v8  ;;  %v1668_v33 = vpop.f32.mrf.mxu1  ;;  %v2189_v17 = vunpack.c.l.b16 %v2015_v5  ;;  %v2190_v21 = vunpack.c.h.b16 %v2015_v5  ;;  %v2195_v27 = vunpack.c.l.b16 %v2027_v14  ;;  %v10388_v5 = vld [vmem:[#allocation3 + $0x3d8] sm:$0xff] }
 0x13b   :  { %v1669_v43 = vadd.f32 %v1668_v33, %v1619_v32  ;;  %3338 = vmatpush.bf16.msrb.mxu3 %v10388_v5 }
 0x13c   :  { %v1764_v46 = vadd.f32 %v1763_v28, %v1715_v31  ;;  %2506 = vmatmul.bf16.gmra.mxu0 %v2241_v29  ;;  %v2192_v28 = vunpack.c.h.b16 %v2019_v12  ;;  %v2196_v29 = vunpack.c.h.b16 %v2027_v14  ;;  %v10373_v31 = vld [vmem:[#allocation3 + $0x360] sm:$0xff] }
 0x13d   :  { %2555 = vmatmul.bf16.gmra.mxu1 %v2242_v30  ;;  %v10365_v30 = vld [vmem:[#allocation3 + $0x320] sm:$0xff] }
 0x13e   :  { %v11300_v56 = vadd.f32 %v1764_v46, %v11001_v24  ;;  %2604 = vmatmul.bf16.gmra.mxu2 %v2243_v34  ;;  %3190 = vmatpush.bf16.msrb.mxu0 %v10365_v30  ;;  %v2245_v34 = vpack.c.b16 %v2193_v20, %v2189_v17  ;;  %v2248_v39 = vpack.c.b16 %v2196_v29, %v2192_v28 }
 0x13f   :  { %2653 = vmatmul.bf16.gmra.mxu3 %v2244_v35  ;;  %3239 = vmatpush.bf16.msrb.mxu1 %v10373_v31  ;;  %v2246_v35 = vpack.c.b16 %v2194_v22, %v2190_v21 }
 0x141   :  { %v1717_v1 = vpop.f32.mrf.mxu2  ;;  %v1621_v9 = vpop.f32.mrf.mxu0 }
 0x142   :  { %v1766_v3 = vpop.f32.mrf.mxu3  ;;  %v1718_v8 = vadd.f32 %v1717_v1, %v1669_v43  ;;  %v1670_v24 = vpop.f32.mrf.mxu1  ;;  %v2247_v43 = vpack.c.b16 %v2195_v27, %v2191_v23  ;;  %v2034_v1 = vrot.slane %v1876_v53, 5  ;;  %v1885_v53 = vld [vmem:[%s13293_s0 + $0x160] sm:$0xee] }
 0x143   :  { %v1671_v13 = vadd.f32 %v1670_v24, %v1621_v9  ;;  %v2042_v9 = vrot.slane %v1880_v57, 5  ;;  %v1882_v57 = vld [vmem:[%s13293_s0 + $0x148] sm:$0xee] }
 0x144   :  { %v1767_v16 = vadd.f32 %v1766_v3, %v1718_v8  ;;  %v10380_v3 = vld [vmem:[#allocation3 + $0x398] sm:$0xff]  ;;  %v8648_v8 = vrot.slane %v1878_v55, 9  ;;  %v2035_v17 = vsel %vm11224_vm5, %v8646_v2, %v2034_v1  ;;  %v1887_v55 = vld [vmem:[%s13293_s0 + $0x170] sm:$0x11]  ;;  %v2046_v1 = vrot.slane %v1883_v51, 5 }
 0x145   :  { %3289 = vmatpush.bf16.msrb.mxu2 %v10380_v3  ;;  %v2199_v30 = vunpack.c.l.b16 %v2035_v17  ;;  %v8651_v3 = vrot.slane %v1885_v53, 9 }
 0x146   :  { %v11311_v18 = vadd.f32 %v1767_v16, %v11027_v63  ;;  %v1873_v63 = vld [vmem:[%s13293_s0 + $0xc0] sm:$0xee]  ;;  %v2039_v16 = vsel %vm11224_vm5, %v8647_v60, %v2038_v0  ;;  %v2043_v21 = vsel %vm11224_vm5, %v8648_v8, %v2042_v9  ;;  %v1886_v60 = vld [vmem:[%s13293_s0 + $0x168] sm:$0xee]  ;;  %v1888_v0 = vld [vmem:[%s13293_s0 + $0x178] sm:$0x11] }
 0x147   :  { %v8645_v58 = vrot.slane %v1873_v63, 9  ;;  %v2201_v27 = vunpack.c.l.b16 %v2039_v16  ;;  %v2202_v29 = vunpack.c.h.b16 %v2039_v16  ;;  %v2054_v8 = vrot.slane %v1887_v55, 5 }
 0x148   :  { %v8650_v9 = vrot.slane %v1882_v57, 9  ;;  %v1891_v57 = vld [vmem:[%s13293_s0 + $0x190] sm:$0x11] }
 0x149   :  { %v1719_v32 = vpop.f32.mrf.mxu2  ;;  %v1624_v36 = vpop.f32.mrf.mxu0  ;;  %v2031_v12 = vsel %vm11224_vm5, %v8645_v58, %v2030_v59  ;;  %v1884_v58 = vld [vmem:[%s13293_s0 + $0x158] sm:$0x11] }
 0x14a   :  { %v1768_v33 = vpop.f32.mrf.mxu3  ;;  %v1720_v48 = vadd.f32 %v1719_v32, %v1671_v13  ;;  %v1673_v42 = vpop.f32.mrf.mxu1  ;;  %v2197_v23 = vunpack.c.l.b16 %v2031_v12  ;;  %v2198_v28 = vunpack.c.h.b16 %v2031_v12  ;;  %v2203_v32 = vunpack.c.l.b16 %v2043_v21  ;;  %v10387_v12 = vld [vmem:[#allocation3 + $0x3d0] sm:$0xff] }
 0x14b   :  { %v1674_v46 = vadd.f32 %v1673_v42, %v1624_v36  ;;  %3339 = vmatpush.bf16.msrb.mxu3 %v10387_v12 }
 0x14c   :  { %v1769_v54 = vadd.f32 %v1768_v33, %v1720_v48  ;;  %2511 = vmatmul.bf16.gmra.mxu0 %v2245_v34  ;;  %v2200_v33 = vunpack.c.h.b16 %v2035_v17  ;;  %v2204_v34 = vunpack.c.h.b16 %v2043_v21  ;;  %v10372_v48 = vld [vmem:[#allocation3 + $0x358] sm:$0xff] }
 0x14d   :  { %2560 = vmatmul.bf16.gmra.mxu1 %v2246_v35  ;;  %v10364_v35 = vld [vmem:[#allocation3 + $0x318] sm:$0xff] }
 0x14e   :  { %v11338_v62 = vadd.f32 %v1769_v54, %v11042_v38  ;;  %2609 = vmatmul.bf16.gmra.mxu2 %v2247_v43  ;;  %3191 = vmatpush.bf16.msrb.mxu0 %v10364_v35  ;;  %v2249_v43 = vpack.c.b16 %v2201_v27, %v2197_v23  ;;  %v2252_v49 = vpack.c.b16 %v2204_v34, %v2200_v33 }
 0x14f   :  { %2658 = vmatmul.bf16.gmra.mxu3 %v2248_v39  ;;  %3240 = vmatpush.bf16.msrb.mxu1 %v10372_v48  ;;  %v2250_v39 = vpack.c.b16 %v2202_v29, %v2198_v28 }
 0x151   :  { %v1722_v24 = vpop.f32.mrf.mxu2  ;;  %v1626_v14 = vpop.f32.mrf.mxu0 }
 0x152   :  { %v1771_v11 = vpop.f32.mrf.mxu3  ;;  %v1723_v13 = vadd.f32 %v1722_v24, %v1674_v46  ;;  %v1675_v38 = vpop.f32.mrf.mxu1  ;;  %v2251_v46 = vpack.c.b16 %v2203_v32, %v2199_v30  ;;  %v2050_v24 = vrot.slane %v1884_v58, 5  ;;  %v1893_v58 = vld [vmem:[%s13293_s0 + $0x1a0] sm:$0xee] }
 0x153   :  { %v1676_v20 = vadd.f32 %v1675_v38, %v1626_v14  ;;  %v2058_v14 = vrot.slane %v1888_v0, 5  ;;  %v1890_v0 = vld [vmem:[%s13293_s0 + $0x188] sm:$0xee] }
 0x154   :  { %v1772_v22 = vadd.f32 %v1771_v11, %v1723_v13  ;;  %v10379_v11 = vld [vmem:[#allocation3 + $0x390] sm:$0xff]  ;;  %v8652_v13 = vrot.slane %v1886_v60, 9  ;;  %v2051_v23 = vsel %vm11224_vm5, %v8650_v9, %v2050_v24  ;;  %v2062_v24 = vrot.slane %v1891_v57, 5 }
 0x155   :  { %3290 = vmatpush.bf16.msrb.mxu2 %v10379_v11  ;;  %v2207_v35 = vunpack.c.l.b16 %v2051_v23  ;;  %v1895_v60 = vld [vmem:[%s13293_s0 + $0x1b0] sm:$0x11]  ;;  %v8655_v11 = vrot.slane %v1893_v58, 9 }
 0x156   :  { %v11349_v31 = vadd.f32 %v1772_v22, %v11064_v10  ;;  %v1881_v10 = vld [vmem:[%s13293_s0 + $0x140] sm:$0xee]  ;;  %v2055_v22 = vsel %vm11224_vm5, %v8651_v3, %v2054_v8  ;;  %v2059_v28 = vsel %vm11224_vm5, %v8652_v13, %v2058_v14  ;;  %v1894_v3 = vld [vmem:[%s13293_s0 + $0x1a8] sm:$0xee]  ;;  %v1896_v8 = vld [vmem:[%s13293_s0 + $0x1b8] sm:$0x11] }
 0x157   :  { %v8649_v2 = vrot.slane %v1881_v10, 9  ;;  %v2209_v32 = vunpack.c.l.b16 %v2055_v22  ;;  %v2210_v34 = vunpack.c.h.b16 %v2055_v22  ;;  %v2070_v13 = vrot.slane %v1895_v60, 5 }
 0x158   :  { %v8654_v14 = vrot.slane %v1890_v0, 9  ;;  %v1899_v0 = vld [vmem:[%s13293_s0 + $0x1d0] sm:$0x11] }
 0x159   :  { %v1724_v36 = vpop.f32.mrf.mxu2  ;;  %v1629_v44 = vpop.f32.mrf.mxu0  ;;  %v2047_v17 = vsel %vm11224_vm5, %v8649_v2, %v2046_v1  ;;  %v1892_v2 = vld [vmem:[%s13293_s0 + $0x198] sm:$0x11] }
 0x15a   :  { %v1773_v42 = vpop.f32.mrf.mxu3  ;;  %v1725_v63 = vadd.f32 %v1724_v36, %v1676_v20  ;;  %v1678_v45 = vpop.f32.mrf.mxu1  ;;  %v2205_v30 = vunpack.c.l.b16 %v2047_v17  ;;  %v2206_v33 = vunpack.c.h.b16 %v2047_v17  ;;  %v2211_v36 = vunpack.c.l.b16 %v2059_v28  ;;  %v10386_v17 = vld [vmem:[#allocation3 + $0x3c8] sm:$0xff] }
 0x15b   :  { %v1679_v54 = vadd.f32 %v1678_v45, %v1629_v44  ;;  %3340 = vmatpush.bf16.msrb.mxu3 %v10386_v17 }
 0x15c   :  { %v1774_v59 = vadd.f32 %v1773_v42, %v1725_v63  ;;  %2516 = vmatmul.bf16.gmra.mxu0 %v2249_v43  ;;  %v2208_v42 = vunpack.c.h.b16 %v2051_v23  ;;  %v2212_v43 = vunpack.c.h.b16 %v2059_v28  ;;  %v10371_v63 = vld [vmem:[#allocation3 + $0x350] sm:$0xff] }
 0x15d   :  { %2565 = vmatmul.bf16.gmra.mxu1 %v2250_v39  ;;  %v10363_v39 = vld [vmem:[#allocation3 + $0x310] sm:$0xff] }
 0x15e   :  { %v11376_v5 = vadd.f32 %v1774_v59, %v11078_v50  ;;  %2614 = vmatmul.bf16.gmra.mxu2 %v2251_v46  ;;  %3192 = vmatpush.bf16.msrb.mxu0 %v10363_v39  ;;  %v2253_v46 = vpack.c.b16 %v2209_v32, %v2205_v30  ;;  %v2256_v55 = vpack.c.b16 %v2212_v43, %v2208_v42 }
 0x15f   :  { %2663 = vmatmul.bf16.gmra.mxu3 %v2252_v49  ;;  %3241 = vmatpush.bf16.msrb.mxu1 %v10371_v63  ;;  %v2254_v49 = vpack.c.b16 %v2210_v34, %v2206_v33 }
 0x161   :  { %v1727_v38 = vpop.f32.mrf.mxu2  ;;  %v1631_v21 = vpop.f32.mrf.mxu0 }
 0x162   :  { %v1776_v16 = vpop.f32.mrf.mxu3  ;;  %v1728_v20 = vadd.f32 %v1727_v38, %v1679_v54  ;;  %v1680_v50 = vpop.f32.mrf.mxu1  ;;  %v2255_v54 = vpack.c.b16 %v2211_v36, %v2207_v35  ;;  %v2066_v38 = vrot.slane %v1892_v2, 5  ;;  %v1901_v2 = vld [vmem:[%s13293_s0 + $0x1e0] sm:$0xee] }
 0x163   :  { %v1681_v27 = vadd.f32 %v1680_v50, %v1631_v21  ;;  %v2074_v21 = vrot.slane %v1896_v8, 5  ;;  %v1898_v8 = vld [vmem:[%s13293_s0 + $0x1c8] sm:$0xee] }
 0x164   :  { %v1777_v29 = vadd.f32 %v1776_v16, %v1728_v20  ;;  %v10378_v16 = vld [vmem:[#allocation3 + $0x388] sm:$0xff]  ;;  %v8656_v20 = vrot.slane %v1894_v3, 9  ;;  %v2067_v30 = vsel %vm11224_vm5, %v8654_v14, %v2066_v38  ;;  %v1903_v3 = vld [vmem:[%s13293_s0 + $0x1f0] sm:$0x11]  ;;  %v2078_v38 = vrot.slane %v1899_v0, 5 }
 0x165   :  { %3291 = vmatpush.bf16.msrb.mxu2 %v10378_v16  ;;  %v2215_v39 = vunpack.c.l.b16 %v2067_v30  ;;  %v8659_v16 = vrot.slane %v1901_v2, 9 }
 0x166   :  { %v11387_v48 = vadd.f32 %v1777_v29, %v11100_v26  ;;  %v1889_v26 = vld [vmem:[%s13293_s0 + $0x180] sm:$0xee]  ;;  %v2071_v29 = vsel %vm11224_vm5, %v8655_v11, %v2070_v13  ;;  %v2075_v33 = vsel %vm11224_vm5, %v8656_v20, %v2074_v21  ;;  %v1902_v11 = vld [vmem:[%s13293_s0 + $0x1e8] sm:$0xee]  ;;  %v1904_v13 = vld [vmem:[%s13293_s0 + $0x1f8] sm:$0x11] }
 0x167   :  { %v8653_v9 = vrot.slane %v1889_v26, 9  ;;  %v2217_v36 = vunpack.c.l.b16 %v2071_v29  ;;  %v2218_v43 = vunpack.c.h.b16 %v2071_v29  ;;  %v2086_v20 = vrot.slane %v1903_v3, 5 }
 0x168   :  { %v8658_v21 = vrot.slane %v1898_v8, 9  ;;  %v1907_v8 = vld [vmem:[%s13293_s0 + $0x210] sm:$0x11] }
 0x169   :  { %v1729_v44 = vpop.f32.mrf.mxu2  ;;  %v1634_v51 = vpop.f32.mrf.mxu0  ;;  %v2063_v23 = vsel %vm11224_vm5, %v8653_v9, %v2062_v24  ;;  %v1900_v9 = vld [vmem:[%s13293_s0 + $0x1d8] sm:$0x11] }
 0x16a   :  { %v1778_v45 = vpop.f32.mrf.mxu3  ;;  %v1730_v10 = vadd.f32 %v1729_v44, %v1681_v27  ;;  %v1683_v53 = vpop.f32.mrf.mxu1  ;;  %v2213_v35 = vunpack.c.l.b16 %v2063_v23  ;;  %v2214_v42 = vunpack.c.h.b16 %v2063_v23  ;;  %v2219_v44 = vunpack.c.l.b16 %v2075_v33  ;;  %v10385_v23 = vld [vmem:[#allocation3 + $0x3c0] sm:$0xff] }
 0x16b   :  { %v1684_v59 = vadd.f32 %v1683_v53, %v1634_v51  ;;  %3341 = vmatpush.bf16.msrb.mxu3 %v10385_v23 }
 0x16c   :  { %v1779_v1 = vadd.f32 %v1778_v45, %v1730_v10  ;;  %2521 = vmatmul.bf16.gmra.mxu0 %v2253_v46  ;;  %v2216_v45 = vunpack.c.h.b16 %v2067_v30  ;;  %v2220_v46 = vunpack.c.h.b16 %v2075_v33  ;;  %v10370_v10 = vld [vmem:[#allocation3 + $0x348] sm:$0xff] }
 0x16d   :  { %2570 = vmatmul.bf16.gmra.mxu1 %v2254_v49  ;;  %v10362_v49 = vld [vmem:[#allocation3 + $0x308] sm:$0xff] }
 0x16e   :  { %v11414_v12 = vadd.f32 %v1779_v1, %v11114_v4  ;;  %2619 = vmatmul.bf16.gmra.mxu2 %v2255_v54  ;;  %3193 = vmatpush.bf16.msrb.mxu0 %v10362_v49  ;;  %v2257_v54 = vpack.c.b16 %v2217_v36, %v2213_v35  ;;  %v2260_v60 = vpack.c.b16 %v2220_v46, %v2216_v45 }
 0x16f   :  { %2668 = vmatmul.bf16.gmra.mxu3 %v2256_v55  ;;  %3242 = vmatpush.bf16.msrb.mxu1 %v10370_v10  ;;  %v2258_v55 = vpack.c.b16 %v2218_v43, %v2214_v42 }
 0x171   :  { %v1732_v50 = vpop.f32.mrf.mxu2  ;;  %v1636_v28 = vpop.f32.mrf.mxu0 }
 0x172   :  { %v1781_v22 = vpop.f32.mrf.mxu3  ;;  %v1733_v27 = vadd.f32 %v1732_v50, %v1684_v59  ;;  %v1685_v4 = vpop.f32.mrf.mxu1  ;;  %v2259_v59 = vpack.c.b16 %v2219_v44, %v2215_v39  ;;  %v2082_v50 = vrot.slane %v1900_v9, 5  ;;  %v1909_v9 = vld [vmem:[%s13293_s0 + $0x220] sm:$0xee] }
 0x173   :  { %v1686_v32 = vadd.f32 %v1685_v4, %v1636_v28  ;;  %v2090_v28 = vrot.slane %v1904_v13, 5  ;;  %v1906_v13 = vld [vmem:[%s13293_s0 + $0x208] sm:$0xee] }
 0x174   :  { %v1782_v34 = vadd.f32 %v1781_v22, %v1733_v27  ;;  %v10377_v22 = vld [vmem:[#allocation3 + $0x380] sm:$0xff]  ;;  %v8660_v27 = vrot.slane %v1902_v11, 9  ;;  %v2083_v35 = vsel %vm11224_vm5, %v8658_v21, %v2082_v50  ;;  %v1911_v11 = vld [vmem:[%s13293_s0 + $0x230] sm:$0x11]  ;;  %v2094_v50 = vrot.slane %v1907_v8, 5 }
 0x175   :  { %3292 = vmatpush.bf16.msrb.mxu2 %v10377_v22  ;;  %v2223_v49 = vunpack.c.l.b16 %v2083_v35  ;;  %v8663_v22 = vrot.slane %v1909_v9, 9 }
 0x176   :  { %v11425_v63 = vadd.f32 %v1782_v34, %v11140_v47  ;;  %v1897_v47 = vld [vmem:[%s13293_s0 + $0x1c0] sm:$0xee]  ;;  %v2087_v34 = vsel %vm11224_vm5, %v8659_v16, %v2086_v20  ;;  %v2091_v42 = vsel %vm11224_vm5, %v8660_v27, %v2090_v28  ;;  %v1910_v16 = vld [vmem:[%s13293_s0 + $0x228] sm:$0xee]  ;;  %v1912_v20 = vld [vmem:[%s13293_s0 + $0x238] sm:$0x11] }
 0x177   :  { %v8657_v14 = vrot.slane %v1897_v47, 9  ;;  %v2225_v44 = vunpack.c.l.b16 %v2087_v34  ;;  %v2226_v46 = vunpack.c.h.b16 %v2087_v34  ;;  %v2102_v27 = vrot.slane %v1911_v11, 5 }
 0x178   :  { %v8662_v28 = vrot.slane %v1906_v13, 9 }
 0x179   :  { %v1734_v51 = vpop.f32.mrf.mxu2  ;;  %v1639_v57 = vpop.f32.mrf.mxu0  ;;  %v2079_v30 = vsel %vm11224_vm5, %v8657_v14, %v2078_v38  ;;  %v1908_v14 = vld [vmem:[%s13293_s0 + $0x218] sm:$0x11] }
 0x17a   :  { %v1783_v53 = vpop.f32.mrf.mxu3  ;;  %v1735_v26 = vadd.f32 %v1734_v51, %v1686_v32  ;;  %v1688_v58 = vpop.f32.mrf.mxu1  ;;  %v2221_v39 = vunpack.c.l.b16 %v2079_v30  ;;  %v2222_v45 = vunpack.c.h.b16 %v2079_v30  ;;  %v2227_v51 = vunpack.c.l.b16 %v2091_v42  ;;  %v10424_v30 = vld [vmem:[#allocation3 + $0x4f8] sm:$0xff] }
 0x17b   :  { %v1689_v1 = vadd.f32 %v1688_v58, %v1639_v57  ;;  %4475 = vmatpush.bf16.msra.mxu3 %v10424_v30  ;;  %v10329_v30 = vld [vmem:[%s13293_s0 + $0x24] sm:$0xf] }
 0x17c   :  { %v1784_v24 = vadd.f32 %v1783_v53, %v1735_v26  ;;  %2526 = vmatmul.bf16.gmra.mxu0 %v2257_v54  ;;  %v2224_v53 = vunpack.c.h.b16 %v2083_v35  ;;  %v2228_v54 = vunpack.c.h.b16 %v2091_v42  ;;  %v10369_v26 = vld [vmem:[#allocation3 + $0x340] sm:$0xff] }
 0x17d   :  { %2575 = vmatmul.bf16.gmra.mxu1 %v2258_v55  ;;  %v10361_v55 = vld [vmem:[#allocation3 + $0x300] sm:$0xff] }
 0x17e   :  { %v11452_v17 = vadd.f32 %v1784_v24, %v11148_v25  ;;  %2624 = vmatmul.bf16.gmra.mxu2 %v2259_v59  ;;  %3194 = vmatpush.bf16.msrb.mxu0 %v10361_v55  ;;  %v2261_v59 = vpack.c.b16 %v2225_v44, %v2221_v39  ;;  %v2264_v3 = vpack.c.b16 %v2228_v54, %v2224_v53 }
 0x17f   :  { %2673 = vmatmul.bf16.gmra.mxu3 %v2260_v60  ;;  %3243 = vmatpush.bf16.msrb.mxu1 %v10369_v26  ;;  %v2262_v60 = vpack.c.b16 %v2226_v46, %v2222_v45 }
 0x181   :  { %v1737_v4 = vpop.f32.mrf.mxu2  ;;  %v1641_v33 = vpop.f32.mrf.mxu0 }
 0x182   :  { %v1786_v29 = vpop.f32.mrf.mxu3  ;;  %v1738_v32 = vadd.f32 %v1737_v4, %v1689_v1  ;;  %v1690_v25 = vpop.f32.mrf.mxu1  ;;  %v2263_v1 = vpack.c.b16 %v2227_v51, %v2223_v49  ;;  %v2098_v4 = vrot.slane %v1908_v14, 5 }
 0x183   :  { %v1691_v36 = vadd.f32 %v1690_v25, %v1641_v33  ;;  %v2106_v33 = vrot.slane %v1912_v20, 5 }
 0x184   :  { %v1787_v43 = vadd.f32 %v1786_v29, %v1738_v32  ;;  %v10416_v29 = vld [vmem:[#allocation3 + $0x4b8] sm:$0xff]  ;;  %v8664_v32 = vrot.slane %v1910_v16, 9  ;;  %v2099_v39 = vsel %vm11224_vm5, %v8662_v28, %v2098_v4  ;;  %v10423_v16 = vld [vmem:[#allocation3 + $0x4f0] sm:$0xff] }
 0x185   :  { %4426 = vmatpush.bf16.msra.mxu2 %v10416_v29  ;;  %v2231_v55 = vunpack.c.l.b16 %v2099_v39  ;;  %4476 = vmatpush.bf16.msra.mxu3 %v10423_v16  ;;  %v8827_v29 = vld [vmem:[%s13293_s0 + $0x20] sm:$0xf]  ;;  %v10336_v16 = vld [vmem:[%s13293_s0 + $0x84] sm:$0xf0] }
 0x186   :  { %v11463_v10 = vadd.f32 %v1787_v43, %v11170_v61  ;;  %v1905_v61 = vld [vmem:[%s13293_s0 + $0x200] sm:$0xee]  ;;  %v2103_v43 = vsel %vm11224_vm5, %v8663_v22, %v2102_v27  ;;  %v2107_v45 = vsel %vm11224_vm5, %v8664_v32, %v2106_v33 }
 0x187   :  { %v8661_v21 = vrot.slane %v1905_v61, 9  ;;  %v2233_v51 = vunpack.c.l.b16 %v2103_v43  ;;  %v2234_v54 = vunpack.c.h.b16 %v2103_v43  ;;  %v8829_v32 = vld [vmem:[%s13293_s0 + $0x40] sm:$0xf0] }
 0x189   :  { %v1739_v57 = vpop.f32.mrf.mxu2  ;;  %v1644_v0 = vpop.f32.mrf.mxu0  ;;  %v2095_v35 = vsel %vm11224_vm5, %v8661_v21, %v2094_v50 }
 0x18a   :  { %v1788_v58 = vpop.f32.mrf.mxu3  ;;  %v1740_v47 = vadd.f32 %v1739_v57, %v1691_v36  ;;  %v1693_v2 = vpop.f32.mrf.mxu1  ;;  %v2229_v49 = vunpack.c.l.b16 %v2095_v35  ;;  %v2230_v53 = vunpack.c.h.b16 %v2095_v35  ;;  %v2235_v57 = vunpack.c.l.b16 %v2107_v45  ;;  %v10407_v35 = vld [vmem:[#allocation3 + $0x470] sm:$0xff] }
 0x18b   :  { %v1694_v24 = vadd.f32 %v1693_v2, %v1644_v0 }
 0x18c   :  { %v1789_v38 = vadd.f32 %v1788_v58, %v1740_v47  ;;  %2531 = vmatmul.bf16.gmra.mxu0 %v2261_v59  ;;  %v2232_v58 = vunpack.c.h.b16 %v2099_v39  ;;  %v2236_v59 = vunpack.c.h.b16 %v2107_v45  ;;  %v10408_v47 = vld [vmem:[#allocation3 + $0x478] sm:$0xff] }
 0x18d   :  { %2580 = vmatmul.bf16.gmra.mxu1 %v2262_v60  ;;  %v10400_v60 = vld [vmem:[#allocation3 + $0x438] sm:$0xff] }
 0x18e   :  { %v11490_v23 = vadd.f32 %v1789_v38, %v11184_v40  ;;  %2629 = vmatmul.bf16.gmra.mxu2 %v2263_v1  ;;  %4328 = vmatpush.bf16.msra.mxu0 %v10400_v60  ;;  %v2265_v1 = vpack.c.b16 %v2233_v51, %v2229_v49  ;;  %v2268_v11 = vpack.c.b16 %v2236_v59, %v2232_v58  ;;  %v10415_v38 = vld [vmem:[#allocation3 + $0x4b0] sm:$0xff]  ;;  %v10414_v58 = vld [vmem:[#allocation3 + $0x4a8] sm:$0xff] }
 0x18f   :  { %2678 = vmatmul.bf16.gmra.mxu3 %v2264_v3  ;;  %4377 = vmatpush.bf16.msra.mxu1 %v10408_v47  ;;  %v2266_v3 = vpack.c.b16 %v2234_v54, %v2230_v53  ;;  %v10422_v59 = vld [vmem:[#allocation3 + $0x4e8] sm:$0xff] }
 0x190   :  { %4427 = vmatpush.bf16.msra.mxu2 %v10415_v38  ;;  %4477 = vmatpush.bf16.msra.mxu3 %v10422_v59  ;;  %v10406_v38 = vld [vmem:[#allocation3 + $0x468] sm:$0xff] }
 0x191   :  { %v1742_v25 = vpop.f32.mrf.mxu2  ;;  %v1646_v42 = vpop.f32.mrf.mxu0  ;;  %v10340_v59 = vld [vmem:[%s13293_s0 + $0xc4] sm:$0xf0] }
 0x192   :  { %v1791_v34 = vpop.f32.mrf.mxu3  ;;  %v1743_v36 = vadd.f32 %v1742_v25, %v1694_v24  ;;  %v1695_v40 = vpop.f32.mrf.mxu1  ;;  %v2267_v24 = vpack.c.b16 %v2235_v57, %v2231_v55  ;;  %v8835_v25 = vld [vmem:[%s13293_s0 + $0x28] sm:$0xf] }
 0x193   :  { %v1696_v44 = vadd.f32 %v1695_v40, %v1646_v42  ;;  %v10330_v42 = vld [vmem:[%s13293_s0 + $0x2c] sm:$0xf]  ;;  %4378 = vmatpush.bf16.msra.mxu1 %v10407_v35  ;;  %v10413_v35 = vld [vmem:[#allocation3 + $0x4a0] sm:$0xff] }
 0x194   :  { %v1792_v46 = vadd.f32 %v1791_v34, %v1743_v36  ;;  %v10399_v34 = vld [vmem:[#allocation3 + $0x430] sm:$0xff]  ;;  %v10332_v36 = vld [vmem:[%s13293_s0 + $0x44] sm:$0xf0]  ;;  %v8837_v40 = vld [vmem:[%s13293_s0 + $0x48] sm:$0xf0]  ;;  %4428 = vmatpush.bf16.msra.mxu2 %v10414_v58 }
 0x195   :  { %4329 = vmatpush.bf16.msra.mxu0 %v10399_v34  ;;  %v8836_v51 = vor.u32 %v10332_v36, %v8835_v25  ;;  %v8840_v53 = vor.u32 %v10330_v42, %v8837_v40  ;;  %v10421_v36 = vld [vmem:[#allocation3 + $0x4e0] sm:$0xff] }
 0x196   :  { %v11501_v26 = vadd.f32 %v1792_v46, %v11194_v6  ;;  %4478 = vmatpush.bf16.msra.mxu3 %v10421_v36  ;;  %v10405_v58 = vld [vmem:[#allocation3 + $0x460] sm:$0xff]  ;;  %v10344_v36 = vld [vmem:[%s13293_s0 + $0x104] sm:$0xf0] }
 0x197   :  { %4379 = vmatpush.bf16.msra.mxu1 %v10406_v38  ;;  %v10412_v38 = vld [vmem:[#allocation3 + $0x498] sm:$0xff] }
 0x198   :  { %4429 = vmatpush.bf16.msra.mxu2 %v10413_v35  ;;  %v10404_v35 = vld [vmem:[#allocation3 + $0x458] sm:$0xff] }
 0x199   :  { %v1744_v0 = vpop.f32.mrf.mxu2  ;;  %v1649_v8 = vpop.f32.mrf.mxu0 }
 0x19a   :  { %v1793_v2 = vpop.f32.mrf.mxu3  ;;  %v1745_v61 = vadd.f32 %v1744_v0, %v1696_v44  ;;  %v1698_v9 = vpop.f32.mrf.mxu1  ;;  %v8832_v44 = vor.u32 %v10329_v30, %v8829_v32 }
 0x19b   :  { %v1699_v13 = vadd.f32 %v1698_v9, %v1649_v8  ;;  %v8843_v8 = vld [vmem:[%s13293_s0 + $0x60] sm:$0xf]  ;;  %v10333_v9 = vld [vmem:[%s13293_s0 + $0x64] sm:$0xf]  ;;  %4380 = vmatpush.bf16.msra.mxu1 %v10405_v58  ;;  %v10411_v58 = vld [vmem:[#allocation3 + $0x490] sm:$0xff] }
 0x19c   :  { %v1794_v14 = vadd.f32 %v1793_v2, %v1745_v61  ;;  %2536 = vmatmul.bf16.gmra.mxu0 %v2265_v1  ;;  %4430 = vmatpush.bf16.msra.mxu2 %v10412_v38  ;;  %v10403_v38 = vld [vmem:[#allocation3 + $0x450] sm:$0xff] }
 0x19d   :  { %2585 = vmatmul.bf16.gmra.mxu1 %v2266_v3 }
 0x19e   :  { %v11504_v6 = vadd.f32 %v1794_v14, %v11211_v41  ;;  %2634 = vmatmul.bf16.gmra.mxu2 %v2267_v24  ;;  %v10331_v41 = vld [vmem:[%s13293_s0 + $0x3c] sm:$0xf0]  ;;  %v8845_v24 = vld [vmem:[%s13293_s0 + $0x80] sm:$0xf0]  ;;  %v10398_v14 = vld [vmem:[#allocation3 + $0x428] sm:$0xff] }
 0x19f   :  { %2683 = vmatmul.bf16.gmra.mxu3 %v2268_v11  ;;  %v8828_v39 = vor.u32 %v10331_v41, %v8827_v29  ;;  %4330 = vmatpush.bf16.msra.mxu0 %v10398_v14 }
 0x1a0   :  { %4381 = vmatpush.bf16.msra.mxu1 %v10404_v35  ;;  %4431 = vmatpush.bf16.msra.mxu2 %v10411_v58  ;;  %v10410_v35 = vld [vmem:[#allocation3 + $0x488] sm:$0xff] }
 0x1a1   :  { %v1747_v20 = vpop.f32.mrf.mxu2  ;;  %v1651_v22 = vpop.f32.mrf.mxu0  ;;  %v10402_v58 = vld [vmem:[#allocation3 + $0x448] sm:$0xff] }
 0x1a2   :  { %v1796_v21 = vpop.f32.mrf.mxu3  ;;  %v1748_v50 = vadd.f32 %v1747_v20, %v1699_v13  ;;  %v1700_v27 = vpop.f32.mrf.mxu1  ;;  %v8851_v13 = vld [vmem:[%s13293_s0 + $0x68] sm:$0xf]  ;;  %v10334_v20 = vld [vmem:[%s13293_s0 + $0x6c] sm:$0xf] }
 0x1a3   :  { %v1701_v28 = vadd.f32 %v1700_v27, %v1651_v22  ;;  %v8848_v27 = vor.u32 %v10333_v9, %v8845_v24  ;;  %v8852_v41 = vor.u32 %v10336_v16, %v8851_v13  ;;  %v10420_v16 = vld [vmem:[#allocation3 + $0x4d8] sm:$0xff] }
 0x1a4   :  { %v1797_v4 = vadd.f32 %v1796_v21, %v1748_v50  ;;  %v8853_v21 = vld [vmem:[%s13293_s0 + $0x88] sm:$0xf0]  ;;  %4479 = vmatpush.bf16.msra.mxu3 %v10420_v16  ;;  %v10348_v16 = vld [vmem:[%s13293_s0 + $0x184] sm:$0xf0]  ;;  %4382 = vmatpush.bf16.msra.mxu1 %v10403_v38  ;;  %v10409_v38 = vld [vmem:[#allocation3 + $0x480] sm:$0xff] }
 0x1a5   :  { %v8856_v30 = vor.u32 %v10334_v20, %v8853_v21  ;;  %4432 = vmatpush.bf16.msra.mxu2 %v10410_v35  ;;  %v10393_v35 = vld [vmem:[#allocation3 + $0x400] sm:$0xff] }
 0x1a6   :  { %v11519_v33 = vadd.f32 %v1797_v4, %v11236_v7 }
 0x1a8   :  { %4383 = vmatpush.bf16.msra.mxu1 %v10402_v58 }
 0x1a9   :  { %v1749_v7 = vpop.f32.mrf.mxu2  ;;  %v2502_v46 = vpop.f32.mrf.mxu0  ;;  %4433 = vmatpush.bf16.msra.mxu2 %v10409_v38 }
 0x1aa   :  { %v1798_v43 = vpop.f32.mrf.mxu3  ;;  %v1750_v45 = vadd.f32 %v1749_v7, %v1701_v28  ;;  %v2551_v49 = vpop.f32.mrf.mxu1 }
 0x1ab   :  { %v2552_v54 = vadd.f32 %v2551_v49, %v2502_v46  ;;  %v8859_v46 = vld [vmem:[%s13293_s0 + $0xa0] sm:$0xf]  ;;  %v10337_v49 = vld [vmem:[%s13293_s0 + $0xa4] sm:$0xf] }
 0x1ac   :  { %v1799_v55 = vadd.f32 %v1798_v43, %v1750_v45  ;;  %3195 = vmatmul.bf16.vlgmr.msrb.gmra.mxu0 %v8828_v39 }
 0x1ad   :  { %3244 = vmatmul.bf16.vlgmr.msrb.gmra.mxu1 %v8832_v44 }
 0x1ae   :  { %v11534_v57 = vadd.f32 %v1799_v55, %v11256_v37  ;;  %3293 = vmatmul.bf16.vlgmr.msrb.gmra.mxu2 %v8836_v51  ;;  %v10335_v37 = vld [vmem:[%s13293_s0 + $0x7c] sm:$0xf0]  ;;  %v8861_v51 = vld [vmem:[%s13293_s0 + $0xc0] sm:$0xf0] }
 0x1af   :  { %3342 = vmatmul.bf16.vlgmr.msrb.gmra.mxu3 %v8840_v53  ;;  %v8844_v22 = vor.u32 %v10335_v37, %v8843_v8  ;;  %v10397_v55 = vld [vmem:[#allocation3 + $0x420] sm:$0xff] }
 0x1b0   :  { %4331 = vmatpush.bf16.msra.mxu0 %v10397_v55 }
 0x1b1   :  { %v2600_v60 = vpop.f32.mrf.mxu2  ;;  %v2504_v2 = vpop.f32.mrf.mxu0 }
 0x1b2   :  { %v2649_v47 = vpop.f32.mrf.mxu3  ;;  %v2601_v0 = vadd.f32 %v2600_v60, %v2552_v54  ;;  %v2553_v1 = vpop.f32.mrf.mxu1  ;;  %v8867_v54 = vld [vmem:[%s13293_s0 + $0xa8] sm:$0xf]  ;;  %v10338_v60 = vld [vmem:[%s13293_s0 + $0xac] sm:$0xf] }
 0x1b3   :  { %v2554_v3 = vadd.f32 %v2553_v1, %v2504_v2  ;;  %v8864_v1 = vor.u32 %v10337_v49, %v8861_v51  ;;  %v8868_v37 = vor.u32 %v10340_v59, %v8867_v54  ;;  %v10419_v59 = vld [vmem:[#allocation3 + $0x4d0] sm:$0xff] }
 0x1b4   :  { %v2650_v61 = vadd.f32 %v2649_v47, %v2601_v0  ;;  %v8869_v47 = vld [vmem:[%s13293_s0 + $0xc8] sm:$0xf0]  ;;  %4480 = vmatpush.bf16.msra.mxu3 %v10419_v59  ;;  %v10352_v59 = vld [vmem:[%s13293_s0 + $0x1c4] sm:$0xf0] }
 0x1b5   :  { %v8872_v9 = vor.u32 %v10338_v60, %v8869_v47 }
 0x1b6   :  { %v11549_v11 = vadd.f32 %v2650_v61, %v11273_v19 }
 0x1b9   :  { %v2602_v19 = vpop.f32.mrf.mxu2  ;;  %v2507_v4 = vpop.f32.mrf.mxu0 }
 0x1ba   :  { %v2651_v50 = vpop.f32.mrf.mxu3  ;;  %v2603_v28 = vadd.f32 %v2602_v19, %v2554_v3  ;;  %v2556_v29 = vpop.f32.mrf.mxu1 }
 0x1bb   :  { %v2557_v32 = vadd.f32 %v2556_v29, %v2507_v4  ;;  %v8875_v4 = vld [vmem:[%s13293_s0 + $0xe0] sm:$0xf]  ;;  %v10341_v29 = vld [vmem:[%s13293_s0 + $0xe4] sm:$0xf] }
 0x1bc   :  { %v2652_v25 = vadd.f32 %v2651_v50, %v2603_v28  ;;  %3200 = vmatmul.bf16.gmra.mxu0 %v8844_v22 }
 0x1bd   :  { %3249 = vmatmul.bf16.gmra.mxu1 %v8848_v27 }
 0x1be   :  { %v11564_v34 = vadd.f32 %v2652_v25, %v11300_v56  ;;  %3298 = vmatmul.bf16.gmra.mxu2 %v8852_v41  ;;  %v10339_v56 = vld [vmem:[%s13293_s0 + $0xbc] sm:$0xf0]  ;;  %v8877_v41 = vld [vmem:[%s13293_s0 + $0x100] sm:$0xf0]  ;;  %v10396_v25 = vld [vmem:[#allocation3 + $0x418] sm:$0xff] }
 0x1bf   :  { %3347 = vmatmul.bf16.gmra.mxu3 %v8856_v30  ;;  %v8860_v2 = vor.u32 %v10339_v56, %v8859_v46  ;;  %4332 = vmatpush.bf16.msra.mxu0 %v10396_v25 }
 0x1c1   :  { %v2605_v42 = vpop.f32.mrf.mxu2  ;;  %v2509_v43 = vpop.f32.mrf.mxu0 }
 0x1c2   :  { %v2654_v40 = vpop.f32.mrf.mxu3  ;;  %v2606_v7 = vadd.f32 %v2605_v42, %v2557_v32  ;;  %v2558_v39 = vpop.f32.mrf.mxu1  ;;  %v8883_v32 = vld [vmem:[%s13293_s0 + $0xe8] sm:$0xf]  ;;  %v10342_v42 = vld [vmem:[%s13293_s0 + $0xec] sm:$0xf] }
 0x1c3   :  { %v2559_v44 = vadd.f32 %v2558_v39, %v2509_v43  ;;  %v8880_v39 = vor.u32 %v10341_v29, %v8877_v41  ;;  %v8884_v56 = vor.u32 %v10344_v36, %v8883_v32  ;;  %v10418_v36 = vld [vmem:[#allocation3 + $0x4c8] sm:$0xff] }
 0x1c4   :  { %v2655_v45 = vadd.f32 %v2654_v40, %v2606_v7  ;;  %v8885_v40 = vld [vmem:[%s13293_s0 + $0x108] sm:$0xf0]  ;;  %4481 = vmatpush.bf16.msra.mxu3 %v10418_v36  ;;  %v10401_v36 = vld [vmem:[#allocation3 + $0x440] sm:$0xff] }
 0x1c5   :  { %v8888_v49 = vor.u32 %v10342_v42, %v8885_v40  ;;  %4384 = vmatpush.bf16.msra.mxu1 %v10401_v36  ;;  %v8939_v36 = vld [vmem:[%s13293_s0 + $0x220] sm:$0xf] }
 0x1c6   :  { %v11579_v53 = vadd.f32 %v2655_v45, %v11311_v18 }
 0x1c9   :  { %v2607_v18 = vpop.f32.mrf.mxu2  ;;  %v2512_v61 = vpop.f32.mrf.mxu0 }
 0x1ca   :  { %v2656_v0 = vpop.f32.mrf.mxu3  ;;  %v2608_v3 = vadd.f32 %v2607_v18, %v2559_v44  ;;  %v2561_v8 = vpop.f32.mrf.mxu1 }
 0x1cb   :  { %v2562_v24 = vadd.f32 %v2561_v8, %v2512_v61  ;;  %v8891_v61 = vld [vmem:[%s13293_s0 + $0x160] sm:$0xf]  ;;  %v10345_v8 = vld [vmem:[%s13293_s0 + $0x164] sm:$0xf] }
 0x1cc   :  { %v2657_v13 = vadd.f32 %v2656_v0, %v2608_v3  ;;  %3205 = vmatmul.bf16.gmra.mxu0 %v8860_v2 }
 0x1cd   :  { %3254 = vmatmul.bf16.gmra.mxu1 %v8864_v1 }
 0x1ce   :  { %v11594_v14 = vadd.f32 %v2657_v13, %v11338_v62  ;;  %3303 = vmatmul.bf16.gmra.mxu2 %v8868_v37  ;;  %v10343_v62 = vld [vmem:[%s13293_s0 + $0xfc] sm:$0xf0]  ;;  %v8893_v37 = vld [vmem:[%s13293_s0 + $0x180] sm:$0xf0]  ;;  %v10395_v13 = vld [vmem:[#allocation3 + $0x410] sm:$0xff] }
 0x1cf   :  { %3352 = vmatmul.bf16.gmra.mxu3 %v8872_v9  ;;  %v8876_v43 = vor.u32 %v10343_v62, %v8875_v4  ;;  %4333 = vmatpush.bf16.msra.mxu0 %v10395_v13 }
 0x1d1   :  { %v2610_v20 = vpop.f32.mrf.mxu2  ;;  %v2514_v50 = vpop.f32.mrf.mxu0 }
 0x1d2   :  { %v2659_v21 = vpop.f32.mrf.mxu3  ;;  %v2611_v19 = vadd.f32 %v2610_v20, %v2562_v24  ;;  %v2563_v22 = vpop.f32.mrf.mxu1  ;;  %v8899_v24 = vld [vmem:[%s13293_s0 + $0x168] sm:$0xf]  ;;  %v10346_v20 = vld [vmem:[%s13293_s0 + $0x16c] sm:$0xf] }
 0x1d3   :  { %v2564_v27 = vadd.f32 %v2563_v22, %v2514_v50  ;;  %v8896_v22 = vor.u32 %v10345_v8, %v8893_v37  ;;  %v8900_v62 = vor.u32 %v10348_v16, %v8899_v24  ;;  %v10417_v16 = vld [vmem:[#allocation3 + $0x4c0] sm:$0xff] }
 0x1d4   :  { %v2660_v28 = vadd.f32 %v2659_v21, %v2611_v19  ;;  %v8901_v21 = vld [vmem:[%s13293_s0 + $0x188] sm:$0xf0]  ;;  %4482 = vmatpush.bf16.msra.mxu3 %v10417_v16  ;;  %v9083_v16 = vld [vmem:[%s13293_s0 + $0x30] sm:$0x11] }
 0x1d5   :  { %v8904_v29 = vor.u32 %v10346_v20, %v8901_v21 }
 0x1d6   :  { %v11609_v30 = vadd.f32 %v2660_v28, %v11349_v31 }
 0x1d9   :  { %v2612_v31 = vpop.f32.mrf.mxu2  ;;  %v2517_v45 = vpop.f32.mrf.mxu0 }
 0x1da   :  { %v2661_v7 = vpop.f32.mrf.mxu3  ;;  %v2613_v44 = vadd.f32 %v2612_v31, %v2564_v27  ;;  %v2566_v46 = vpop.f32.mrf.mxu1 }
 0x1db   :  { %v2567_v51 = vadd.f32 %v2566_v46, %v2517_v45  ;;  %v8907_v45 = vld [vmem:[%s13293_s0 + $0x1a0] sm:$0xf]  ;;  %v10349_v46 = vld [vmem:[%s13293_s0 + $0x1a4] sm:$0xf] }
 0x1dc   :  { %v2662_v54 = vadd.f32 %v2661_v7, %v2613_v44  ;;  %3210 = vmatmul.bf16.gmra.mxu0 %v8876_v43 }
 0x1dd   :  { %3259 = vmatmul.bf16.gmra.mxu1 %v8880_v39 }
 0x1de   :  { %v11624_v55 = vadd.f32 %v2662_v54, %v11376_v5  ;;  %3308 = vmatmul.bf16.gmra.mxu2 %v8884_v56  ;;  %v10347_v5 = vld [vmem:[%s13293_s0 + $0x17c] sm:$0xf0]  ;;  %v8909_v56 = vld [vmem:[%s13293_s0 + $0x1c0] sm:$0xf0]  ;;  %v10394_v54 = vld [vmem:[#allocation3 + $0x408] sm:$0xff] }
 0x1df   :  { %3357 = vmatmul.bf16.gmra.mxu3 %v8888_v49  ;;  %v8892_v50 = vor.u32 %v10347_v5, %v8891_v61  ;;  %4334 = vmatpush.bf16.msra.mxu0 %v10394_v54 }
 0x1e1   :  { %v2615_v60 = vpop.f32.mrf.mxu2  ;;  %v2519_v0 = vpop.f32.mrf.mxu0 }
 0x1e2   :  { %v2664_v47 = vpop.f32.mrf.mxu3  ;;  %v2616_v18 = vadd.f32 %v2615_v60, %v2567_v51  ;;  %v2568_v2 = vpop.f32.mrf.mxu1  ;;  %v8915_v51 = vld [vmem:[%s13293_s0 + $0x1a8] sm:$0xf]  ;;  %v10350_v60 = vld [vmem:[%s13293_s0 + $0x1ac] sm:$0xf] }
 0x1e3   :  { %v2569_v1 = vadd.f32 %v2568_v2, %v2519_v0  ;;  %v8912_v2 = vor.u32 %v10349_v46, %v8909_v56  ;;  %v8916_v5 = vor.u32 %v10352_v59, %v8915_v51  ;;  %4335 = vmatpush.bf16.msra.mxu0 %v10393_v35 }
 0x1e4   :  { %v2665_v3 = vadd.f32 %v2664_v47, %v2616_v18  ;;  %v8917_v47 = vld [vmem:[%s13293_s0 + $0x1c8] sm:$0xf0] }
 0x1e5   :  { %v8920_v8 = vor.u32 %v10350_v60, %v8917_v47  ;;  %v9082_v47 = vld [vmem:[%s13293_s0 + $0x28] sm:$0xff] }
 0x1e6   :  { %v11639_v9 = vadd.f32 %v2665_v3, %v11387_v48 }
 0x1e9   :  { %v2617_v48 = vpop.f32.mrf.mxu2  ;;  %v2522_v28 = vpop.f32.mrf.mxu0 }
 0x1ea   :  { %v2666_v19 = vpop.f32.mrf.mxu3  ;;  %v2618_v27 = vadd.f32 %v2617_v48, %v2569_v1  ;;  %v2571_v4 = vpop.f32.mrf.mxu1 }
 0x1eb   :  { %v2572_v41 = vadd.f32 %v2571_v4, %v2522_v28  ;;  %v8923_v28 = vld [vmem:[%s13293_s0 + $0x1e0] sm:$0xf]  ;;  %v10353_v4 = vld [vmem:[%s13293_s0 + $0x1e4] sm:$0xf] }
 0x1ec   :  { %v2667_v32 = vadd.f32 %v2666_v19, %v2618_v27  ;;  %3215 = vmatmul.bf16.gmra.mxu0 %v8892_v50 }
 0x1ed   :  { %3264 = vmatmul.bf16.gmra.mxu1 %v8896_v22 }
 0x1ee   :  { %v11654_v25 = vadd.f32 %v2667_v32, %v11414_v12  ;;  %3313 = vmatmul.bf16.gmra.mxu2 %v8900_v62  ;;  %v10351_v12 = vld [vmem:[%s13293_s0 + $0x1bc] sm:$0xf0]  ;;  %v8925_v62 = vld [vmem:[%s13293_s0 + $0x200] sm:$0xf0]  ;;  %v10356_v32 = vld [vmem:[%s13293_s0 + $0x204] sm:$0xf0] }
 0x1ef   :  { %3362 = vmatmul.bf16.gmra.mxu3 %v8904_v29  ;;  %v8908_v0 = vor.u32 %v10351_v12, %v8907_v45  ;;  %v8931_v29 = vld [vmem:[%s13293_s0 + $0x1e8] sm:$0xf] }
 0x1f0   :  { %v8932_v45 = vor.u32 %v10356_v32, %v8931_v29 }
 0x1f1   :  { %v2620_v42 = vpop.f32.mrf.mxu2  ;;  %v2524_v7 = vpop.f32.mrf.mxu0 }
 0x1f2   :  { %v2669_v40 = vpop.f32.mrf.mxu3  ;;  %v2621_v31 = vadd.f32 %v2620_v42, %v2572_v41  ;;  %v2573_v43 = vpop.f32.mrf.mxu1  ;;  %v10354_v42 = vld [vmem:[%s13293_s0 + $0x1ec] sm:$0xf] }
 0x1f3   :  { %v2574_v39 = vadd.f32 %v2573_v43, %v2524_v7 }
 0x1f4   :  { %v2670_v44 = vadd.f32 %v2669_v40, %v2621_v31  ;;  %v8933_v40 = vld [vmem:[%s13293_s0 + $0x208] sm:$0xf0]  ;;  %v9081_v31 = vld [vmem:[%s13293_s0 + $0x20] sm:$0xff] }
 0x1f5   :  { %v8936_v51 = vor.u32 %v10354_v42, %v8933_v40  ;;  %v3496_v54 = vshrl.u32 %v9081_v31, 16  ;;  %v3499_v58 = vshll.u32 %v9081_v31, 16  ;;  %v10359_v42 = vld [vmem:[%s13293_s0 + $0x23c] sm:$0xf0]  ;;  %v10357_v40 = vld [vmem:[%s13293_s0 + $0x224] sm:$0xf] }
 0x1f6   :  { %v11669_v49 = vadd.f32 %v2670_v44, %v11425_v63  ;;  %v8928_v44 = vor.u32 %v10353_v4, %v8925_v62  ;;  %v3505_v62 = vshll.u32 %v9083_v16, 16  ;;  %v8941_v31 = vld [vmem:[%s13293_s0 + $0x240] sm:$0xf0] }
 0x1f9   :  { %v2622_v63 = vpop.f32.mrf.mxu2  ;;  %v2527_v3 = vpop.f32.mrf.mxu0 }
 0x1fa   :  { %v2671_v18 = vpop.f32.mrf.mxu3  ;;  %v2623_v1 = vadd.f32 %v2622_v63, %v2574_v39  ;;  %v2576_v61 = vpop.f32.mrf.mxu1 }
 0x1fb   :  { %v2577_v37 = vadd.f32 %v2576_v61, %v2527_v3  ;;  %v3501_v3 = vrot.slane %v3499_v58, 5  ;;  %v3510_v61 = vshrl.u32 %v9082_v47, 16  ;;  %v8949_v58 = vld [vmem:[%s13293_s0 + $0x248] sm:$0xf0] }
 0x1fc   :  { %v2672_v24 = vadd.f32 %v2671_v18, %v2623_v1  ;;  %3220 = vmatmul.bf16.gmra.mxu0 %v8908_v0  ;;  %v9086_v0 = vld [vmem:[%s13293_s0 + $0x48] sm:$0xff]  ;;  %v3498_v1 = vrot.slane %v3496_v54, 4  ;;  %v10440_v54 = vld [vmem:[#allocation3 + $0x578] sm:$0xff] }
 0x1fd   :  { %3269 = vmatmul.bf16.gmra.mxu1 %v8912_v2  ;;  %v3538_v38 = vshrl.u32 %v9086_v0, 16 }
 0x1fe   :  { %v11684_v13 = vadd.f32 %v2672_v24, %v11452_v17  ;;  %3318 = vmatmul.bf16.gmra.mxu2 %v8916_v5  ;;  %v10355_v17 = vld [vmem:[%s13293_s0 + $0x1fc] sm:$0xf0]  ;;  %v10448_v5 = vld [vmem:[#allocation3 + $0x5b8] sm:$0xff]  ;;  %v3513_v24 = vshll.u32 %v9082_v47, 16  ;;  %5262 = vmatpush.bf16.msrb.mxu1 %v10440_v54 }
 0x1ff   :  { %3367 = vmatmul.bf16.gmra.mxu3 %v8920_v8  ;;  %v8924_v39 = vor.u32 %v10355_v17, %v8923_v28  ;;  %v10456_v8 = vld [vmem:[#allocation3 + $0x5f8] sm:$0xff]  ;;  %5311 = vmatpush.bf16.msrb.mxu2 %v10448_v5  ;;  %v3502_v28 = vor.u32 %v3501_v3, %v3498_v1  ;;  %v3512_v17 = vrot.slane %v3510_v61, 4  ;;  %v8940_v5 = vor.u32 %v10359_v42, %v8939_v36  ;;  %v10447_v36 = vld [vmem:[#allocation3 + $0x5b0] sm:$0xff] }
 0x200   :  { %5360 = vmatpush.bf16.msrb.mxu3 %v10456_v8  ;;  %v3515_v32 = vrot.slane %v3513_v24, 5  ;;  %v8944_v8 = vor.u32 %v10357_v40, %v8941_v31  ;;  %v10455_v42 = vld [vmem:[#allocation3 + $0x5f0] sm:$0xff] }
 0x201   :  { %v2625_v20 = vpop.f32.mrf.mxu2  ;;  %v2529_v19 = vpop.f32.mrf.mxu0 }
 0x202   :  { %v2674_v21 = vpop.f32.mrf.mxu3  ;;  %v2626_v48 = vadd.f32 %v2625_v20, %v2577_v37  ;;  %v2578_v50 = vpop.f32.mrf.mxu1  ;;  %v9087_v20 = vld [vmem:[%s13293_s0 + $0x50] sm:$0x11]  ;;  %v3516_v47 = vor.u32 %v3515_v32, %v3512_v17 }
 0x203   :  { %v2579_v22 = vadd.f32 %v2578_v50, %v2529_v19  ;;  %v3533_v29 = vshll.u32 %v9087_v20, 16  ;;  %5312 = vmatpush.bf16.msrb.mxu2 %v10447_v36  ;;  %v9097_v36 = vld [vmem:[%s13293_s0 + $0xa0] sm:$0xff] }
 0x204   :  { %v2675_v27 = vadd.f32 %v2674_v21, %v2626_v48  ;;  %v3541_v21 = vshll.u32 %v9086_v0, 16  ;;  %5361 = vmatpush.bf16.msrb.mxu3 %v10455_v42 }
 0x205   :  { %v3535_v0 = vrot.slane %v3533_v29, 5 }
 0x206   :  { %v11702_v41 = vadd.f32 %v2675_v27, %v11463_v10  ;;  %v9085_v10 = vld [vmem:[%s13293_s0 + $0x40] sm:$0xff] }
 0x207   :  { %v3524_v60 = vshrl.u32 %v9085_v10, 16  ;;  %v3527_v18 = vshll.u32 %v9085_v10, 16 }
 0x209   :  { %v2627_v7 = vpop.f32.mrf.mxu2  ;;  %v2532_v46 = vpop.f32.mrf.mxu0  ;;  %v3526_v37 = vrot.slane %v3524_v60, 4  ;;  %v3507_v60 = vrot.slane %v3505_v62, 5 }
 0x20a   :  { %v2676_v43 = vpop.f32.mrf.mxu3  ;;  %v2628_v12 = vadd.f32 %v2627_v7, %v2579_v22  ;;  %v2581_v56 = vpop.f32.mrf.mxu1  ;;  %v9084_v7 = vld [vmem:[%s13293_s0 + $0x38] sm:$0x11] }
 0x20b   :  { %v2582_v59 = vadd.f32 %v2581_v56, %v2532_v46  ;;  %v10358_v56 = vld [vmem:[%s13293_s0 + $0x22c] sm:$0xf] }
 0x20c   :  { %v2677_v63 = vadd.f32 %v2676_v43, %v2628_v12  ;;  %3225 = vmatmul.bf16.gmra.mxu0 %v8924_v39  ;;  %v3540_v43 = vrot.slane %v3538_v38, 4  ;;  %v3543_v39 = vrot.slane %v3541_v21, 5  ;;  %v9088_v12 = vld [vmem:[%s13293_s0 + $0x58] sm:$0x11]  ;;  %v8952_v20 = vor.u32 %v10358_v56, %v8949_v58 }
 0x20d   :  { %3274 = vmatmul.bf16.gmra.mxu1 %v8928_v44  ;;  %v8947_v44 = vld [vmem:[%s13293_s0 + $0x228] sm:$0xf]  ;;  %v3547_v3 = vshll.u32 %v9088_v12, 16 }
 0x20e   :  { %v11726_v2 = vadd.f32 %v2677_v63, %v11490_v23  ;;  %3323 = vmatmul.bf16.gmra.mxu2 %v8932_v45  ;;  %v3529_v23 = vrot.slane %v3527_v18, 5  ;;  %v10360_v45 = vld [vmem:[%s13293_s0 + $0x244] sm:$0xf0]  ;;  %v3519_v63 = vshll.u32 %v9084_v7, 16  ;;  %v3544_v1 = vor.u32 %v3543_v39, %v3540_v43 }
 0x20f   :  { %3372 = vmatmul.bf16.gmra.mxu3 %v8936_v51  ;;  %v10432_v51 = vld [vmem:[#allocation3 + $0x538] sm:$0xff]  ;;  %v8948_v16 = vor.u32 %v10360_v45, %v8947_v44  ;;  %v3549_v17 = vrot.slane %v3547_v3, 5 }
 0x210   :  { %v3530_v10 = vor.u32 %v3529_v23, %v3526_v37  ;;  %5213 = vmatpush.bf16.msrb.mxu0 %v10432_v51  ;;  %v9089_v23 = vld [vmem:[%s13293_s0 + $0x60] sm:$0xff]  ;;  %v9091_v51 = vld [vmem:[%s13293_s0 + $0x70] sm:$0x11] }
 0x211   :  { %v2630_v48 = vpop.f32.mrf.mxu2  ;;  %v2534_v22 = vpop.f32.mrf.mxu0  ;;  %v3552_v62 = vshrl.u32 %v9089_v23, 16  ;;  %v3555_v29 = vshll.u32 %v9089_v23, 16 }
 0x212   :  { %v2679_v19 = vpop.f32.mrf.mxu3  ;;  %v2631_v50 = vadd.f32 %v2630_v48, %v2582_v59  ;;  %v2583_v27 = vpop.f32.mrf.mxu1  ;;  %v3503_v59 = vrot.slane %v3502_v28, 4  ;;  %v3531_v18 = vrot.slane %v3530_v10, 4  ;;  %v3545_v28 = vrot.slane %v3544_v1, 4 }
 0x213   :  { %v2584_v4 = vadd.f32 %v2583_v27, %v2534_v22  ;;  %v3554_v54 = vrot.slane %v3552_v62, 4  ;;  %v3557_v58 = vrot.slane %v3555_v29, 5 }
 0x214   :  { %v2680_v35 = vadd.f32 %v2679_v19, %v2631_v50  ;;  %v11772_v48 = vsel %vm10934_vm2, %v3503_v59, %v3507_v60  ;;  %v3517_v19 = vrot.slane %v3516_v47, 4  ;;  %v3521_v50 = vrot.slane %v3519_v63, 5 }
 0x215   :  { %v3536_v27 = vsel %vm10934_vm2, %v3531_v18, %v3535_v0  ;;  %v4008_v40 = vunpack.c.l.b16 %v11772_v48  ;;  %v4009_v10 = vunpack.c.h.b16 %v11772_v48  ;;  %v3550_v39 = vsel %vm10934_vm2, %v3545_v28, %v3549_v17  ;;  %v10431_v17 = vld [vmem:[#allocation3 + $0x530] sm:$0xff] }
 0x216   :  { %v11759_v46 = vadd.f32 %v2680_v35, %v11501_v26  ;;  %v9090_v35 = vld [vmem:[%s13293_s0 + $0x68] sm:$0xff]  ;;  %v4012_v31 = vunpack.c.l.b16 %v3536_v27  ;;  %v3522_v7 = vsel %vm10934_vm2, %v3517_v19, %v3521_v50  ;;  %v4013_v43 = vunpack.c.h.b16 %v3536_v27  ;;  %5214 = vmatpush.bf16.msrb.mxu0 %v10431_v17 }
 0x217   :  { %v3566_v59 = vshrl.u32 %v9090_v35, 16  ;;  %v3569_v60 = vshll.u32 %v9090_v35, 16  ;;  %v4010_v0 = vunpack.c.l.b16 %v3522_v7  ;;  %v3558_v23 = vor.u32 %v3557_v58, %v3554_v54 }
 0x218   :  { %v4072_v62 = vpack.c.b16 %v4012_v31, %v4008_v40  ;;  %v4073_v29 = vpack.c.b16 %v4013_v43, %v4009_v10  ;;  %v3608_v58 = vshrl.u32 %v9097_v36, 16 }
 0x219   :  { %v2632_v26 = vpop.f32.mrf.mxu2  ;;  %v2537_v24 = vpop.f32.mrf.mxu0  ;;  %v3568_v48 = vrot.slane %v3566_v59, 4  ;;  %v3571_v19 = vrot.slane %v3569_v60, 5  ;;  %v3611_v59 = vshll.u32 %v9097_v36, 16 }
 0x21a   :  { %v2681_v61 = vpop.f32.mrf.mxu3  ;;  %v2633_v37 = vadd.f32 %v2632_v26, %v2584_v4  ;;  %v2586_v38 = vpop.f32.mrf.mxu1  ;;  %v9093_v4 = vld [vmem:[%s13293_s0 + $0x80] sm:$0xff] }
 0x21b   :  { %v2587_v21 = vadd.f32 %v2586_v38, %v2537_v24  ;;  %v3580_v44 = vshrl.u32 %v9093_v4, 16  ;;  %v3583_v45 = vshll.u32 %v9093_v4, 16  ;;  %v3561_v24 = vshll.u32 %v9091_v51, 16  ;;  %v10439_v4 = vld [vmem:[#allocation3 + $0x570] sm:$0xff] }
 0x21c   :  { %v2682_v22 = vadd.f32 %v2681_v61, %v2633_v37  ;;  %3230 = vmatmul.bf16.gmra.mxu0 %v8940_v5  ;;  %v4014_v61 = vunpack.c.l.b16 %v3550_v39  ;;  %v4011_v5 = vunpack.c.h.b16 %v3522_v7  ;;  %5263 = vmatpush.bf16.msrb.mxu1 %v10439_v4  ;;  %v3572_v40 = vor.u32 %v3571_v19, %v3568_v48  ;;  %v9099_v48 = vld [vmem:[%s13293_s0 + $0xb0] sm:$0x11] }
 0x21d   :  { %3279 = vmatmul.bf16.gmra.mxu1 %v8944_v8  ;;  %v4015_v8 = vunpack.c.h.b16 %v3550_v39  ;;  %v3582_v38 = vrot.slane %v3580_v44, 4  ;;  %v3563_v7 = vrot.slane %v3561_v24, 5  ;;  %v9101_v39 = vld [vmem:[%s13293_s0 + $0xc0] sm:$0xff] }
 0x21e   :  { %v11780_v32 = vadd.f32 %v2682_v22, %v11504_v6  ;;  %3328 = vmatmul.bf16.gmra.mxu2 %v8948_v16  ;;  %v9094_v6 = vld [vmem:[%s13293_s0 + $0x88] sm:$0xff]  ;;  %v3585_v16 = vrot.slane %v3583_v45, 5  ;;  %v9096_v22 = vld [vmem:[%s13293_s0 + $0x98] sm:$0x11]  ;;  %v4074_v35 = vpack.c.b16 %v4014_v61, %v4010_v0  ;;  %v3573_v61 = vrot.slane %v3572_v40, 4 }
 0x21f   :  { %3377 = vmatmul.bf16.gmra.mxu3 %v8952_v20  ;;  %v3594_v1 = vshrl.u32 %v9094_v6, 16  ;;  %v3597_v3 = vshll.u32 %v9094_v6, 16  ;;  %v9095_v20 = vld [vmem:[%s13293_s0 + $0x90] sm:$0x11]  ;;  %v4075_v42 = vpack.c.b16 %v4015_v8, %v4011_v5  ;;  %v3603_v10 = vshll.u32 %v9096_v22, 16 }
 0x220   :  { %v3586_v6 = vor.u32 %v3585_v16, %v3582_v38  ;;  %v3610_v16 = vrot.slane %v3608_v58, 4 }
 0x221   :  { %v2635_v12 = vpop.f32.mrf.mxu2  ;;  %v2539_v63 = vpop.f32.mrf.mxu0  ;;  %v3596_v27 = vrot.slane %v3594_v1, 4  ;;  %v3599_v28 = vrot.slane %v3597_v3, 5  ;;  %v9098_v3 = vld [vmem:[%s13293_s0 + $0xa8] sm:$0xff]  ;;  %v3605_v8 = vrot.slane %v3603_v10, 5 }
 0x222   :  { %v2684_v56 = vpop.f32.mrf.mxu3  ;;  %v2636_v47 = vadd.f32 %v2635_v12, %v2587_v21  ;;  %v2588_v18 = vpop.f32.mrf.mxu1  ;;  %v9092_v21 = vld [vmem:[%s13293_s0 + $0x78] sm:$0x11]  ;;  %v3559_v12 = vrot.slane %v3558_v23, 4  ;;  %v3587_v0 = vrot.slane %v3586_v6, 4  ;;  %v10446_v23 = vld [vmem:[#allocation3 + $0x5a8] sm:$0xff] }
 0x223   :  { %v2589_v26 = vadd.f32 %v2588_v18, %v2539_v63  ;;  %v3575_v31 = vshll.u32 %v9092_v21, 16  ;;  %v3600_v54 = vor.u32 %v3599_v28, %v3596_v27  ;;  %v3639_v63 = vshll.u32 %v9101_v39, 16  ;;  %v10454_v21 = vld [vmem:[#allocation3 + $0x5e8] sm:$0xff]  ;;  %v9103_v28 = vld [vmem:[%s13293_s0 + $0xd0] sm:$0x11]  ;;  %5313 = vmatpush.bf16.msrb.mxu2 %v10446_v23 }
 0x224   :  { %v2685_v37 = vadd.f32 %v2684_v56, %v2636_v47  ;;  %v3636_v47 = vshrl.u32 %v9101_v39, 16  ;;  %v3622_v27 = vshrl.u32 %v9098_v3, 16  ;;  %5362 = vmatpush.bf16.msrb.mxu3 %v10454_v21  ;;  %v3645_v10 = vshll.u32 %v9103_v28, 16 }
 0x225   :  { %v3577_v5 = vrot.slane %v3575_v31, 5  ;;  %v3601_v38 = vrot.slane %v3600_v54, 4  ;;  %v3641_v22 = vrot.slane %v3639_v63, 5 }
 0x226   :  { %v11804_v50 = vadd.f32 %v2685_v37, %v11519_v33  ;;  %v3589_v33 = vshll.u32 %v9095_v20, 16  ;;  %v9102_v37 = vld [vmem:[%s13293_s0 + $0xc8] sm:$0xff]  ;;  %v3613_v20 = vrot.slane %v3611_v59, 5  ;;  %v3638_v19 = vrot.slane %v3636_v47, 4 }
 0x227   :  { %v3650_v17 = vshrl.u32 %v9102_v37, 16  ;;  %v3653_v4 = vshll.u32 %v9102_v37, 16 }
 0x228   :  { %v3591_v1 = vrot.slane %v3589_v33, 5  ;;  %v3642_v31 = vor.u32 %v3641_v22, %v3638_v19 }
 0x229   :  { %v2637_v44 = vpop.f32.mrf.mxu2  ;;  %v3196_v56 = vpop.f32.mrf.mxu0  ;;  %v3652_v58 = vrot.slane %v3650_v17, 4  ;;  %v3655_v59 = vrot.slane %v3653_v4, 5 }
 0x22a   :  { %v2686_v45 = vpop.f32.mrf.mxu3  ;;  %v2638_v43 = vadd.f32 %v2637_v44, %v2589_v26  ;;  %v3245_v51 = vpop.f32.mrf.mxu1  ;;  %v11820_v26 = vsel %vm10934_vm2, %v3559_v12, %v3563_v7  ;;  %v3578_v7 = vsel %vm10934_vm2, %v3573_v61, %v3577_v5  ;;  %v3606_v44 = vsel %vm10934_vm2, %v3601_v38, %v3605_v8  ;;  %v10430_v5 = vld [vmem:[#allocation3 + $0x528] sm:$0xff] }
 0x22b   :  { %v3246_v60 = vadd.f32 %v3245_v51, %v3196_v56  ;;  %v4016_v36 = vunpack.c.l.b16 %v11820_v26  ;;  %v3617_v12 = vshll.u32 %v9099_v48, 16  ;;  %v9100_v51 = vld [vmem:[%s13293_s0 + $0xb8] sm:$0x11]  ;;  %v4018_v63 = vunpack.c.l.b16 %v3578_v7  ;;  %v10438_v8 = vld [vmem:[#allocation3 + $0x568] sm:$0xff]  ;;  %5215 = vmatpush.bf16.msrb.mxu0 %v10430_v5 }
 0x22c   :  { %v2687_v18 = vadd.f32 %v2686_v45, %v2638_v43  ;;  %4336 = vmatmul.bf16.vlgmr.msra.gmra.mxu0 %v4072_v62  ;;  %v3614_v45 = vor.u32 %v3613_v20, %v3610_v16  ;;  %v3624_v43 = vrot.slane %v3622_v27, 4  ;;  %v3643_v38 = vrot.slane %v3642_v31, 4  ;;  %5264 = vmatpush.bf16.msrb.mxu1 %v10438_v8 }
 0x22d   :  { %4385 = vmatmul.bf16.vlgmr.msra.gmra.mxu1 %v4073_v29  ;;  %v3619_v37 = vrot.slane %v3617_v12, 5  ;;  %v3647_v16 = vrot.slane %v3645_v10, 5  ;;  %v3631_v20 = vshll.u32 %v9100_v51, 16  ;;  %v3656_v21 = vor.u32 %v3655_v59, %v3652_v58  ;;  %v10445_v51 = vld [vmem:[#allocation3 + $0x5a0] sm:$0xff] }
 0x22e   :  { %v11826_v24 = vadd.f32 %v2687_v18, %v11534_v57  ;;  %4434 = vmatmul.bf16.vlgmr.msra.gmra.mxu2 %v4074_v35  ;;  %v3625_v57 = vshll.u32 %v9098_v3, 16  ;;  %v3592_v35 = vsel %vm10934_vm2, %v3587_v0, %v3591_v1  ;;  %v4019_v18 = vunpack.c.h.b16 %v3578_v7  ;;  %v9104_v0 = vld [vmem:[%s13293_s0 + $0xd8] sm:$0x11] }
 0x22f   :  { %4483 = vmatmul.bf16.vlgmr.msra.gmra.mxu3 %v4075_v42  ;;  %v4017_v42 = vunpack.c.h.b16 %v11820_v26  ;;  %v4021_v47 = vunpack.c.h.b16 %v3592_v35  ;;  %v4022_v3 = vunpack.c.l.b16 %v3606_v44  ;;  %v4023_v26 = vunpack.c.h.b16 %v3606_v44  ;;  %5314 = vmatpush.bf16.msrb.mxu2 %v10445_v51 }
 0x230   :  { %v3627_v54 = vrot.slane %v3625_v57, 5  ;;  %v3615_v61 = vrot.slane %v3614_v45, 4  ;;  %v3659_v48 = vshll.u32 %v9104_v0, 16  ;;  %v3657_v44 = vrot.slane %v3656_v21, 4 }
 0x231   :  { %v3294_v62 = vpop.f32.mrf.mxu2  ;;  %v3198_v33 = vpop.f32.mrf.mxu0  ;;  %v4077_v28 = vpack.c.b16 %v4021_v47, %v4017_v42  ;;  %v4078_v4 = vpack.c.b16 %v4022_v3, %v4018_v63  ;;  %v3633_v42 = vrot.slane %v3631_v20, 5 }
 0x232   :  { %v3343_v29 = vpop.f32.mrf.mxu3  ;;  %v3295_v6 = vadd.f32 %v3294_v62, %v3246_v60  ;;  %v3247_v39 = vpop.f32.mrf.mxu1  ;;  %v4020_v60 = vunpack.c.l.b16 %v3592_v35  ;;  %v3628_v23 = vor.u32 %v3627_v54, %v3624_v43  ;;  %v4079_v62 = vpack.c.b16 %v4023_v26, %v4019_v18  ;;  %v9109_v35 = vld [vmem:[%s13293_s0 + $0x100] sm:$0xff]  ;;  %v9106_v43 = vld [vmem:[%s13293_s0 + $0xe8] sm:$0xff]  ;;  %v9107_v26 = vld [vmem:[%s13293_s0 + $0xf0] sm:$0x11] }
 0x233   :  { %v3248_v40 = vadd.f32 %v3247_v39, %v3198_v33  ;;  %v3661_v45 = vrot.slane %v3659_v48, 5  ;;  %v3692_v31 = vshrl.u32 %v9109_v35, 16  ;;  %v3695_v10 = vshll.u32 %v9109_v35, 16  ;;  %v10453_v54 = vld [vmem:[#allocation3 + $0x5e0] sm:$0xff] }
 0x234   :  { %v3344_v56 = vadd.f32 %v3343_v29, %v3295_v6  ;;  %v4076_v27 = vpack.c.b16 %v4020_v60, %v4016_v36  ;;  %v9105_v29 = vld [vmem:[%s13293_s0 + $0xe0] sm:$0xff]  ;;  %v11859_v6 = vsel %vm10934_vm2, %v3615_v61, %v3619_v37  ;;  %v11863_v36 = vsel %vm10934_vm2, %v3643_v38, %v3647_v16  ;;  %v9110_v60 = vld [vmem:[%s13293_s0 + $0x108] sm:$0xff]  ;;  %5363 = vmatpush.bf16.msrb.mxu3 %v10453_v54 }
 0x235   :  { %v3629_v39 = vrot.slane %v3628_v23, 4  ;;  %v3664_v12 = vshrl.u32 %v9105_v29, 16  ;;  %v4024_v58 = vunpack.c.l.b16 %v11859_v6  ;;  %v4025_v59 = vunpack.c.h.b16 %v11859_v6  ;;  %v9111_v23 = vld [vmem:[%s13293_s0 + $0x110] sm:$0x11]  ;;  %v9108_v6 = vld [vmem:[%s13293_s0 + $0xf8] sm:$0x11] }
 0x236   :  { %v11849_v1 = vadd.f32 %v3344_v56, %v11549_v11  ;;  %v4028_v47 = vunpack.c.l.b16 %v11863_v36  ;;  %v3678_v18 = vshrl.u32 %v9106_v43, 16  ;;  %v3694_v8 = vrot.slane %v3692_v31, 4  ;;  %v9112_v31 = vld [vmem:[%s13293_s0 + $0x118] sm:$0x11] }
 0x237   :  { %v3634_v63 = vsel %vm10934_vm2, %v3629_v39, %v3633_v42  ;;  %v3666_v61 = vrot.slane %v3664_v12, 4  ;;  %v3697_v37 = vrot.slane %v3695_v10, 5  ;;  %v3681_v21 = vshll.u32 %v9106_v43, 16  ;;  %v10437_v12 = vld [vmem:[#allocation3 + $0x560] sm:$0xff] }
 0x238   :  { %v3706_v48 = vshrl.u32 %v9110_v60, 16  ;;  %v3680_v42 = vrot.slane %v3678_v18, 4  ;;  %5265 = vmatpush.bf16.msrb.mxu1 %v10437_v12 }
 0x239   :  { %v3296_v19 = vpop.f32.mrf.mxu2  ;;  %v3201_v57 = vpop.f32.mrf.mxu0  ;;  %v3698_v35 = vor.u32 %v3697_v37, %v3694_v8  ;;  %v3683_v39 = vrot.slane %v3681_v21, 5  ;;  %v3715_v8 = vshll.u32 %v9112_v31, 16  ;;  %v9119_v31 = vld [vmem:[%s13293_s0 + $0x190] sm:$0x11] }
 0x23a   :  { %v3345_v22 = vpop.f32.mrf.mxu3  ;;  %v3297_v11 = vadd.f32 %v3296_v19, %v3248_v40  ;;  %v3250_v17 = vpop.f32.mrf.mxu1  ;;  %v3667_v40 = vshll.u32 %v9105_v29, 16  ;;  %v3709_v19 = vshll.u32 %v9110_v60, 16 }
 0x23b   :  { %v3251_v7 = vadd.f32 %v3250_v17, %v3201_v57  ;;  %v3699_v18 = vrot.slane %v3698_v35, 4 }
 0x23c   :  { %v3346_v33 = vadd.f32 %v3345_v22, %v3297_v11  ;;  %4341 = vmatmul.bf16.gmra.mxu0 %v4076_v27  ;;  %v3669_v5 = vrot.slane %v3667_v40, 5  ;;  %v4029_v27 = vunpack.c.h.b16 %v11863_v36  ;;  %v4027_v11 = vunpack.c.h.b16 %v3634_v63 }
 0x23d   :  { %4390 = vmatmul.bf16.gmra.mxu1 %v4077_v28  ;;  %v4026_v28 = vunpack.c.l.b16 %v3634_v63  ;;  %v3711_v36 = vrot.slane %v3709_v19, 5  ;;  %v4080_v40 = vpack.c.b16 %v4028_v47, %v4024_v58  ;;  %v3687_v58 = vshll.u32 %v9108_v6, 16  ;;  %v9117_v47 = vld [vmem:[%s13293_s0 + $0x180] sm:$0xff] }
 0x23e   :  { %v11869_v56 = vadd.f32 %v3346_v33, %v11564_v34  ;;  %4439 = vmatmul.bf16.gmra.mxu2 %v4078_v4  ;;  %v3662_v34 = vsel %vm10934_vm2, %v3657_v44, %v3661_v45  ;;  %v3670_v29 = vor.u32 %v3669_v5, %v3666_v61  ;;  %v3708_v44 = vrot.slane %v3706_v48, 4  ;;  %v10429_v45 = vld [vmem:[#allocation3 + $0x520] sm:$0xff]  ;;  %v9114_v48 = vld [vmem:[%s13293_s0 + $0x168] sm:$0xff] }
 0x23f   :  { %4488 = vmatmul.bf16.gmra.mxu3 %v4079_v62  ;;  %v4030_v17 = vunpack.c.l.b16 %v3662_v34  ;;  %v4031_v4 = vunpack.c.h.b16 %v3662_v34  ;;  %v3673_v62 = vshll.u32 %v9107_v26, 16  ;;  %v4081_v10 = vpack.c.b16 %v4029_v27, %v4025_v59  ;;  %5216 = vmatpush.bf16.msrb.mxu0 %v10429_v45 }
 0x240   :  { %v3671_v34 = vrot.slane %v3670_v29, 4  ;;  %v3684_v61 = vor.u32 %v3683_v39, %v3680_v42  ;;  %v3712_v5 = vor.u32 %v3711_v36, %v3708_v44  ;;  %v3751_v21 = vshll.u32 %v9117_v47, 16  ;;  %v10452_v29 = vld [vmem:[#allocation3 + $0x5d8] sm:$0xff] }
 0x241   :  { %v3299_v0 = vpop.f32.mrf.mxu2  ;;  %v3203_v16 = vpop.f32.mrf.mxu0  ;;  %v4082_v43 = vpack.c.b16 %v4030_v17, %v4026_v28  ;;  %v4083_v51 = vpack.c.b16 %v4031_v4, %v4027_v11  ;;  %v3675_v54 = vrot.slane %v3673_v62, 5  ;;  %v3689_v27 = vrot.slane %v3687_v58, 5  ;;  %v9118_v4 = vld [vmem:[%s13293_s0 + $0x188] sm:$0xff]  ;;  %v10444_v62 = vld [vmem:[#allocation3 + $0x598] sm:$0xff]  ;;  %5364 = vmatpush.bf16.msrb.mxu3 %v10452_v29 }
 0x242   :  { %v3348_v3 = vpop.f32.mrf.mxu3  ;;  %v3300_v38 = vadd.f32 %v3299_v0, %v3251_v7  ;;  %v3252_v20 = vpop.f32.mrf.mxu1  ;;  %v3701_v7 = vshll.u32 %v9111_v23, 16  ;;  %v3748_v23 = vshrl.u32 %v9117_v47, 16  ;;  %v3685_v11 = vrot.slane %v3684_v61, 4  ;;  %5315 = vmatpush.bf16.msrb.mxu2 %v10444_v62 }
 0x243   :  { %v3253_v22 = vadd.f32 %v3252_v20, %v3203_v16  ;;  %v11908_v19 = vsel %vm10934_vm2, %v3671_v34, %v3675_v54  ;;  %v3717_v17 = vrot.slane %v3715_v8, 5  ;;  %v3734_v6 = vshrl.u32 %v9114_v48, 16 }
 0x244   :  { %v3349_v57 = vadd.f32 %v3348_v3, %v3300_v38  ;;  %v3703_v0 = vrot.slane %v3701_v7, 5  ;;  %v3737_v42 = vshll.u32 %v9114_v48, 16  ;;  %v3750_v39 = vrot.slane %v3748_v23, 4 }
 0x245   :  { %v3753_v44 = vrot.slane %v3751_v21, 5  ;;  %v4032_v45 = vunpack.c.l.b16 %v11908_v19  ;;  %v4033_v12 = vunpack.c.h.b16 %v11908_v19  ;;  %v3736_v58 = vrot.slane %v3734_v6, 4  ;;  %v9120_v19 = vld [vmem:[%s13293_s0 + $0x198] sm:$0x11] }
 0x246   :  { %v11892_v33 = vadd.f32 %v3349_v57, %v11579_v53  ;;  %v9113_v53 = vld [vmem:[%s13293_s0 + $0x160] sm:$0xff]  ;;  %v3713_v57 = vrot.slane %v3712_v5, 4  ;;  %v3739_v47 = vrot.slane %v3737_v42, 5  ;;  %v3757_v61 = vshll.u32 %v9119_v31, 16  ;;  %v9116_v5 = vld [vmem:[%s13293_s0 + $0x178] sm:$0x11] }
 0x247   :  { %v3720_v38 = vshrl.u32 %v9113_v53, 16  ;;  %v3723_v16 = vshll.u32 %v9113_v53, 16 }
 0x248   :  { %v3718_v34 = vsel %vm10934_vm2, %v3713_v57, %v3717_v17  ;;  %v3740_v57 = vor.u32 %v3739_v47, %v3736_v58  ;;  %v3743_v17 = vshll.u32 %v9116_v5, 16  ;;  %v3759_v29 = vrot.slane %v3757_v61, 5  ;;  %v9122_v58 = vld [vmem:[%s13293_s0 + $0x1a8] sm:$0xff]  ;;  %v10451_v61 = vld [vmem:[#allocation3 + $0x5d0] sm:$0xff] }
 0x249   :  { %v3301_v60 = vpop.f32.mrf.mxu2  ;;  %v3206_v3 = vpop.f32.mrf.mxu0  ;;  %v3722_v35 = vrot.slane %v3720_v38, 4  ;;  %v3725_v7 = vrot.slane %v3723_v16, 5  ;;  %v4038_v23 = vunpack.c.l.b16 %v3718_v34  ;;  %v4039_v48 = vunpack.c.h.b16 %v3718_v34  ;;  %5365 = vmatpush.bf16.msrb.mxu3 %v10451_v61 }
 0x24a   :  { %v3350_v63 = vpop.f32.mrf.mxu3  ;;  %v3302_v59 = vadd.f32 %v3301_v60, %v3253_v22  ;;  %v3255_v26 = vpop.f32.mrf.mxu1  ;;  %v11912_v22 = vsel %vm10934_vm2, %v3699_v18, %v3703_v0 }
 0x24b   :  { %v3256_v37 = vadd.f32 %v3255_v26, %v3206_v3  ;;  %v4036_v60 = vunpack.c.l.b16 %v11912_v22  ;;  %v3726_v0 = vor.u32 %v3725_v7, %v3722_v35  ;;  %v3754_v26 = vor.u32 %v3753_v44, %v3750_v39 }
 0x24c   :  { %v3351_v20 = vadd.f32 %v3350_v63, %v3302_v59  ;;  %4346 = vmatmul.bf16.gmra.mxu0 %v4080_v40  ;;  %v9115_v40 = vld [vmem:[%s13293_s0 + $0x170] sm:$0x11]  ;;  %v3690_v63 = vsel %vm10934_vm2, %v3685_v11, %v3689_v27  ;;  %v4037_v8 = vunpack.c.h.b16 %v11912_v22  ;;  %v10428_v27 = vld [vmem:[#allocation3 + $0x518] sm:$0xff]  ;;  %v3771_v39 = vshll.u32 %v9120_v19, 16 }
 0x24d   :  { %4395 = vmatmul.bf16.gmra.mxu1 %v4081_v10  ;;  %v3762_v10 = vshrl.u32 %v9118_v4, 16  ;;  %v3729_v3 = vshll.u32 %v9115_v40, 16  ;;  %v4035_v21 = vunpack.c.h.b16 %v3690_v63  ;;  %v10436_v11 = vld [vmem:[#allocation3 + $0x558] sm:$0xff]  ;;  %v3755_v22 = vrot.slane %v3754_v26, 4  ;;  %5217 = vmatpush.bf16.msrb.mxu0 %v10428_v27  ;;  %v10443_v26 = vld [vmem:[#allocation3 + $0x590] sm:$0xff] }
 0x24e   :  { %v11915_v28 = vadd.f32 %v3351_v20, %v11594_v14  ;;  %4444 = vmatmul.bf16.gmra.mxu2 %v4082_v43  ;;  %v3765_v43 = vshll.u32 %v9118_v4, 16  ;;  %v3727_v4 = vrot.slane %v3726_v0, 4  ;;  %5266 = vmatpush.bf16.msrb.mxu1 %v10436_v11  ;;  %v4084_v7 = vpack.c.b16 %v4036_v60, %v4032_v45 }
 0x24f   :  { %4493 = vmatmul.bf16.gmra.mxu3 %v4083_v51  ;;  %v3764_v38 = vrot.slane %v3762_v10, 4  ;;  %v3731_v62 = vrot.slane %v3729_v3, 5  ;;  %v4085_v6 = vpack.c.b16 %v4037_v8, %v4033_v12  ;;  %v4087_v31 = vpack.c.b16 %v4039_v48, %v4035_v21  ;;  %v9121_v10 = vld [vmem:[%s13293_s0 + $0x1a0] sm:$0xff]  ;;  %5316 = vmatpush.bf16.msrb.mxu2 %v10443_v26 }
 0x250   :  { %v3767_v16 = vrot.slane %v3765_v43, 5  ;;  %v3760_v60 = vsel %vm10934_vm2, %v3755_v22, %v3759_v29  ;;  %v3773_v34 = vrot.slane %v3771_v39, 5  ;;  %v3779_v0 = vshll.u32 %v9121_v10, 16  ;;  %v9123_v29 = vld [vmem:[%s13293_s0 + $0x1b0] sm:$0x11] }
 0x251   :  { %v3304_v14 = vpop.f32.mrf.mxu2  ;;  %v3208_v54 = vpop.f32.mrf.mxu0  ;;  %v3732_v12 = vsel %vm10934_vm2, %v3727_v4, %v3731_v62  ;;  %v3793_v21 = vshll.u32 %v9122_v58, 16  ;;  %v4045_v19 = vunpack.c.h.b16 %v3760_v60  ;;  %v9124_v39 = vld [vmem:[%s13293_s0 + $0x1b8] sm:$0x11] }
 0x252   :  { %v3353_v36 = vpop.f32.mrf.mxu3  ;;  %v3305_v51 = vadd.f32 %v3304_v14, %v3256_v37  ;;  %v3257_v53 = vpop.f32.mrf.mxu1  ;;  %v4034_v37 = vunpack.c.l.b16 %v3690_v63  ;;  %v3768_v42 = vor.u32 %v3767_v16, %v3764_v38  ;;  %v4040_v5 = vunpack.c.l.b16 %v3732_v12  ;;  %v9126_v16 = vld [vmem:[%s13293_s0 + $0x1c8] sm:$0xff] }
 0x253   :  { %v3258_v18 = vadd.f32 %v3257_v53, %v3208_v54  ;;  %v3745_v54 = vrot.slane %v3743_v17, 5  ;;  %v9125_v53 = vld [vmem:[%s13293_s0 + $0x1c0] sm:$0xff]  ;;  %v4041_v38 = vunpack.c.h.b16 %v3732_v12 }
 0x254   :  { %v3354_v59 = vadd.f32 %v3353_v36, %v3305_v51  ;;  %v4086_v40 = vpack.c.b16 %v4038_v23, %v4034_v37  ;;  %v3741_v51 = vrot.slane %v3740_v57, 4  ;;  %v3769_v63 = vrot.slane %v3768_v42, 4 }
 0x255   :  { %v3807_v3 = vshll.u32 %v9125_v53, 16  ;;  %v4044_v37 = vunpack.c.l.b16 %v3760_v60  ;;  %v3790_v23 = vshrl.u32 %v9122_v58, 16  ;;  %v3781_v57 = vrot.slane %v3779_v0, 5  ;;  %v9128_v0 = vld [vmem:[%s13293_s0 + $0x1d8] sm:$0x11] }
 0x256   :  { %v11938_v20 = vadd.f32 %v3354_v59, %v11609_v30  ;;  %v3804_v59 = vshrl.u32 %v9125_v53, 16  ;;  %v3746_v8 = vsel %vm10934_vm2, %v3741_v51, %v3745_v54  ;;  %v3774_v27 = vsel %vm10934_vm2, %v3769_v63, %v3773_v34  ;;  %v10427_v63 = vld [vmem:[#allocation3 + $0x510] sm:$0xff] }
 0x257   :  { %v4042_v22 = vunpack.c.l.b16 %v3746_v8  ;;  %v4043_v42 = vunpack.c.h.b16 %v3746_v8  ;;  %v3785_v54 = vshll.u32 %v9123_v29, 16  ;;  %v3799_v60 = vshll.u32 %v9124_v39, 16  ;;  %v10435_v34 = vld [vmem:[#allocation3 + $0x550] sm:$0xff]  ;;  %5218 = vmatpush.bf16.msrb.mxu0 %v10427_v63 }
 0x258   :  { %5267 = vmatpush.bf16.msrb.mxu1 %v10435_v34 }
 0x259   :  { %v3306_v35 = vpop.f32.mrf.mxu2  ;;  %v3211_v14 = vpop.f32.mrf.mxu0 }
 0x25a   :  { %v3355_v30 = vpop.f32.mrf.mxu3  ;;  %v3307_v44 = vadd.f32 %v3306_v35, %v3258_v18  ;;  %v3260_v36 = vpop.f32.mrf.mxu1  ;;  %v3776_v18 = vshrl.u32 %v9121_v10, 16  ;;  %v9127_v35 = vld [vmem:[%s13293_s0 + $0x1d0] sm:$0x11]  ;;  %v3795_v10 = vrot.slane %v3793_v21, 5 }
 0x25b   :  { %v3261_v43 = vadd.f32 %v3260_v36, %v3211_v14  ;;  %v3821_v14 = vshll.u32 %v9126_v16, 16  ;;  %v3813_v53 = vshll.u32 %v9127_v35, 16 }
 0x25c   :  { %v3356_v45 = vadd.f32 %v3355_v30, %v3307_v44  ;;  %4351 = vmatmul.bf16.gmra.mxu0 %v4084_v7  ;;  %v3778_v11 = vrot.slane %v3776_v18, 4  ;;  %v3806_v30 = vrot.slane %v3804_v59, 4  ;;  %v3809_v7 = vrot.slane %v3807_v3, 5 }
 0x25d   :  { %4400 = vmatmul.bf16.gmra.mxu1 %v4085_v6  ;;  %v3818_v44 = vshrl.u32 %v9126_v16, 16  ;;  %v4088_v18 = vpack.c.b16 %v4044_v37, %v4040_v5  ;;  %v3823_v59 = vrot.slane %v3821_v14, 5  ;;  %v4089_v3 = vpack.c.b16 %v4045_v19, %v4041_v38  ;;  %v9134_v14 = vld [vmem:[%s13293_s0 + $0x208] sm:$0xff] }
 0x25e   :  { %v11957_v47 = vadd.f32 %v3356_v45, %v11624_v55  ;;  %4449 = vmatmul.bf16.gmra.mxu2 %v4086_v40  ;;  %v4046_v40 = vunpack.c.l.b16 %v3774_v27  ;;  %v3782_v51 = vor.u32 %v3781_v57, %v3778_v11  ;;  %v3810_v12 = vor.u32 %v3809_v7, %v3806_v30 }
 0x25f   :  { %4498 = vmatmul.bf16.gmra.mxu3 %v4087_v31  ;;  %v3792_v31 = vrot.slane %v3790_v23, 4  ;;  %v3820_v58 = vrot.slane %v3818_v44, 4  ;;  %v3787_v5 = vrot.slane %v3785_v54, 5  ;;  %v3815_v37 = vrot.slane %v3813_v53, 5  ;;  %v9131_v53 = vld [vmem:[%s13293_s0 + $0x1f0] sm:$0x11] }
 0x260   :  { %v4090_v26 = vpack.c.b16 %v4046_v40, %v4042_v22  ;;  %v3783_v21 = vrot.slane %v3782_v51, 4  ;;  %v3801_v11 = vrot.slane %v3799_v60, 5  ;;  %v3827_v57 = vshll.u32 %v9128_v0, 16  ;;  %v10450_v40 = vld [vmem:[#allocation3 + $0x5c8] sm:$0xff] }
 0x261   :  { %v3309_v55 = vpop.f32.mrf.mxu2  ;;  %v3213_v4 = vpop.f32.mrf.mxu0  ;;  %v3796_v61 = vor.u32 %v3795_v10, %v3792_v31  ;;  %5366 = vmatpush.bf16.msrb.mxu3 %v10450_v40 }
 0x262   :  { %v3358_v48 = vpop.f32.mrf.mxu3  ;;  %v3310_v17 = vadd.f32 %v3309_v55, %v3261_v43  ;;  %v3262_v62 = vpop.f32.mrf.mxu1  ;;  %v4047_v43 = vunpack.c.h.b16 %v3774_v27  ;;  %v9133_v55 = vld [vmem:[%s13293_s0 + $0x200] sm:$0xff]  ;;  %v3811_v27 = vrot.slane %v3810_v12, 4  ;;  %v3829_v10 = vrot.slane %v3827_v57, 5 }
 0x263   :  { %v3263_v6 = vadd.f32 %v3262_v62, %v3213_v4  ;;  %v3824_v4 = vor.u32 %v3823_v59, %v3820_v58  ;;  %v3797_v35 = vrot.slane %v3796_v61, 4  ;;  %v3860_v30 = vshrl.u32 %v9133_v55, 16 }
 0x264   :  { %v3359_v36 = vadd.f32 %v3358_v48, %v3310_v17  ;;  %v4091_v23 = vpack.c.b16 %v4047_v43, %v4043_v42  ;;  %v3863_v7 = vshll.u32 %v9133_v55, 16  ;;  %v3788_v42 = vsel %vm10934_vm2, %v3783_v21, %v3787_v5 }
 0x265   :  { %v3816_v44 = vsel %vm10934_vm2, %v3811_v27, %v3815_v37  ;;  %v3825_v31 = vrot.slane %v3824_v4, 4  ;;  %v4048_v54 = vunpack.c.l.b16 %v3788_v42  ;;  %v3862_v12 = vrot.slane %v3860_v30, 4 }
 0x266   :  { %v11976_v45 = vadd.f32 %v3359_v36, %v11639_v9  ;;  %v9129_v9 = vld [vmem:[%s13293_s0 + $0x1e0] sm:$0xff]  ;;  %v10442_v36 = vld [vmem:[#allocation3 + $0x588] sm:$0xff]  ;;  %v3865_v60 = vrot.slane %v3863_v7, 5  ;;  %v3874_v59 = vshrl.u32 %v9134_v14, 16  ;;  %v9136_v7 = vld [vmem:[%s13293_s0 + $0x218] sm:$0x11] }
 0x267   :  { %v3832_v62 = vshrl.u32 %v9129_v9, 16  ;;  %v3835_v22 = vshll.u32 %v9129_v9, 16  ;;  %5317 = vmatpush.bf16.msrb.mxu2 %v10442_v36  ;;  %v3830_v5 = vsel %vm10934_vm2, %v3825_v31, %v3829_v10 }
 0x268   :  { %v3876_v4 = vrot.slane %v3874_v59, 4  ;;  %v4055_v30 = vunpack.c.h.b16 %v3830_v5 }
 0x269   :  { %v3311_v8 = vpop.f32.mrf.mxu2  ;;  %v3216_v38 = vpop.f32.mrf.mxu0  ;;  %v3834_v43 = vrot.slane %v3832_v62, 4  ;;  %v3837_v51 = vrot.slane %v3835_v22, 5 }
 0x26a   :  { %v3360_v16 = vpop.f32.mrf.mxu3  ;;  %v3312_v48 = vadd.f32 %v3311_v8, %v3263_v6  ;;  %v3265_v19 = vpop.f32.mrf.mxu1  ;;  %v9130_v6 = vld [vmem:[%s13293_s0 + $0x1e8] sm:$0xff]  ;;  %v4052_v8 = vunpack.c.l.b16 %v3816_v44 }
 0x26b   :  { %v3266_v17 = vadd.f32 %v3265_v19, %v3216_v38  ;;  %v3846_v0 = vshrl.u32 %v9130_v6, 16  ;;  %v3849_v58 = vshll.u32 %v9130_v6, 16  ;;  %v3838_v55 = vor.u32 %v3837_v51, %v3834_v43  ;;  %v10434_v6 = vld [vmem:[#allocation3 + $0x548] sm:$0xff] }
 0x26c   :  { %v3361_v29 = vadd.f32 %v3360_v16, %v3312_v48  ;;  %4356 = vmatmul.bf16.gmra.mxu0 %v4088_v18  ;;  %v9135_v18 = vld [vmem:[%s13293_s0 + $0x210] sm:$0x11]  ;;  %v4049_v16 = vunpack.c.h.b16 %v3788_v42  ;;  %v3841_v38 = vshll.u32 %v9131_v53, 16  ;;  %v3866_v19 = vor.u32 %v3865_v60, %v3862_v12  ;;  %v10426_v42 = vld [vmem:[#allocation3 + $0x508] sm:$0xff]  ;;  %5268 = vmatpush.bf16.msrb.mxu1 %v10434_v6 }
 0x26d   :  { %4405 = vmatmul.bf16.gmra.mxu1 %v4089_v3  ;;  %v3877_v3 = vshll.u32 %v9134_v14, 16  ;;  %v3869_v27 = vshll.u32 %v9135_v18, 16  ;;  %v3848_v57 = vrot.slane %v3846_v0, 4  ;;  %v3839_v36 = vrot.slane %v3838_v55, 4  ;;  %5219 = vmatpush.bf16.msrb.mxu0 %v10426_v42  ;;  %v9138_v55 = vld [vmem:[%s13293_s0 + $0x228] sm:$0xff] }
 0x26e   :  { %v11993_v39 = vadd.f32 %v3361_v29, %v11654_v25  ;;  %4454 = vmatmul.bf16.gmra.mxu2 %v4090_v26  ;;  %v3802_v25 = vsel %vm10934_vm2, %v3797_v35, %v3801_v11  ;;  %v9132_v11 = vld [vmem:[%s13293_s0 + $0x1f8] sm:$0x11]  ;;  %v4054_v29 = vunpack.c.l.b16 %v3830_v5  ;;  %v3843_v40 = vrot.slane %v3841_v38, 5  ;;  %v10441_v5 = vld [vmem:[#allocation3 + $0x580] sm:$0xff] }
 0x26f   :  { %4503 = vmatmul.bf16.gmra.mxu3 %v4091_v23  ;;  %v4053_v23 = vunpack.c.h.b16 %v3816_v44  ;;  %v4050_v37 = vunpack.c.l.b16 %v3802_v25  ;;  %v3879_v62 = vrot.slane %v3877_v3, 5  ;;  %v4051_v35 = vunpack.c.h.b16 %v3802_v25  ;;  %5318 = vmatpush.bf16.msrb.mxu2 %v10441_v5  ;;  %v9144_v5 = vld [vmem:[%s13293_s0 + $0x258] sm:$0x11] }
 0x270   :  { %v4092_v44 = vpack.c.b16 %v4052_v8, %v4048_v54  ;;  %v3871_v31 = vrot.slane %v3869_v27, 5  ;;  %v3855_v10 = vshll.u32 %v9132_v11, 16  ;;  %v3867_v51 = vrot.slane %v3866_v19, 4 }
 0x271   :  { %v3314_v63 = vpop.f32.mrf.mxu2  ;;  %v3218_v61 = vpop.f32.mrf.mxu0  ;;  %v4093_v14 = vpack.c.b16 %v4053_v23, %v4049_v16  ;;  %v3880_v25 = vor.u32 %v3879_v62, %v3876_v4  ;;  %v3883_v12 = vshll.u32 %v9136_v7, 16  ;;  %v4094_v18 = vpack.c.b16 %v4054_v29, %v4050_v37  ;;  %v9137_v16 = vld [vmem:[%s13293_s0 + $0x220] sm:$0xff] }
 0x272   :  { %v3363_v34 = vpop.f32.mrf.mxu3  ;;  %v3315_v26 = vadd.f32 %v3314_v63, %v3266_v17  ;;  %v3267_v9 = vpop.f32.mrf.mxu1  ;;  %v3851_v17 = vrot.slane %v3849_v58, 5  ;;  %v4095_v0 = vpack.c.b16 %v4055_v30, %v4051_v35  ;;  %v3844_v59 = vsel %vm10934_vm2, %v3839_v36, %v3843_v40  ;;  %v10449_v37 = vld [vmem:[#allocation3 + $0x5c0] sm:$0xff] }
 0x273   :  { %v3268_v21 = vadd.f32 %v3267_v9, %v3218_v61  ;;  %v3857_v3 = vrot.slane %v3855_v10, 5  ;;  %v3881_v9 = vrot.slane %v3880_v25, 4  ;;  %v3885_v8 = vrot.slane %v3883_v12, 5  ;;  %5367 = vmatpush.bf16.msrb.mxu3 %v10449_v37  ;;  %v9139_v12 = vld [vmem:[%s13293_s0 + $0x230] sm:$0x11] }
 0x274   :  { %v3364_v48 = vadd.f32 %v3363_v34, %v3315_v26  ;;  %v3852_v53 = vor.u32 %v3851_v17, %v3848_v57  ;;  %v3872_v26 = vsel %vm10934_vm2, %v3867_v51, %v3871_v31  ;;  %v4057_v19 = vunpack.c.h.b16 %v3844_v59 }
 0x275   :  { %v4060_v38 = vunpack.c.l.b16 %v3872_v26  ;;  %v3888_v27 = vshrl.u32 %v9137_v16, 16  ;;  %v3886_v4 = vsel %vm10934_vm2, %v3881_v9, %v3885_v8  ;;  %v3891_v62 = vshll.u32 %v9137_v16, 16 }
 0x276   :  { %v12014_v22 = vadd.f32 %v3364_v48, %v11669_v49  ;;  %v3853_v61 = vrot.slane %v3852_v53, 4  ;;  %v4056_v48 = vunpack.c.l.b16 %v3844_v59  ;;  %v3902_v6 = vshrl.u32 %v9138_v55, 16  ;;  %v10425_v59 = vld [vmem:[#allocation3 + $0x500] sm:$0xff] }
 0x277   :  { %v4061_v36 = vunpack.c.h.b16 %v3872_v26  ;;  %v3890_v51 = vrot.slane %v3888_v27, 4  ;;  %v4063_v25 = vunpack.c.h.b16 %v3886_v4  ;;  %v9140_v26 = vld [vmem:[%s13293_s0 + $0x238] sm:$0x11]  ;;  %5220 = vmatpush.bf16.msrb.mxu0 %v10425_v59 }
 0x278   :  { %v3858_v17 = vsel %vm10934_vm2, %v3853_v61, %v3857_v3  ;;  %v10433_v3 = vld [vmem:[#allocation3 + $0x540] sm:$0xff]  ;;  %v4096_v8 = vpack.c.b16 %v4060_v38, %v4056_v48  ;;  %v3911_v48 = vshll.u32 %v9140_v26, 16 }
 0x279   :  { %v3316_v43 = vpop.f32.mrf.mxu2  ;;  %v3221_v63 = vpop.f32.mrf.mxu0  ;;  %v4059_v53 = vunpack.c.h.b16 %v3858_v17  ;;  %v4097_v16 = vpack.c.b16 %v4061_v36, %v4057_v19  ;;  %5269 = vmatpush.bf16.msrb.mxu1 %v10433_v3 }
 0x27a   :  { %v3365_v49 = vpop.f32.mrf.mxu3  ;;  %v3317_v60 = vadd.f32 %v3316_v43, %v3268_v21  ;;  %v3270_v34 = vpop.f32.mrf.mxu1  ;;  %v9141_v21 = vld [vmem:[%s13293_s0 + $0x240] sm:$0xff]  ;;  %v4058_v43 = vunpack.c.l.b16 %v3858_v17 }
 0x27b   :  { %v3271_v58 = vadd.f32 %v3270_v34, %v3221_v63  ;;  %v3916_v29 = vshrl.u32 %v9141_v21, 16  ;;  %v3919_v42 = vshll.u32 %v9141_v21, 16  ;;  %v3893_v63 = vrot.slane %v3891_v62, 5 }
 0x27c   :  { %v3366_v54 = vadd.f32 %v3365_v49, %v3317_v60  ;;  %4361 = vmatmul.bf16.gmra.mxu0 %v4092_v44  ;;  %v3905_v44 = vshll.u32 %v9138_v55, 16  ;;  %v4062_v49 = vunpack.c.l.b16 %v3886_v4  ;;  %v9143_v60 = vld [vmem:[%s13293_s0 + $0x250] sm:$0x11]  ;;  %v4099_v55 = vpack.c.b16 %v4063_v25, %v4059_v53 }
 0x27d   :  { %4410 = vmatmul.bf16.gmra.mxu1 %v4093_v14  ;;  %v3918_v34 = vrot.slane %v3916_v29, 4  ;;  %v3894_v27 = vor.u32 %v3893_v63, %v3890_v51 }
 0x27e   :  { %v12027_v23 = vadd.f32 %v3366_v54, %v11684_v13  ;;  %4459 = vmatmul.bf16.gmra.mxu2 %v4094_v18  ;;  %v9142_v13 = vld [vmem:[%s13293_s0 + $0x248] sm:$0xff]  ;;  %v3907_v54 = vrot.slane %v3905_v44, 5  ;;  %v4098_v21 = vpack.c.b16 %v4062_v49, %v4058_v43 }
 0x27f   :  { %4508 = vmatmul.bf16.gmra.mxu3 %v4095_v0  ;;  %v3930_v40 = vshrl.u32 %v9142_v13, 16  ;;  %v3933_v31 = vshll.u32 %v9142_v13, 16  ;;  %v3921_v0 = vrot.slane %v3919_v42, 5  ;;  %v3897_v13 = vshll.u32 %v9139_v12, 16 }
 0x281   :  { %v3319_v11 = vpop.f32.mrf.mxu2  ;;  %v3223_v30 = vpop.f32.mrf.mxu0  ;;  %v3932_v61 = vrot.slane %v3930_v40, 4  ;;  %v3935_v9 = vrot.slane %v3933_v31, 5  ;;  %v3922_v62 = vor.u32 %v3921_v0, %v3918_v34  ;;  %v3899_v42 = vrot.slane %v3897_v13, 5  ;;  %v10512_v31 = vld [vmem:[#allocation3 + $0x6b8] sm:$0xff] }
 0x282   :  { %v3368_v57 = vpop.f32.mrf.mxu3  ;;  %v3320_v35 = vadd.f32 %v3319_v11, %v3271_v58  ;;  %v3272_v7 = vpop.f32.mrf.mxu1  ;;  %v3904_v58 = vrot.slane %v3902_v6, 4  ;;  %v3925_v11 = vshll.u32 %v9143_v60, 16  ;;  %v3913_v40 = vrot.slane %v3911_v48, 5  ;;  %6005 = vmatpush.bf16.msra.mxu2 %v10512_v31  ;;  %v9275_v48 = vld [vmem:[%s13293_s0 + $0x30] sm:$0x11] }
 0x283   :  { %v3273_v14 = vadd.f32 %v3272_v7, %v3223_v30  ;;  %v3936_v19 = vor.u32 %v3935_v9, %v3932_v61  ;;  %v3895_v7 = vrot.slane %v3894_v27, 4 }
 0x284   :  { %v3369_v10 = vadd.f32 %v3368_v57, %v3320_v35  ;;  %v3908_v29 = vor.u32 %v3907_v54, %v3904_v58  ;;  %v3939_v35 = vshll.u32 %v9144_v5, 16  ;;  %v3927_v6 = vrot.slane %v3925_v11, 5 }
 0x285   :  { %v3937_v43 = vrot.slane %v3936_v19, 4  ;;  %v3900_v25 = vsel %vm10934_vm2, %v3895_v7, %v3899_v42  ;;  %v9276_v7 = vld [vmem:[%s13293_s0 + $0x38] sm:$0x11] }
 0x286   :  { %v12049_v18 = vadd.f32 %v3369_v10, %v11702_v41  ;;  %v3909_v36 = vrot.slane %v3908_v29, 4  ;;  %v10520_v10 = vld [vmem:[#allocation3 + $0x6f8] sm:$0xff]  ;;  %v3941_v49 = vrot.slane %v3939_v35, 5  ;;  %v4064_v59 = vunpack.c.l.b16 %v3900_v25  ;;  %v9279_v35 = vld [vmem:[%s13293_s0 + $0x50] sm:$0x11] }
 0x287   :  { %6054 = vmatpush.bf16.msra.mxu3 %v10520_v10  ;;  %v4065_v26 = vunpack.c.h.b16 %v3900_v25  ;;  %v10519_v25 = vld [vmem:[#allocation3 + $0x6f0] sm:$0xff] }
 0x288   :  { %v3914_v34 = vsel %vm10934_vm2, %v3909_v36, %v3913_v40  ;;  %v3942_v58 = vsel %vm10934_vm2, %v3937_v43, %v3941_v49  ;;  %v4702_v40 = vrot.slane %v9275_v48, 5  ;;  %v4710_v43 = vrot.slane %v9279_v35, 5 }
 0x289   :  { %v3321_v41 = vpop.f32.mrf.mxu2  ;;  %v3226_v17 = vpop.f32.mrf.mxu0  ;;  %v4066_v9 = vunpack.c.l.b16 %v3914_v34  ;;  %v4071_v5 = vunpack.c.h.b16 %v3942_v58 }
 0x28a   :  { %v3370_v37 = vpop.f32.mrf.mxu3  ;;  %v3322_v57 = vadd.f32 %v3321_v41, %v3273_v14  ;;  %v3275_v4 = vpop.f32.mrf.mxu1  ;;  %v3923_v14 = vrot.slane %v3922_v62, 4  ;;  %v10496_v41 = vld [vmem:[#allocation3 + $0x638] sm:$0xff] }
 0x28b   :  { %v3276_v38 = vadd.f32 %v3275_v4, %v3226_v17  ;;  %5907 = vmatpush.bf16.msra.mxu0 %v10496_v41  ;;  %6055 = vmatpush.bf16.msra.mxu3 %v10519_v25 }
 0x28c   :  { %v3371_v30 = vadd.f32 %v3370_v37, %v3322_v57  ;;  %4366 = vmatmul.bf16.gmra.mxu0 %v4096_v8  ;;  %v3928_v63 = vsel %vm10934_vm2, %v3923_v14, %v3927_v6  ;;  %v10504_v37 = vld [vmem:[#allocation3 + $0x678] sm:$0xff]  ;;  %v9278_v6 = vld [vmem:[%s13293_s0 + $0x48] sm:$0xee] }
 0x28d   :  { %4415 = vmatmul.bf16.gmra.mxu1 %v4097_v16  ;;  %v4068_v3 = vunpack.c.l.b16 %v3928_v63  ;;  %v4069_v61 = vunpack.c.h.b16 %v3928_v63  ;;  %v4070_v16 = vunpack.c.l.b16 %v3942_v58  ;;  %v9280_v14 = vld [vmem:[%s13293_s0 + $0x58] sm:$0x11] }
 0x28e   :  { %v12058_v44 = vadd.f32 %v3371_v30, %v11726_v2  ;;  %4464 = vmatmul.bf16.gmra.mxu2 %v4098_v21  ;;  %v4067_v21 = vunpack.c.h.b16 %v3914_v34  ;;  %5956 = vmatpush.bf16.msra.mxu1 %v10504_v37  ;;  %v9274_v30 = vld [vmem:[%s13293_s0 + $0x28] sm:$0xee] }
 0x28f   :  { %4513 = vmatmul.bf16.gmra.mxu3 %v4099_v55  ;;  %v4100_v13 = vpack.c.b16 %v4068_v3, %v4064_v59  ;;  %v4101_v11 = vpack.c.b16 %v4069_v61, %v4065_v26  ;;  %v4102_v62 = vpack.c.b16 %v4070_v16, %v4066_v9  ;;  %v9338_v49 = vrot.slane %v9274_v30, 9  ;;  %v9283_v30 = vld [vmem:[%s13293_s0 + $0x70] sm:$0x11] }
 0x290   :  { %v4103_v29 = vpack.c.b16 %v4071_v5, %v4067_v21 }
 0x291   :  { %v3324_v51 = vpop.f32.mrf.mxu2  ;;  %v3228_v60 = vpop.f32.mrf.mxu0 }
 0x292   :  { %v3373_v53 = vpop.f32.mrf.mxu3  ;;  %v3325_v12 = vadd.f32 %v3324_v51, %v3276_v38  ;;  %v3277_v2 = vpop.f32.mrf.mxu1  ;;  %v9277_v38 = vld [vmem:[%s13293_s0 + $0x40] sm:$0xee]  ;;  %v4706_v51 = vrot.slane %v9276_v7, 5 }
 0x293   :  { %v3278_v0 = vadd.f32 %v3277_v2, %v3228_v60  ;;  %v9339_v31 = vrot.slane %v9277_v38, 9  ;;  %v4714_v60 = vrot.slane %v9280_v14, 5  ;;  %v9285_v7 = vld [vmem:[%s13293_s0 + $0x80] sm:$0xee]  ;;  %v9282_v14 = vld [vmem:[%s13293_s0 + $0x68] sm:$0xee] }
 0x294   :  { %v3374_v54 = vadd.f32 %v3373_v53, %v3325_v12  ;;  %v10511_v53 = vld [vmem:[#allocation3 + $0x6b0] sm:$0xff]  ;;  %v9340_v12 = vrot.slane %v9278_v6, 9  ;;  %v4707_v59 = vsel %vm11224_vm5, %v9338_v49, %v4706_v51  ;;  %v4718_v51 = vrot.slane %v9283_v30, 5 }
 0x295   :  { %6006 = vmatpush.bf16.msra.mxu2 %v10511_v53  ;;  %v4895_v41 = vunpack.c.l.b16 %v4707_v59  ;;  %v9287_v6 = vld [vmem:[%s13293_s0 + $0x90] sm:$0x11]  ;;  %v9343_v53 = vrot.slane %v9285_v7, 9 }
 0x296   :  { %v12069_v8 = vadd.f32 %v3374_v54, %v11759_v46  ;;  %v9273_v46 = vld [vmem:[%s13293_s0 + $0x20] sm:$0xee]  ;;  %v4711_v54 = vsel %vm11224_vm5, %v9339_v31, %v4710_v43  ;;  %v4715_v26 = vsel %vm11224_vm5, %v9340_v12, %v4714_v60  ;;  %v9286_v31 = vld [vmem:[%s13293_s0 + $0x88] sm:$0xee]  ;;  %v9288_v43 = vld [vmem:[%s13293_s0 + $0x98] sm:$0x11] }
 0x297   :  { %v9337_v36 = vrot.slane %v9273_v46, 9  ;;  %v4897_v16 = vunpack.c.l.b16 %v4711_v54  ;;  %v4898_v5 = vunpack.c.h.b16 %v4711_v54  ;;  %v4726_v12 = vrot.slane %v9287_v6, 5 }
 0x298   :  { %v9342_v60 = vrot.slane %v9282_v14, 9  ;;  %v9291_v14 = vld [vmem:[%s13293_s0 + $0xb0] sm:$0x11] }
 0x299   :  { %v3326_v55 = vpop.f32.mrf.mxu2  ;;  %v3231_v17 = vpop.f32.mrf.mxu0  ;;  %v4703_v34 = vsel %vm11224_vm5, %v9337_v36, %v4702_v40  ;;  %v9284_v36 = vld [vmem:[%s13293_s0 + $0x78] sm:$0x11] }
 0x29a   :  { %v3375_v27 = vpop.f32.mrf.mxu3  ;;  %v3327_v57 = vadd.f32 %v3326_v55, %v3278_v0  ;;  %v3280_v4 = vpop.f32.mrf.mxu1  ;;  %v4893_v9 = vunpack.c.l.b16 %v4703_v34  ;;  %v4894_v21 = vunpack.c.h.b16 %v4703_v34  ;;  %v4899_v55 = vunpack.c.l.b16 %v4715_v26  ;;  %v10518_v34 = vld [vmem:[#allocation3 + $0x6e8] sm:$0xff] }
 0x29b   :  { %v3281_v19 = vadd.f32 %v3280_v4, %v3231_v17  ;;  %6056 = vmatpush.bf16.msra.mxu3 %v10518_v34 }
 0x29c   :  { %v3376_v42 = vadd.f32 %v3375_v27, %v3327_v57  ;;  %4371 = vmatmul.bf16.gmra.mxu0 %v4100_v13  ;;  %v4896_v27 = vunpack.c.h.b16 %v4707_v59  ;;  %v4900_v13 = vunpack.c.h.b16 %v4715_v26  ;;  %v10503_v57 = vld [vmem:[#allocation3 + $0x670] sm:$0xff] }
 0x29d   :  { %4420 = vmatmul.bf16.gmra.mxu1 %v4101_v11  ;;  %v10495_v11 = vld [vmem:[#allocation3 + $0x630] sm:$0xff] }
 0x29e   :  { %v12096_v10 = vadd.f32 %v3376_v42, %v11780_v32  ;;  %4469 = vmatmul.bf16.gmra.mxu2 %v4102_v62  ;;  %5908 = vmatpush.bf16.msra.mxu0 %v10495_v11  ;;  %v4957_v62 = vpack.c.b16 %v4897_v16, %v4893_v9  ;;  %v4960_v35 = vpack.c.b16 %v4900_v13, %v4896_v27 }
 0x29f   :  { %4518 = vmatmul.bf16.gmra.mxu3 %v4103_v29  ;;  %5957 = vmatpush.bf16.msra.mxu1 %v10503_v57  ;;  %v4958_v29 = vpack.c.b16 %v4898_v5, %v4894_v21 }
 0x2a1   :  { %v3329_v2 = vpop.f32.mrf.mxu2  ;;  %v3233_v58 = vpop.f32.mrf.mxu0 }
 0x2a2   :  { %v3378_v63 = vpop.f32.mrf.mxu3  ;;  %v3330_v0 = vadd.f32 %v3329_v2, %v3281_v19  ;;  %v3282_v32 = vpop.f32.mrf.mxu1  ;;  %v4959_v19 = vpack.c.b16 %v4899_v55, %v4895_v41  ;;  %v4722_v2 = vrot.slane %v9284_v36, 5  ;;  %v9293_v36 = vld [vmem:[%s13293_s0 + $0xc0] sm:$0xee] }
 0x2a3   :  { %v3283_v3 = vadd.f32 %v3282_v32, %v3233_v58  ;;  %v4730_v58 = vrot.slane %v9288_v43, 5  ;;  %v9290_v43 = vld [vmem:[%s13293_s0 + $0xa8] sm:$0xee] }
 0x2a4   :  { %v3379_v61 = vadd.f32 %v3378_v63, %v3330_v0  ;;  %v10510_v63 = vld [vmem:[#allocation3 + $0x6a8] sm:$0xff]  ;;  %v9344_v0 = vrot.slane %v9286_v31, 9  ;;  %v4723_v9 = vsel %vm11224_vm5, %v9342_v60, %v4722_v2  ;;  %v9295_v31 = vld [vmem:[%s13293_s0 + $0xd0] sm:$0x11]  ;;  %v4734_v2 = vrot.slane %v9291_v14, 5 }
 0x2a5   :  { %6007 = vmatpush.bf16.msra.mxu2 %v10510_v63  ;;  %v4903_v11 = vunpack.c.l.b16 %v4723_v9  ;;  %v9347_v63 = vrot.slane %v9293_v36, 9 }
 0x2a6   :  { %v12107_v37 = vadd.f32 %v3379_v61, %v11804_v50  ;;  %v9281_v50 = vld [vmem:[%s13293_s0 + $0x60] sm:$0xee]  ;;  %v4727_v61 = vsel %vm11224_vm5, %v9343_v53, %v4726_v12  ;;  %v4731_v21 = vsel %vm11224_vm5, %v9344_v0, %v4730_v58  ;;  %v9294_v53 = vld [vmem:[%s13293_s0 + $0xc8] sm:$0xee]  ;;  %v9296_v12 = vld [vmem:[%s13293_s0 + $0xd8] sm:$0x11] }
 0x2a7   :  { %v9341_v49 = vrot.slane %v9281_v50, 9  ;;  %v4905_v55 = vunpack.c.l.b16 %v4727_v61  ;;  %v4906_v13 = vunpack.c.h.b16 %v4727_v61  ;;  %v4742_v0 = vrot.slane %v9295_v31, 5 }
 0x2a8   :  { %v9346_v58 = vrot.slane %v9290_v43, 9  ;;  %v9299_v43 = vld [vmem:[%s13293_s0 + $0xf0] sm:$0x11] }
 0x2a9   :  { %v3331_v17 = vpop.f32.mrf.mxu2  ;;  %v4337_v48 = vpop.f32.mrf.mxu0  ;;  %v4719_v59 = vsel %vm11224_vm5, %v9341_v49, %v4718_v51  ;;  %v9292_v49 = vld [vmem:[%s13293_s0 + $0xb8] sm:$0x11] }
 0x2aa   :  { %v3380_v4 = vpop.f32.mrf.mxu3  ;;  %v3332_v46 = vadd.f32 %v3331_v17, %v3283_v3  ;;  %v4386_v38 = vpop.f32.mrf.mxu1  ;;  %v4901_v41 = vunpack.c.l.b16 %v4719_v59  ;;  %v4902_v27 = vunpack.c.h.b16 %v4719_v59  ;;  %v4907_v17 = vunpack.c.l.b16 %v4731_v21  ;;  %v10517_v59 = vld [vmem:[#allocation3 + $0x6e0] sm:$0xff] }
 0x2ab   :  { %v4387_v42 = vadd.f32 %v4386_v38, %v4337_v48  ;;  %6057 = vmatpush.bf16.msra.mxu3 %v10517_v59 }
 0x2ac   :  { %v3381_v40 = vadd.f32 %v3380_v4, %v3332_v46  ;;  %5221 = vmatmul.bf16.vlgmr.msrb.gmra.mxu0 %v4957_v62  ;;  %v4904_v4 = vunpack.c.h.b16 %v4723_v9  ;;  %v4908_v62 = vunpack.c.h.b16 %v4731_v21  ;;  %v10502_v46 = vld [vmem:[#allocation3 + $0x668] sm:$0xff] }
 0x2ad   :  { %5270 = vmatmul.bf16.vlgmr.msrb.gmra.mxu1 %v4958_v29  ;;  %v10494_v29 = vld [vmem:[#allocation3 + $0x628] sm:$0xff] }
 0x2ae   :  { %v12134_v25 = vadd.f32 %v3381_v40, %v11826_v24  ;;  %5319 = vmatmul.bf16.vlgmr.msrb.gmra.mxu2 %v4959_v19  ;;  %5909 = vmatpush.bf16.msra.mxu0 %v10494_v29  ;;  %v4961_v19 = vpack.c.b16 %v4905_v55, %v4901_v41  ;;  %v4964_v6 = vpack.c.b16 %v4908_v62, %v4904_v4 }
 0x2af   :  { %5368 = vmatmul.bf16.vlgmr.msrb.gmra.mxu3 %v4960_v35  ;;  %5958 = vmatpush.bf16.msra.mxu1 %v10502_v46  ;;  %v4962_v35 = vpack.c.b16 %v4906_v13, %v4902_v27 }
 0x2b1   :  { %v4435_v32 = vpop.f32.mrf.mxu2  ;;  %v4339_v26 = vpop.f32.mrf.mxu0 }
 0x2b2   :  { %v4484_v54 = vpop.f32.mrf.mxu3  ;;  %v4436_v3 = vadd.f32 %v4435_v32, %v4387_v42  ;;  %v4388_v24 = vpop.f32.mrf.mxu1  ;;  %v4963_v42 = vpack.c.b16 %v4907_v17, %v4903_v11  ;;  %v4738_v32 = vrot.slane %v9292_v49, 5  ;;  %v9301_v49 = vld [vmem:[%s13293_s0 + $0x100] sm:$0xee] }
 0x2b3   :  { %v4389_v16 = vadd.f32 %v4388_v24, %v4339_v26  ;;  %v4746_v26 = vrot.slane %v9296_v12, 5  ;;  %v9298_v12 = vld [vmem:[%s13293_s0 + $0xe8] sm:$0xee] }
 0x2b4   :  { %v4485_v5 = vadd.f32 %v4484_v54, %v4436_v3  ;;  %v10509_v54 = vld [vmem:[#allocation3 + $0x6a0] sm:$0xff]  ;;  %v9348_v3 = vrot.slane %v9294_v53, 9  ;;  %v4739_v41 = vsel %vm11224_vm5, %v9346_v58, %v4738_v32  ;;  %v9303_v53 = vld [vmem:[%s13293_s0 + $0x110] sm:$0x11]  ;;  %v4750_v32 = vrot.slane %v9299_v43, 5 }
 0x2b5   :  { %6008 = vmatpush.bf16.msra.mxu2 %v10509_v54  ;;  %v4911_v29 = vunpack.c.l.b16 %v4739_v41  ;;  %v9351_v54 = vrot.slane %v9301_v49, 9 }
 0x2b6   :  { %v12145_v57 = vadd.f32 %v4485_v5, %v11849_v1  ;;  %v9289_v1 = vld [vmem:[%s13293_s0 + $0xa0] sm:$0xee]  ;;  %v4743_v5 = vsel %vm11224_vm5, %v9347_v63, %v4742_v0  ;;  %v4747_v27 = vsel %vm11224_vm5, %v9348_v3, %v4746_v26  ;;  %v9302_v63 = vld [vmem:[%s13293_s0 + $0x108] sm:$0xee]  ;;  %v9304_v0 = vld [vmem:[%s13293_s0 + $0x118] sm:$0x11] }
 0x2b7   :  { %v9345_v60 = vrot.slane %v9289_v1, 9  ;;  %v4913_v17 = vunpack.c.l.b16 %v4743_v5  ;;  %v4914_v62 = vunpack.c.h.b16 %v4743_v5  ;;  %v4758_v3 = vrot.slane %v9303_v53, 5 }
 0x2b8   :  { %v9350_v26 = vrot.slane %v9298_v12, 9  ;;  %v9307_v12 = vld [vmem:[%s13293_s0 + $0x170] sm:$0x11] }
 0x2b9   :  { %v4437_v48 = vpop.f32.mrf.mxu2  ;;  %v4342_v30 = vpop.f32.mrf.mxu0  ;;  %v4735_v9 = vsel %vm11224_vm5, %v9345_v60, %v4734_v2  ;;  %v9300_v60 = vld [vmem:[%s13293_s0 + $0xf8] sm:$0x11] }
 0x2ba   :  { %v4486_v38 = vpop.f32.mrf.mxu3  ;;  %v4438_v50 = vadd.f32 %v4437_v48, %v4389_v16  ;;  %v4391_v7 = vpop.f32.mrf.mxu1  ;;  %v4909_v11 = vunpack.c.l.b16 %v4735_v9  ;;  %v4910_v4 = vunpack.c.h.b16 %v4735_v9  ;;  %v4915_v48 = vunpack.c.l.b16 %v4747_v27  ;;  %v10516_v9 = vld [vmem:[#allocation3 + $0x6d8] sm:$0xff] }
 0x2bb   :  { %v4392_v40 = vadd.f32 %v4391_v7, %v4342_v30  ;;  %6058 = vmatpush.bf16.msra.mxu3 %v10516_v9 }
 0x2bc   :  { %v4487_v51 = vadd.f32 %v4486_v38, %v4438_v50  ;;  %5226 = vmatmul.bf16.gmra.mxu0 %v4961_v19  ;;  %v4912_v38 = vunpack.c.h.b16 %v4739_v41  ;;  %v4916_v19 = vunpack.c.h.b16 %v4747_v27  ;;  %v10501_v50 = vld [vmem:[#allocation3 + $0x660] sm:$0xff] }
 0x2bd   :  { %5275 = vmatmul.bf16.gmra.mxu1 %v4962_v35  ;;  %v10493_v35 = vld [vmem:[#allocation3 + $0x620] sm:$0xff] }
 0x2be   :  { %v12172_v34 = vadd.f32 %v4487_v51, %v11869_v56  ;;  %5324 = vmatmul.bf16.gmra.mxu2 %v4963_v42  ;;  %5910 = vmatpush.bf16.msra.mxu0 %v10493_v35  ;;  %v4965_v42 = vpack.c.b16 %v4913_v17, %v4909_v11  ;;  %v4968_v31 = vpack.c.b16 %v4916_v19, %v4912_v38 }
 0x2bf   :  { %5373 = vmatmul.bf16.gmra.mxu3 %v4964_v6  ;;  %5959 = vmatpush.bf16.msra.mxu1 %v10501_v50  ;;  %v4966_v6 = vpack.c.b16 %v4914_v62, %v4910_v4 }
 0x2c1   :  { %v4440_v24 = vpop.f32.mrf.mxu2  ;;  %v4344_v21 = vpop.f32.mrf.mxu0 }
 0x2c2   :  { %v4489_v61 = vpop.f32.mrf.mxu3  ;;  %v4441_v16 = vadd.f32 %v4440_v24, %v4392_v40  ;;  %v4393_v56 = vpop.f32.mrf.mxu1  ;;  %v4967_v40 = vpack.c.b16 %v4915_v48, %v4911_v29  ;;  %v4754_v24 = vrot.slane %v9300_v60, 5  ;;  %v9309_v60 = vld [vmem:[%s13293_s0 + $0x180] sm:$0xee] }
 0x2c3   :  { %v4394_v55 = vadd.f32 %v4393_v56, %v4344_v21  ;;  %v4762_v21 = vrot.slane %v9304_v0, 5  ;;  %v9306_v0 = vld [vmem:[%s13293_s0 + $0x168] sm:$0xee] }
 0x2c4   :  { %v4490_v13 = vadd.f32 %v4489_v61, %v4441_v16  ;;  %v10508_v61 = vld [vmem:[#allocation3 + $0x698] sm:$0xff]  ;;  %v9352_v16 = vrot.slane %v9302_v63, 9  ;;  %v4755_v11 = vsel %vm11224_vm5, %v9350_v26, %v4754_v24  ;;  %v9311_v63 = vld [vmem:[%s13293_s0 + $0x190] sm:$0x11]  ;;  %v4766_v24 = vrot.slane %v9307_v12, 5 }
 0x2c5   :  { %6009 = vmatpush.bf16.msra.mxu2 %v10508_v61  ;;  %v4919_v35 = vunpack.c.l.b16 %v4755_v11  ;;  %v9355_v61 = vrot.slane %v9309_v60, 9 }
 0x2c6   :  { %v12183_v46 = vadd.f32 %v4490_v13, %v11892_v33  ;;  %v9297_v33 = vld [vmem:[%s13293_s0 + $0xe0] sm:$0xee]  ;;  %v4759_v13 = vsel %vm11224_vm5, %v9351_v54, %v4758_v3  ;;  %v4763_v4 = vsel %vm11224_vm5, %v9352_v16, %v4762_v21  ;;  %v9310_v54 = vld [vmem:[%s13293_s0 + $0x188] sm:$0xee]  ;;  %v9312_v3 = vld [vmem:[%s13293_s0 + $0x198] sm:$0x11] }
 0x2c7   :  { %v9349_v58 = vrot.slane %v9297_v33, 9  ;;  %v4921_v48 = vunpack.c.l.b16 %v4759_v13  ;;  %v4922_v19 = vunpack.c.h.b16 %v4759_v13  ;;  %v4774_v16 = vrot.slane %v9311_v63, 5 }
 0x2c8   :  { %v9354_v21 = vrot.slane %v9306_v0, 9  ;;  %v9315_v0 = vld [vmem:[%s13293_s0 + $0x1b0] sm:$0x11] }
 0x2c9   :  { %v4442_v30 = vpop.f32.mrf.mxu2  ;;  %v4347_v14 = vpop.f32.mrf.mxu0  ;;  %v4751_v41 = vsel %vm11224_vm5, %v9349_v58, %v4750_v32  ;;  %v9308_v58 = vld [vmem:[%s13293_s0 + $0x178] sm:$0x11] }
 0x2ca   :  { %v4491_v7 = vpop.f32.mrf.mxu3  ;;  %v4443_v1 = vadd.f32 %v4442_v30, %v4394_v55  ;;  %v4396_v36 = vpop.f32.mrf.mxu1  ;;  %v4917_v29 = vunpack.c.l.b16 %v4751_v41  ;;  %v4918_v38 = vunpack.c.h.b16 %v4751_v41  ;;  %v4923_v30 = vunpack.c.l.b16 %v4763_v4  ;;  %v10515_v41 = vld [vmem:[#allocation3 + $0x6d0] sm:$0xff] }
 0x2cb   :  { %v4397_v51 = vadd.f32 %v4396_v36, %v4347_v14  ;;  %6059 = vmatpush.bf16.msra.mxu3 %v10515_v41 }
 0x2cc   :  { %v4492_v2 = vadd.f32 %v4491_v7, %v4443_v1  ;;  %5231 = vmatmul.bf16.gmra.mxu0 %v4965_v42  ;;  %v4920_v7 = vunpack.c.h.b16 %v4755_v11  ;;  %v4924_v42 = vunpack.c.h.b16 %v4763_v4  ;;  %v10500_v1 = vld [vmem:[#allocation3 + $0x658] sm:$0xff] }
 0x2cd   :  { %5280 = vmatmul.bf16.gmra.mxu1 %v4966_v6  ;;  %v10492_v6 = vld [vmem:[#allocation3 + $0x618] sm:$0xff] }
 0x2ce   :  { %v12210_v59 = vadd.f32 %v4492_v2, %v11915_v28  ;;  %5329 = vmatmul.bf16.gmra.mxu2 %v4967_v40  ;;  %5911 = vmatpush.bf16.msra.mxu0 %v10492_v6  ;;  %v4969_v40 = vpack.c.b16 %v4921_v48, %v4917_v29  ;;  %v4972_v53 = vpack.c.b16 %v4924_v42, %v4920_v7 }
 0x2cf   :  { %5378 = vmatmul.bf16.gmra.mxu3 %v4968_v31  ;;  %5960 = vmatpush.bf16.msra.mxu1 %v10500_v1  ;;  %v4970_v31 = vpack.c.b16 %v4922_v19, %v4918_v38 }
 0x2d1   :  { %v4445_v56 = vpop.f32.mrf.mxu2  ;;  %v4349_v27 = vpop.f32.mrf.mxu0 }
 0x2d2   :  { %v4494_v5 = vpop.f32.mrf.mxu3  ;;  %v4446_v55 = vadd.f32 %v4445_v56, %v4397_v51  ;;  %v4398_v28 = vpop.f32.mrf.mxu1  ;;  %v4971_v51 = vpack.c.b16 %v4923_v30, %v4919_v35  ;;  %v4770_v56 = vrot.slane %v9308_v58, 5  ;;  %v9317_v58 = vld [vmem:[%s13293_s0 + $0x1c0] sm:$0xee] }
 0x2d3   :  { %v4399_v17 = vadd.f32 %v4398_v28, %v4349_v27  ;;  %v4778_v27 = vrot.slane %v9312_v3, 5  ;;  %v9314_v3 = vld [vmem:[%s13293_s0 + $0x1a8] sm:$0xee] }
 0x2d4   :  { %v4495_v62 = vadd.f32 %v4494_v5, %v4446_v55  ;;  %v10507_v5 = vld [vmem:[#allocation3 + $0x690] sm:$0xff]  ;;  %v9356_v55 = vrot.slane %v9310_v54, 9  ;;  %v4771_v29 = vsel %vm11224_vm5, %v9354_v21, %v4770_v56  ;;  %v4782_v56 = vrot.slane %v9315_v0, 5 }
 0x2d5   :  { %6010 = vmatpush.bf16.msra.mxu2 %v10507_v5  ;;  %v4927_v6 = vunpack.c.l.b16 %v4771_v29  ;;  %v9319_v54 = vld [vmem:[%s13293_s0 + $0x1d0] sm:$0x11]  ;;  %v9359_v5 = vrot.slane %v9317_v58, 9 }
 0x2d6   :  { %v12221_v50 = vadd.f32 %v4495_v62, %v11938_v20  ;;  %v9305_v20 = vld [vmem:[%s13293_s0 + $0x160] sm:$0xee]  ;;  %v4775_v62 = vsel %vm11224_vm5, %v9355_v61, %v4774_v16  ;;  %v4779_v38 = vsel %vm11224_vm5, %v9356_v55, %v4778_v27  ;;  %v9318_v61 = vld [vmem:[%s13293_s0 + $0x1c8] sm:$0xee]  ;;  %v9320_v16 = vld [vmem:[%s13293_s0 + $0x1d8] sm:$0x11] }
 0x2d7   :  { %v9353_v26 = vrot.slane %v9305_v20, 9  ;;  %v4929_v30 = vunpack.c.l.b16 %v4775_v62  ;;  %v4930_v42 = vunpack.c.h.b16 %v4775_v62  ;;  %v4790_v55 = vrot.slane %v9319_v54, 5 }
 0x2d8   :  { %v9358_v27 = vrot.slane %v9314_v3, 9  ;;  %v9323_v3 = vld [vmem:[%s13293_s0 + $0x1f0] sm:$0x11] }
 0x2d9   :  { %v4447_v14 = vpop.f32.mrf.mxu2  ;;  %v4352_v43 = vpop.f32.mrf.mxu0  ;;  %v4767_v11 = vsel %vm11224_vm5, %v9353_v26, %v4766_v24  ;;  %v9316_v26 = vld [vmem:[%s13293_s0 + $0x1b8] sm:$0x11] }
 0x2da   :  { %v4496_v36 = vpop.f32.mrf.mxu3  ;;  %v4448_v33 = vadd.f32 %v4447_v14, %v4399_v17  ;;  %v4401_v49 = vpop.f32.mrf.mxu1  ;;  %v4925_v35 = vunpack.c.l.b16 %v4767_v11  ;;  %v4926_v7 = vunpack.c.h.b16 %v4767_v11  ;;  %v4931_v14 = vunpack.c.l.b16 %v4779_v38  ;;  %v10514_v11 = vld [vmem:[#allocation3 + $0x6c8] sm:$0xff] }
 0x2db   :  { %v4402_v2 = vadd.f32 %v4401_v49, %v4352_v43  ;;  %6060 = vmatpush.bf16.msra.mxu3 %v10514_v11 }
 0x2dc   :  { %v4497_v32 = vadd.f32 %v4496_v36, %v4448_v33  ;;  %5236 = vmatmul.bf16.gmra.mxu0 %v4969_v40  ;;  %v4928_v36 = vunpack.c.h.b16 %v4771_v29  ;;  %v4932_v40 = vunpack.c.h.b16 %v4779_v38  ;;  %v10499_v33 = vld [vmem:[#allocation3 + $0x650] sm:$0xff] }
 0x2dd   :  { %5285 = vmatmul.bf16.gmra.mxu1 %v4970_v31  ;;  %v10491_v31 = vld [vmem:[#allocation3 + $0x610] sm:$0xff] }
 0x2de   :  { %v12248_v9 = vadd.f32 %v4497_v32, %v11957_v47  ;;  %5334 = vmatmul.bf16.gmra.mxu2 %v4971_v51  ;;  %5912 = vmatpush.bf16.msra.mxu0 %v10491_v31  ;;  %v4973_v51 = vpack.c.b16 %v4929_v30, %v4925_v35  ;;  %v4976_v63 = vpack.c.b16 %v4932_v40, %v4928_v36 }
 0x2df   :  { %5383 = vmatmul.bf16.gmra.mxu3 %v4972_v53  ;;  %5961 = vmatpush.bf16.msra.mxu1 %v10499_v33  ;;  %v4974_v53 = vpack.c.b16 %v4930_v42, %v4926_v7 }
 0x2e1   :  { %v4450_v28 = vpop.f32.mrf.mxu2  ;;  %v4354_v4 = vpop.f32.mrf.mxu0 }
 0x2e2   :  { %v4499_v13 = vpop.f32.mrf.mxu3  ;;  %v4451_v17 = vadd.f32 %v4450_v28, %v4402_v2  ;;  %v4403_v47 = vpop.f32.mrf.mxu1  ;;  %v4975_v2 = vpack.c.b16 %v4931_v14, %v4927_v6  ;;  %v4786_v28 = vrot.slane %v9316_v26, 5  ;;  %v9325_v26 = vld [vmem:[%s13293_s0 + $0x200] sm:$0xee] }
 0x2e3   :  { %v4404_v48 = vadd.f32 %v4403_v47, %v4354_v4  ;;  %v4794_v4 = vrot.slane %v9320_v16, 5  ;;  %v9322_v16 = vld [vmem:[%s13293_s0 + $0x1e8] sm:$0xee] }
 0x2e4   :  { %v4500_v19 = vadd.f32 %v4499_v13, %v4451_v17  ;;  %v10506_v13 = vld [vmem:[#allocation3 + $0x688] sm:$0xff]  ;;  %v9360_v17 = vrot.slane %v9318_v61, 9  ;;  %v4787_v35 = vsel %vm11224_vm5, %v9358_v27, %v4786_v28  ;;  %v9327_v61 = vld [vmem:[%s13293_s0 + $0x210] sm:$0x11]  ;;  %v4798_v28 = vrot.slane %v9323_v3, 5 }
 0x2e5   :  { %6011 = vmatpush.bf16.msra.mxu2 %v10506_v13  ;;  %v4935_v31 = vunpack.c.l.b16 %v4787_v35  ;;  %v9363_v13 = vrot.slane %v9325_v26, 9 }
 0x2e6   :  { %v12259_v1 = vadd.f32 %v4500_v19, %v11976_v45  ;;  %v9313_v45 = vld [vmem:[%s13293_s0 + $0x1a0] sm:$0xee]  ;;  %v4791_v19 = vsel %vm11224_vm5, %v9359_v5, %v4790_v55  ;;  %v4795_v7 = vsel %vm11224_vm5, %v9360_v17, %v4794_v4  ;;  %v9326_v5 = vld [vmem:[%s13293_s0 + $0x208] sm:$0xee]  ;;  %v9328_v55 = vld [vmem:[%s13293_s0 + $0x218] sm:$0x11] }
 0x2e7   :  { %v9357_v21 = vrot.slane %v9313_v45, 9  ;;  %v4937_v14 = vunpack.c.l.b16 %v4791_v19  ;;  %v4938_v40 = vunpack.c.h.b16 %v4791_v19  ;;  %v4806_v17 = vrot.slane %v9327_v61, 5 }
 0x2e8   :  { %v9362_v4 = vrot.slane %v9322_v16, 9  ;;  %v9331_v16 = vld [vmem:[%s13293_s0 + $0x230] sm:$0x11] }
 0x2e9   :  { %v4452_v43 = vpop.f32.mrf.mxu2  ;;  %v4357_v12 = vpop.f32.mrf.mxu0  ;;  %v4783_v29 = vsel %vm11224_vm5, %v9357_v21, %v4782_v56  ;;  %v9324_v21 = vld [vmem:[%s13293_s0 + $0x1f8] sm:$0x11] }
 0x2ea   :  { %v4501_v49 = vpop.f32.mrf.mxu3  ;;  %v4453_v20 = vadd.f32 %v4452_v43, %v4404_v48  ;;  %v4406_v60 = vpop.f32.mrf.mxu1  ;;  %v4933_v6 = vunpack.c.l.b16 %v4783_v29  ;;  %v4934_v36 = vunpack.c.h.b16 %v4783_v29  ;;  %v4939_v43 = vunpack.c.l.b16 %v4795_v7  ;;  %v10513_v29 = vld [vmem:[#allocation3 + $0x6c0] sm:$0xff] }
 0x2eb   :  { %v4407_v32 = vadd.f32 %v4406_v60, %v4357_v12  ;;  %6061 = vmatpush.bf16.msra.mxu3 %v10513_v29 }
 0x2ec   :  { %v4502_v24 = vadd.f32 %v4501_v49, %v4453_v20  ;;  %5241 = vmatmul.bf16.gmra.mxu0 %v4973_v51  ;;  %v4936_v49 = vunpack.c.h.b16 %v4787_v35  ;;  %v4940_v51 = vunpack.c.h.b16 %v4795_v7  ;;  %v10498_v20 = vld [vmem:[#allocation3 + $0x648] sm:$0xff] }
 0x2ed   :  { %5290 = vmatmul.bf16.gmra.mxu1 %v4974_v53  ;;  %v10490_v53 = vld [vmem:[#allocation3 + $0x608] sm:$0xff] }
 0x2ee   :  { %v12286_v41 = vadd.f32 %v4502_v24, %v11993_v39  ;;  %5339 = vmatmul.bf16.gmra.mxu2 %v4975_v2  ;;  %5913 = vmatpush.bf16.msra.mxu0 %v10490_v53  ;;  %v4977_v2 = vpack.c.b16 %v4937_v14, %v4933_v6  ;;  %v4980_v54 = vpack.c.b16 %v4940_v51, %v4936_v49 }
 0x2ef   :  { %5388 = vmatmul.bf16.gmra.mxu3 %v4976_v63  ;;  %5962 = vmatpush.bf16.msra.mxu1 %v10498_v20  ;;  %v4978_v63 = vpack.c.b16 %v4938_v40, %v4934_v36 }
 0x2f1   :  { %v4455_v47 = vpop.f32.mrf.mxu2  ;;  %v4359_v38 = vpop.f32.mrf.mxu0 }
 0x2f2   :  { %v4504_v62 = vpop.f32.mrf.mxu3  ;;  %v4456_v48 = vadd.f32 %v4455_v47, %v4407_v32  ;;  %v4408_v39 = vpop.f32.mrf.mxu1  ;;  %v4979_v32 = vpack.c.b16 %v4939_v43, %v4935_v31  ;;  %v4802_v47 = vrot.slane %v9324_v21, 5  ;;  %v9333_v21 = vld [vmem:[%s13293_s0 + $0x240] sm:$0xee] }
 0x2f3   :  { %v4409_v30 = vadd.f32 %v4408_v39, %v4359_v38  ;;  %v4810_v38 = vrot.slane %v9328_v55, 5  ;;  %v9330_v55 = vld [vmem:[%s13293_s0 + $0x228] sm:$0xee] }
 0x2f4   :  { %v4505_v42 = vadd.f32 %v4504_v62, %v4456_v48  ;;  %v10505_v62 = vld [vmem:[#allocation3 + $0x680] sm:$0xff]  ;;  %v9364_v48 = vrot.slane %v9326_v5, 9  ;;  %v4803_v6 = vsel %vm11224_vm5, %v9362_v4, %v4802_v47  ;;  %v9335_v5 = vld [vmem:[%s13293_s0 + $0x250] sm:$0x11]  ;;  %v4814_v47 = vrot.slane %v9331_v16, 5 }
 0x2f5   :  { %6012 = vmatpush.bf16.msra.mxu2 %v10505_v62  ;;  %v4943_v53 = vunpack.c.l.b16 %v4803_v6  ;;  %v9367_v62 = vrot.slane %v9333_v21, 9 }
 0x2f6   :  { %v12297_v33 = vadd.f32 %v4505_v42, %v12014_v22  ;;  %v9321_v22 = vld [vmem:[%s13293_s0 + $0x1e0] sm:$0xee]  ;;  %v4807_v42 = vsel %vm11224_vm5, %v9363_v13, %v4806_v17  ;;  %v4811_v36 = vsel %vm11224_vm5, %v9364_v48, %v4810_v38  ;;  %v9334_v13 = vld [vmem:[%s13293_s0 + $0x248] sm:$0xee]  ;;  %v9336_v17 = vld [vmem:[%s13293_s0 + $0x258] sm:$0x11] }
 0x2f7   :  { %v9361_v27 = vrot.slane %v9321_v22, 9  ;;  %v4945_v43 = vunpack.c.l.b16 %v4807_v42  ;;  %v4946_v51 = vunpack.c.h.b16 %v4807_v42  ;;  %v4822_v48 = vrot.slane %v9335_v5, 5 }
 0x2f8   :  { %v9366_v38 = vrot.slane %v9330_v55, 9 }
 0x2f9   :  { %v4457_v12 = vpop.f32.mrf.mxu2  ;;  %v4362_v0 = vpop.f32.mrf.mxu0  ;;  %v4799_v35 = vsel %vm11224_vm5, %v9361_v27, %v4798_v28  ;;  %v9332_v27 = vld [vmem:[%s13293_s0 + $0x238] sm:$0x11] }
 0x2fa   :  { %v4506_v60 = vpop.f32.mrf.mxu3  ;;  %v4458_v45 = vadd.f32 %v4457_v12, %v4409_v30  ;;  %v4411_v58 = vpop.f32.mrf.mxu1  ;;  %v4941_v31 = vunpack.c.l.b16 %v4799_v35  ;;  %v4942_v49 = vunpack.c.h.b16 %v4799_v35  ;;  %v4947_v12 = vunpack.c.l.b16 %v4811_v36  ;;  %v10552_v35 = vld [vmem:[#allocation3 + $0x7f8] sm:$0xff] }
 0x2fb   :  { %v4412_v24 = vadd.f32 %v4411_v58, %v4362_v0  ;;  %7195 = vmatpush.bf16.msrb.mxu3 %v10552_v35  ;;  %v10457_v35 = vld [vmem:[%s13293_s0 + $0x44] sm:$0xf] }
 0x2fc   :  { %v4507_v56 = vadd.f32 %v4506_v60, %v4458_v45  ;;  %5246 = vmatmul.bf16.gmra.mxu0 %v4977_v2  ;;  %v4944_v60 = vunpack.c.h.b16 %v4803_v6  ;;  %v4948_v2 = vunpack.c.h.b16 %v4811_v36  ;;  %v10497_v45 = vld [vmem:[#allocation3 + $0x640] sm:$0xff] }
 0x2fd   :  { %5295 = vmatmul.bf16.gmra.mxu1 %v4978_v63  ;;  %v10489_v63 = vld [vmem:[#allocation3 + $0x600] sm:$0xff] }
 0x2fe   :  { %v12324_v11 = vadd.f32 %v4507_v56, %v12027_v23  ;;  %5344 = vmatmul.bf16.gmra.mxu2 %v4979_v32  ;;  %5914 = vmatpush.bf16.msra.mxu0 %v10489_v63  ;;  %v4981_v32 = vpack.c.b16 %v4945_v43, %v4941_v31  ;;  %v4984_v61 = vpack.c.b16 %v4948_v2, %v4944_v60 }
 0x2ff   :  { %5393 = vmatmul.bf16.gmra.mxu3 %v4980_v54  ;;  %5963 = vmatpush.bf16.msra.mxu1 %v10497_v45  ;;  %v4982_v54 = vpack.c.b16 %v4946_v51, %v4942_v49 }
 0x301   :  { %v4460_v39 = vpop.f32.mrf.mxu2  ;;  %v4364_v7 = vpop.f32.mrf.mxu0 }
 0x302   :  { %v4509_v19 = vpop.f32.mrf.mxu3  ;;  %v4461_v30 = vadd.f32 %v4460_v39, %v4412_v24  ;;  %v4413_v23 = vpop.f32.mrf.mxu1  ;;  %v4983_v24 = vpack.c.b16 %v4947_v12, %v4943_v53  ;;  %v4818_v39 = vrot.slane %v9332_v27, 5 }
 0x303   :  { %v4414_v14 = vadd.f32 %v4413_v23, %v4364_v7  ;;  %v4826_v7 = vrot.slane %v9336_v17, 5 }
 0x304   :  { %v4510_v40 = vadd.f32 %v4509_v19, %v4461_v30  ;;  %v10544_v19 = vld [vmem:[#allocation3 + $0x7b8] sm:$0xff]  ;;  %v9368_v30 = vrot.slane %v9334_v13, 9  ;;  %v4819_v31 = vsel %vm11224_vm5, %v9366_v38, %v4818_v39  ;;  %v10551_v13 = vld [vmem:[#allocation3 + $0x7f0] sm:$0xff] }
 0x305   :  { %7146 = vmatpush.bf16.msrb.mxu2 %v10544_v19  ;;  %v4951_v63 = vunpack.c.l.b16 %v4819_v31  ;;  %7196 = vmatpush.bf16.msrb.mxu3 %v10551_v13  ;;  %v9531_v19 = vld [vmem:[%s13293_s0 + $0x40] sm:$0xf]  ;;  %v10464_v13 = vld [vmem:[%s13293_s0 + $0xa4] sm:$0xf0] }
 0x306   :  { %v12335_v20 = vadd.f32 %v4510_v40, %v12049_v18  ;;  %v9329_v18 = vld [vmem:[%s13293_s0 + $0x220] sm:$0xee]  ;;  %v4823_v40 = vsel %vm11224_vm5, %v9367_v62, %v4822_v48  ;;  %v4827_v49 = vsel %vm11224_vm5, %v9368_v30, %v4826_v7 }
 0x307   :  { %v9365_v4 = vrot.slane %v9329_v18, 9  ;;  %v4953_v12 = vunpack.c.l.b16 %v4823_v40  ;;  %v4954_v2 = vunpack.c.h.b16 %v4823_v40  ;;  %v9533_v30 = vld [vmem:[%s13293_s0 + $0x60] sm:$0xf0] }
 0x309   :  { %v4462_v0 = vpop.f32.mrf.mxu2  ;;  %v4367_v3 = vpop.f32.mrf.mxu0  ;;  %v4815_v6 = vsel %vm11224_vm5, %v9365_v4, %v4814_v47 }
 0x30a   :  { %v4511_v58 = vpop.f32.mrf.mxu3  ;;  %v4463_v22 = vadd.f32 %v4462_v0, %v4414_v14  ;;  %v4416_v26 = vpop.f32.mrf.mxu1  ;;  %v4949_v53 = vunpack.c.l.b16 %v4815_v6  ;;  %v4950_v60 = vunpack.c.h.b16 %v4815_v6  ;;  %v4955_v0 = vunpack.c.l.b16 %v4827_v49  ;;  %v10535_v6 = vld [vmem:[#allocation3 + $0x770] sm:$0xff] }
 0x30b   :  { %v4417_v56 = vadd.f32 %v4416_v26, %v4367_v3 }
 0x30c   :  { %v4512_v28 = vadd.f32 %v4511_v58, %v4463_v22  ;;  %5251 = vmatmul.bf16.gmra.mxu0 %v4981_v32  ;;  %v4952_v58 = vunpack.c.h.b16 %v4819_v31  ;;  %v4956_v32 = vunpack.c.h.b16 %v4827_v49  ;;  %v10536_v22 = vld [vmem:[#allocation3 + $0x778] sm:$0xff] }
 0x30d   :  { %5300 = vmatmul.bf16.gmra.mxu1 %v4982_v54  ;;  %v10528_v54 = vld [vmem:[#allocation3 + $0x738] sm:$0xff] }
 0x30e   :  { %v12362_v29 = vadd.f32 %v4512_v28, %v12058_v44  ;;  %5349 = vmatmul.bf16.gmra.mxu2 %v4983_v24  ;;  %7048 = vmatpush.bf16.msrb.mxu0 %v10528_v54  ;;  %v4985_v24 = vpack.c.b16 %v4953_v12, %v4949_v53  ;;  %v4988_v5 = vpack.c.b16 %v4956_v32, %v4952_v58  ;;  %v10543_v28 = vld [vmem:[#allocation3 + $0x7b0] sm:$0xff]  ;;  %v10542_v58 = vld [vmem:[#allocation3 + $0x7a8] sm:$0xff] }
 0x30f   :  { %5398 = vmatmul.bf16.gmra.mxu3 %v4984_v61  ;;  %7097 = vmatpush.bf16.msrb.mxu1 %v10536_v22  ;;  %v4986_v61 = vpack.c.b16 %v4954_v2, %v4950_v60  ;;  %v10550_v32 = vld [vmem:[#allocation3 + $0x7e8] sm:$0xff] }
 0x310   :  { %7147 = vmatpush.bf16.msrb.mxu2 %v10543_v28  ;;  %7197 = vmatpush.bf16.msrb.mxu3 %v10550_v32  ;;  %v10534_v28 = vld [vmem:[#allocation3 + $0x768] sm:$0xff] }
 0x311   :  { %v4465_v23 = vpop.f32.mrf.mxu2  ;;  %v4369_v36 = vpop.f32.mrf.mxu0  ;;  %v10468_v32 = vld [vmem:[%s13293_s0 + $0xe4] sm:$0xf0] }
 0x312   :  { %v4514_v42 = vpop.f32.mrf.mxu3  ;;  %v4466_v14 = vadd.f32 %v4465_v23, %v4417_v56  ;;  %v4418_v44 = vpop.f32.mrf.mxu1  ;;  %v4987_v56 = vpack.c.b16 %v4955_v0, %v4951_v63  ;;  %v9539_v23 = vld [vmem:[%s13293_s0 + $0x48] sm:$0xf] }
 0x313   :  { %v4419_v43 = vadd.f32 %v4418_v44, %v4369_v36  ;;  %v10458_v36 = vld [vmem:[%s13293_s0 + $0x4c] sm:$0xf]  ;;  %7098 = vmatpush.bf16.msrb.mxu1 %v10535_v6  ;;  %v10541_v6 = vld [vmem:[#allocation3 + $0x7a0] sm:$0xff] }
 0x314   :  { %v4515_v51 = vadd.f32 %v4514_v42, %v4466_v14  ;;  %v10527_v42 = vld [vmem:[#allocation3 + $0x730] sm:$0xff]  ;;  %v10460_v14 = vld [vmem:[%s13293_s0 + $0x64] sm:$0xf0]  ;;  %v9541_v44 = vld [vmem:[%s13293_s0 + $0x68] sm:$0xf0]  ;;  %7148 = vmatpush.bf16.msrb.mxu2 %v10542_v58 }
 0x315   :  { %7049 = vmatpush.bf16.msrb.mxu0 %v10527_v42  ;;  %v9540_v12 = vor.u32 %v10460_v14, %v9539_v23  ;;  %v9544_v60 = vor.u32 %v10458_v36, %v9541_v44  ;;  %v10549_v14 = vld [vmem:[#allocation3 + $0x7e0] sm:$0xff] }
 0x316   :  { %v12373_v45 = vadd.f32 %v4515_v51, %v12069_v8  ;;  %7198 = vmatpush.bf16.msrb.mxu3 %v10549_v14  ;;  %v10533_v58 = vld [vmem:[#allocation3 + $0x760] sm:$0xff]  ;;  %v10472_v14 = vld [vmem:[%s13293_s0 + $0x124] sm:$0xf0] }
 0x317   :  { %7099 = vmatpush.bf16.msrb.mxu1 %v10534_v28  ;;  %v10540_v28 = vld [vmem:[#allocation3 + $0x798] sm:$0xff] }
 0x318   :  { %7149 = vmatpush.bf16.msrb.mxu2 %v10541_v6  ;;  %v10532_v6 = vld [vmem:[#allocation3 + $0x758] sm:$0xff] }
 0x319   :  { %v4467_v3 = vpop.f32.mrf.mxu2  ;;  %v4372_v16 = vpop.f32.mrf.mxu0 }
 0x31a   :  { %v4516_v26 = vpop.f32.mrf.mxu3  ;;  %v4468_v18 = vadd.f32 %v4467_v3, %v4419_v43  ;;  %v4421_v21 = vpop.f32.mrf.mxu1  ;;  %v9536_v43 = vor.u32 %v10457_v35, %v9533_v30 }
 0x31b   :  { %v4422_v55 = vadd.f32 %v4421_v21, %v4372_v16  ;;  %v9547_v16 = vld [vmem:[%s13293_s0 + $0x80] sm:$0xf]  ;;  %v10461_v21 = vld [vmem:[%s13293_s0 + $0x84] sm:$0xf]  ;;  %7100 = vmatpush.bf16.msrb.mxu1 %v10533_v58  ;;  %v10539_v58 = vld [vmem:[#allocation3 + $0x790] sm:$0xff] }
 0x31c   :  { %v4517_v27 = vadd.f32 %v4516_v26, %v4468_v18  ;;  %5256 = vmatmul.bf16.gmra.mxu0 %v4985_v24  ;;  %7150 = vmatpush.bf16.msrb.mxu2 %v10540_v28  ;;  %v10531_v28 = vld [vmem:[#allocation3 + $0x750] sm:$0xff] }
 0x31d   :  { %5305 = vmatmul.bf16.gmra.mxu1 %v4986_v61 }
 0x31e   :  { %v12376_v8 = vadd.f32 %v4517_v27, %v12096_v10  ;;  %5354 = vmatmul.bf16.gmra.mxu2 %v4987_v56  ;;  %v10459_v10 = vld [vmem:[%s13293_s0 + $0x5c] sm:$0xf0]  ;;  %v9549_v56 = vld [vmem:[%s13293_s0 + $0xa0] sm:$0xf0]  ;;  %v10526_v27 = vld [vmem:[#allocation3 + $0x728] sm:$0xff] }
 0x31f   :  { %5403 = vmatmul.bf16.gmra.mxu3 %v4988_v5  ;;  %v9532_v31 = vor.u32 %v10459_v10, %v9531_v19  ;;  %7050 = vmatpush.bf16.msrb.mxu0 %v10526_v27 }
 0x320   :  { %7101 = vmatpush.bf16.msrb.mxu1 %v10532_v6  ;;  %7151 = vmatpush.bf16.msrb.mxu2 %v10539_v58  ;;  %v10538_v6 = vld [vmem:[#allocation3 + $0x788] sm:$0xff] }
 0x321   :  { %v4470_v17 = vpop.f32.mrf.mxu2  ;;  %v4374_v62 = vpop.f32.mrf.mxu0  ;;  %v10530_v58 = vld [vmem:[#allocation3 + $0x748] sm:$0xff] }
 0x322   :  { %v4519_v4 = vpop.f32.mrf.mxu3  ;;  %v4471_v47 = vadd.f32 %v4470_v17, %v4422_v55  ;;  %v4423_v48 = vpop.f32.mrf.mxu1  ;;  %v9555_v55 = vld [vmem:[%s13293_s0 + $0x88] sm:$0xf]  ;;  %v10462_v17 = vld [vmem:[%s13293_s0 + $0x8c] sm:$0xf] }
 0x323   :  { %v4424_v38 = vadd.f32 %v4423_v48, %v4374_v62  ;;  %v9552_v48 = vor.u32 %v10461_v21, %v9549_v56  ;;  %v9556_v10 = vor.u32 %v10464_v13, %v9555_v55  ;;  %v10548_v13 = vld [vmem:[#allocation3 + $0x7d8] sm:$0xff] }
 0x324   :  { %v4520_v39 = vadd.f32 %v4519_v4, %v4471_v47  ;;  %v9557_v4 = vld [vmem:[%s13293_s0 + $0xa8] sm:$0xf0]  ;;  %7199 = vmatpush.bf16.msrb.mxu3 %v10548_v13  ;;  %v10476_v13 = vld [vmem:[%s13293_s0 + $0x1a4] sm:$0xf0]  ;;  %7102 = vmatpush.bf16.msrb.mxu1 %v10531_v28  ;;  %v10537_v28 = vld [vmem:[#allocation3 + $0x780] sm:$0xff] }
 0x325   :  { %v9560_v35 = vor.u32 %v10462_v17, %v9557_v4  ;;  %7152 = vmatpush.bf16.msrb.mxu2 %v10538_v6  ;;  %v10521_v6 = vld [vmem:[#allocation3 + $0x700] sm:$0xff] }
 0x326   :  { %v12391_v7 = vadd.f32 %v4520_v39, %v12107_v37 }
 0x328   :  { %7103 = vmatpush.bf16.msrb.mxu1 %v10530_v58 }
 0x329   :  { %v4472_v37 = vpop.f32.mrf.mxu2  ;;  %v5222_v51 = vpop.f32.mrf.mxu0  ;;  %7153 = vmatpush.bf16.msrb.mxu2 %v10537_v28 }
 0x32a   :  { %v4521_v40 = vpop.f32.mrf.mxu3  ;;  %v4473_v49 = vadd.f32 %v4472_v37, %v4424_v38  ;;  %v5271_v53 = vpop.f32.mrf.mxu1 }
 0x32b   :  { %v5272_v2 = vadd.f32 %v5271_v53, %v5222_v51  ;;  %v9563_v51 = vld [vmem:[%s13293_s0 + $0xc0] sm:$0xf]  ;;  %v10465_v53 = vld [vmem:[%s13293_s0 + $0xc4] sm:$0xf] }
 0x32c   :  { %v4522_v63 = vadd.f32 %v4521_v40, %v4473_v49  ;;  %5915 = vmatmul.bf16.vlgmr.msra.gmra.mxu0 %v9532_v31 }
 0x32d   :  { %5964 = vmatmul.bf16.vlgmr.msra.gmra.mxu1 %v9536_v43 }
 0x32e   :  { %v12406_v0 = vadd.f32 %v4522_v63, %v12134_v25  ;;  %6013 = vmatmul.bf16.vlgmr.msra.gmra.mxu2 %v9540_v12  ;;  %v10463_v25 = vld [vmem:[%s13293_s0 + $0x9c] sm:$0xf0]  ;;  %v9565_v12 = vld [vmem:[%s13293_s0 + $0xe0] sm:$0xf0] }
 0x32f   :  { %6062 = vmatmul.bf16.vlgmr.msra.gmra.mxu3 %v9544_v60  ;;  %v9548_v62 = vor.u32 %v10463_v25, %v9547_v16  ;;  %v10525_v63 = vld [vmem:[#allocation3 + $0x720] sm:$0xff] }
 0x330   :  { %7051 = vmatpush.bf16.msrb.mxu0 %v10525_v63 }
 0x331   :  { %v5320_v54 = vpop.f32.mrf.mxu2  ;;  %v5224_v26 = vpop.f32.mrf.mxu0 }
 0x332   :  { %v5369_v22 = vpop.f32.mrf.mxu3  ;;  %v5321_v3 = vadd.f32 %v5320_v54, %v5272_v2  ;;  %v5273_v24 = vpop.f32.mrf.mxu1  ;;  %v9571_v2 = vld [vmem:[%s13293_s0 + $0xc8] sm:$0xf]  ;;  %v10466_v54 = vld [vmem:[%s13293_s0 + $0xcc] sm:$0xf] }
 0x333   :  { %v5274_v61 = vadd.f32 %v5273_v24, %v5224_v26  ;;  %v9568_v24 = vor.u32 %v10465_v53, %v9565_v12  ;;  %v9572_v25 = vor.u32 %v10468_v32, %v9571_v2  ;;  %v10547_v32 = vld [vmem:[#allocation3 + $0x7d0] sm:$0xff] }
 0x334   :  { %v5370_v18 = vadd.f32 %v5369_v22, %v5321_v3  ;;  %v9573_v22 = vld [vmem:[%s13293_s0 + $0xe8] sm:$0xf0]  ;;  %7200 = vmatpush.bf16.msrb.mxu3 %v10547_v32  ;;  %v10480_v32 = vld [vmem:[%s13293_s0 + $0x1e4] sm:$0xf0] }
 0x335   :  { %v9576_v21 = vor.u32 %v10466_v54, %v9573_v22 }
 0x336   :  { %v12421_v5 = vadd.f32 %v5370_v18, %v12145_v57 }
 0x339   :  { %v5322_v57 = vpop.f32.mrf.mxu2  ;;  %v5227_v39 = vpop.f32.mrf.mxu0 }
 0x33a   :  { %v5371_v47 = vpop.f32.mrf.mxu3  ;;  %v5323_v38 = vadd.f32 %v5322_v57, %v5274_v61  ;;  %v5276_v19 = vpop.f32.mrf.mxu1 }
 0x33b   :  { %v5277_v30 = vadd.f32 %v5276_v19, %v5227_v39  ;;  %v9579_v39 = vld [vmem:[%s13293_s0 + $0x100] sm:$0xf]  ;;  %v10469_v19 = vld [vmem:[%s13293_s0 + $0x104] sm:$0xf] }
 0x33c   :  { %v5372_v23 = vadd.f32 %v5371_v47, %v5323_v38  ;;  %5920 = vmatmul.bf16.gmra.mxu0 %v9548_v62 }
 0x33d   :  { %5969 = vmatmul.bf16.gmra.mxu1 %v9552_v48 }
 0x33e   :  { %v12436_v42 = vadd.f32 %v5372_v23, %v12172_v34  ;;  %6018 = vmatmul.bf16.gmra.mxu2 %v9556_v10  ;;  %v10467_v34 = vld [vmem:[%s13293_s0 + $0xdc] sm:$0xf0]  ;;  %v9581_v10 = vld [vmem:[%s13293_s0 + $0x120] sm:$0xf0]  ;;  %v10524_v23 = vld [vmem:[#allocation3 + $0x718] sm:$0xff] }
 0x33f   :  { %6067 = vmatmul.bf16.gmra.mxu3 %v9560_v35  ;;  %v9564_v26 = vor.u32 %v10467_v34, %v9563_v51  ;;  %7052 = vmatpush.bf16.msrb.mxu0 %v10524_v23 }
 0x341   :  { %v5325_v36 = vpop.f32.mrf.mxu2  ;;  %v5229_v40 = vpop.f32.mrf.mxu0 }
 0x342   :  { %v5374_v44 = vpop.f32.mrf.mxu3  ;;  %v5326_v37 = vadd.f32 %v5325_v36, %v5277_v30  ;;  %v5278_v31 = vpop.f32.mrf.mxu1  ;;  %v9587_v30 = vld [vmem:[%s13293_s0 + $0x108] sm:$0xf]  ;;  %v10470_v36 = vld [vmem:[%s13293_s0 + $0x10c] sm:$0xf] }
 0x343   :  { %v5279_v43 = vadd.f32 %v5278_v31, %v5229_v40  ;;  %v9584_v31 = vor.u32 %v10469_v19, %v9581_v10  ;;  %v9588_v34 = vor.u32 %v10472_v14, %v9587_v30  ;;  %v10546_v14 = vld [vmem:[#allocation3 + $0x7c8] sm:$0xff] }
 0x344   :  { %v5375_v49 = vadd.f32 %v5374_v44, %v5326_v37  ;;  %v9589_v44 = vld [vmem:[%s13293_s0 + $0x128] sm:$0xf0]  ;;  %7201 = vmatpush.bf16.msrb.mxu3 %v10546_v14  ;;  %v10529_v14 = vld [vmem:[#allocation3 + $0x740] sm:$0xff] }
 0x345   :  { %v9592_v53 = vor.u32 %v10470_v36, %v9589_v44  ;;  %7104 = vmatpush.bf16.msrb.mxu1 %v10529_v14  ;;  %v9643_v14 = vld [vmem:[%s13293_s0 + $0x240] sm:$0xf] }
 0x346   :  { %v12451_v60 = vadd.f32 %v5375_v49, %v12183_v46 }
 0x349   :  { %v5327_v46 = vpop.f32.mrf.mxu2  ;;  %v5232_v18 = vpop.f32.mrf.mxu0 }
 0x34a   :  { %v5376_v3 = vpop.f32.mrf.mxu3  ;;  %v5328_v61 = vadd.f32 %v5327_v46, %v5279_v43  ;;  %v5281_v16 = vpop.f32.mrf.mxu1 }
 0x34b   :  { %v5282_v56 = vadd.f32 %v5281_v16, %v5232_v18  ;;  %v9595_v18 = vld [vmem:[%s13293_s0 + $0x180] sm:$0xf]  ;;  %v10473_v16 = vld [vmem:[%s13293_s0 + $0x184] sm:$0xf] }
 0x34c   :  { %v5377_v55 = vadd.f32 %v5376_v3, %v5328_v61  ;;  %5925 = vmatmul.bf16.gmra.mxu0 %v9564_v26 }
 0x34d   :  { %5974 = vmatmul.bf16.gmra.mxu1 %v9568_v24 }
 0x34e   :  { %v12466_v27 = vadd.f32 %v5377_v55, %v12210_v59  ;;  %6023 = vmatmul.bf16.gmra.mxu2 %v9572_v25  ;;  %v10471_v59 = vld [vmem:[%s13293_s0 + $0x11c] sm:$0xf0]  ;;  %v9597_v25 = vld [vmem:[%s13293_s0 + $0x1a0] sm:$0xf0]  ;;  %v10523_v55 = vld [vmem:[#allocation3 + $0x710] sm:$0xff] }
 0x34f   :  { %6072 = vmatmul.bf16.gmra.mxu3 %v9576_v21  ;;  %v9580_v40 = vor.u32 %v10471_v59, %v9579_v39  ;;  %7053 = vmatpush.bf16.msrb.mxu0 %v10523_v55 }
 0x351   :  { %v5330_v17 = vpop.f32.mrf.mxu2  ;;  %v5234_v47 = vpop.f32.mrf.mxu0 }
 0x352   :  { %v5379_v4 = vpop.f32.mrf.mxu3  ;;  %v5331_v57 = vadd.f32 %v5330_v17, %v5282_v56  ;;  %v5283_v62 = vpop.f32.mrf.mxu1  ;;  %v9603_v56 = vld [vmem:[%s13293_s0 + $0x188] sm:$0xf]  ;;  %v10474_v17 = vld [vmem:[%s13293_s0 + $0x18c] sm:$0xf] }
 0x353   :  { %v5284_v48 = vadd.f32 %v5283_v62, %v5234_v47  ;;  %v9600_v62 = vor.u32 %v10473_v16, %v9597_v25  ;;  %v9604_v59 = vor.u32 %v10476_v13, %v9603_v56  ;;  %v10545_v13 = vld [vmem:[#allocation3 + $0x7c0] sm:$0xff] }
 0x354   :  { %v5380_v38 = vadd.f32 %v5379_v4, %v5331_v57  ;;  %v9605_v4 = vld [vmem:[%s13293_s0 + $0x1a8] sm:$0xf0]  ;;  %7202 = vmatpush.bf16.msrb.mxu3 %v10545_v13  ;;  %v9787_v13 = vld [vmem:[%s13293_s0 + $0x50] sm:$0x11] }
 0x355   :  { %v9608_v19 = vor.u32 %v10474_v17, %v9605_v4 }
 0x356   :  { %v12481_v35 = vadd.f32 %v5380_v38, %v12221_v50 }
 0x359   :  { %v5332_v50 = vpop.f32.mrf.mxu2  ;;  %v5237_v49 = vpop.f32.mrf.mxu0 }
 0x35a   :  { %v5381_v37 = vpop.f32.mrf.mxu3  ;;  %v5333_v43 = vadd.f32 %v5332_v50, %v5284_v48  ;;  %v5286_v51 = vpop.f32.mrf.mxu1 }
 0x35b   :  { %v5287_v12 = vadd.f32 %v5286_v51, %v5237_v49  ;;  %v9611_v49 = vld [vmem:[%s13293_s0 + $0x1c0] sm:$0xf]  ;;  %v10477_v51 = vld [vmem:[%s13293_s0 + $0x1c4] sm:$0xf] }
 0x35c   :  { %v5382_v2 = vadd.f32 %v5381_v37, %v5333_v43  ;;  %5930 = vmatmul.bf16.gmra.mxu0 %v9580_v40 }
 0x35d   :  { %5979 = vmatmul.bf16.gmra.mxu1 %v9584_v31 }
 0x35e   :  { %v12496_v63 = vadd.f32 %v5382_v2, %v12248_v9  ;;  %6028 = vmatmul.bf16.gmra.mxu2 %v9588_v34  ;;  %v10475_v9 = vld [vmem:[%s13293_s0 + $0x19c] sm:$0xf0]  ;;  %v9613_v34 = vld [vmem:[%s13293_s0 + $0x1e0] sm:$0xf0]  ;;  %v10522_v2 = vld [vmem:[#allocation3 + $0x708] sm:$0xff] }
 0x35f   :  { %6077 = vmatmul.bf16.gmra.mxu3 %v9592_v53  ;;  %v9596_v47 = vor.u32 %v10475_v9, %v9595_v18  ;;  %7054 = vmatpush.bf16.msrb.mxu0 %v10522_v2 }
 0x361   :  { %v5335_v54 = vpop.f32.mrf.mxu2  ;;  %v5239_v3 = vpop.f32.mrf.mxu0 }
 0x362   :  { %v5384_v22 = vpop.f32.mrf.mxu3  ;;  %v5336_v46 = vadd.f32 %v5335_v54, %v5287_v12  ;;  %v5288_v26 = vpop.f32.mrf.mxu1  ;;  %v9619_v12 = vld [vmem:[%s13293_s0 + $0x1c8] sm:$0xf]  ;;  %v10478_v54 = vld [vmem:[%s13293_s0 + $0x1cc] sm:$0xf] }
 0x363   :  { %v5289_v24 = vadd.f32 %v5288_v26, %v5239_v3  ;;  %v9616_v26 = vor.u32 %v10477_v51, %v9613_v34  ;;  %v9620_v9 = vor.u32 %v10480_v32, %v9619_v12  ;;  %7055 = vmatpush.bf16.msrb.mxu0 %v10521_v6 }
 0x364   :  { %v5385_v61 = vadd.f32 %v5384_v22, %v5336_v46  ;;  %v9621_v22 = vld [vmem:[%s13293_s0 + $0x1e8] sm:$0xf0] }
 0x365   :  { %v9624_v16 = vor.u32 %v10478_v54, %v9621_v22  ;;  %v9786_v22 = vld [vmem:[%s13293_s0 + $0x48] sm:$0xff] }
 0x366   :  { %v12511_v21 = vadd.f32 %v5385_v61, %v12259_v1 }
 0x369   :  { %v5337_v1 = vpop.f32.mrf.mxu2  ;;  %v5242_v38 = vpop.f32.mrf.mxu0 }
 0x36a   :  { %v5386_v57 = vpop.f32.mrf.mxu3  ;;  %v5338_v48 = vadd.f32 %v5337_v1, %v5289_v24  ;;  %v5291_v39 = vpop.f32.mrf.mxu1 }
 0x36b   :  { %v5292_v10 = vadd.f32 %v5291_v39, %v5242_v38  ;;  %v9627_v38 = vld [vmem:[%s13293_s0 + $0x200] sm:$0xf]  ;;  %v10481_v39 = vld [vmem:[%s13293_s0 + $0x204] sm:$0xf] }
 0x36c   :  { %v5387_v30 = vadd.f32 %v5386_v57, %v5338_v48  ;;  %5935 = vmatmul.bf16.gmra.mxu0 %v9596_v47 }
 0x36d   :  { %5984 = vmatmul.bf16.gmra.mxu1 %v9600_v62 }
 0x36e   :  { %v12526_v23 = vadd.f32 %v5387_v30, %v12286_v41  ;;  %6033 = vmatmul.bf16.gmra.mxu2 %v9604_v59  ;;  %v10479_v41 = vld [vmem:[%s13293_s0 + $0x1dc] sm:$0xf0]  ;;  %v9629_v59 = vld [vmem:[%s13293_s0 + $0x220] sm:$0xf0]  ;;  %v10484_v30 = vld [vmem:[%s13293_s0 + $0x224] sm:$0xf0] }
 0x36f   :  { %6082 = vmatmul.bf16.gmra.mxu3 %v9608_v19  ;;  %v9612_v3 = vor.u32 %v10479_v41, %v9611_v49  ;;  %v9635_v19 = vld [vmem:[%s13293_s0 + $0x208] sm:$0xf] }
 0x370   :  { %v9636_v49 = vor.u32 %v10484_v30, %v9635_v19 }
 0x371   :  { %v5340_v36 = vpop.f32.mrf.mxu2  ;;  %v5244_v37 = vpop.f32.mrf.mxu0 }
 0x372   :  { %v5389_v44 = vpop.f32.mrf.mxu3  ;;  %v5341_v50 = vadd.f32 %v5340_v36, %v5292_v10  ;;  %v5293_v40 = vpop.f32.mrf.mxu1  ;;  %v10482_v36 = vld [vmem:[%s13293_s0 + $0x20c] sm:$0xf] }
 0x373   :  { %v5294_v31 = vadd.f32 %v5293_v40, %v5244_v37 }
 0x374   :  { %v5390_v43 = vadd.f32 %v5389_v44, %v5341_v50  ;;  %v9637_v44 = vld [vmem:[%s13293_s0 + $0x228] sm:$0xf0]  ;;  %v9785_v50 = vld [vmem:[%s13293_s0 + $0x40] sm:$0xff] }
 0x375   :  { %v9640_v12 = vor.u32 %v10482_v36, %v9637_v44  ;;  %v6216_v2 = vshrl.u32 %v9785_v50, 16  ;;  %v6219_v58 = vshll.u32 %v9785_v50, 16  ;;  %v10487_v36 = vld [vmem:[%s13293_s0 + $0x25c] sm:$0xf0]  ;;  %v10485_v44 = vld [vmem:[%s13293_s0 + $0x244] sm:$0xf] }
 0x376   :  { %v12541_v53 = vadd.f32 %v5390_v43, %v12297_v33  ;;  %v9632_v43 = vor.u32 %v10481_v39, %v9629_v59  ;;  %v6225_v59 = vshll.u32 %v9787_v13, 16  ;;  %v9645_v50 = vld [vmem:[%s13293_s0 + $0x260] sm:$0xf0] }
 0x379   :  { %v5342_v33 = vpop.f32.mrf.mxu2  ;;  %v5247_v61 = vpop.f32.mrf.mxu0 }
 0x37a   :  { %v5391_v46 = vpop.f32.mrf.mxu3  ;;  %v5343_v24 = vadd.f32 %v5342_v33, %v5294_v31  ;;  %v5296_v18 = vpop.f32.mrf.mxu1 }
 0x37b   :  { %v5297_v25 = vadd.f32 %v5296_v18, %v5247_v61  ;;  %v6221_v61 = vrot.slane %v6219_v58, 5  ;;  %v6230_v18 = vshrl.u32 %v9786_v22, 16  ;;  %v9653_v58 = vld [vmem:[%s13293_s0 + $0x268] sm:$0xf0] }
 0x37c   :  { %v5392_v56 = vadd.f32 %v5391_v46, %v5343_v24  ;;  %5940 = vmatmul.bf16.gmra.mxu0 %v9612_v3  ;;  %v9790_v3 = vld [vmem:[%s13293_s0 + $0x68] sm:$0xff]  ;;  %v6218_v24 = vrot.slane %v6216_v2, 4  ;;  %v10568_v2 = vld [vmem:[#allocation3 + $0x878] sm:$0xff] }
 0x37d   :  { %5989 = vmatmul.bf16.gmra.mxu1 %v9616_v26  ;;  %v6258_v28 = vshrl.u32 %v9790_v3, 16 }
 0x37e   :  { %v12556_v55 = vadd.f32 %v5392_v56, %v12324_v11  ;;  %6038 = vmatmul.bf16.gmra.mxu2 %v9620_v9  ;;  %v10483_v11 = vld [vmem:[%s13293_s0 + $0x21c] sm:$0xf0]  ;;  %v10576_v9 = vld [vmem:[#allocation3 + $0x8b8] sm:$0xff]  ;;  %v6233_v56 = vshll.u32 %v9786_v22, 16  ;;  %7982 = vmatpush.bf16.msra.mxu1 %v10568_v2 }
 0x37f   :  { %6087 = vmatmul.bf16.gmra.mxu3 %v9624_v16  ;;  %v9628_v31 = vor.u32 %v10483_v11, %v9627_v38  ;;  %v10584_v16 = vld [vmem:[#allocation3 + $0x8f8] sm:$0xff]  ;;  %8031 = vmatpush.bf16.msra.mxu2 %v10576_v9  ;;  %v6222_v38 = vor.u32 %v6221_v61, %v6218_v24  ;;  %v6232_v11 = vrot.slane %v6230_v18, 4  ;;  %v9644_v9 = vor.u32 %v10487_v36, %v9643_v14  ;;  %v10575_v14 = vld [vmem:[#allocation3 + $0x8b0] sm:$0xff] }
 0x380   :  { %8080 = vmatpush.bf16.msra.mxu3 %v10584_v16  ;;  %v6235_v30 = vrot.slane %v6233_v56, 5  ;;  %v9648_v16 = vor.u32 %v10485_v44, %v9645_v50  ;;  %v10583_v36 = vld [vmem:[#allocation3 + $0x8f0] sm:$0xff] }
 0x381   :  { %v5345_v17 = vpop.f32.mrf.mxu2  ;;  %v5249_v57 = vpop.f32.mrf.mxu0 }
 0x382   :  { %v5394_v4 = vpop.f32.mrf.mxu3  ;;  %v5346_v1 = vadd.f32 %v5345_v17, %v5297_v25  ;;  %v5298_v47 = vpop.f32.mrf.mxu1  ;;  %v9791_v17 = vld [vmem:[%s13293_s0 + $0x70] sm:$0x11]  ;;  %v6236_v22 = vor.u32 %v6235_v30, %v6232_v11 }
 0x383   :  { %v5299_v62 = vadd.f32 %v5298_v47, %v5249_v57  ;;  %v6253_v19 = vshll.u32 %v9791_v17, 16  ;;  %8032 = vmatpush.bf16.msra.mxu2 %v10575_v14  ;;  %v9801_v14 = vld [vmem:[%s13293_s0 + $0xc0] sm:$0xff] }
 0x384   :  { %v5395_v48 = vadd.f32 %v5394_v4, %v5346_v1  ;;  %v6261_v4 = vshll.u32 %v9790_v3, 16  ;;  %8081 = vmatpush.bf16.msra.mxu3 %v10583_v36 }
 0x385   :  { %v6255_v3 = vrot.slane %v6253_v19, 5 }
 0x386   :  { %v12574_v10 = vadd.f32 %v5395_v48, %v12335_v20  ;;  %v9789_v20 = vld [vmem:[%s13293_s0 + $0x60] sm:$0xff] }
 0x387   :  { %v6244_v54 = vshrl.u32 %v9789_v20, 16  ;;  %v6247_v46 = vshll.u32 %v9789_v20, 16 }
 0x389   :  { %v5347_v37 = vpop.f32.mrf.mxu2  ;;  %v5252_v51 = vpop.f32.mrf.mxu0  ;;  %v6246_v25 = vrot.slane %v6244_v54, 4  ;;  %v6227_v54 = vrot.slane %v6225_v59, 5 }
 0x38a   :  { %v5396_v40 = vpop.f32.mrf.mxu3  ;;  %v5348_v41 = vadd.f32 %v5347_v37, %v5299_v62  ;;  %v5301_v34 = vpop.f32.mrf.mxu1  ;;  %v9788_v37 = vld [vmem:[%s13293_s0 + $0x58] sm:$0x11] }
 0x38b   :  { %v5302_v32 = vadd.f32 %v5301_v34, %v5252_v51  ;;  %v10486_v34 = vld [vmem:[%s13293_s0 + $0x24c] sm:$0xf] }
 0x38c   :  { %v5397_v33 = vadd.f32 %v5396_v40, %v5348_v41  ;;  %5945 = vmatmul.bf16.gmra.mxu0 %v9628_v31  ;;  %v6260_v40 = vrot.slane %v6258_v28, 4  ;;  %v6263_v31 = vrot.slane %v6261_v4, 5  ;;  %v9792_v41 = vld [vmem:[%s13293_s0 + $0x78] sm:$0x11]  ;;  %v9656_v17 = vor.u32 %v10486_v34, %v9653_v58 }
 0x38d   :  { %5994 = vmatmul.bf16.gmra.mxu1 %v9632_v43  ;;  %v9651_v43 = vld [vmem:[%s13293_s0 + $0x248] sm:$0xf]  ;;  %v6267_v61 = vshll.u32 %v9792_v41, 16 }
 0x38e   :  { %v12598_v26 = vadd.f32 %v5397_v33, %v12362_v29  ;;  %6043 = vmatmul.bf16.gmra.mxu2 %v9636_v49  ;;  %v6249_v29 = vrot.slane %v6247_v46, 5  ;;  %v10488_v49 = vld [vmem:[%s13293_s0 + $0x264] sm:$0xf0]  ;;  %v6239_v33 = vshll.u32 %v9788_v37, 16  ;;  %v6264_v24 = vor.u32 %v6263_v31, %v6260_v40 }
 0x38f   :  { %6092 = vmatmul.bf16.gmra.mxu3 %v9640_v12  ;;  %v10560_v12 = vld [vmem:[#allocation3 + $0x838] sm:$0xff]  ;;  %v9652_v13 = vor.u32 %v10488_v49, %v9651_v43  ;;  %v6269_v11 = vrot.slane %v6267_v61, 5 }
 0x390   :  { %v6250_v20 = vor.u32 %v6249_v29, %v6246_v25  ;;  %7933 = vmatpush.bf16.msra.mxu0 %v10560_v12  ;;  %v9793_v29 = vld [vmem:[%s13293_s0 + $0x80] sm:$0xff]  ;;  %v9795_v12 = vld [vmem:[%s13293_s0 + $0x90] sm:$0x11] }
 0x391   :  { %v5350_v1 = vpop.f32.mrf.mxu2  ;;  %v5254_v62 = vpop.f32.mrf.mxu0  ;;  %v6272_v59 = vshrl.u32 %v9793_v29, 16  ;;  %v6275_v19 = vshll.u32 %v9793_v29, 16 }
 0x392   :  { %v5399_v57 = vpop.f32.mrf.mxu3  ;;  %v5351_v47 = vadd.f32 %v5350_v1, %v5302_v32  ;;  %v5303_v48 = vpop.f32.mrf.mxu1  ;;  %v6223_v32 = vrot.slane %v6222_v38, 4  ;;  %v6251_v46 = vrot.slane %v6250_v20, 4  ;;  %v6265_v38 = vrot.slane %v6264_v24, 4 }
 0x393   :  { %v5304_v39 = vadd.f32 %v5303_v48, %v5254_v62  ;;  %v6274_v2 = vrot.slane %v6272_v59, 4  ;;  %v6277_v58 = vrot.slane %v6275_v19, 5 }
 0x394   :  { %v5400_v6 = vadd.f32 %v5399_v57, %v5351_v47  ;;  %v12644_v1 = vsel %vm10934_vm2, %v6223_v32, %v6227_v54  ;;  %v6237_v57 = vrot.slane %v6236_v22, 4  ;;  %v6241_v47 = vrot.slane %v6239_v33, 5 }
 0x395   :  { %v6256_v48 = vsel %vm10934_vm2, %v6251_v46, %v6255_v3  ;;  %v6728_v44 = vunpack.c.l.b16 %v12644_v1  ;;  %v6729_v20 = vunpack.c.h.b16 %v12644_v1  ;;  %v6270_v31 = vsel %vm10934_vm2, %v6265_v38, %v6269_v11  ;;  %v10559_v11 = vld [vmem:[#allocation3 + $0x830] sm:$0xff] }
 0x396   :  { %v12631_v51 = vadd.f32 %v5400_v6, %v12373_v45  ;;  %v9794_v6 = vld [vmem:[%s13293_s0 + $0x88] sm:$0xff]  ;;  %v6732_v50 = vunpack.c.l.b16 %v6256_v48  ;;  %v6242_v37 = vsel %vm10934_vm2, %v6237_v57, %v6241_v47  ;;  %v6733_v40 = vunpack.c.h.b16 %v6256_v48  ;;  %7934 = vmatpush.bf16.msra.mxu0 %v10559_v11 }
 0x397   :  { %v6286_v32 = vshrl.u32 %v9794_v6, 16  ;;  %v6289_v54 = vshll.u32 %v9794_v6, 16  ;;  %v6730_v3 = vunpack.c.l.b16 %v6242_v37  ;;  %v6278_v29 = vor.u32 %v6277_v58, %v6274_v2 }
 0x398   :  { %v6792_v59 = vpack.c.b16 %v6732_v50, %v6728_v44  ;;  %v6793_v19 = vpack.c.b16 %v6733_v40, %v6729_v20  ;;  %v6328_v58 = vshrl.u32 %v9801_v14, 16 }
 0x399   :  { %v5352_v45 = vpop.f32.mrf.mxu2  ;;  %v5257_v56 = vpop.f32.mrf.mxu0  ;;  %v6288_v1 = vrot.slane %v6286_v32, 4  ;;  %v6291_v57 = vrot.slane %v6289_v54, 5  ;;  %v6331_v32 = vshll.u32 %v9801_v14, 16 }
 0x39a   :  { %v5401_v18 = vpop.f32.mrf.mxu3  ;;  %v5353_v25 = vadd.f32 %v5352_v45, %v5304_v39  ;;  %v5306_v28 = vpop.f32.mrf.mxu1  ;;  %v9797_v39 = vld [vmem:[%s13293_s0 + $0xa0] sm:$0xff] }
 0x39b   :  { %v5307_v4 = vadd.f32 %v5306_v28, %v5257_v56  ;;  %v6300_v43 = vshrl.u32 %v9797_v39, 16  ;;  %v6303_v49 = vshll.u32 %v9797_v39, 16  ;;  %v6281_v56 = vshll.u32 %v9795_v12, 16  ;;  %v10567_v39 = vld [vmem:[#allocation3 + $0x870] sm:$0xff] }
 0x39c   :  { %v5402_v62 = vadd.f32 %v5401_v18, %v5353_v25  ;;  %5950 = vmatmul.bf16.gmra.mxu0 %v9644_v9  ;;  %v6734_v18 = vunpack.c.l.b16 %v6270_v31  ;;  %v6731_v9 = vunpack.c.h.b16 %v6242_v37  ;;  %7983 = vmatpush.bf16.msra.mxu1 %v10567_v39  ;;  %v6292_v44 = vor.u32 %v6291_v57, %v6288_v1  ;;  %v9803_v1 = vld [vmem:[%s13293_s0 + $0xd0] sm:$0x11] }
 0x39d   :  { %5999 = vmatmul.bf16.gmra.mxu1 %v9648_v16  ;;  %v6735_v16 = vunpack.c.h.b16 %v6270_v31  ;;  %v6302_v28 = vrot.slane %v6300_v43, 4  ;;  %v6283_v37 = vrot.slane %v6281_v56, 5  ;;  %v9805_v31 = vld [vmem:[%s13293_s0 + $0xe0] sm:$0xff] }
 0x39e   :  { %v12652_v30 = vadd.f32 %v5402_v62, %v12376_v8  ;;  %6048 = vmatmul.bf16.gmra.mxu2 %v9652_v13  ;;  %v9798_v8 = vld [vmem:[%s13293_s0 + $0xa8] sm:$0xff]  ;;  %v6305_v13 = vrot.slane %v6303_v49, 5  ;;  %v9800_v62 = vld [vmem:[%s13293_s0 + $0xb8] sm:$0x11]  ;;  %v6794_v6 = vpack.c.b16 %v6734_v18, %v6730_v3  ;;  %v6293_v18 = vrot.slane %v6292_v44, 4 }
 0x39f   :  { %6097 = vmatmul.bf16.gmra.mxu3 %v9656_v17  ;;  %v6314_v24 = vshrl.u32 %v9798_v8, 16  ;;  %v6317_v61 = vshll.u32 %v9798_v8, 16  ;;  %v9799_v17 = vld [vmem:[%s13293_s0 + $0xb0] sm:$0x11]  ;;  %v6795_v36 = vpack.c.b16 %v6735_v16, %v6731_v9  ;;  %v6323_v20 = vshll.u32 %v9800_v62, 16 }
 0x3a0   :  { %v6306_v8 = vor.u32 %v6305_v13, %v6302_v28  ;;  %v6330_v13 = vrot.slane %v6328_v58, 4 }
 0x3a1   :  { %v5355_v41 = vpop.f32.mrf.mxu2  ;;  %v5259_v33 = vpop.f32.mrf.mxu0  ;;  %v6316_v48 = vrot.slane %v6314_v24, 4  ;;  %v6319_v38 = vrot.slane %v6317_v61, 5  ;;  %v9802_v61 = vld [vmem:[%s13293_s0 + $0xc8] sm:$0xff]  ;;  %v6325_v16 = vrot.slane %v6323_v20, 5 }
 0x3a2   :  { %v5404_v34 = vpop.f32.mrf.mxu3  ;;  %v5356_v22 = vadd.f32 %v5355_v41, %v5307_v4  ;;  %v5308_v46 = vpop.f32.mrf.mxu1  ;;  %v9796_v4 = vld [vmem:[%s13293_s0 + $0x98] sm:$0x11]  ;;  %v6279_v41 = vrot.slane %v6278_v29, 4  ;;  %v6307_v3 = vrot.slane %v6306_v8, 4  ;;  %v10574_v29 = vld [vmem:[#allocation3 + $0x8a8] sm:$0xff] }
 0x3a3   :  { %v5309_v45 = vadd.f32 %v5308_v46, %v5259_v33  ;;  %v6295_v50 = vshll.u32 %v9796_v4, 16  ;;  %v6320_v2 = vor.u32 %v6319_v38, %v6316_v48  ;;  %v6359_v33 = vshll.u32 %v9805_v31, 16  ;;  %v10582_v4 = vld [vmem:[#allocation3 + $0x8e8] sm:$0xff]  ;;  %v9807_v38 = vld [vmem:[%s13293_s0 + $0xf0] sm:$0x11]  ;;  %8033 = vmatpush.bf16.msra.mxu2 %v10574_v29 }
 0x3a4   :  { %v5405_v25 = vadd.f32 %v5404_v34, %v5356_v22  ;;  %v6356_v22 = vshrl.u32 %v9805_v31, 16  ;;  %v6342_v48 = vshrl.u32 %v9802_v61, 16  ;;  %8082 = vmatpush.bf16.msra.mxu3 %v10582_v4  ;;  %v6365_v20 = vshll.u32 %v9807_v38, 16 }
 0x3a5   :  { %v6297_v9 = vrot.slane %v6295_v50, 5  ;;  %v6321_v28 = vrot.slane %v6320_v2, 4  ;;  %v6361_v62 = vrot.slane %v6359_v33, 5 }
 0x3a6   :  { %v12676_v47 = vadd.f32 %v5405_v25, %v12391_v7  ;;  %v6309_v7 = vshll.u32 %v9799_v17, 16  ;;  %v9806_v25 = vld [vmem:[%s13293_s0 + $0xe8] sm:$0xff]  ;;  %v6333_v17 = vrot.slane %v6331_v32, 5  ;;  %v6358_v57 = vrot.slane %v6356_v22, 4 }
 0x3a7   :  { %v6370_v11 = vshrl.u32 %v9806_v25, 16  ;;  %v6373_v39 = vshll.u32 %v9806_v25, 16 }
 0x3a8   :  { %v6311_v24 = vrot.slane %v6309_v7, 5  ;;  %v6362_v50 = vor.u32 %v6361_v62, %v6358_v57 }
 0x3a9   :  { %v5357_v43 = vpop.f32.mrf.mxu2  ;;  %v5916_v34 = vpop.f32.mrf.mxu0  ;;  %v6372_v58 = vrot.slane %v6370_v11, 4  ;;  %v6375_v32 = vrot.slane %v6373_v39, 5 }
 0x3aa   :  { %v5406_v49 = vpop.f32.mrf.mxu3  ;;  %v5358_v40 = vadd.f32 %v5357_v43, %v5309_v45  ;;  %v5965_v12 = vpop.f32.mrf.mxu1  ;;  %v12692_v45 = vsel %vm10934_vm2, %v6279_v41, %v6283_v37  ;;  %v6298_v37 = vsel %vm10934_vm2, %v6293_v18, %v6297_v9  ;;  %v6326_v43 = vsel %vm10934_vm2, %v6321_v28, %v6325_v16  ;;  %v10558_v9 = vld [vmem:[#allocation3 + $0x828] sm:$0xff] }
 0x3ab   :  { %v5966_v54 = vadd.f32 %v5965_v12, %v5916_v34  ;;  %v6736_v14 = vunpack.c.l.b16 %v12692_v45  ;;  %v6337_v41 = vshll.u32 %v9803_v1, 16  ;;  %v9804_v12 = vld [vmem:[%s13293_s0 + $0xd8] sm:$0x11]  ;;  %v6738_v33 = vunpack.c.l.b16 %v6298_v37  ;;  %v10566_v16 = vld [vmem:[#allocation3 + $0x868] sm:$0xff]  ;;  %7935 = vmatpush.bf16.msra.mxu0 %v10558_v9 }
 0x3ac   :  { %v5407_v46 = vadd.f32 %v5406_v49, %v5358_v40  ;;  %7056 = vmatmul.bf16.vlgmr.msrb.gmra.mxu0 %v6792_v59  ;;  %v6334_v49 = vor.u32 %v6333_v17, %v6330_v13  ;;  %v6344_v40 = vrot.slane %v6342_v48, 4  ;;  %v6363_v28 = vrot.slane %v6362_v50, 4  ;;  %7984 = vmatpush.bf16.msra.mxu1 %v10566_v16 }
 0x3ad   :  { %7105 = vmatmul.bf16.vlgmr.msrb.gmra.mxu1 %v6793_v19  ;;  %v6339_v25 = vrot.slane %v6337_v41, 5  ;;  %v6367_v13 = vrot.slane %v6365_v20, 5  ;;  %v6351_v17 = vshll.u32 %v9804_v12, 16  ;;  %v6376_v4 = vor.u32 %v6375_v32, %v6372_v58  ;;  %v10573_v12 = vld [vmem:[#allocation3 + $0x8a0] sm:$0xff] }
 0x3ae   :  { %v12698_v56 = vadd.f32 %v5407_v46, %v12406_v0  ;;  %7154 = vmatmul.bf16.vlgmr.msrb.gmra.mxu2 %v6794_v6  ;;  %v6345_v0 = vshll.u32 %v9802_v61, 16  ;;  %v6312_v6 = vsel %vm10934_vm2, %v6307_v3, %v6311_v24  ;;  %v6739_v46 = vunpack.c.h.b16 %v6298_v37  ;;  %v9808_v3 = vld [vmem:[%s13293_s0 + $0xf8] sm:$0x11] }
 0x3af   :  { %7203 = vmatmul.bf16.vlgmr.msrb.gmra.mxu3 %v6795_v36  ;;  %v6737_v36 = vunpack.c.h.b16 %v12692_v45  ;;  %v6741_v22 = vunpack.c.h.b16 %v6312_v6  ;;  %v6742_v61 = vunpack.c.l.b16 %v6326_v43  ;;  %v6743_v45 = vunpack.c.h.b16 %v6326_v43  ;;  %8034 = vmatpush.bf16.msra.mxu2 %v10573_v12 }
 0x3b0   :  { %v6347_v2 = vrot.slane %v6345_v0, 5  ;;  %v6335_v18 = vrot.slane %v6334_v49, 4  ;;  %v6379_v1 = vshll.u32 %v9808_v3, 16  ;;  %v6377_v43 = vrot.slane %v6376_v4, 4 }
 0x3b1   :  { %v6014_v59 = vpop.f32.mrf.mxu2  ;;  %v5918_v7 = vpop.f32.mrf.mxu0  ;;  %v6797_v38 = vpack.c.b16 %v6741_v22, %v6737_v36  ;;  %v6798_v39 = vpack.c.b16 %v6742_v61, %v6738_v33  ;;  %v6353_v36 = vrot.slane %v6351_v17, 5 }
 0x3b2   :  { %v6063_v19 = vpop.f32.mrf.mxu3  ;;  %v6015_v8 = vadd.f32 %v6014_v59, %v5966_v54  ;;  %v5967_v31 = vpop.f32.mrf.mxu1  ;;  %v6740_v54 = vunpack.c.l.b16 %v6312_v6  ;;  %v6348_v29 = vor.u32 %v6347_v2, %v6344_v40  ;;  %v6799_v59 = vpack.c.b16 %v6743_v45, %v6739_v46  ;;  %v9813_v6 = vld [vmem:[%s13293_s0 + $0x120] sm:$0xff]  ;;  %v9810_v40 = vld [vmem:[%s13293_s0 + $0x108] sm:$0xff]  ;;  %v9811_v45 = vld [vmem:[%s13293_s0 + $0x110] sm:$0x11] }
 0x3b3   :  { %v5968_v44 = vadd.f32 %v5967_v31, %v5918_v7  ;;  %v6381_v49 = vrot.slane %v6379_v1, 5  ;;  %v6412_v50 = vshrl.u32 %v9813_v6, 16  ;;  %v6415_v20 = vshll.u32 %v9813_v6, 16  ;;  %v10581_v2 = vld [vmem:[#allocation3 + $0x8e0] sm:$0xff] }
 0x3b4   :  { %v6064_v34 = vadd.f32 %v6063_v19, %v6015_v8  ;;  %v6796_v48 = vpack.c.b16 %v6740_v54, %v6736_v14  ;;  %v9809_v19 = vld [vmem:[%s13293_s0 + $0x100] sm:$0xff]  ;;  %v12731_v8 = vsel %vm10934_vm2, %v6335_v18, %v6339_v25  ;;  %v12735_v14 = vsel %vm10934_vm2, %v6363_v28, %v6367_v13  ;;  %v9814_v54 = vld [vmem:[%s13293_s0 + $0x128] sm:$0xff]  ;;  %8083 = vmatpush.bf16.msra.mxu3 %v10581_v2 }
 0x3b5   :  { %v6349_v31 = vrot.slane %v6348_v29, 4  ;;  %v6384_v41 = vshrl.u32 %v9809_v19, 16  ;;  %v6744_v58 = vunpack.c.l.b16 %v12731_v8  ;;  %v6745_v32 = vunpack.c.h.b16 %v12731_v8  ;;  %v9815_v29 = vld [vmem:[%s13293_s0 + $0x130] sm:$0x11]  ;;  %v9812_v8 = vld [vmem:[%s13293_s0 + $0x118] sm:$0x11] }
 0x3b6   :  { %v12721_v24 = vadd.f32 %v6064_v34, %v12421_v5  ;;  %v6748_v22 = vunpack.c.l.b16 %v12735_v14  ;;  %v6398_v46 = vshrl.u32 %v9810_v40, 16  ;;  %v6414_v16 = vrot.slane %v6412_v50, 4  ;;  %v9816_v50 = vld [vmem:[%s13293_s0 + $0x138] sm:$0x11] }
 0x3b7   :  { %v6354_v33 = vsel %vm10934_vm2, %v6349_v31, %v6353_v36  ;;  %v6386_v18 = vrot.slane %v6384_v41, 4  ;;  %v6417_v25 = vrot.slane %v6415_v20, 5  ;;  %v6401_v4 = vshll.u32 %v9810_v40, 16  ;;  %v10565_v41 = vld [vmem:[#allocation3 + $0x860] sm:$0xff] }
 0x3b8   :  { %v6426_v1 = vshrl.u32 %v9814_v54, 16  ;;  %v6400_v36 = vrot.slane %v6398_v46, 4  ;;  %7985 = vmatpush.bf16.msra.mxu1 %v10565_v41 }
 0x3b9   :  { %v6016_v57 = vpop.f32.mrf.mxu2  ;;  %v5921_v0 = vpop.f32.mrf.mxu0  ;;  %v6418_v6 = vor.u32 %v6417_v25, %v6414_v16  ;;  %v6403_v31 = vrot.slane %v6401_v4, 5  ;;  %v6435_v16 = vshll.u32 %v9816_v50, 16  ;;  %v9823_v50 = vld [vmem:[%s13293_s0 + $0x1b0] sm:$0x11] }
 0x3ba   :  { %v6065_v62 = vpop.f32.mrf.mxu3  ;;  %v6017_v5 = vadd.f32 %v6016_v57, %v5968_v44  ;;  %v5970_v11 = vpop.f32.mrf.mxu1  ;;  %v6387_v44 = vshll.u32 %v9809_v19, 16  ;;  %v6429_v57 = vshll.u32 %v9814_v54, 16 }
 0x3bb   :  { %v5971_v37 = vadd.f32 %v5970_v11, %v5921_v0  ;;  %v6419_v46 = vrot.slane %v6418_v6, 4 }
 0x3bc   :  { %v6066_v7 = vadd.f32 %v6065_v62, %v6017_v5  ;;  %7061 = vmatmul.bf16.gmra.mxu0 %v6796_v48  ;;  %v6389_v9 = vrot.slane %v6387_v44, 5  ;;  %v6749_v48 = vunpack.c.h.b16 %v12735_v14  ;;  %v6747_v5 = vunpack.c.h.b16 %v6354_v33 }
 0x3bd   :  { %7110 = vmatmul.bf16.gmra.mxu1 %v6797_v38  ;;  %v6746_v38 = vunpack.c.l.b16 %v6354_v33  ;;  %v6431_v14 = vrot.slane %v6429_v57, 5  ;;  %v6800_v44 = vpack.c.b16 %v6748_v22, %v6744_v58  ;;  %v6407_v58 = vshll.u32 %v9812_v8, 16  ;;  %v9821_v22 = vld [vmem:[%s13293_s0 + $0x1a0] sm:$0xff] }
 0x3be   :  { %v12741_v34 = vadd.f32 %v6066_v7, %v12436_v42  ;;  %7159 = vmatmul.bf16.gmra.mxu2 %v6798_v39  ;;  %v6382_v42 = vsel %vm10934_vm2, %v6377_v43, %v6381_v49  ;;  %v6390_v19 = vor.u32 %v6389_v9, %v6386_v18  ;;  %v6428_v43 = vrot.slane %v6426_v1, 4  ;;  %v10557_v49 = vld [vmem:[#allocation3 + $0x820] sm:$0xff]  ;;  %v9818_v1 = vld [vmem:[%s13293_s0 + $0x188] sm:$0xff] }
 0x3bf   :  { %7208 = vmatmul.bf16.gmra.mxu3 %v6799_v59  ;;  %v6750_v11 = vunpack.c.l.b16 %v6382_v42  ;;  %v6751_v39 = vunpack.c.h.b16 %v6382_v42  ;;  %v6393_v59 = vshll.u32 %v9811_v45, 16  ;;  %v6801_v20 = vpack.c.b16 %v6749_v48, %v6745_v32  ;;  %7936 = vmatpush.bf16.msra.mxu0 %v10557_v49 }
 0x3c0   :  { %v6391_v42 = vrot.slane %v6390_v19, 4  ;;  %v6404_v18 = vor.u32 %v6403_v31, %v6400_v36  ;;  %v6432_v9 = vor.u32 %v6431_v14, %v6428_v43  ;;  %v6471_v4 = vshll.u32 %v9821_v22, 16  ;;  %v10580_v19 = vld [vmem:[#allocation3 + $0x8d8] sm:$0xff] }
 0x3c1   :  { %v6019_v3 = vpop.f32.mrf.mxu2  ;;  %v5923_v13 = vpop.f32.mrf.mxu0  ;;  %v6802_v40 = vpack.c.b16 %v6750_v11, %v6746_v38  ;;  %v6803_v12 = vpack.c.b16 %v6751_v39, %v6747_v5  ;;  %v6395_v2 = vrot.slane %v6393_v59, 5  ;;  %v6409_v48 = vrot.slane %v6407_v58, 5  ;;  %v9822_v39 = vld [vmem:[%s13293_s0 + $0x1a8] sm:$0xff]  ;;  %v10572_v59 = vld [vmem:[#allocation3 + $0x898] sm:$0xff]  ;;  %8084 = vmatpush.bf16.msra.mxu3 %v10580_v19 }
 0x3c2   :  { %v6068_v61 = vpop.f32.mrf.mxu3  ;;  %v6020_v28 = vadd.f32 %v6019_v3, %v5971_v37  ;;  %v5972_v17 = vpop.f32.mrf.mxu1  ;;  %v6421_v37 = vshll.u32 %v9815_v29, 16  ;;  %v6468_v29 = vshrl.u32 %v9821_v22, 16  ;;  %v6405_v5 = vrot.slane %v6404_v18, 4  ;;  %8035 = vmatpush.bf16.msra.mxu2 %v10572_v59 }
 0x3c3   :  { %v5973_v62 = vadd.f32 %v5972_v17, %v5923_v13  ;;  %v12780_v57 = vsel %vm10934_vm2, %v6391_v42, %v6395_v2  ;;  %v6437_v11 = vrot.slane %v6435_v16, 5  ;;  %v6454_v8 = vshrl.u32 %v9818_v1, 16 }
 0x3c4   :  { %v6069_v0 = vadd.f32 %v6068_v61, %v6020_v28  ;;  %v6423_v3 = vrot.slane %v6421_v37, 5  ;;  %v6457_v36 = vshll.u32 %v9818_v1, 16  ;;  %v6470_v31 = vrot.slane %v6468_v29, 4 }
 0x3c5   :  { %v6473_v43 = vrot.slane %v6471_v4, 5  ;;  %v6752_v49 = vunpack.c.l.b16 %v12780_v57  ;;  %v6753_v41 = vunpack.c.h.b16 %v12780_v57  ;;  %v6456_v58 = vrot.slane %v6454_v8, 4  ;;  %v9824_v57 = vld [vmem:[%s13293_s0 + $0x1b8] sm:$0x11] }
 0x3c6   :  { %v12764_v7 = vadd.f32 %v6069_v0, %v12451_v60  ;;  %v9817_v60 = vld [vmem:[%s13293_s0 + $0x180] sm:$0xff]  ;;  %v6433_v0 = vrot.slane %v6432_v9, 4  ;;  %v6459_v22 = vrot.slane %v6457_v36, 5  ;;  %v6477_v18 = vshll.u32 %v9823_v50, 16  ;;  %v9820_v9 = vld [vmem:[%s13293_s0 + $0x198] sm:$0x11] }
 0x3c7   :  { %v6440_v28 = vshrl.u32 %v9817_v60, 16  ;;  %v6443_v13 = vshll.u32 %v9817_v60, 16 }
 0x3c8   :  { %v6438_v42 = vsel %vm10934_vm2, %v6433_v0, %v6437_v11  ;;  %v6460_v0 = vor.u32 %v6459_v22, %v6456_v58  ;;  %v6463_v11 = vshll.u32 %v9820_v9, 16  ;;  %v6479_v19 = vrot.slane %v6477_v18, 5  ;;  %v9826_v58 = vld [vmem:[%s13293_s0 + $0x1c8] sm:$0xff]  ;;  %v10579_v18 = vld [vmem:[#allocation3 + $0x8d0] sm:$0xff] }
 0x3c9   :  { %v6021_v54 = vpop.f32.mrf.mxu2  ;;  %v5926_v61 = vpop.f32.mrf.mxu0  ;;  %v6442_v6 = vrot.slane %v6440_v28, 4  ;;  %v6445_v37 = vrot.slane %v6443_v13, 5  ;;  %v6758_v29 = vunpack.c.l.b16 %v6438_v42  ;;  %v6759_v1 = vunpack.c.h.b16 %v6438_v42  ;;  %8085 = vmatpush.bf16.msra.mxu3 %v10579_v18 }
 0x3ca   :  { %v6070_v33 = vpop.f32.mrf.mxu3  ;;  %v6022_v32 = vadd.f32 %v6021_v54, %v5973_v62  ;;  %v5975_v45 = vpop.f32.mrf.mxu1  ;;  %v12784_v62 = vsel %vm10934_vm2, %v6419_v46, %v6423_v3 }
 0x3cb   :  { %v5976_v25 = vadd.f32 %v5975_v45, %v5926_v61  ;;  %v6756_v54 = vunpack.c.l.b16 %v12784_v62  ;;  %v6446_v3 = vor.u32 %v6445_v37, %v6442_v6  ;;  %v6474_v45 = vor.u32 %v6473_v43, %v6470_v31 }
 0x3cc   :  { %v6071_v17 = vadd.f32 %v6070_v33, %v6022_v32  ;;  %7066 = vmatmul.bf16.gmra.mxu0 %v6800_v44  ;;  %v9819_v44 = vld [vmem:[%s13293_s0 + $0x190] sm:$0x11]  ;;  %v6410_v33 = vsel %vm10934_vm2, %v6405_v5, %v6409_v48  ;;  %v6757_v16 = vunpack.c.h.b16 %v12784_v62  ;;  %v10556_v48 = vld [vmem:[#allocation3 + $0x818] sm:$0xff]  ;;  %v6491_v31 = vshll.u32 %v9824_v57, 16 }
 0x3cd   :  { %7115 = vmatmul.bf16.gmra.mxu1 %v6801_v20  ;;  %v6482_v20 = vshrl.u32 %v9822_v39, 16  ;;  %v6449_v61 = vshll.u32 %v9819_v44, 16  ;;  %v6755_v4 = vunpack.c.h.b16 %v6410_v33  ;;  %v10564_v5 = vld [vmem:[#allocation3 + $0x858] sm:$0xff]  ;;  %v6475_v62 = vrot.slane %v6474_v45, 4  ;;  %7937 = vmatpush.bf16.msra.mxu0 %v10556_v48  ;;  %v10571_v45 = vld [vmem:[#allocation3 + $0x890] sm:$0xff] }
 0x3ce   :  { %v12787_v38 = vadd.f32 %v6071_v17, %v12466_v27  ;;  %7164 = vmatmul.bf16.gmra.mxu2 %v6802_v40  ;;  %v6485_v40 = vshll.u32 %v9822_v39, 16  ;;  %v6447_v39 = vrot.slane %v6446_v3, 4  ;;  %7986 = vmatpush.bf16.msra.mxu1 %v10564_v5  ;;  %v6804_v37 = vpack.c.b16 %v6756_v54, %v6752_v49 }
 0x3cf   :  { %7213 = vmatmul.bf16.gmra.mxu3 %v6803_v12  ;;  %v6484_v28 = vrot.slane %v6482_v20, 4  ;;  %v6451_v59 = vrot.slane %v6449_v61, 5  ;;  %v6805_v8 = vpack.c.b16 %v6757_v16, %v6753_v41  ;;  %v6807_v50 = vpack.c.b16 %v6759_v1, %v6755_v4  ;;  %v9825_v20 = vld [vmem:[%s13293_s0 + $0x1c0] sm:$0xff]  ;;  %8036 = vmatpush.bf16.msra.mxu2 %v10571_v45 }
 0x3d0   :  { %v6487_v13 = vrot.slane %v6485_v40, 5  ;;  %v6480_v54 = vsel %vm10934_vm2, %v6475_v62, %v6479_v19  ;;  %v6493_v42 = vrot.slane %v6491_v31, 5  ;;  %v6499_v3 = vshll.u32 %v9825_v20, 16  ;;  %v9827_v19 = vld [vmem:[%s13293_s0 + $0x1d0] sm:$0x11] }
 0x3d1   :  { %v6024_v27 = vpop.f32.mrf.mxu2  ;;  %v5928_v2 = vpop.f32.mrf.mxu0  ;;  %v6452_v41 = vsel %vm10934_vm2, %v6447_v39, %v6451_v59  ;;  %v6513_v4 = vshll.u32 %v9826_v58, 16  ;;  %v6765_v57 = vunpack.c.h.b16 %v6480_v54  ;;  %v9828_v31 = vld [vmem:[%s13293_s0 + $0x1d8] sm:$0x11] }
 0x3d2   :  { %v6073_v14 = vpop.f32.mrf.mxu3  ;;  %v6025_v12 = vadd.f32 %v6024_v27, %v5976_v25  ;;  %v5977_v60 = vpop.f32.mrf.mxu1  ;;  %v6754_v25 = vunpack.c.l.b16 %v6410_v33  ;;  %v6488_v36 = vor.u32 %v6487_v13, %v6484_v28  ;;  %v6760_v9 = vunpack.c.l.b16 %v6452_v41  ;;  %v9830_v13 = vld [vmem:[%s13293_s0 + $0x1e8] sm:$0xff] }
 0x3d3   :  { %v5978_v46 = vadd.f32 %v5977_v60, %v5928_v2  ;;  %v6465_v2 = vrot.slane %v6463_v11, 5  ;;  %v9829_v60 = vld [vmem:[%s13293_s0 + $0x1e0] sm:$0xff]  ;;  %v6761_v28 = vunpack.c.h.b16 %v6452_v41 }
 0x3d4   :  { %v6074_v32 = vadd.f32 %v6073_v14, %v6025_v12  ;;  %v6806_v44 = vpack.c.b16 %v6758_v29, %v6754_v25  ;;  %v6461_v12 = vrot.slane %v6460_v0, 4  ;;  %v6489_v33 = vrot.slane %v6488_v36, 4 }
 0x3d5   :  { %v6527_v61 = vshll.u32 %v9829_v60, 16  ;;  %v6764_v25 = vunpack.c.l.b16 %v6480_v54  ;;  %v6510_v29 = vshrl.u32 %v9826_v58, 16  ;;  %v6501_v0 = vrot.slane %v6499_v3, 5  ;;  %v9832_v3 = vld [vmem:[%s13293_s0 + $0x1f8] sm:$0x11] }
 0x3d6   :  { %v12810_v17 = vadd.f32 %v6074_v32, %v12481_v35  ;;  %v6524_v32 = vshrl.u32 %v9829_v60, 16  ;;  %v6466_v16 = vsel %vm10934_vm2, %v6461_v12, %v6465_v2  ;;  %v6494_v48 = vsel %vm10934_vm2, %v6489_v33, %v6493_v42  ;;  %v10555_v33 = vld [vmem:[#allocation3 + $0x810] sm:$0xff] }
 0x3d7   :  { %v6762_v62 = vunpack.c.l.b16 %v6466_v16  ;;  %v6763_v36 = vunpack.c.h.b16 %v6466_v16  ;;  %v6505_v2 = vshll.u32 %v9827_v19, 16  ;;  %v6519_v54 = vshll.u32 %v9828_v31, 16  ;;  %v10563_v42 = vld [vmem:[#allocation3 + $0x850] sm:$0xff]  ;;  %7938 = vmatpush.bf16.msra.mxu0 %v10555_v33 }
 0x3d8   :  { %7987 = vmatpush.bf16.msra.mxu1 %v10563_v42 }
 0x3d9   :  { %v6026_v6 = vpop.f32.mrf.mxu2  ;;  %v5931_v27 = vpop.f32.mrf.mxu0 }
 0x3da   :  { %v6075_v35 = vpop.f32.mrf.mxu3  ;;  %v6027_v43 = vadd.f32 %v6026_v6, %v5978_v46  ;;  %v5980_v14 = vpop.f32.mrf.mxu1  ;;  %v6496_v46 = vshrl.u32 %v9825_v20, 16  ;;  %v9831_v6 = vld [vmem:[%s13293_s0 + $0x1f0] sm:$0x11]  ;;  %v6515_v20 = vrot.slane %v6513_v4, 5 }
 0x3db   :  { %v5981_v40 = vadd.f32 %v5980_v14, %v5931_v27  ;;  %v6541_v27 = vshll.u32 %v9830_v13, 16  ;;  %v6533_v60 = vshll.u32 %v9831_v6, 16 }
 0x3dc   :  { %v6076_v49 = vadd.f32 %v6075_v35, %v6027_v43  ;;  %7071 = vmatmul.bf16.gmra.mxu0 %v6804_v37  ;;  %v6498_v5 = vrot.slane %v6496_v46, 4  ;;  %v6526_v35 = vrot.slane %v6524_v32, 4  ;;  %v6529_v37 = vrot.slane %v6527_v61, 5 }
 0x3dd   :  { %7120 = vmatmul.bf16.gmra.mxu1 %v6805_v8  ;;  %v6538_v43 = vshrl.u32 %v9830_v13, 16  ;;  %v6808_v46 = vpack.c.b16 %v6764_v25, %v6760_v9  ;;  %v6543_v32 = vrot.slane %v6541_v27, 5  ;;  %v6809_v61 = vpack.c.b16 %v6765_v57, %v6761_v28  ;;  %v9838_v27 = vld [vmem:[%s13293_s0 + $0x228] sm:$0xff] }
 0x3de   :  { %v12829_v22 = vadd.f32 %v6076_v49, %v12496_v63  ;;  %7169 = vmatmul.bf16.gmra.mxu2 %v6806_v44  ;;  %v6766_v44 = vunpack.c.l.b16 %v6494_v48  ;;  %v6502_v12 = vor.u32 %v6501_v0, %v6498_v5  ;;  %v6530_v41 = vor.u32 %v6529_v37, %v6526_v35 }
 0x3df   :  { %7218 = vmatmul.bf16.gmra.mxu3 %v6807_v50  ;;  %v6512_v50 = vrot.slane %v6510_v29, 4  ;;  %v6540_v58 = vrot.slane %v6538_v43, 4  ;;  %v6507_v9 = vrot.slane %v6505_v2, 5  ;;  %v6535_v25 = vrot.slane %v6533_v60, 5  ;;  %v9835_v60 = vld [vmem:[%s13293_s0 + $0x210] sm:$0x11] }
 0x3e0   :  { %v6810_v45 = vpack.c.b16 %v6766_v44, %v6762_v62  ;;  %v6503_v4 = vrot.slane %v6502_v12, 4  ;;  %v6521_v5 = vrot.slane %v6519_v54, 5  ;;  %v6547_v0 = vshll.u32 %v9832_v3, 16  ;;  %v10578_v44 = vld [vmem:[#allocation3 + $0x8c8] sm:$0xff] }
 0x3e1   :  { %v6029_v63 = vpop.f32.mrf.mxu2  ;;  %v5933_v39 = vpop.f32.mrf.mxu0  ;;  %v6516_v18 = vor.u32 %v6515_v20, %v6512_v50  ;;  %8086 = vmatpush.bf16.msra.mxu3 %v10578_v44 }
 0x3e2   :  { %v6078_v1 = vpop.f32.mrf.mxu3  ;;  %v6030_v11 = vadd.f32 %v6029_v63, %v5981_v40  ;;  %v5982_v59 = vpop.f32.mrf.mxu1  ;;  %v6767_v40 = vunpack.c.h.b16 %v6494_v48  ;;  %v9837_v63 = vld [vmem:[%s13293_s0 + $0x220] sm:$0xff]  ;;  %v6531_v48 = vrot.slane %v6530_v41, 4  ;;  %v6549_v20 = vrot.slane %v6547_v0, 5 }
 0x3e3   :  { %v5983_v8 = vadd.f32 %v5982_v59, %v5933_v39  ;;  %v6544_v39 = vor.u32 %v6543_v32, %v6540_v58  ;;  %v6517_v6 = vrot.slane %v6516_v18, 4  ;;  %v6580_v35 = vshrl.u32 %v9837_v63, 16 }
 0x3e4   :  { %v6079_v14 = vadd.f32 %v6078_v1, %v6030_v11  ;;  %v6811_v29 = vpack.c.b16 %v6767_v40, %v6763_v36  ;;  %v6583_v37 = vshll.u32 %v9837_v63, 16  ;;  %v6508_v36 = vsel %vm10934_vm2, %v6503_v4, %v6507_v9 }
 0x3e5   :  { %v6536_v43 = vsel %vm10934_vm2, %v6531_v48, %v6535_v25  ;;  %v6545_v50 = vrot.slane %v6544_v39, 4  ;;  %v6768_v2 = vunpack.c.l.b16 %v6508_v36  ;;  %v6582_v41 = vrot.slane %v6580_v35, 4 }
 0x3e6   :  { %v12848_v49 = vadd.f32 %v6079_v14, %v12511_v21  ;;  %v9833_v21 = vld [vmem:[%s13293_s0 + $0x200] sm:$0xff]  ;;  %v10570_v14 = vld [vmem:[#allocation3 + $0x888] sm:$0xff]  ;;  %v6585_v54 = vrot.slane %v6583_v37, 5  ;;  %v6594_v32 = vshrl.u32 %v9838_v27, 16  ;;  %v9840_v37 = vld [vmem:[%s13293_s0 + $0x238] sm:$0x11] }
 0x3e7   :  { %v6552_v59 = vshrl.u32 %v9833_v21, 16  ;;  %v6555_v62 = vshll.u32 %v9833_v21, 16  ;;  %8037 = vmatpush.bf16.msra.mxu2 %v10570_v14  ;;  %v6550_v9 = vsel %vm10934_vm2, %v6545_v50, %v6549_v20 }
 0x3e8   :  { %v6596_v39 = vrot.slane %v6594_v32, 4  ;;  %v6775_v35 = vunpack.c.h.b16 %v6550_v9 }
 0x3e9   :  { %v6031_v16 = vpop.f32.mrf.mxu2  ;;  %v5936_v28 = vpop.f32.mrf.mxu0  ;;  %v6554_v40 = vrot.slane %v6552_v59, 4  ;;  %v6557_v12 = vrot.slane %v6555_v62, 5 }
 0x3ea   :  { %v6080_v13 = vpop.f32.mrf.mxu3  ;;  %v6032_v1 = vadd.f32 %v6031_v16, %v5983_v8  ;;  %v5985_v57 = vpop.f32.mrf.mxu1  ;;  %v9834_v8 = vld [vmem:[%s13293_s0 + $0x208] sm:$0xff]  ;;  %v6772_v16 = vunpack.c.l.b16 %v6536_v43 }
 0x3eb   :  { %v5986_v11 = vadd.f32 %v5985_v57, %v5936_v28  ;;  %v6566_v3 = vshrl.u32 %v9834_v8, 16  ;;  %v6569_v58 = vshll.u32 %v9834_v8, 16  ;;  %v6558_v63 = vor.u32 %v6557_v12, %v6554_v40  ;;  %v10562_v8 = vld [vmem:[#allocation3 + $0x848] sm:$0xff] }
 0x3ec   :  { %v6081_v19 = vadd.f32 %v6080_v13, %v6032_v1  ;;  %7076 = vmatmul.bf16.gmra.mxu0 %v6808_v46  ;;  %v9839_v46 = vld [vmem:[%s13293_s0 + $0x230] sm:$0x11]  ;;  %v6769_v13 = vunpack.c.h.b16 %v6508_v36  ;;  %v6561_v28 = vshll.u32 %v9835_v60, 16  ;;  %v6586_v57 = vor.u32 %v6585_v54, %v6582_v41  ;;  %v10554_v36 = vld [vmem:[#allocation3 + $0x808] sm:$0xff]  ;;  %7988 = vmatpush.bf16.msra.mxu1 %v10562_v8 }
 0x3ed   :  { %7125 = vmatmul.bf16.gmra.mxu1 %v6809_v61  ;;  %v6597_v61 = vshll.u32 %v9838_v27, 16  ;;  %v6589_v48 = vshll.u32 %v9839_v46, 16  ;;  %v6568_v0 = vrot.slane %v6566_v3, 4  ;;  %v6559_v14 = vrot.slane %v6558_v63, 4  ;;  %7939 = vmatpush.bf16.msra.mxu0 %v10554_v36  ;;  %v9842_v63 = vld [vmem:[%s13293_s0 + $0x248] sm:$0xff] }
 0x3ee   :  { %v12865_v31 = vadd.f32 %v6081_v19, %v12526_v23  ;;  %7174 = vmatmul.bf16.gmra.mxu2 %v6810_v45  ;;  %v6522_v23 = vsel %vm10934_vm2, %v6517_v6, %v6521_v5  ;;  %v9836_v5 = vld [vmem:[%s13293_s0 + $0x218] sm:$0x11]  ;;  %v6774_v19 = vunpack.c.l.b16 %v6550_v9  ;;  %v6563_v44 = vrot.slane %v6561_v28, 5  ;;  %v10569_v9 = vld [vmem:[#allocation3 + $0x880] sm:$0xff] }
 0x3ef   :  { %7223 = vmatmul.bf16.gmra.mxu3 %v6811_v29  ;;  %v6773_v29 = vunpack.c.h.b16 %v6536_v43  ;;  %v6770_v25 = vunpack.c.l.b16 %v6522_v23  ;;  %v6599_v59 = vrot.slane %v6597_v61, 5  ;;  %v6771_v6 = vunpack.c.h.b16 %v6522_v23  ;;  %8038 = vmatpush.bf16.msra.mxu2 %v10569_v9  ;;  %v9848_v9 = vld [vmem:[%s13293_s0 + $0x278] sm:$0x11] }
 0x3f0   :  { %v6812_v43 = vpack.c.b16 %v6772_v16, %v6768_v2  ;;  %v6591_v50 = vrot.slane %v6589_v48, 5  ;;  %v6575_v20 = vshll.u32 %v9836_v5, 16  ;;  %v6587_v12 = vrot.slane %v6586_v57, 4 }
 0x3f1   :  { %v6034_v33 = vpop.f32.mrf.mxu2  ;;  %v5938_v18 = vpop.f32.mrf.mxu0  ;;  %v6813_v27 = vpack.c.b16 %v6773_v29, %v6769_v13  ;;  %v6600_v23 = vor.u32 %v6599_v59, %v6596_v39  ;;  %v6603_v41 = vshll.u32 %v9840_v37, 16  ;;  %v6814_v46 = vpack.c.b16 %v6774_v19, %v6770_v25  ;;  %v9841_v13 = vld [vmem:[%s13293_s0 + $0x240] sm:$0xff] }
 0x3f2   :  { %v6083_v42 = vpop.f32.mrf.mxu3  ;;  %v6035_v45 = vadd.f32 %v6034_v33, %v5986_v11  ;;  %v5987_v21 = vpop.f32.mrf.mxu1  ;;  %v6571_v11 = vrot.slane %v6569_v58, 5  ;;  %v6815_v3 = vpack.c.b16 %v6775_v35, %v6771_v6  ;;  %v6564_v32 = vsel %vm10934_vm2, %v6559_v14, %v6563_v44  ;;  %v10577_v25 = vld [vmem:[#allocation3 + $0x8c0] sm:$0xff] }
 0x3f3   :  { %v5988_v4 = vadd.f32 %v5987_v21, %v5938_v18  ;;  %v6577_v61 = vrot.slane %v6575_v20, 5  ;;  %v6601_v21 = vrot.slane %v6600_v23, 4  ;;  %v6605_v16 = vrot.slane %v6603_v41, 5  ;;  %8087 = vmatpush.bf16.msra.mxu3 %v10577_v25  ;;  %v9843_v41 = vld [vmem:[%s13293_s0 + $0x250] sm:$0x11] }
 0x3f4   :  { %v6084_v1 = vadd.f32 %v6083_v42, %v6035_v45  ;;  %v6572_v60 = vor.u32 %v6571_v11, %v6568_v0  ;;  %v6592_v45 = vsel %vm10934_vm2, %v6587_v12, %v6591_v50  ;;  %v6777_v57 = vunpack.c.h.b16 %v6564_v32 }
 0x3f5   :  { %v6780_v28 = vunpack.c.l.b16 %v6592_v45  ;;  %v6608_v48 = vshrl.u32 %v9841_v13, 16  ;;  %v6606_v39 = vsel %vm10934_vm2, %v6601_v21, %v6605_v16  ;;  %v6611_v59 = vshll.u32 %v9841_v13, 16 }
 0x3f6   :  { %v12886_v62 = vadd.f32 %v6084_v1, %v12541_v53  ;;  %v6573_v18 = vrot.slane %v6572_v60, 4  ;;  %v6776_v1 = vunpack.c.l.b16 %v6564_v32  ;;  %v6622_v8 = vshrl.u32 %v9842_v63, 16  ;;  %v10553_v32 = vld [vmem:[#allocation3 + $0x800] sm:$0xff] }
 0x3f7   :  { %v6781_v14 = vunpack.c.h.b16 %v6592_v45  ;;  %v6610_v12 = vrot.slane %v6608_v48, 4  ;;  %v6783_v23 = vunpack.c.h.b16 %v6606_v39  ;;  %v9844_v45 = vld [vmem:[%s13293_s0 + $0x258] sm:$0x11]  ;;  %7940 = vmatpush.bf16.msra.mxu0 %v10553_v32 }
 0x3f8   :  { %v6578_v11 = vsel %vm10934_vm2, %v6573_v18, %v6577_v61  ;;  %v10561_v61 = vld [vmem:[#allocation3 + $0x840] sm:$0xff]  ;;  %v6816_v16 = vpack.c.b16 %v6780_v28, %v6776_v1  ;;  %v6631_v1 = vshll.u32 %v9844_v45, 16 }
 0x3f9   :  { %v6036_v40 = vpop.f32.mrf.mxu2  ;;  %v5941_v33 = vpop.f32.mrf.mxu0  ;;  %v6779_v60 = vunpack.c.h.b16 %v6578_v11  ;;  %v6817_v13 = vpack.c.b16 %v6781_v14, %v6777_v57  ;;  %7989 = vmatpush.bf16.msra.mxu1 %v10561_v61 }
 0x3fa   :  { %v6085_v53 = vpop.f32.mrf.mxu3  ;;  %v6037_v54 = vadd.f32 %v6036_v40, %v5988_v4  ;;  %v5990_v42 = vpop.f32.mrf.mxu1  ;;  %v9845_v4 = vld [vmem:[%s13293_s0 + $0x260] sm:$0xff]  ;;  %v6778_v40 = vunpack.c.l.b16 %v6578_v11 }
 0x3fb   :  { %v5991_v58 = vadd.f32 %v5990_v42, %v5941_v33  ;;  %v6636_v19 = vshrl.u32 %v9845_v4, 16  ;;  %v6639_v36 = vshll.u32 %v9845_v4, 16  ;;  %v6613_v33 = vrot.slane %v6611_v59, 5 }
 0x3fc   :  { %v6086_v2 = vadd.f32 %v6085_v53, %v6037_v54  ;;  %7081 = vmatmul.bf16.gmra.mxu0 %v6812_v43  ;;  %v6625_v43 = vshll.u32 %v9842_v63, 16  ;;  %v6782_v53 = vunpack.c.l.b16 %v6606_v39  ;;  %v9847_v54 = vld [vmem:[%s13293_s0 + $0x270] sm:$0x11]  ;;  %v6819_v63 = vpack.c.b16 %v6783_v23, %v6779_v60 }
 0x3fd   :  { %7130 = vmatmul.bf16.gmra.mxu1 %v6813_v27  ;;  %v6638_v42 = vrot.slane %v6636_v19, 4  ;;  %v6614_v48 = vor.u32 %v6613_v33, %v6610_v12 }
 0x3fe   :  { %v12899_v29 = vadd.f32 %v6086_v2, %v12556_v55  ;;  %7179 = vmatmul.bf16.gmra.mxu2 %v6814_v46  ;;  %v9846_v55 = vld [vmem:[%s13293_s0 + $0x268] sm:$0xff]  ;;  %v6627_v2 = vrot.slane %v6625_v43, 5  ;;  %v6818_v4 = vpack.c.b16 %v6782_v53, %v6778_v40 }
 0x3ff   :  { %7228 = vmatmul.bf16.gmra.mxu3 %v6815_v3  ;;  %v6650_v44 = vshrl.u32 %v9846_v55, 16  ;;  %v6653_v50 = vshll.u32 %v9846_v55, 16  ;;  %v6641_v3 = vrot.slane %v6639_v36, 5  ;;  %v6617_v55 = vshll.u32 %v9843_v41, 16 }
 0x401   :  { %v6039_v5 = vpop.f32.mrf.mxu2  ;;  %v5943_v35 = vpop.f32.mrf.mxu0  ;;  %v6652_v18 = vrot.slane %v6650_v44, 4  ;;  %v6655_v21 = vrot.slane %v6653_v50, 5  ;;  %v6642_v59 = vor.u32 %v6641_v3, %v6638_v42  ;;  %v6619_v36 = vrot.slane %v6617_v55, 5 }
 0x402   :  { %v6088_v0 = vpop.f32.mrf.mxu3  ;;  %v6040_v6 = vadd.f32 %v6039_v5, %v5991_v58  ;;  %v5992_v37 = vpop.f32.mrf.mxu1  ;;  %v6624_v58 = vrot.slane %v6622_v8, 4  ;;  %v6645_v5 = vshll.u32 %v9847_v54, 16  ;;  %v6633_v44 = vrot.slane %v6631_v1, 5  ;;  %v9980_v1 = vld [vmem:[%s13293_s0 + $0x58] sm:$0x11] }
 0x403   :  { %v5993_v27 = vadd.f32 %v5992_v37, %v5943_v35  ;;  %v6656_v57 = vor.u32 %v6655_v21, %v6652_v18  ;;  %v6615_v37 = vrot.slane %v6614_v48, 4 }
 0x404   :  { %v6089_v20 = vadd.f32 %v6088_v0, %v6040_v6  ;;  %v6628_v19 = vor.u32 %v6627_v2, %v6624_v58  ;;  %v6659_v6 = vshll.u32 %v9848_v9, 16  ;;  %v6647_v8 = vrot.slane %v6645_v5, 5 }
 0x405   :  { %v6657_v50 = vrot.slane %v6656_v57, 4  ;;  %v6620_v12 = vsel %vm10934_vm2, %v6615_v37, %v6619_v36  ;;  %v9982_v57 = vld [vmem:[%s13293_s0 + $0x68] sm:$0xee] }
 0x406   :  { %v12921_v46 = vadd.f32 %v6089_v20, %v12574_v10  ;;  %v6629_v14 = vrot.slane %v6628_v19, 4  ;;  %v6661_v20 = vrot.slane %v6659_v6, 5  ;;  %v6784_v58 = vunpack.c.l.b16 %v6620_v12  ;;  %v9978_v19 = vld [vmem:[%s13293_s0 + $0x48] sm:$0xee]  ;;  %v9984_v6 = vld [vmem:[%s13293_s0 + $0x78] sm:$0x11] }
 0x407   :  { %v6785_v32 = vunpack.c.h.b16 %v6620_v12 }
 0x408   :  { %v6662_v42 = vsel %vm10934_vm2, %v6657_v50, %v6661_v20  ;;  %v10044_v50 = vrot.slane %v9982_v57, 9  ;;  %v7434_v20 = vrot.slane %v9984_v6, 5  ;;  %v9992_v57 = vld [vmem:[%s13293_s0 + $0xb8] sm:$0x11] }
 0x409   :  { %v6041_v10 = vpop.f32.mrf.mxu2  ;;  %v5946_v11 = vpop.f32.mrf.mxu0  ;;  %v6790_v21 = vunpack.c.l.b16 %v6662_v42 }
 0x40a   :  { %v6090_v25 = vpop.f32.mrf.mxu3  ;;  %v6042_v0 = vadd.f32 %v6041_v10, %v5993_v27  ;;  %v5995_v39 = vpop.f32.mrf.mxu1  ;;  %v6643_v27 = vrot.slane %v6642_v59, 4  ;;  %v9983_v59 = vld [vmem:[%s13293_s0 + $0x70] sm:$0x11] }
 0x40b   :  { %v5996_v28 = vadd.f32 %v5995_v39, %v5946_v11  ;;  %v9981_v11 = vld [vmem:[%s13293_s0 + $0x60] sm:$0xee] }
 0x40c   :  { %v6091_v35 = vadd.f32 %v6090_v25, %v6042_v0  ;;  %7086 = vmatmul.bf16.gmra.mxu0 %v6816_v16  ;;  %v6648_v54 = vsel %vm10934_vm2, %v6643_v27, %v6647_v8  ;;  %v9977_v0 = vld [vmem:[%s13293_s0 + $0x40] sm:$0xee]  ;;  %v10043_v36 = vrot.slane %v9981_v11, 9  ;;  %v7430_v27 = vrot.slane %v9983_v59, 5  ;;  %v9986_v59 = vld [vmem:[%s13293_s0 + $0x88] sm:$0xee] }
 0x40d   :  { %7135 = vmatmul.bf16.gmra.mxu1 %v6817_v13  ;;  %v6788_v2 = vunpack.c.l.b16 %v6648_v54  ;;  %v6789_v61 = vunpack.c.h.b16 %v6648_v54  ;;  %v6791_v13 = vunpack.c.h.b16 %v6662_v42 }
 0x40e   :  { %v12930_v43 = vadd.f32 %v6091_v35, %v12598_v26  ;;  %7184 = vmatmul.bf16.gmra.mxu2 %v6818_v4  ;;  %v6634_v26 = vsel %vm10934_vm2, %v6629_v14, %v6633_v44  ;;  %v10041_v35 = vrot.slane %v9977_v0, 9  ;;  %v10042_v14 = vrot.slane %v9978_v19, 9  ;;  %v9985_v0 = vld [vmem:[%s13293_s0 + $0x80] sm:$0xee]  ;;  %v9988_v19 = vld [vmem:[%s13293_s0 + $0x98] sm:$0x11] }
 0x40f   :  { %7233 = vmatmul.bf16.gmra.mxu3 %v6819_v63  ;;  %v6786_v45 = vunpack.c.l.b16 %v6634_v26  ;;  %v6787_v16 = vunpack.c.h.b16 %v6634_v26  ;;  %v6820_v10 = vpack.c.b16 %v6788_v2, %v6784_v58  ;;  %v6821_v25 = vpack.c.b16 %v6789_v61, %v6785_v32 }
 0x410   :  { %v7426_v44 = vrot.slane %v9980_v1, 5  ;;  %v7431_v54 = vsel %vm11224_vm5, %v10043_v36, %v7430_v27  ;;  %v10045_v6 = vrot.slane %v9985_v0, 9  ;;  %v9993_v0 = vld [vmem:[%s13293_s0 + $0xc0] sm:$0xee] }
 0x411   :  { %v6044_v40 = vpop.f32.mrf.mxu2  ;;  %v5948_v23 = vpop.f32.mrf.mxu0  ;;  %v6822_v55 = vpack.c.b16 %v6790_v21, %v6786_v45  ;;  %v6823_v5 = vpack.c.b16 %v6791_v13, %v6787_v16  ;;  %v7617_v58 = vunpack.c.l.b16 %v7431_v54  ;;  %v7618_v32 = vunpack.c.h.b16 %v7431_v54 }
 0x412   :  { %v6093_v53 = vpop.f32.mrf.mxu3  ;;  %v6045_v60 = vadd.f32 %v6044_v40, %v5996_v28  ;;  %v5997_v41 = vpop.f32.mrf.mxu1 }
 0x413   :  { %v5998_v33 = vadd.f32 %v5997_v41, %v5948_v23 }
 0x414   :  { %v6094_v3 = vadd.f32 %v6093_v53, %v6045_v60 }
 0x416   :  { %v12941_v18 = vadd.f32 %v6094_v3, %v12631_v51  ;;  %v9979_v51 = vld [vmem:[%s13293_s0 + $0x50] sm:$0x11] }
 0x417   :  { %v7422_v37 = vrot.slane %v9979_v51, 5  ;;  %v9989_v51 = vld [vmem:[%s13293_s0 + $0xa0] sm:$0xee] }
 0x419   :  { %v6046_v4 = vpop.f32.mrf.mxu2  ;;  %v5951_v48 = vpop.f32.mrf.mxu0  ;;  %v7423_v12 = vsel %vm11224_vm5, %v10041_v35, %v7422_v37  ;;  %v10047_v37 = vrot.slane %v9989_v51, 9 }
 0x41a   :  { %v6095_v9 = vpop.f32.mrf.mxu3  ;;  %v6047_v63 = vadd.f32 %v6046_v4, %v5998_v33  ;;  %v6000_v15 = vpop.f32.mrf.mxu1  ;;  %v7435_v33 = vsel %vm11224_vm5, %v10044_v50, %v7434_v20  ;;  %v7613_v3 = vunpack.c.l.b16 %v7423_v12  ;;  %v7614_v2 = vunpack.c.h.b16 %v7423_v12 }
 0x41b   :  { %v6001_v39 = vadd.f32 %v6000_v15, %v5951_v48  ;;  %v7619_v21 = vunpack.c.l.b16 %v7435_v33  ;;  %v7620_v13 = vunpack.c.h.b16 %v7435_v33  ;;  %v7450_v20 = vrot.slane %v9992_v57, 5 }
 0x41c   :  { %v6096_v28 = vadd.f32 %v6095_v9, %v6047_v63  ;;  %7091 = vmatmul.bf16.gmra.mxu0 %v6820_v10  ;;  %v7677_v10 = vpack.c.b16 %v7617_v58, %v7613_v3  ;;  %v10049_v57 = vrot.slane %v9993_v0, 9  ;;  %v10001_v0 = vld [vmem:[%s13293_s0 + $0x100] sm:$0xee] }
 0x41d   :  { %7140 = vmatmul.bf16.gmra.mxu1 %v6821_v25  ;;  %v7678_v25 = vpack.c.b16 %v7618_v32, %v7614_v2 }
 0x41e   :  { %v12968_v8 = vadd.f32 %v6096_v28, %v12652_v30  ;;  %7189 = vmatmul.bf16.gmra.mxu2 %v6822_v55  ;;  %v7427_v30 = vsel %vm11224_vm5, %v10042_v14, %v7426_v44  ;;  %v9990_v28 = vld [vmem:[%s13293_s0 + $0xa8] sm:$0xee]  ;;  %v10046_v14 = vrot.slane %v9986_v59, 9  ;;  %v7442_v44 = vrot.slane %v9988_v19, 5  ;;  %v9996_v59 = vld [vmem:[%s13293_s0 + $0xd8] sm:$0x11] }
 0x41f   :  { %7238 = vmatmul.bf16.gmra.mxu3 %v6823_v5  ;;  %v7615_v61 = vunpack.c.l.b16 %v7427_v30  ;;  %v7616_v16 = vunpack.c.h.b16 %v7427_v30  ;;  %v10048_v50 = vrot.slane %v9990_v28, 9  ;;  %v10000_v28 = vld [vmem:[%s13293_s0 + $0xf8] sm:$0x11] }
 0x421   :  { %v6049_v40 = vpop.f32.mrf.mxu2  ;;  %v5953_v23 = vpop.f32.mrf.mxu0  ;;  %v7679_v55 = vpack.c.b16 %v7619_v21, %v7615_v61  ;;  %v7680_v5 = vpack.c.b16 %v7620_v13, %v7616_v16 }
 0x422   :  { %v6098_v53 = vpop.f32.mrf.mxu3  ;;  %v6050_v60 = vadd.f32 %v6049_v40, %v6001_v39  ;;  %v6002_v41 = vpop.f32.mrf.mxu1  ;;  %v9991_v39 = vld [vmem:[%s13293_s0 + $0xb0] sm:$0x11] }
 0x423   :  { %v6003_v26 = vadd.f32 %v6002_v41, %v5953_v23  ;;  %v7446_v27 = vrot.slane %v9991_v39, 5  ;;  %v9994_v39 = vld [vmem:[%s13293_s0 + $0xc8] sm:$0xee] }
 0x424   :  { %v6099_v42 = vadd.f32 %v6098_v53, %v6050_v60 }
 0x425   :  { %v7447_v54 = vsel %vm11224_vm5, %v10047_v37, %v7446_v27 }
 0x426   :  { %v12979_v45 = vadd.f32 %v6099_v42, %v12676_v47  ;;  %v9987_v47 = vld [vmem:[%s13293_s0 + $0x90] sm:$0x11]  ;;  %v7625_v3 = vunpack.c.l.b16 %v7447_v54  ;;  %v7626_v2 = vunpack.c.h.b16 %v7447_v54 }
 0x427   :  { %v7438_v35 = vrot.slane %v9987_v47, 5  ;;  %v9997_v47 = vld [vmem:[%s13293_s0 + $0xe0] sm:$0xee] }
 0x429   :  { %v6051_v4 = vpop.f32.mrf.mxu2  ;;  %v7057_v48 = vpop.f32.mrf.mxu0  ;;  %v7439_v12 = vsel %vm11224_vm5, %v10045_v6, %v7438_v35  ;;  %v10051_v35 = vrot.slane %v9997_v47, 9 }
 0x42a   :  { %v6100_v9 = vpop.f32.mrf.mxu3  ;;  %v6052_v63 = vadd.f32 %v6051_v4, %v6003_v26  ;;  %v7106_v15 = vpop.f32.mrf.mxu1  ;;  %v7451_v26 = vsel %vm11224_vm5, %v10048_v50, %v7450_v20  ;;  %v7621_v42 = vunpack.c.l.b16 %v7439_v12  ;;  %v7622_v58 = vunpack.c.h.b16 %v7439_v12 }
 0x42b   :  { %v7107_v11 = vadd.f32 %v7106_v15, %v7057_v48  ;;  %v7627_v21 = vunpack.c.l.b16 %v7451_v26  ;;  %v7628_v13 = vunpack.c.h.b16 %v7451_v26  ;;  %v7466_v20 = vrot.slane %v10000_v28, 5 }
 0x42c   :  { %v6101_v1 = vadd.f32 %v6100_v9, %v6052_v63  ;;  %7941 = vmatmul.bf16.vlgmr.msra.gmra.mxu0 %v7677_v10  ;;  %v7681_v10 = vpack.c.b16 %v7625_v3, %v7621_v42  ;;  %v10053_v28 = vrot.slane %v10001_v0, 9  ;;  %v10009_v0 = vld [vmem:[%s13293_s0 + $0x180] sm:$0xee] }
 0x42d   :  { %7990 = vmatmul.bf16.vlgmr.msra.gmra.mxu1 %v7678_v25  ;;  %v7682_v25 = vpack.c.b16 %v7626_v2, %v7622_v58 }
 0x42e   :  { %v13006_v36 = vadd.f32 %v6101_v1, %v12698_v56  ;;  %8039 = vmatmul.bf16.vlgmr.msra.gmra.mxu2 %v7679_v55  ;;  %v7443_v56 = vsel %vm11224_vm5, %v10046_v14, %v7442_v44  ;;  %v9998_v1 = vld [vmem:[%s13293_s0 + $0xe8] sm:$0xee]  ;;  %v10050_v14 = vrot.slane %v9994_v39, 9  ;;  %v7458_v44 = vrot.slane %v9996_v59, 5  ;;  %v10004_v39 = vld [vmem:[%s13293_s0 + $0x118] sm:$0x11] }
 0x42f   :  { %8088 = vmatmul.bf16.vlgmr.msra.gmra.mxu3 %v7680_v5  ;;  %v7623_v32 = vunpack.c.l.b16 %v7443_v56  ;;  %v7624_v16 = vunpack.c.h.b16 %v7443_v56  ;;  %v10052_v50 = vrot.slane %v9998_v1, 9  ;;  %v10008_v1 = vld [vmem:[%s13293_s0 + $0x138] sm:$0x11] }
 0x431   :  { %v7155_v40 = vpop.f32.mrf.mxu2  ;;  %v7059_v23 = vpop.f32.mrf.mxu0  ;;  %v7683_v55 = vpack.c.b16 %v7627_v21, %v7623_v32  ;;  %v7684_v5 = vpack.c.b16 %v7628_v13, %v7624_v16 }
 0x432   :  { %v7204_v53 = vpop.f32.mrf.mxu3  ;;  %v7156_v60 = vadd.f32 %v7155_v40, %v7107_v11  ;;  %v7108_v41 = vpop.f32.mrf.mxu1  ;;  %v9999_v11 = vld [vmem:[%s13293_s0 + $0xf0] sm:$0x11] }
 0x433   :  { %v7109_v30 = vadd.f32 %v7108_v41, %v7059_v23  ;;  %v7462_v27 = vrot.slane %v9999_v11, 5  ;;  %v10002_v11 = vld [vmem:[%s13293_s0 + $0x108] sm:$0xee] }
 0x434   :  { %v7205_v33 = vadd.f32 %v7204_v53, %v7156_v60 }
 0x435   :  { %v7463_v54 = vsel %vm11224_vm5, %v10051_v35, %v7462_v27 }
 0x436   :  { %v13017_v61 = vadd.f32 %v7205_v33, %v12721_v24  ;;  %v9995_v24 = vld [vmem:[%s13293_s0 + $0xd0] sm:$0x11]  ;;  %v7633_v42 = vunpack.c.l.b16 %v7463_v54  ;;  %v7634_v58 = vunpack.c.h.b16 %v7463_v54 }
 0x437   :  { %v7454_v6 = vrot.slane %v9995_v24, 5  ;;  %v10005_v24 = vld [vmem:[%s13293_s0 + $0x120] sm:$0xee] }
 0x439   :  { %v7157_v4 = vpop.f32.mrf.mxu2  ;;  %v7062_v48 = vpop.f32.mrf.mxu0  ;;  %v7455_v12 = vsel %vm11224_vm5, %v10049_v57, %v7454_v6  ;;  %v10055_v6 = vrot.slane %v10005_v24, 9 }
 0x43a   :  { %v7206_v9 = vpop.f32.mrf.mxu3  ;;  %v7158_v63 = vadd.f32 %v7157_v4, %v7109_v30  ;;  %v7111_v15 = vpop.f32.mrf.mxu1  ;;  %v7467_v30 = vsel %vm11224_vm5, %v10052_v50, %v7466_v20  ;;  %v7629_v33 = vunpack.c.l.b16 %v7455_v12  ;;  %v7630_v3 = vunpack.c.h.b16 %v7455_v12 }
 0x43b   :  { %v7112_v51 = vadd.f32 %v7111_v15, %v7062_v48  ;;  %v7635_v21 = vunpack.c.l.b16 %v7467_v30  ;;  %v7636_v13 = vunpack.c.h.b16 %v7467_v30  ;;  %v7482_v20 = vrot.slane %v10008_v1, 5 }
 0x43c   :  { %v7207_v19 = vadd.f32 %v7206_v9, %v7158_v63  ;;  %7946 = vmatmul.bf16.gmra.mxu0 %v7681_v10  ;;  %v7685_v10 = vpack.c.b16 %v7633_v42, %v7629_v33  ;;  %v10057_v1 = vrot.slane %v10009_v0, 9  ;;  %v10017_v0 = vld [vmem:[%s13293_s0 + $0x1c0] sm:$0xee] }
 0x43d   :  { %7995 = vmatmul.bf16.gmra.mxu1 %v7682_v25  ;;  %v7686_v25 = vpack.c.b16 %v7634_v58, %v7630_v3 }
 0x43e   :  { %v13044_v37 = vadd.f32 %v7207_v19, %v12741_v34  ;;  %8044 = vmatmul.bf16.gmra.mxu2 %v7683_v55  ;;  %v7459_v34 = vsel %vm11224_vm5, %v10050_v14, %v7458_v44  ;;  %v10006_v19 = vld [vmem:[%s13293_s0 + $0x128] sm:$0xee]  ;;  %v10054_v14 = vrot.slane %v10002_v11, 9  ;;  %v7474_v44 = vrot.slane %v10004_v39, 5  ;;  %v10012_v11 = vld [vmem:[%s13293_s0 + $0x198] sm:$0x11] }
 0x43f   :  { %8093 = vmatmul.bf16.gmra.mxu3 %v7684_v5  ;;  %v7631_v2 = vunpack.c.l.b16 %v7459_v34  ;;  %v7632_v16 = vunpack.c.h.b16 %v7459_v34  ;;  %v10056_v50 = vrot.slane %v10006_v19, 9  ;;  %v10016_v19 = vld [vmem:[%s13293_s0 + $0x1b8] sm:$0x11] }
 0x441   :  { %v7160_v40 = vpop.f32.mrf.mxu2  ;;  %v7064_v23 = vpop.f32.mrf.mxu0  ;;  %v7687_v55 = vpack.c.b16 %v7635_v21, %v7631_v2  ;;  %v7688_v5 = vpack.c.b16 %v7636_v13, %v7632_v16 }
 0x442   :  { %v7209_v53 = vpop.f32.mrf.mxu3  ;;  %v7161_v60 = vadd.f32 %v7160_v40, %v7112_v51  ;;  %v7113_v41 = vpop.f32.mrf.mxu1  ;;  %v10007_v51 = vld [vmem:[%s13293_s0 + $0x130] sm:$0x11] }
 0x443   :  { %v7114_v56 = vadd.f32 %v7113_v41, %v7064_v23  ;;  %v7478_v27 = vrot.slane %v10007_v51, 5  ;;  %v10010_v51 = vld [vmem:[%s13293_s0 + $0x188] sm:$0xee] }
 0x444   :  { %v7210_v26 = vadd.f32 %v7209_v53, %v7161_v60 }
 0x445   :  { %v7479_v54 = vsel %vm11224_vm5, %v10055_v6, %v7478_v27 }
 0x446   :  { %v13055_v32 = vadd.f32 %v7210_v26, %v12764_v7  ;;  %v10003_v7 = vld [vmem:[%s13293_s0 + $0x110] sm:$0x11]  ;;  %v7641_v33 = vunpack.c.l.b16 %v7479_v54  ;;  %v7642_v3 = vunpack.c.h.b16 %v7479_v54 }
 0x447   :  { %v7470_v57 = vrot.slane %v10003_v7, 5  ;;  %v10013_v7 = vld [vmem:[%s13293_s0 + $0x1a0] sm:$0xee] }
 0x449   :  { %v7162_v4 = vpop.f32.mrf.mxu2  ;;  %v7067_v48 = vpop.f32.mrf.mxu0  ;;  %v7471_v12 = vsel %vm11224_vm5, %v10053_v28, %v7470_v57  ;;  %v10059_v57 = vrot.slane %v10013_v7, 9 }
 0x44a   :  { %v7211_v9 = vpop.f32.mrf.mxu3  ;;  %v7163_v63 = vadd.f32 %v7162_v4, %v7114_v56  ;;  %v7116_v15 = vpop.f32.mrf.mxu1  ;;  %v7483_v56 = vsel %vm11224_vm5, %v10056_v50, %v7482_v20  ;;  %v7637_v26 = vunpack.c.l.b16 %v7471_v12  ;;  %v7638_v42 = vunpack.c.h.b16 %v7471_v12 }
 0x44b   :  { %v7117_v47 = vadd.f32 %v7116_v15, %v7067_v48  ;;  %v7643_v21 = vunpack.c.l.b16 %v7483_v56  ;;  %v7644_v13 = vunpack.c.h.b16 %v7483_v56  ;;  %v7498_v20 = vrot.slane %v10016_v19, 5 }
 0x44c   :  { %v7212_v59 = vadd.f32 %v7211_v9, %v7163_v63  ;;  %7951 = vmatmul.bf16.gmra.mxu0 %v7685_v10  ;;  %v7689_v10 = vpack.c.b16 %v7641_v33, %v7637_v26  ;;  %v10061_v19 = vrot.slane %v10017_v0, 9  ;;  %v10025_v0 = vld [vmem:[%s13293_s0 + $0x200] sm:$0xee] }
 0x44d   :  { %8000 = vmatmul.bf16.gmra.mxu1 %v7686_v25  ;;  %v7690_v25 = vpack.c.b16 %v7642_v3, %v7638_v42 }
 0x44e   :  { %v13082_v35 = vadd.f32 %v7212_v59, %v12787_v38  ;;  %8049 = vmatmul.bf16.gmra.mxu2 %v7687_v55  ;;  %v7475_v38 = vsel %vm11224_vm5, %v10054_v14, %v7474_v44  ;;  %v10014_v59 = vld [vmem:[%s13293_s0 + $0x1a8] sm:$0xee]  ;;  %v10058_v14 = vrot.slane %v10010_v51, 9  ;;  %v7490_v44 = vrot.slane %v10012_v11, 5  ;;  %v10020_v51 = vld [vmem:[%s13293_s0 + $0x1d8] sm:$0x11] }
 0x44f   :  { %8098 = vmatmul.bf16.gmra.mxu3 %v7688_v5  ;;  %v7639_v58 = vunpack.c.l.b16 %v7475_v38  ;;  %v7640_v16 = vunpack.c.h.b16 %v7475_v38  ;;  %v10060_v50 = vrot.slane %v10014_v59, 9  ;;  %v10024_v59 = vld [vmem:[%s13293_s0 + $0x1f8] sm:$0x11] }
 0x451   :  { %v7165_v40 = vpop.f32.mrf.mxu2  ;;  %v7069_v23 = vpop.f32.mrf.mxu0  ;;  %v7691_v55 = vpack.c.b16 %v7643_v21, %v7639_v58  ;;  %v7692_v5 = vpack.c.b16 %v7644_v13, %v7640_v16 }
 0x452   :  { %v7214_v53 = vpop.f32.mrf.mxu3  ;;  %v7166_v60 = vadd.f32 %v7165_v40, %v7117_v47  ;;  %v7118_v41 = vpop.f32.mrf.mxu1  ;;  %v10015_v47 = vld [vmem:[%s13293_s0 + $0x1b0] sm:$0x11] }
 0x453   :  { %v7119_v34 = vadd.f32 %v7118_v41, %v7069_v23  ;;  %v7494_v27 = vrot.slane %v10015_v47, 5  ;;  %v10018_v47 = vld [vmem:[%s13293_s0 + $0x1c8] sm:$0xee] }
 0x454   :  { %v7215_v30 = vadd.f32 %v7214_v53, %v7166_v60 }
 0x455   :  { %v7495_v54 = vsel %vm11224_vm5, %v10059_v57, %v7494_v27 }
 0x456   :  { %v13093_v2 = vadd.f32 %v7215_v30, %v12810_v17  ;;  %v10011_v17 = vld [vmem:[%s13293_s0 + $0x190] sm:$0x11]  ;;  %v7649_v26 = vunpack.c.l.b16 %v7495_v54  ;;  %v7650_v42 = vunpack.c.h.b16 %v7495_v54 }
 0x457   :  { %v7486_v28 = vrot.slane %v10011_v17, 5  ;;  %v10021_v17 = vld [vmem:[%s13293_s0 + $0x1e0] sm:$0xee] }
 0x459   :  { %v7167_v4 = vpop.f32.mrf.mxu2  ;;  %v7072_v48 = vpop.f32.mrf.mxu0  ;;  %v7487_v12 = vsel %vm11224_vm5, %v10057_v1, %v7486_v28  ;;  %v10063_v28 = vrot.slane %v10021_v17, 9 }
 0x45a   :  { %v7216_v9 = vpop.f32.mrf.mxu3  ;;  %v7168_v63 = vadd.f32 %v7167_v4, %v7119_v34  ;;  %v7121_v15 = vpop.f32.mrf.mxu1  ;;  %v7499_v34 = vsel %vm11224_vm5, %v10060_v50, %v7498_v20  ;;  %v7645_v30 = vunpack.c.l.b16 %v7487_v12  ;;  %v7646_v33 = vunpack.c.h.b16 %v7487_v12 }
 0x45b   :  { %v7122_v24 = vadd.f32 %v7121_v15, %v7072_v48  ;;  %v7651_v21 = vunpack.c.l.b16 %v7499_v34  ;;  %v7652_v13 = vunpack.c.h.b16 %v7499_v34  ;;  %v7514_v20 = vrot.slane %v10024_v59, 5 }
 0x45c   :  { %v7217_v39 = vadd.f32 %v7216_v9, %v7168_v63  ;;  %7956 = vmatmul.bf16.gmra.mxu0 %v7689_v10  ;;  %v7693_v10 = vpack.c.b16 %v7649_v26, %v7645_v30  ;;  %v10065_v59 = vrot.slane %v10025_v0, 9  ;;  %v10033_v0 = vld [vmem:[%s13293_s0 + $0x240] sm:$0xee] }
 0x45d   :  { %8005 = vmatmul.bf16.gmra.mxu1 %v7690_v25  ;;  %v7694_v25 = vpack.c.b16 %v7650_v42, %v7646_v33 }
 0x45e   :  { %v13120_v6 = vadd.f32 %v7217_v39, %v12829_v22  ;;  %8054 = vmatmul.bf16.gmra.mxu2 %v7691_v55  ;;  %v7491_v22 = vsel %vm11224_vm5, %v10058_v14, %v7490_v44  ;;  %v10022_v39 = vld [vmem:[%s13293_s0 + $0x1e8] sm:$0xee]  ;;  %v10062_v14 = vrot.slane %v10018_v47, 9  ;;  %v7506_v44 = vrot.slane %v10020_v51, 5  ;;  %v10028_v47 = vld [vmem:[%s13293_s0 + $0x218] sm:$0x11] }
 0x45f   :  { %8103 = vmatmul.bf16.gmra.mxu3 %v7692_v5  ;;  %v7647_v3 = vunpack.c.l.b16 %v7491_v22  ;;  %v7648_v16 = vunpack.c.h.b16 %v7491_v22  ;;  %v10064_v50 = vrot.slane %v10022_v39, 9  ;;  %v10032_v39 = vld [vmem:[%s13293_s0 + $0x238] sm:$0x11] }
 0x461   :  { %v7170_v40 = vpop.f32.mrf.mxu2  ;;  %v7074_v23 = vpop.f32.mrf.mxu0  ;;  %v7695_v55 = vpack.c.b16 %v7651_v21, %v7647_v3  ;;  %v7696_v5 = vpack.c.b16 %v7652_v13, %v7648_v16 }
 0x462   :  { %v7219_v53 = vpop.f32.mrf.mxu3  ;;  %v7171_v60 = vadd.f32 %v7170_v40, %v7122_v24  ;;  %v7123_v41 = vpop.f32.mrf.mxu1  ;;  %v10023_v24 = vld [vmem:[%s13293_s0 + $0x1f0] sm:$0x11] }
 0x463   :  { %v7124_v38 = vadd.f32 %v7123_v41, %v7074_v23  ;;  %v7510_v27 = vrot.slane %v10023_v24, 5  ;;  %v10026_v24 = vld [vmem:[%s13293_s0 + $0x208] sm:$0xee] }
 0x464   :  { %v7220_v56 = vadd.f32 %v7219_v53, %v7171_v60 }
 0x465   :  { %v7511_v54 = vsel %vm11224_vm5, %v10063_v28, %v7510_v27 }
 0x466   :  { %v13131_v58 = vadd.f32 %v7220_v56, %v12848_v49  ;;  %v10019_v49 = vld [vmem:[%s13293_s0 + $0x1d0] sm:$0x11]  ;;  %v7657_v30 = vunpack.c.l.b16 %v7511_v54  ;;  %v7658_v33 = vunpack.c.h.b16 %v7511_v54 }
 0x467   :  { %v7502_v1 = vrot.slane %v10019_v49, 5  ;;  %v10029_v49 = vld [vmem:[%s13293_s0 + $0x220] sm:$0xee] }
 0x469   :  { %v7172_v4 = vpop.f32.mrf.mxu2  ;;  %v7077_v48 = vpop.f32.mrf.mxu0  ;;  %v7503_v12 = vsel %vm11224_vm5, %v10061_v19, %v7502_v1  ;;  %v10067_v1 = vrot.slane %v10029_v49, 9 }
 0x46a   :  { %v7221_v9 = vpop.f32.mrf.mxu3  ;;  %v7173_v63 = vadd.f32 %v7172_v4, %v7124_v38  ;;  %v7126_v15 = vpop.f32.mrf.mxu1  ;;  %v7515_v38 = vsel %vm11224_vm5, %v10064_v50, %v7514_v20  ;;  %v7653_v56 = vunpack.c.l.b16 %v7503_v12  ;;  %v7654_v26 = vunpack.c.h.b16 %v7503_v12 }
 0x46b   :  { %v7127_v7 = vadd.f32 %v7126_v15, %v7077_v48  ;;  %v7659_v21 = vunpack.c.l.b16 %v7515_v38  ;;  %v7660_v13 = vunpack.c.h.b16 %v7515_v38  ;;  %v7530_v20 = vrot.slane %v10032_v39, 5 }
 0x46c   :  { %v7222_v11 = vadd.f32 %v7221_v9, %v7173_v63  ;;  %7961 = vmatmul.bf16.gmra.mxu0 %v7693_v10  ;;  %v7697_v10 = vpack.c.b16 %v7657_v30, %v7653_v56  ;;  %v10069_v39 = vrot.slane %v10033_v0, 9 }
 0x46d   :  { %8010 = vmatmul.bf16.gmra.mxu1 %v7694_v25  ;;  %v7698_v25 = vpack.c.b16 %v7658_v33, %v7654_v26 }
 0x46e   :  { %v13158_v57 = vadd.f32 %v7222_v11, %v12865_v31  ;;  %8059 = vmatmul.bf16.gmra.mxu2 %v7695_v55  ;;  %v7507_v31 = vsel %vm11224_vm5, %v10062_v14, %v7506_v44  ;;  %v10030_v11 = vld [vmem:[%s13293_s0 + $0x228] sm:$0xee]  ;;  %v10066_v14 = vrot.slane %v10026_v24, 9  ;;  %v7522_v44 = vrot.slane %v10028_v47, 5  ;;  %v10036_v24 = vld [vmem:[%s13293_s0 + $0x258] sm:$0x11] }
 0x46f   :  { %8108 = vmatmul.bf16.gmra.mxu3 %v7696_v5  ;;  %v7655_v42 = vunpack.c.l.b16 %v7507_v31  ;;  %v7656_v16 = vunpack.c.h.b16 %v7507_v31  ;;  %v10068_v50 = vrot.slane %v10030_v11, 9  ;;  %v10040_v11 = vld [vmem:[%s13293_s0 + $0x278] sm:$0x11] }
 0x471   :  { %v7175_v40 = vpop.f32.mrf.mxu2  ;;  %v7079_v23 = vpop.f32.mrf.mxu0  ;;  %v7699_v55 = vpack.c.b16 %v7659_v21, %v7655_v42  ;;  %v7700_v5 = vpack.c.b16 %v7660_v13, %v7656_v16 }
 0x472   :  { %v7224_v53 = vpop.f32.mrf.mxu3  ;;  %v7176_v60 = vadd.f32 %v7175_v40, %v7127_v7  ;;  %v7128_v41 = vpop.f32.mrf.mxu1  ;;  %v10031_v7 = vld [vmem:[%s13293_s0 + $0x230] sm:$0x11] }
 0x473   :  { %v7129_v22 = vadd.f32 %v7128_v41, %v7079_v23  ;;  %v7526_v27 = vrot.slane %v10031_v7, 5  ;;  %v10034_v7 = vld [vmem:[%s13293_s0 + $0x248] sm:$0xee] }
 0x474   :  { %v7225_v34 = vadd.f32 %v7224_v53, %v7176_v60 }
 0x475   :  { %v7527_v54 = vsel %vm11224_vm5, %v10067_v1, %v7526_v27 }
 0x476   :  { %v13169_v3 = vadd.f32 %v7225_v34, %v12886_v62  ;;  %v10027_v62 = vld [vmem:[%s13293_s0 + $0x210] sm:$0x11]  ;;  %v7665_v56 = vunpack.c.l.b16 %v7527_v54  ;;  %v7666_v26 = vunpack.c.h.b16 %v7527_v54 }
 0x477   :  { %v7518_v19 = vrot.slane %v10027_v62, 5  ;;  %v10037_v62 = vld [vmem:[%s13293_s0 + $0x260] sm:$0xee] }
 0x479   :  { %v7177_v4 = vpop.f32.mrf.mxu2  ;;  %v7082_v48 = vpop.f32.mrf.mxu0  ;;  %v7519_v12 = vsel %vm11224_vm5, %v10065_v59, %v7518_v19  ;;  %v10071_v19 = vrot.slane %v10037_v62, 9 }
 0x47a   :  { %v7226_v9 = vpop.f32.mrf.mxu3  ;;  %v7178_v63 = vadd.f32 %v7177_v4, %v7129_v22  ;;  %v7131_v15 = vpop.f32.mrf.mxu1  ;;  %v7531_v22 = vsel %vm11224_vm5, %v10068_v50, %v7530_v20  ;;  %v7661_v34 = vunpack.c.l.b16 %v7519_v12  ;;  %v7662_v30 = vunpack.c.h.b16 %v7519_v12 }
 0x47b   :  { %v7132_v17 = vadd.f32 %v7131_v15, %v7082_v48  ;;  %v7667_v21 = vunpack.c.l.b16 %v7531_v22  ;;  %v7668_v13 = vunpack.c.h.b16 %v7531_v22  ;;  %v7546_v20 = vrot.slane %v10040_v11, 5 }
 0x47c   :  { %v7227_v51 = vadd.f32 %v7226_v9, %v7178_v63  ;;  %7966 = vmatmul.bf16.gmra.mxu0 %v7697_v10  ;;  %v7701_v10 = vpack.c.b16 %v7665_v56, %v7661_v34 }
 0x47d   :  { %8015 = vmatmul.bf16.gmra.mxu1 %v7698_v25  ;;  %v7702_v25 = vpack.c.b16 %v7666_v26, %v7662_v30 }
 0x47e   :  { %v13196_v28 = vadd.f32 %v7227_v51, %v12899_v29  ;;  %8064 = vmatmul.bf16.gmra.mxu2 %v7699_v55  ;;  %v7523_v29 = vsel %vm11224_vm5, %v10066_v14, %v7522_v44  ;;  %v10038_v51 = vld [vmem:[%s13293_s0 + $0x268] sm:$0xee]  ;;  %v10070_v14 = vrot.slane %v10034_v7, 9  ;;  %v7538_v44 = vrot.slane %v10036_v24, 5 }
 0x47f   :  { %8113 = vmatmul.bf16.gmra.mxu3 %v7700_v5  ;;  %v7663_v33 = vunpack.c.l.b16 %v7523_v29  ;;  %v7664_v16 = vunpack.c.h.b16 %v7523_v29  ;;  %v10072_v50 = vrot.slane %v10038_v51, 9 }
 0x481   :  { %v7180_v40 = vpop.f32.mrf.mxu2  ;;  %v7084_v23 = vpop.f32.mrf.mxu0  ;;  %v7703_v55 = vpack.c.b16 %v7667_v21, %v7663_v33  ;;  %v7704_v5 = vpack.c.b16 %v7668_v13, %v7664_v16 }
 0x482   :  { %v7229_v53 = vpop.f32.mrf.mxu3  ;;  %v7181_v60 = vadd.f32 %v7180_v40, %v7132_v17  ;;  %v7133_v41 = vpop.f32.mrf.mxu1  ;;  %v10039_v17 = vld [vmem:[%s13293_s0 + $0x270] sm:$0x11] }
 0x483   :  { %v7134_v31 = vadd.f32 %v7133_v41, %v7084_v23  ;;  %v7542_v27 = vrot.slane %v10039_v17, 5 }
 0x484   :  { %v7230_v38 = vadd.f32 %v7229_v53, %v7181_v60 }
 0x485   :  { %v7543_v54 = vsel %vm11224_vm5, %v10071_v19, %v7542_v27 }
 0x486   :  { %v13207_v42 = vadd.f32 %v7230_v38, %v12921_v46  ;;  %v10035_v46 = vld [vmem:[%s13293_s0 + $0x250] sm:$0x11]  ;;  %v7673_v34 = vunpack.c.l.b16 %v7543_v54  ;;  %v7674_v30 = vunpack.c.h.b16 %v7543_v54  ;;  %s10675_s0 = smov [#allocation8]  }
 0x487   :  { %v7534_v59 = vrot.slane %v10035_v46, 5  ;;  %s8233_s16 = sshll.u32 %s10675_s0, 4  ;;  %s8234_s16 = int_to_ptr.vmem [resolvable:$true] %s8233_s16 }
 0x489   :  { %v7182_v4 = vpop.f32.mrf.mxu2  ;;  %v7087_v48 = vpop.f32.mrf.mxu0  ;;  %v7535_v12 = vsel %vm11224_vm5, %v10069_v39, %v7534_v59 }
 0x48a   :  { %v7231_v9 = vpop.f32.mrf.mxu3  ;;  %v7183_v63 = vadd.f32 %v7182_v4, %v7134_v31  ;;  %v7136_v15 = vpop.f32.mrf.mxu1  ;;  %v7547_v31 = vsel %vm11224_vm5, %v10072_v50, %v7546_v20  ;;  %v7669_v38 = vunpack.c.l.b16 %v7535_v12  ;;  %v7670_v56 = vunpack.c.h.b16 %v7535_v12 }
 0x48b   :  { %v7137_v49 = vadd.f32 %v7136_v15, %v7087_v48  ;;  %v7675_v21 = vunpack.c.l.b16 %v7547_v31  ;;  %v7676_v13 = vunpack.c.h.b16 %v7547_v31 }
 0x48c   :  { %v7232_v47 = vadd.f32 %v7231_v9, %v7183_v63  ;;  %7971 = vmatmul.bf16.gmra.mxu0 %v7701_v10  ;;  %v7705_v10 = vpack.c.b16 %v7673_v34, %v7669_v38 }
 0x48d   :  { %8020 = vmatmul.bf16.gmra.mxu1 %v7702_v25  ;;  %v7706_v25 = vpack.c.b16 %v7674_v30, %v7670_v56 }
 0x48e   :  { %v13234_v1 = vadd.f32 %v7232_v47, %v12930_v43  ;;  %8069 = vmatmul.bf16.gmra.mxu2 %v7703_v55  ;;  %v7539_v43 = vsel %vm11224_vm5, %v10070_v14, %v7538_v44 }
 0x48f   :  { %8118 = vmatmul.bf16.gmra.mxu3 %v7704_v5  ;;  %v7671_v26 = vunpack.c.l.b16 %v7539_v43  ;;  %v7672_v16 = vunpack.c.h.b16 %v7539_v43 }
 0x491   :  { %v7185_v40 = vpop.f32.mrf.mxu2  ;;  %v7089_v23 = vpop.f32.mrf.mxu0  ;;  %v7707_v15 = vpack.c.b16 %v7675_v21, %v7671_v26  ;;  %v7708_v55 = vpack.c.b16 %v7676_v13, %v7672_v16 }
 0x492   :  { %v7234_v53 = vpop.f32.mrf.mxu3  ;;  %v7186_v60 = vadd.f32 %v7185_v40, %v7137_v49  ;;  %v7138_v41 = vpop.f32.mrf.mxu1 }
 0x493   :  { %v7139_v29 = vadd.f32 %v7138_v41, %v7089_v23  ;;  %v13256_v23 = vld [vmem:[#allocation6] ss:$0 sm:$0xff] }
 0x494   :  { %v7235_v22 = vadd.f32 %v7234_v53, %v7186_v60 }
 0x496   :  { %v13245_v33 = vadd.f32 %v7235_v22, %v12941_v18 }
 0x499   :  { %v7187_v4 = vpop.f32.mrf.mxu2  ;;  %v7092_v48 = vpop.f32.mrf.mxu0 }
 0x49a   :  { %v7236_v9 = vpop.f32.mrf.mxu3  ;;  %v7188_v63 = vadd.f32 %v7187_v4, %v7139_v29  ;;  %v7141_v52 = vpop.f32.mrf.mxu1 }
 0x49b   :  { %v7142_v5 = vadd.f32 %v7141_v52, %v7092_v48 }
 0x49c   :  { %v7237_v0 = vadd.f32 %v7236_v9, %v7188_v63  ;;  %7976 = vmatmul.bf16.gmra.mxu0 %v7705_v10 }
 0x49d   :  { %8025 = vmatmul.bf16.gmra.mxu1 %v7706_v25 }
 0x49e   :  { %v13248_v46 = vadd.f32 %v7237_v0, %v12968_v8  ;;  %8074 = vmatmul.bf16.gmra.mxu2 %v7707_v15 }
 0x49f   :  { %8123 = vmatmul.bf16.gmra.mxu3 %v7708_v55 }
 0x4a1   :  { %v7190_v18 = vpop.f32.mrf.mxu2  ;;  %v7094_v17 = vpop.f32.mrf.mxu0 }
 0x4a2   :  { %v7239_v62 = vpop.f32.mrf.mxu3  ;;  %v7191_v49 = vadd.f32 %v7190_v18, %v7142_v5  ;;  %v7143_v7 = vpop.f32.mrf.mxu1 }
 0x4a3   :  { %v7144_v24 = vadd.f32 %v7143_v7, %v7094_v17 }
 0x4a4   :  { %v7240_v47 = vadd.f32 %v7239_v62, %v7191_v49 }
 0x4a6   :  { %v13251_v51 = vadd.f32 %v7240_v47, %v12979_v45 }
 0x4a9   :  { %v7192_v11 = vpop.f32.mrf.mxu2  ;;  %v7942_v19 = vpop.f32.mrf.mxu0 }
 0x4aa   :  { %v7241_v39 = vpop.f32.mrf.mxu3  ;;  %v7193_v59 = vadd.f32 %v7192_v11, %v7144_v24  ;;  %v7991_v27 = vpop.f32.mrf.mxu1 }
 0x4ab   :  { %v7992_v44 = vadd.f32 %v7991_v27, %v7942_v19 }
 0x4ac   :  { %v7242_v14 = vadd.f32 %v7241_v39, %v7193_v59 }
 0x4ae   :  { %v13254_v8 = vadd.f32 %v7242_v14, %v13006_v36 }
 0x4b1   :  { %v8040_v50 = vpop.f32.mrf.mxu2  ;;  %v7944_v53 = vpop.f32.mrf.mxu0 }
 0x4b2   :  { %v8089_v20 = vpop.f32.mrf.mxu3  ;;  %v8041_v40 = vadd.f32 %v8040_v50, %v7992_v44  ;;  %v7993_v12 = vpop.f32.mrf.mxu1 }
 0x4b3   :  { %v7994_v54 = vadd.f32 %v7993_v12, %v7944_v53 }
 0x4b4   :  { %v8090_v60 = vadd.f32 %v8089_v20, %v8041_v40 }
 0x4b6   :  { %v8145_v45 = vadd.f32 %v8090_v60, %v13017_v61 }
 0x4b8   :  { %v8197_v41 = vadd.f32 %v13256_v23, %v8145_v45 }
 0x4b9   :  { %v8042_v43 = vpop.f32.mrf.mxu2  ;;  %v7947_v36 = vpop.f32.mrf.mxu0 }
 0x4ba   :  { %v8091_v29 = vpop.f32.mrf.mxu3  ;;  %8213 = vst [vmem:[#allocation8] sm:$0xff] %v8197_v41  ;;  %v8043_v31 = vadd.f32 %v8042_v43, %v7994_v54  ;;  %v7996_v22 = vpop.f32.mrf.mxu1 }
 0x4bb   :  { %v7997_v56 = vadd.f32 %v7996_v22, %v7947_v36 }
 0x4bc   :  { %v8092_v38 = vadd.f32 %v8091_v29, %v8043_v31 }
 0x4be   :  { %v8146_v34 = vadd.f32 %v8092_v38, %v13044_v37 }
 0x4c0   :  { %v8198_v30 = vadd.f32 %v13256_v23, %v8146_v34 }
 0x4c1   :  { %v8045_v26 = vpop.f32.mrf.mxu2  ;;  %v7949_v61 = vpop.f32.mrf.mxu0 }
 0x4c2   :  { %v8094_v21 = vpop.f32.mrf.mxu3  ;;  %8214 = vst [vmem:[#allocation8 + $0x8] sm:$0xff] %v8198_v30  ;;  %v8046_v16 = vadd.f32 %v8045_v26, %v7997_v56  ;;  %v7998_v13 = vpop.f32.mrf.mxu1 }
 0x4c3   :  { %v7999_v25 = vadd.f32 %v7998_v13, %v7949_v61 }
 0x4c4   :  { %v8095_v4 = vadd.f32 %v8094_v21, %v8046_v16 }
 0x4c6   :  { %v8147_v9 = vadd.f32 %v8095_v4, %v13055_v32 }
 0x4c8   :  { %v8199_v10 = vadd.f32 %v13256_v23, %v8147_v9 }
 0x4c9   :  { %v8047_v63 = vpop.f32.mrf.mxu2  ;;  %v7952_v37 = vpop.f32.mrf.mxu0 }
 0x4ca   :  { %v8096_v48 = vpop.f32.mrf.mxu3  ;;  %8215 = vst [vmem:[#allocation8 + $0x10] sm:$0xff] %v8199_v10  ;;  %v8048_v52 = vadd.f32 %v8047_v63, %v7999_v25  ;;  %v8001_v15 = vpop.f32.mrf.mxu1 }
 0x4cb   :  { %v8002_v0 = vadd.f32 %v8001_v15, %v7952_v37 }
 0x4cc   :  { %v8097_v55 = vadd.f32 %v8096_v48, %v8048_v52 }
 0x4ce   :  { %v8148_v5 = vadd.f32 %v8097_v55, %v13082_v35 }
 0x4d0   :  { %v8200_v18 = vadd.f32 %v13256_v23, %v8148_v5 }
 0x4d1   :  { %v8050_v62 = vpop.f32.mrf.mxu2  ;;  %v7954_v32 = vpop.f32.mrf.mxu0 }
 0x4d2   :  { %v8099_v49 = vpop.f32.mrf.mxu3  ;;  %8216 = vst [vmem:[#allocation8 + $0x18] sm:$0xff] %v8200_v18  ;;  %v8051_v17 = vadd.f32 %v8050_v62, %v8002_v0  ;;  %v8003_v7 = vpop.f32.mrf.mxu1 }
 0x4d3   :  { %v8004_v39 = vadd.f32 %v8003_v7, %v7954_v32 }
 0x4d4   :  { %v8100_v24 = vadd.f32 %v8099_v49, %v8051_v17 }
 0x4d6   :  { %v8149_v47 = vadd.f32 %v8100_v24, %v13093_v2 }
 0x4d8   :  { %v8201_v11 = vadd.f32 %v13256_v23, %v8149_v47 }
 0x4d9   :  { %v8052_v59 = vpop.f32.mrf.mxu2  ;;  %v7957_v35 = vpop.f32.mrf.mxu0 }
 0x4da   :  { %v8101_v19 = vpop.f32.mrf.mxu3  ;;  %8217 = vst [vmem:[#allocation8 + $0x20] sm:$0xff] %v8201_v11  ;;  %v8053_v27 = vadd.f32 %v8052_v59, %v8004_v39  ;;  %v8006_v14 = vpop.f32.mrf.mxu1 }
 0x4db   :  { %v8007_v20 = vadd.f32 %v8006_v14, %v7957_v35 }
 0x4dc   :  { %v8102_v44 = vadd.f32 %v8101_v19, %v8053_v27 }
 0x4de   :  { %v8150_v50 = vadd.f32 %v8102_v44, %v13120_v6 }
 0x4e0   :  { %v8202_v40 = vadd.f32 %v13256_v23, %v8150_v50 }
 0x4e1   :  { %v8055_v53 = vpop.f32.mrf.mxu2  ;;  %v7959_v2 = vpop.f32.mrf.mxu0 }
 0x4e2   :  { %v8104_v12 = vpop.f32.mrf.mxu3  ;;  %8218 = vst [vmem:[#allocation8 + $0x28] sm:$0xff] %v8202_v40  ;;  %v8056_v60 = vadd.f32 %v8055_v53, %v8007_v20  ;;  %v8008_v45 = vpop.f32.mrf.mxu1 }
 0x4e3   :  { %v8009_v29 = vadd.f32 %v8008_v45, %v7959_v2 }
 0x4e4   :  { %v8105_v41 = vadd.f32 %v8104_v12, %v8056_v60 }
 0x4e6   :  { %v8151_v54 = vadd.f32 %v8105_v41, %v13131_v58 }
 0x4e8   :  { %v8203_v43 = vadd.f32 %v13256_v23, %v8151_v54 }
 0x4e9   :  { %v8057_v31 = vpop.f32.mrf.mxu2  ;;  %v7962_v6 = vpop.f32.mrf.mxu0 }
 0x4ea   :  { %v8106_v36 = vpop.f32.mrf.mxu3  ;;  %8219 = vst [vmem:[#allocation8 + $0x30] sm:$0xff] %v8203_v43  ;;  %v8058_v22 = vadd.f32 %v8057_v31, %v8009_v29  ;;  %v8011_v38 = vpop.f32.mrf.mxu1 }
 0x4eb   :  { %v8012_v30 = vadd.f32 %v8011_v38, %v7962_v6 }
 0x4ec   :  { %v8107_v34 = vadd.f32 %v8106_v36, %v8058_v22 }
 0x4ee   :  { %v8152_v56 = vadd.f32 %v8107_v34, %v13158_v57 }
 0x4f0   :  { %v8204_v26 = vadd.f32 %v13256_v23, %v8152_v56 }
 0x4f1   :  { %v8060_v21 = vpop.f32.mrf.mxu2  ;;  %v7964_v58 = vpop.f32.mrf.mxu0 }
 0x4f2   :  { %v8109_v16 = vpop.f32.mrf.mxu3  ;;  %8220 = vst [vmem:[#allocation8 + $0x38] sm:$0xff] %v8204_v26  ;;  %v8061_v61 = vadd.f32 %v8060_v21, %v8012_v30  ;;  %v8013_v13 = vpop.f32.mrf.mxu1 }
 0x4f3   :  { %v8014_v25 = vadd.f32 %v8013_v13, %v7964_v58 }
 0x4f4   :  { %v8110_v4 = vadd.f32 %v8109_v16, %v8061_v61 }
 0x4f6   :  { %v8153_v9 = vadd.f32 %v8110_v4, %v13169_v3 }
 0x4f8   :  { %v8205_v10 = vadd.f32 %v13256_v23, %v8153_v9 }
 0x4f9   :  { %v8062_v63 = vpop.f32.mrf.mxu2  ;;  %v7967_v57 = vpop.f32.mrf.mxu0 }
 0x4fa   :  { %v8111_v48 = vpop.f32.mrf.mxu3  ;;  %8221 = vst [vmem:[#allocation8 + $0x40] sm:$0xff] %v8205_v10  ;;  %v8063_v52 = vadd.f32 %v8062_v63, %v8014_v25  ;;  %v8016_v37 = vpop.f32.mrf.mxu1 }
 0x4fb   :  { %v8017_v5 = vadd.f32 %v8016_v37, %v7967_v57 }
 0x4fc   :  { %v8112_v15 = vadd.f32 %v8111_v48, %v8063_v52 }
 0x4fe   :  { %v8154_v55 = vadd.f32 %v8112_v15, %v13196_v28 }
 0x500   :  { %v8206_v0 = vadd.f32 %v13256_v23, %v8154_v55 }
 0x501   :  { %v8065_v18 = vpop.f32.mrf.mxu2  ;;  %v7969_v3 = vpop.f32.mrf.mxu0 }
 0x502   :  { %v8114_v62 = vpop.f32.mrf.mxu3  ;;  %8222 = vst [vmem:[#allocation8 + $0x48] sm:$0xff] %v8206_v0  ;;  %v8066_v49 = vadd.f32 %v8065_v18, %v8017_v5  ;;  %v8018_v17 = vpop.f32.mrf.mxu1 }
 0x503   :  { %v8019_v47 = vadd.f32 %v8018_v17, %v7969_v3 }
 0x504   :  { %v8115_v32 = vadd.f32 %v8114_v62, %v8066_v49 }
 0x506   :  { %v8155_v7 = vadd.f32 %v8115_v32, %v13207_v42 }
 0x508   :  { %v8207_v24 = vadd.f32 %v13256_v23, %v8155_v7 }
 0x509   :  { %v8067_v11 = vpop.f32.mrf.mxu2  ;;  %v7972_v28 = vpop.f32.mrf.mxu0 }
 0x50a   :  { %v8116_v39 = vpop.f32.mrf.mxu3  ;;  %8223 = vst [vmem:[#allocation8 + $0x50] sm:$0xff] %v8207_v24  ;;  %v8068_v59 = vadd.f32 %v8067_v11, %v8019_v47  ;;  %v8021_v19 = vpop.f32.mrf.mxu1 }
 0x50b   :  { %v8022_v14 = vadd.f32 %v8021_v19, %v7972_v28 }
 0x50c   :  { %v8117_v27 = vadd.f32 %v8116_v39, %v8068_v59 }
 0x50e   :  { %v8156_v35 = vadd.f32 %v8117_v27, %v13234_v1 }
 0x510   :  { %v8208_v44 = vadd.f32 %v13256_v23, %v8156_v35 }
 0x511   :  { %v8070_v50 = vpop.f32.mrf.mxu2  ;;  %v7974_v42 = vpop.f32.mrf.mxu0 }
 0x512   :  { %v8119_v20 = vpop.f32.mrf.mxu3  ;;  %8224 = vst [vmem:[#allocation8 + $0x58] sm:$0xff] %v8208_v44  ;;  %v8071_v40 = vadd.f32 %v8070_v50, %v8022_v14  ;;  %v8023_v53 = vpop.f32.mrf.mxu1 }
 0x513   :  { %v8024_v45 = vadd.f32 %v8023_v53, %v7974_v42 }
 0x514   :  { %v8120_v12 = vadd.f32 %v8119_v20, %v8071_v40 }
 0x516   :  { %v8157_v60 = vadd.f32 %v8120_v12, %v13245_v33 }
 0x518   :  { %v8209_v2 = vadd.f32 %v13256_v23, %v8157_v60 }
 0x519   :  { %v8072_v41 = vpop.f32.mrf.mxu2  ;;  %v7977_v1 = vpop.f32.mrf.mxu0 }
 0x51a   :  { %v8121_v54 = vpop.f32.mrf.mxu3  ;;  %8225 = vst [vmem:[#allocation8 + $0x60] sm:$0xff] %v8209_v2  ;;  %v8073_v43 = vadd.f32 %v8072_v41, %v8024_v45  ;;  %v8026_v29 = vpop.f32.mrf.mxu1 }
 0x51b   :  { %v8027_v22 = vadd.f32 %v8026_v29, %v7977_v1 }
 0x51c   :  { %v8122_v31 = vadd.f32 %v8121_v54, %v8073_v43 }
 0x51e   :  { %v8158_v36 = vadd.f32 %v8122_v31, %v13248_v46 }
 0x520   :  { %v8210_v6 = vadd.f32 %v13256_v23, %v8158_v36 }
 0x521   :  { %v8075_v38 = vpop.f32.mrf.mxu2  ;;  %v7979_v30 = vpop.f32.mrf.mxu0 }
 0x522   :  { %v8124_v34 = vpop.f32.mrf.mxu3  ;;  %8226 = vst [vmem:[#allocation8 + $0x68] sm:$0xff] %v8210_v6  ;;  %v8076_v56 = vadd.f32 %v8075_v38, %v8027_v22  ;;  %v8028_v26 = vpop.f32.mrf.mxu1 }
 0x523   :  { %v8029_v61 = vadd.f32 %v8028_v26, %v7979_v30 }
 0x524   :  { %v8125_v33 = vadd.f32 %v8124_v34, %v8076_v56 }
 0x526   :  { %v8159_v21 = vadd.f32 %v8125_v33, %v13251_v51 }
 0x528   :  { %v8211_v16 = vadd.f32 %v13256_v23, %v8159_v21 }
 0x529   :  { %v8077_v58 = vpop.f32.mrf.mxu2 }
 0x52a   :  { %8227 = vst [vmem:[#allocation8 + $0x70] sm:$0xff] %v8211_v16  ;;  %v8078_v13 = vadd.f32 %v8077_v58, %v8029_v61  ;;  %v8126_v4 = vpop.f32.mrf.mxu3 }
 0x52c   :  { %v8127_v46 = vadd.f32 %v8126_v4, %v8078_v13 }
 0x52e   :  { %v8160_v9 = vadd.f32 %v8127_v46, %v13254_v8 }
 0x530   :  { %v8212_v51 = vadd.f32 %v13256_v23, %v8160_v9 }
 0x532   :  { %8228 = vst [vmem:[#allocation8 + $0x78] sm:$0xff] %v8212_v51 }
 0x533   :  { %8241 = dma.vmem_to_hbm [thread:$0]  %s8234_s16, 2048, %s8236_s19, [#allocation5], %s10676_s20, %s10676_s20, %s10677_s21  }
 0x534   :  { %10669 = dma.done.wait [#allocation5], 2048  }
 0x535   :  { %10670 = vsyncadd [#allocation5], 4294965248 }
 0x536   :  { %8246 = vsyncpa [#allocation4], 1 }
 0x537   :  { %8247 = vsyncpa [#allocation7], 1 }
 0x538   :  { %8248 = vsyncpa [#allocation5], 1 }

</bundles_post_ra>
